<compile_context>
chip_gen: v6e
topology: v6e:2x2x1
jax: 0.10.0
libtpu: 0.0.40
codegen_flags: <defaults>
</compile_context>

<pallas_src>
import functools
import math

import jax
import jax.numpy as jnp
from jax.experimental import pallas as pl
from jax.experimental.pallas import tpu as pltpu


def _layernorm(x, g, b, eps=1e-5):
    mu = jnp.mean(x, axis=-1, keepdims=True)
    xc = x - mu
    var = jnp.mean(xc * xc, axis=-1, keepdims=True)
    return xc * jax.lax.rsqrt(var + eps) * g + b


# ---------------------------------------------------------------------------
# Single fused kernel: whole Transformer forward.
# ---------------------------------------------------------------------------
def _transformer_kernel(x_ref, t_ref, regmask_ref,
                        wip_ref, bip_ref, reg_ref, wemb_ref, bemb_ref, pe_ref,
                        wqkv_ref, bqkv_ref, wo_ref, bo_ref,
                        g1_ref, b1_ref, w1_ref, bf1_ref, w2_ref, bf2_ref,
                        g2_ref, b2_ref, whead_ref, bhead_ref,
                        o_ref, *, B, S1, Sp, nhead):
    D = wip_ref.shape[1]
    L = wqkv_ref.shape[0]
    BSp = B * Sp
    Dh = D // nhead
    scale = 1.0 / math.sqrt(Dh)

    # ---- stage 1: input projection (+t), reg token, embedding, PE (batch-folded) ----
    xp = (jnp.dot(x_ref[...], wip_ref[...], preferred_element_type=jnp.float32)
          + bip_ref[...] + t_ref[...])                               # (B*Sp, D)
    # Position-0 rows of each batch were fed zeros, so they currently hold bip.
    # Swap in the regression token there:  xc = xp + mask * (reg - bip).
    delta = jnp.broadcast_to(reg_ref[...] - bip_ref[...], (BSp, D))
    mask = jnp.broadcast_to(regmask_ref[...], (BSp, D))
    xc = xp + mask * delta
    xe = jnp.dot(xc, wemb_ref[...], preferred_element_type=jnp.float32) + bemb_ref[...]
    # PE passed once as (Sp, D); replicate across batch (aligned sublane concat, tiny).
    pe_full = jnp.concatenate([pe_ref[...]] * B, axis=0)             # (B*Sp, D)
    h = xe + pe_full

    # Attention key-validity mask: padded positions >= S1 are never attended to.
    key_ok = jax.lax.broadcasted_iota(jnp.int32, (1, Sp, Sp), 2) < S1

    # ---- encoder layers (statically unrolled; weights stay resident in VMEM) ----
    for l in range(L):
        qkv = (jnp.dot(h, wqkv_ref[l], preferred_element_type=jnp.float32)
               + bqkv_ref[l])                                        # (B*Sp, 3D)
        # Sublane-split to (B, Sp, 3D): Sp % 8 == 0 so this is layout-preserving.
        qkv3 = qkv.reshape(B, Sp, 3 * D)
        heads = []
        for hh in range(nhead):                 # tiny static head loop; batched over B
            lo = hh * Dh
            qh = qkv3[:, :, lo:lo + Dh] * scale                      # (B, Sp, Dh)
            kh = qkv3[:, :, D + lo:D + lo + Dh]
            vh = qkv3[:, :, 2 * D + lo:2 * D + lo + Dh]
            s = jnp.einsum('bqd,bkd->bqk', qh, kh,
                           preferred_element_type=jnp.float32)       # (B, Sp, Sp)
            s = jnp.where(key_ok, s, -1e30)
            s = s - jnp.max(s, axis=-1, keepdims=True)
            p = jnp.exp(s)
            p = p * pl.reciprocal(jnp.sum(p, axis=-1, keepdims=True), approx=True)
            heads.append(jnp.einsum('bqk,bkd->bqd', p, vh,
                                    preferred_element_type=jnp.float32))
        attn = jnp.concatenate(heads, axis=-1).reshape(BSp, D)       # (B*Sp, D)
        attn = jnp.dot(attn, wo_ref[l], preferred_element_type=jnp.float32) + bo_ref[l]

        # post-norm residual 1
        h1 = _layernorm(h + attn, g1_ref[l], b1_ref[l])

        # feed-forward (ReLU), batch-folded
        f = jnp.dot(h1, w1_ref[l], preferred_element_type=jnp.float32) + bf1_ref[l]
        f = jnp.maximum(f, 0.0)
        f = jnp.dot(f, w2_ref[l], preferred_element_type=jnp.float32) + bf2_ref[l]

        # post-norm residual 2
        h = _layernorm(h1 + f, g2_ref[l], b2_ref[l])

    # ---- linear head (row 0 of each batch block is extracted by the wrapper) ----
    out = jnp.dot(h, whead_ref[...], preferred_element_type=jnp.float32) + bhead_ref[...]
    o_ref[...] = out.astype(o_ref.dtype)


# ---------------------------------------------------------------------------
# Parameter init (deterministic, in-script).  Per-layer weights are stacked on a
# leading layer axis so the kernel signature is independent of num_layers.
# ---------------------------------------------------------------------------
def init_params(key, input_dim, d_model, nhead, num_layers, num_outputs,
                dim_ff=2048, max_len=64):
    def nrm(k, shape, scale=0.02):
        return scale * jax.random.normal(k, shape, dtype=jnp.float32)

    keys = iter(jax.random.split(key, 4 + 4 * num_layers))

    params = {
        'Wip': nrm(next(keys), (input_dim, d_model)),
        'bip': jnp.zeros((1, d_model), jnp.float32),
        'reg': nrm(next(keys), (1, d_model), scale=1.0),
        'Wemb': nrm(next(keys), (d_model, d_model)),
        'bemb': jnp.zeros((1, d_model), jnp.float32),
        'Whead': nrm(next(keys), (d_model, num_outputs)),
        'bhead': jnp.zeros((1, num_outputs), jnp.float32),
    }

    # sinusoidal positional encoding (same formula as PositionalEncoding)
    position = jnp.arange(max_len, dtype=jnp.float32)[:, None]
    div_term = jnp.exp(jnp.arange(0, d_model, 2, dtype=jnp.float32)
                       * (-math.log(10000.0) / d_model))
    pe = jnp.zeros((max_len, d_model), jnp.float32)
    pe = pe.at[:, 0::2].set(jnp.sin(position * div_term))
    pe = pe.at[:, 1::2].set(jnp.cos(position * div_term))
    params['pe'] = pe

    wqkv, wo, w1, w2 = [], [], [], []
    for _ in range(num_layers):
        wqkv.append(nrm(next(keys), (d_model, 3 * d_model)))
        wo.append(nrm(next(keys), (d_model, d_model)))
        w1.append(nrm(next(keys), (d_model, dim_ff)))
        w2.append(nrm(next(keys), (dim_ff, d_model)))
    L = num_layers
    params.update({
        'wqkv': jnp.stack(wqkv), 'bqkv': jnp.zeros((L, 1, 3 * d_model), jnp.float32),
        'wo': jnp.stack(wo),     'bo': jnp.zeros((L, 1, d_model), jnp.float32),
        'g1': jnp.ones((L, 1, d_model), jnp.float32),
        'b1': jnp.zeros((L, 1, d_model), jnp.float32),
        'w1': jnp.stack(w1),     'bf1': jnp.zeros((L, 1, dim_ff), jnp.float32),
        'w2': jnp.stack(w2),     'bf2': jnp.zeros((L, 1, d_model), jnp.float32),
        'g2': jnp.ones((L, 1, d_model), jnp.float32),
        'b2': jnp.zeros((L, 1, d_model), jnp.float32),
    })
    return params


# ---------------------------------------------------------------------------
# Wrapper: tiny host-side padding/flattening, then ONE fused pallas_call.
# ---------------------------------------------------------------------------
def transformer_forward(params, x, t, *, nhead):
    B, S, In = x.shape
    num_out = params['Whead'].shape[1]
    S1 = S + 1                       # + regression token
    Sp = ((S1 + 7) // 8) * 8         # pad each sequence block to a sublane multiple
    pad = Sp - S1

    # Padded + flattened inputs (row 0 of each batch = reg-token slot, trailing rows = pad).
    x_pad = jnp.concatenate(
        [jnp.zeros((B, 1, In), x.dtype), x, jnp.zeros((B, pad, In), x.dtype)],
        axis=1).reshape(B * Sp, In)
    t_pad = jnp.concatenate(
        [jnp.zeros((B, 1), t.dtype), t, jnp.zeros((B, pad), t.dtype)],
        axis=1).reshape(B * Sp, 1)
    pos = jnp.arange(B * Sp) % Sp
    reg_mask = (pos == 0).astype(x.dtype)[:, None]      # (B*Sp, 1)
    pe = params['pe'][:Sp]                              # (Sp, D), passed once (not tiled)

    kernel = functools.partial(_transformer_kernel, B=B, S1=S1, Sp=Sp, nhead=nhead)
    vmem = pl.BlockSpec(memory_space=pltpu.MemorySpace.VMEM)

    out_flat = pl.pallas_call(
        kernel,
        out_shape=jax.ShapeDtypeStruct((B * Sp, num_out), x.dtype),
        in_specs=[vmem] * 23,
        out_specs=vmem,
    )(x_pad, t_pad, reg_mask,
      params['Wip'], params['bip'], params['reg'], params['Wemb'], params['bemb'], pe,
      params['wqkv'], params['bqkv'], params['wo'], params['bo'],
      params['g1'], params['b1'], params['w1'], params['bf1'],
      params['w2'], params['bf2'], params['g2'], params['b2'],
      params['Whead'], params['bhead'])

    # head was computed for every row in-kernel; keep only the regression-token rows
    return out_flat.reshape(B, Sp, num_out)[:, 0, :]    # (B, num_outputs)


# ---------------------------------------------------------------------------
# Pure-JAX reference (for correctness validation of the fused kernel).
# ---------------------------------------------------------------------------
def _reference_forward(params, x, t, *, nhead):
    B, S, _ = x.shape
    D = params['Wip'].shape[1]
    Dh = D // nhead
    scale = 1.0 / math.sqrt(Dh)
    S1 = S + 1

    xp = jnp.einsum('bsi,id->bsd', x, params['Wip']) + params['bip'][0] + t[..., None]
    reg = jnp.broadcast_to(params['reg'][None], (B, 1, D))
    h = jnp.concatenate([reg, xp], axis=1)                           # (B, S1, D)
    h = jnp.einsum('bsd,de->bse', h, params['Wemb']) + params['bemb'][0]
    h = h + params['pe'][:S1]

    L = params['wqkv'].shape[0]
    for l in range(L):
        qkv = jnp.einsum('bsd,df->bsf', h, params['wqkv'][l]) + params['bqkv'][l][0]
        q, k, v = jnp.split(qkv, 3, axis=-1)
        q = q.reshape(B, S1, nhead, Dh).transpose(0, 2, 1, 3) * scale
        k = k.reshape(B, S1, nhead, Dh).transpose(0, 2, 1, 3)
        v = v.reshape(B, S1, nhead, Dh).transpose(0, 2, 1, 3)
        s = jnp.einsum('bhqd,bhkd->bhqk', q, k)
        p = jax.nn.softmax(s, axis=-1)
        o = jnp.einsum('bhqk,bhkd->bhqd', p, v)
        o = o.transpose(0, 2, 1, 3).reshape(B, S1, D)
        o = jnp.einsum('bsd,de->bse', o, params['wo'][l]) + params['bo'][l][0]
        h = _layernorm(h + o, params['g1'][l][0], params['b1'][l][0])
        f = jnp.einsum('bsd,df->bsf', h, params['w1'][l]) + params['bf1'][l][0]
        f = jnp.maximum(f, 0.0)
        f = jnp.einsum('bsf,fd->bsd', f, params['w2'][l]) + params['bf2'][l][0]
        h = _layernorm(h + f, params['g2'][l][0], params['b2'][l][0])

    return jnp.einsum('bd,do->bo', h[:, 0, :], params['Whead']) + params['bhead'][0]


if __name__ == "__main__":
    B, S, input_dim = 2, 8, 4
    d_model, nhead, num_layers, num_outputs = 32, 4, 2, 1

    key = jax.random.PRNGKey(0)
    kp, kx, kt = jax.random.split(key, 3)
    params = init_params(kp, input_dim, d_model, nhead, num_layers, num_outputs)
    x = jax.random.normal(kx, (B, S, input_dim), dtype=jnp.float32)
    t = jax.random.normal(kt, (B, S), dtype=jnp.float32)

    fwd = jax.jit(functools.partial(transformer_forward, nhead=nhead))
    out = fwd(params, x, t)
    jax.block_until_ready(out)
    assert out.shape == (B, num_outputs), out.shape
    assert bool(jnp.all(jnp.isfinite(out))), "non-finite output"

    ref = _reference_forward(params, x, t, nhead=nhead)
    assert bool(jnp.allclose(out, ref, rtol=2e-2, atol=2e-3)), (out, ref)
    print("KERNEL_OK")
</pallas_src>

<mosaic_0001>
module attributes {stable_mosaic.version = 11 : i64} {
  func.func @_transformer_kernel(%arg0: memref<32x4xf32, #tpu.memory_space<vmem>>, %arg1: memref<32x1xf32, #tpu.memory_space<vmem>>, %arg2: memref<32x1xf32, #tpu.memory_space<vmem>>, %arg3: memref<4x32xf32, #tpu.memory_space<vmem>>, %arg4: memref<1x32xf32, #tpu.memory_space<vmem>>, %arg5: memref<1x32xf32, #tpu.memory_space<vmem>>, %arg6: memref<32x32xf32, #tpu.memory_space<vmem>>, %arg7: memref<1x32xf32, #tpu.memory_space<vmem>>, %arg8: memref<16x32xf32, #tpu.memory_space<vmem>>, %arg9: memref<2x32x96xf32, #tpu.memory_space<vmem>>, %arg10: memref<2x1x96xf32, #tpu.memory_space<vmem>>, %arg11: memref<2x32x32xf32, #tpu.memory_space<vmem>>, %arg12: memref<2x1x32xf32, #tpu.memory_space<vmem>>, %arg13: memref<2x1x32xf32, #tpu.memory_space<vmem>>, %arg14: memref<2x1x32xf32, #tpu.memory_space<vmem>>, %arg15: memref<2x32x2048xf32, #tpu.memory_space<vmem>>, %arg16: memref<2x1x2048xf32, #tpu.memory_space<vmem>>, %arg17: memref<2x2048x32xf32, #tpu.memory_space<vmem>>, %arg18: memref<2x1x32xf32, #tpu.memory_space<vmem>>, %arg19: memref<2x1x32xf32, #tpu.memory_space<vmem>>, %arg20: memref<2x1x32xf32, #tpu.memory_space<vmem>>, %arg21: memref<32x1xf32, #tpu.memory_space<vmem>>, %arg22: memref<1x1xf32, #tpu.memory_space<vmem>>, %arg23: memref<32x1xf32, #tpu.memory_space<vmem>>) attributes {dimension_semantics = [], scalar_prefetch = 0 : i64, scratch_operands = 0 : i64, tpu.core_type = #tpu.core_type<tc>} {
    %c0 = arith.constant 0 : index
    %c0_0 = arith.constant 0 : index
    %0 = vector.load %arg0[%c0, %c0_0] : memref<32x4xf32, #tpu.memory_space<vmem>>, vector<32x4xf32>
    %c0_1 = arith.constant 0 : index
    %c0_2 = arith.constant 0 : index
    %1 = vector.load %arg3[%c0_1, %c0_2] : memref<4x32xf32, #tpu.memory_space<vmem>>, vector<4x32xf32>
    %cst = arith.constant dense<0.000000e+00> : vector<32x32xf32>
    %2 = tpu.matmul %0, %1, %cst {dimension_numbers = #tpu.dot_dimension_numbers<[1], [0], [0], [1], [0, 0, 1, 1], [], []>} : vector<32x4xf32>, vector<4x32xf32>, vector<32x32xf32> -> vector<32x32xf32>
    %c0_3 = arith.constant 0 : index
    %c0_4 = arith.constant 0 : index
    %3 = vector.load %arg4[%c0_3, %c0_4] : memref<1x32xf32, #tpu.memory_space<vmem>>, vector<1x32xf32>
    %4 = vector.broadcast %3 : vector<1x32xf32> to vector<32x32xf32>
    %5 = arith.addf %2, %4 : vector<32x32xf32>
    %c0_5 = arith.constant 0 : index
    %c0_6 = arith.constant 0 : index
    %6 = vector.load %arg1[%c0_5, %c0_6] : memref<32x1xf32, #tpu.memory_space<vmem>>, vector<32x1xf32>
    %7 = vector.broadcast %6 : vector<32x1xf32> to vector<32x32xf32>
    %8 = arith.addf %5, %7 : vector<32x32xf32>
    %c0_7 = arith.constant 0 : index
    %c0_8 = arith.constant 0 : index
    %9 = vector.load %arg5[%c0_7, %c0_8] : memref<1x32xf32, #tpu.memory_space<vmem>>, vector<1x32xf32>
    %c0_9 = arith.constant 0 : index
    %c0_10 = arith.constant 0 : index
    %10 = vector.load %arg4[%c0_9, %c0_10] : memref<1x32xf32, #tpu.memory_space<vmem>>, vector<1x32xf32>
    %11 = arith.subf %9, %10 : vector<1x32xf32>
    %12 = vector.shape_cast %11 : vector<1x32xf32> to vector<1x32xf32>
    %13 = vector.broadcast %12 : vector<1x32xf32> to vector<32x32xf32>
    %c0_11 = arith.constant 0 : index
    %c0_12 = arith.constant 0 : index
    %14 = vector.load %arg2[%c0_11, %c0_12] : memref<32x1xf32, #tpu.memory_space<vmem>>, vector<32x1xf32>
    %15 = vector.shape_cast %14 : vector<32x1xf32> to vector<32x1xf32>
    %16 = vector.broadcast %15 : vector<32x1xf32> to vector<32x32xf32>
    %17 = arith.mulf %16, %13 : vector<32x32xf32>
    %18 = arith.addf %8, %17 : vector<32x32xf32>
    %c0_13 = arith.constant 0 : index
    %c0_14 = arith.constant 0 : index
    %19 = vector.load %arg6[%c0_13, %c0_14] : memref<32x32xf32, #tpu.memory_space<vmem>>, vector<32x32xf32>
    %cst_15 = arith.constant dense<0.000000e+00> : vector<32x32xf32>
    %20 = tpu.matmul %18, %19, %cst_15 {dimension_numbers = #tpu.dot_dimension_numbers<[1], [0], [0], [1], [0, 0, 1, 1], [], []>} : vector<32x32xf32>, vector<32x32xf32>, vector<32x32xf32> -> vector<32x32xf32>
    %c0_16 = arith.constant 0 : index
    %c0_17 = arith.constant 0 : index
    %21 = vector.load %arg7[%c0_16, %c0_17] : memref<1x32xf32, #tpu.memory_space<vmem>>, vector<1x32xf32>
    %22 = vector.broadcast %21 : vector<1x32xf32> to vector<32x32xf32>
    %23 = arith.addf %20, %22 : vector<32x32xf32>
    %c0_18 = arith.constant 0 : index
    %c0_19 = arith.constant 0 : index
    %24 = vector.load %arg8[%c0_18, %c0_19] : memref<16x32xf32, #tpu.memory_space<vmem>>, vector<16x32xf32>
    %25 = tpu.concatenate %24, %24 in 0 : vector<16x32xf32>, vector<16x32xf32> -> vector<32x32xf32>
    %26 = arith.addf %23, %25 : vector<32x32xf32>
    %27 = tpu.iota {dimensions = array<i32: 2>} : vector<1x16x16xi32>
    %c9_i32 = arith.constant 9 : i32
    %28 = vector.broadcast %c9_i32 : i32 to vector<1x16x16xi32>
    %29 = arith.cmpi slt, %27, %28 : vector<1x16x16xi32>
    %c0_20 = arith.constant 0 : index
    %c0_21 = arith.constant 0 : index
    %c0_22 = arith.constant 0 : index
    %30 = vector.load %arg9[%c0_20, %c0_21, %c0_22] : memref<2x32x96xf32, #tpu.memory_space<vmem>>, vector<1x32x96xf32>
    %31 = vector.shape_cast %30 : vector<1x32x96xf32> to vector<32x96xf32>
    %cst_23 = arith.constant dense<0.000000e+00> : vector<32x96xf32>
    %32 = tpu.matmul %26, %31, %cst_23 {dimension_numbers = #tpu.dot_dimension_numbers<[1], [0], [0], [1], [0, 0, 1, 1], [], []>} : vector<32x32xf32>, vector<32x96xf32>, vector<32x96xf32> -> vector<32x96xf32>
    %c0_24 = arith.constant 0 : index
    %c0_25 = arith.constant 0 : index
    %c0_26 = arith.constant 0 : index
    %33 = vector.load %arg10[%c0_24, %c0_25, %c0_26] : memref<2x1x96xf32, #tpu.memory_space<vmem>>, vector<1x1x96xf32>
    %34 = vector.shape_cast %33 : vector<1x1x96xf32> to vector<1x96xf32>
    %35 = vector.broadcast %34 : vector<1x96xf32> to vector<32x96xf32>
    %36 = arith.addf %32, %35 : vector<32x96xf32>
    %37 = vector.shape_cast %36 : vector<32x96xf32> to vector<2x16x96xf32>
    %38 = vector.extract_strided_slice %37 {offsets = [0, 0, 0], sizes = [2, 16, 8], strides = [1, 1, 1]} : vector<2x16x96xf32> to vector<2x16x8xf32>
    %cst_27 = arith.constant 0.353553385 : f32
    %39 = vector.broadcast %cst_27 : f32 to vector<2x16x8xf32>
    %40 = arith.mulf %38, %39 : vector<2x16x8xf32>
    %41 = vector.extract_strided_slice %37 {offsets = [0, 0, 32], sizes = [2, 16, 8], strides = [1, 1, 1]} : vector<2x16x96xf32> to vector<2x16x8xf32>
    %42 = vector.extract_strided_slice %37 {offsets = [0, 0, 64], sizes = [2, 16, 8], strides = [1, 1, 1]} : vector<2x16x96xf32> to vector<2x16x8xf32>
    "tpu.trace_start"() <{level = 10 : i32, message = "bqd,bkd->bqk"}> : () -> ()
    %cst_28 = arith.constant dense<0.000000e+00> : vector<2x16x16xf32>
    %43 = tpu.matmul %40, %41, %cst_28 {dimension_numbers = #tpu.dot_dimension_numbers<[2], [2], [1], [1], [0, 0, 0, 1, 1, 1], [0], [0]>} : vector<2x16x8xf32>, vector<2x16x8xf32>, vector<2x16x16xf32> -> vector<2x16x16xf32>
    %cst_29 = arith.constant -1.000000e+30 : f32
    "tpu.trace_stop"() : () -> ()
    %44 = vector.shape_cast %29 : vector<1x16x16xi1> to vector<1x16x16xi1>
    %45 = vector.broadcast %44 : vector<1x16x16xi1> to vector<2x16x16xi1>
    %46 = vector.broadcast %cst_29 : f32 to vector<2x16x16xf32>
    %47 = arith.select %45, %43, %46 : vector<2x16x16xi1>, vector<2x16x16xf32>
    %cst_30 = arith.constant dense<0xFF800000> : vector<2x16xf32>
    %48 = vector.multi_reduction <maximumf>, %47, %cst_30 [2] : vector<2x16x16xf32> to vector<2x16xf32>
    %49 = vector.shape_cast %48 : vector<2x16xf32> to vector<2x16x1xf32>
    %50 = vector.broadcast %49 : vector<2x16x1xf32> to vector<2x16x16xf32>
    %51 = arith.subf %47, %50 : vector<2x16x16xf32>
    %52 = math.exp %51 : vector<2x16x16xf32>
    %cst_31 = arith.constant dense<0.000000e+00> : vector<2x16xf32>
    %53 = vector.multi_reduction <add>, %52, %cst_31 [2] : vector<2x16x16xf32> to vector<2x16xf32>
    %54 = vector.shape_cast %53 : vector<2x16xf32> to vector<2x16x1xf32>
    %55 = tpu.reciprocal %54 {approx = true} : vector<2x16x1xf32> -> vector<2x16x1xf32>
    %56 = vector.broadcast %55 : vector<2x16x1xf32> to vector<2x16x16xf32>
    %57 = arith.mulf %52, %56 : vector<2x16x16xf32>
    "tpu.trace_start"() <{level = 10 : i32, message = "bqk,bkd->bqd"}> : () -> ()
    %cst_32 = arith.constant dense<0.000000e+00> : vector<2x16x8xf32>
    %58 = tpu.matmul %57, %42, %cst_32 {dimension_numbers = #tpu.dot_dimension_numbers<[2], [1], [1], [2], [0, 0, 0, 1, 1, 2], [0], [0]>} : vector<2x16x16xf32>, vector<2x16x8xf32>, vector<2x16x8xf32> -> vector<2x16x8xf32>
    "tpu.trace_stop"() : () -> ()
    %59 = vector.extract_strided_slice %37 {offsets = [0, 0, 8], sizes = [2, 16, 8], strides = [1, 1, 1]} : vector<2x16x96xf32> to vector<2x16x8xf32>
    %cst_33 = arith.constant 0.353553385 : f32
    %60 = vector.broadcast %cst_33 : f32 to vector<2x16x8xf32>
    %61 = arith.mulf %59, %60 : vector<2x16x8xf32>
    %62 = vector.extract_strided_slice %37 {offsets = [0, 0, 40], sizes = [2, 16, 8], strides = [1, 1, 1]} : vector<2x16x96xf32> to vector<2x16x8xf32>
    %63 = vector.extract_strided_slice %37 {offsets = [0, 0, 72], sizes = [2, 16, 8], strides = [1, 1, 1]} : vector<2x16x96xf32> to vector<2x16x8xf32>
    "tpu.trace_start"() <{level = 10 : i32, message = "bqd,bkd->bqk"}> : () -> ()
    %cst_34 = arith.constant dense<0.000000e+00> : vector<2x16x16xf32>
    %64 = tpu.matmul %61, %62, %cst_34 {dimension_numbers = #tpu.dot_dimension_numbers<[2], [2], [1], [1], [0, 0, 0, 1, 1, 1], [0], [0]>} : vector<2x16x8xf32>, vector<2x16x8xf32>, vector<2x16x16xf32> -> vector<2x16x16xf32>
    %cst_35 = arith.constant -1.000000e+30 : f32
    "tpu.trace_stop"() : () -> ()
    %65 = vector.shape_cast %29 : vector<1x16x16xi1> to vector<1x16x16xi1>
    %66 = vector.broadcast %65 : vector<1x16x16xi1> to vector<2x16x16xi1>
    %67 = vector.broadcast %cst_35 : f32 to vector<2x16x16xf32>
    %68 = arith.select %66, %64, %67 : vector<2x16x16xi1>, vector<2x16x16xf32>
    %cst_36 = arith.constant dense<0xFF800000> : vector<2x16xf32>
    %69 = vector.multi_reduction <maximumf>, %68, %cst_36 [2] : vector<2x16x16xf32> to vector<2x16xf32>
    %70 = vector.shape_cast %69 : vector<2x16xf32> to vector<2x16x1xf32>
    %71 = vector.broadcast %70 : vector<2x16x1xf32> to vector<2x16x16xf32>
    %72 = arith.subf %68, %71 : vector<2x16x16xf32>
    %73 = math.exp %72 : vector<2x16x16xf32>
    %cst_37 = arith.constant dense<0.000000e+00> : vector<2x16xf32>
    %74 = vector.multi_reduction <add>, %73, %cst_37 [2] : vector<2x16x16xf32> to vector<2x16xf32>
    %75 = vector.shape_cast %74 : vector<2x16xf32> to vector<2x16x1xf32>
    %76 = tpu.reciprocal %75 {approx = true} : vector<2x16x1xf32> -> vector<2x16x1xf32>
    %77 = vector.broadcast %76 : vector<2x16x1xf32> to vector<2x16x16xf32>
    %78 = arith.mulf %73, %77 : vector<2x16x16xf32>
    "tpu.trace_start"() <{level = 10 : i32, message = "bqk,bkd->bqd"}> : () -> ()
    %cst_38 = arith.constant dense<0.000000e+00> : vector<2x16x8xf32>
    %79 = tpu.matmul %78, %63, %cst_38 {dimension_numbers = #tpu.dot_dimension_numbers<[2], [1], [1], [2], [0, 0, 0, 1, 1, 2], [0], [0]>} : vector<2x16x16xf32>, vector<2x16x8xf32>, vector<2x16x8xf32> -> vector<2x16x8xf32>
    "tpu.trace_stop"() : () -> ()
    %80 = vector.extract_strided_slice %37 {offsets = [0, 0, 16], sizes = [2, 16, 8], strides = [1, 1, 1]} : vector<2x16x96xf32> to vector<2x16x8xf32>
    %cst_39 = arith.constant 0.353553385 : f32
    %81 = vector.broadcast %cst_39 : f32 to vector<2x16x8xf32>
    %82 = arith.mulf %80, %81 : vector<2x16x8xf32>
    %83 = vector.extract_strided_slice %37 {offsets = [0, 0, 48], sizes = [2, 16, 8], strides = [1, 1, 1]} : vector<2x16x96xf32> to vector<2x16x8xf32>
    %84 = vector.extract_strided_slice %37 {offsets = [0, 0, 80], sizes = [2, 16, 8], strides = [1, 1, 1]} : vector<2x16x96xf32> to vector<2x16x8xf32>
    "tpu.trace_start"() <{level = 10 : i32, message = "bqd,bkd->bqk"}> : () -> ()
    %cst_40 = arith.constant dense<0.000000e+00> : vector<2x16x16xf32>
    %85 = tpu.matmul %82, %83, %cst_40 {dimension_numbers = #tpu.dot_dimension_numbers<[2], [2], [1], [1], [0, 0, 0, 1, 1, 1], [0], [0]>} : vector<2x16x8xf32>, vector<2x16x8xf32>, vector<2x16x16xf32> -> vector<2x16x16xf32>
    %cst_41 = arith.constant -1.000000e+30 : f32
    "tpu.trace_stop"() : () -> ()
    %86 = vector.shape_cast %29 : vector<1x16x16xi1> to vector<1x16x16xi1>
    %87 = vector.broadcast %86 : vector<1x16x16xi1> to vector<2x16x16xi1>
    %88 = vector.broadcast %cst_41 : f32 to vector<2x16x16xf32>
    %89 = arith.select %87, %85, %88 : vector<2x16x16xi1>, vector<2x16x16xf32>
    %cst_42 = arith.constant dense<0xFF800000> : vector<2x16xf32>
    %90 = vector.multi_reduction <maximumf>, %89, %cst_42 [2] : vector<2x16x16xf32> to vector<2x16xf32>
    %91 = vector.shape_cast %90 : vector<2x16xf32> to vector<2x16x1xf32>
    %92 = vector.broadcast %91 : vector<2x16x1xf32> to vector<2x16x16xf32>
    %93 = arith.subf %89, %92 : vector<2x16x16xf32>
    %94 = math.exp %93 : vector<2x16x16xf32>
    %cst_43 = arith.constant dense<0.000000e+00> : vector<2x16xf32>
    %95 = vector.multi_reduction <add>, %94, %cst_43 [2] : vector<2x16x16xf32> to vector<2x16xf32>
    %96 = vector.shape_cast %95 : vector<2x16xf32> to vector<2x16x1xf32>
    %97 = tpu.reciprocal %96 {approx = true} : vector<2x16x1xf32> -> vector<2x16x1xf32>
    %98 = vector.broadcast %97 : vector<2x16x1xf32> to vector<2x16x16xf32>
    %99 = arith.mulf %94, %98 : vector<2x16x16xf32>
    "tpu.trace_start"() <{level = 10 : i32, message = "bqk,bkd->bqd"}> : () -> ()
    %cst_44 = arith.constant dense<0.000000e+00> : vector<2x16x8xf32>
    %100 = tpu.matmul %99, %84, %cst_44 {dimension_numbers = #tpu.dot_dimension_numbers<[2], [1], [1], [2], [0, 0, 0, 1, 1, 2], [0], [0]>} : vector<2x16x16xf32>, vector<2x16x8xf32>, vector<2x16x8xf32> -> vector<2x16x8xf32>
    "tpu.trace_stop"() : () -> ()
    %101 = vector.extract_strided_slice %37 {offsets = [0, 0, 24], sizes = [2, 16, 8], strides = [1, 1, 1]} : vector<2x16x96xf32> to vector<2x16x8xf32>
    %cst_45 = arith.constant 0.353553385 : f32
    %102 = vector.broadcast %cst_45 : f32 to vector<2x16x8xf32>
    %103 = arith.mulf %101, %102 : vector<2x16x8xf32>
    %104 = vector.extract_strided_slice %37 {offsets = [0, 0, 56], sizes = [2, 16, 8], strides = [1, 1, 1]} : vector<2x16x96xf32> to vector<2x16x8xf32>
    %105 = vector.extract_strided_slice %37 {offsets = [0, 0, 88], sizes = [2, 16, 8], strides = [1, 1, 1]} : vector<2x16x96xf32> to vector<2x16x8xf32>
    "tpu.trace_start"() <{level = 10 : i32, message = "bqd,bkd->bqk"}> : () -> ()
    %cst_46 = arith.constant dense<0.000000e+00> : vector<2x16x16xf32>
    %106 = tpu.matmul %103, %104, %cst_46 {dimension_numbers = #tpu.dot_dimension_numbers<[2], [2], [1], [1], [0, 0, 0, 1, 1, 1], [0], [0]>} : vector<2x16x8xf32>, vector<2x16x8xf32>, vector<2x16x16xf32> -> vector<2x16x16xf32>
    %cst_47 = arith.constant -1.000000e+30 : f32
    "tpu.trace_stop"() : () -> ()
    %107 = vector.shape_cast %29 : vector<1x16x16xi1> to vector<1x16x16xi1>
    %108 = vector.broadcast %107 : vector<1x16x16xi1> to vector<2x16x16xi1>
    %109 = vector.broadcast %cst_47 : f32 to vector<2x16x16xf32>
    %110 = arith.select %108, %106, %109 : vector<2x16x16xi1>, vector<2x16x16xf32>
    %cst_48 = arith.constant dense<0xFF800000> : vector<2x16xf32>
    %111 = vector.multi_reduction <maximumf>, %110, %cst_48 [2] : vector<2x16x16xf32> to vector<2x16xf32>
    %112 = vector.shape_cast %111 : vector<2x16xf32> to vector<2x16x1xf32>
    %113 = vector.broadcast %112 : vector<2x16x1xf32> to vector<2x16x16xf32>
    %114 = arith.subf %110, %113 : vector<2x16x16xf32>
    %115 = math.exp %114 : vector<2x16x16xf32>
    %cst_49 = arith.constant dense<0.000000e+00> : vector<2x16xf32>
    %116 = vector.multi_reduction <add>, %115, %cst_49 [2] : vector<2x16x16xf32> to vector<2x16xf32>
    %117 = vector.shape_cast %116 : vector<2x16xf32> to vector<2x16x1xf32>
    %118 = tpu.reciprocal %117 {approx = true} : vector<2x16x1xf32> -> vector<2x16x1xf32>
    %119 = vector.broadcast %118 : vector<2x16x1xf32> to vector<2x16x16xf32>
    %120 = arith.mulf %115, %119 : vector<2x16x16xf32>
    "tpu.trace_start"() <{level = 10 : i32, message = "bqk,bkd->bqd"}> : () -> ()
    %cst_50 = arith.constant dense<0.000000e+00> : vector<2x16x8xf32>
    %121 = tpu.matmul %120, %105, %cst_50 {dimension_numbers = #tpu.dot_dimension_numbers<[2], [1], [1], [2], [0, 0, 0, 1, 1, 2], [0], [0]>} : vector<2x16x16xf32>, vector<2x16x8xf32>, vector<2x16x8xf32> -> vector<2x16x8xf32>
    "tpu.trace_stop"() : () -> ()
    %122 = tpu.concatenate %58, %79, %100, %121 in 2 : vector<2x16x8xf32>, vector<2x16x8xf32>, vector<2x16x8xf32>, vector<2x16x8xf32> -> vector<2x16x32xf32>
    %123 = vector.shape_cast %122 : vector<2x16x32xf32> to vector<32x32xf32>
    %c0_51 = arith.constant 0 : index
    %c0_52 = arith.constant 0 : index
    %c0_53 = arith.constant 0 : index
    %124 = vector.load %arg11[%c0_51, %c0_52, %c0_53] : memref<2x32x32xf32, #tpu.memory_space<vmem>>, vector<1x32x32xf32>
    %125 = vector.shape_cast %124 : vector<1x32x32xf32> to vector<32x32xf32>
    %cst_54 = arith.constant dense<0.000000e+00> : vector<32x32xf32>
    %126 = tpu.matmul %123, %125, %cst_54 {dimension_numbers = #tpu.dot_dimension_numbers<[1], [0], [0], [1], [0, 0, 1, 1], [], []>} : vector<32x32xf32>, vector<32x32xf32>, vector<32x32xf32> -> vector<32x32xf32>
    %c0_55 = arith.constant 0 : index
    %c0_56 = arith.constant 0 : index
    %c0_57 = arith.constant 0 : index
    %127 = vector.load %arg12[%c0_55, %c0_56, %c0_57] : memref<2x1x32xf32, #tpu.memory_space<vmem>>, vector<1x1x32xf32>
    %128 = vector.shape_cast %127 : vector<1x1x32xf32> to vector<1x32xf32>
    %129 = vector.broadcast %128 : vector<1x32xf32> to vector<32x32xf32>
    %130 = arith.addf %126, %129 : vector<32x32xf32>
    %131 = arith.addf %26, %130 : vector<32x32xf32>
    %c0_58 = arith.constant 0 : index
    %c0_59 = arith.constant 0 : index
    %c0_60 = arith.constant 0 : index
    %132 = vector.load %arg13[%c0_58, %c0_59, %c0_60] : memref<2x1x32xf32, #tpu.memory_space<vmem>>, vector<1x1x32xf32>
    %133 = vector.shape_cast %132 : vector<1x1x32xf32> to vector<1x32xf32>
    %c0_61 = arith.constant 0 : index
    %c0_62 = arith.constant 0 : index
    %c0_63 = arith.constant 0 : index
    %134 = vector.load %arg14[%c0_61, %c0_62, %c0_63] : memref<2x1x32xf32, #tpu.memory_space<vmem>>, vector<1x1x32xf32>
    %135 = vector.shape_cast %134 : vector<1x1x32xf32> to vector<1x32xf32>
    %cst_64 = arith.constant dense<0.000000e+00> : vector<32xf32>
    %136 = vector.multi_reduction <add>, %131, %cst_64 [1] : vector<32x32xf32> to vector<32xf32>
    %137 = vector.shape_cast %136 : vector<32xf32> to vector<32x1xf32>
    %cst_65 = arith.constant 3.200000e+01 : f32
    %138 = vector.broadcast %cst_65 : f32 to vector<32x1xf32>
    %139 = arith.divf %137, %138 : vector<32x1xf32>
    %140 = vector.broadcast %139 : vector<32x1xf32> to vector<32x32xf32>
    %141 = arith.subf %131, %140 : vector<32x32xf32>
    %142 = arith.mulf %141, %141 : vector<32x32xf32>
    %cst_66 = arith.constant dense<0.000000e+00> : vector<32xf32>
    %143 = vector.multi_reduction <add>, %142, %cst_66 [1] : vector<32x32xf32> to vector<32xf32>
    %144 = vector.shape_cast %143 : vector<32xf32> to vector<32x1xf32>
    %cst_67 = arith.constant 3.200000e+01 : f32
    %145 = vector.broadcast %cst_67 : f32 to vector<32x1xf32>
    %146 = arith.divf %144, %145 : vector<32x1xf32>
    %cst_68 = arith.constant 9.99999974E-6 : f32
    %147 = vector.broadcast %cst_68 : f32 to vector<32x1xf32>
    %148 = arith.addf %146, %147 : vector<32x1xf32>
    %149 = math.rsqrt %148 : vector<32x1xf32>
    %150 = vector.broadcast %149 : vector<32x1xf32> to vector<32x32xf32>
    %151 = arith.mulf %141, %150 : vector<32x32xf32>
    %152 = vector.broadcast %133 : vector<1x32xf32> to vector<32x32xf32>
    %153 = arith.mulf %151, %152 : vector<32x32xf32>
    %154 = vector.broadcast %135 : vector<1x32xf32> to vector<32x32xf32>
    %155 = arith.addf %153, %154 : vector<32x32xf32>
    %c0_69 = arith.constant 0 : index
    %c0_70 = arith.constant 0 : index
    %c0_71 = arith.constant 0 : index
    %156 = vector.load %arg15[%c0_69, %c0_70, %c0_71] : memref<2x32x2048xf32, #tpu.memory_space<vmem>>, vector<1x32x2048xf32>
    %157 = vector.shape_cast %156 : vector<1x32x2048xf32> to vector<32x2048xf32>
    %cst_72 = arith.constant dense<0.000000e+00> : vector<32x2048xf32>
    %158 = tpu.matmul %155, %157, %cst_72 {dimension_numbers = #tpu.dot_dimension_numbers<[1], [0], [0], [1], [0, 0, 1, 1], [], []>} : vector<32x32xf32>, vector<32x2048xf32>, vector<32x2048xf32> -> vector<32x2048xf32>
    %c0_73 = arith.constant 0 : index
    %c0_74 = arith.constant 0 : index
    %c0_75 = arith.constant 0 : index
    %159 = vector.load %arg16[%c0_73, %c0_74, %c0_75] : memref<2x1x2048xf32, #tpu.memory_space<vmem>>, vector<1x1x2048xf32>
    %160 = vector.shape_cast %159 : vector<1x1x2048xf32> to vector<1x2048xf32>
    %161 = vector.broadcast %160 : vector<1x2048xf32> to vector<32x2048xf32>
    %162 = arith.addf %158, %161 : vector<32x2048xf32>
    %cst_76 = arith.constant 0.000000e+00 : f32
    %163 = vector.broadcast %cst_76 : f32 to vector<32x2048xf32>
    %164 = arith.maximumf %162, %163 : vector<32x2048xf32>
    %c0_77 = arith.constant 0 : index
    %c0_78 = arith.constant 0 : index
    %c0_79 = arith.constant 0 : index
    %165 = vector.load %arg17[%c0_77, %c0_78, %c0_79] : memref<2x2048x32xf32, #tpu.memory_space<vmem>>, vector<1x2048x32xf32>
    %166 = vector.shape_cast %165 : vector<1x2048x32xf32> to vector<2048x32xf32>
    %cst_80 = arith.constant dense<0.000000e+00> : vector<32x32xf32>
    %167 = tpu.matmul %164, %166, %cst_80 {dimension_numbers = #tpu.dot_dimension_numbers<[1], [0], [0], [1], [0, 0, 1, 1], [], []>} : vector<32x2048xf32>, vector<2048x32xf32>, vector<32x32xf32> -> vector<32x32xf32>
    %c0_81 = arith.constant 0 : index
    %c0_82 = arith.constant 0 : index
    %c0_83 = arith.constant 0 : index
    %168 = vector.load %arg18[%c0_81, %c0_82, %c0_83] : memref<2x1x32xf32, #tpu.memory_space<vmem>>, vector<1x1x32xf32>
    %169 = vector.shape_cast %168 : vector<1x1x32xf32> to vector<1x32xf32>
    %170 = vector.broadcast %169 : vector<1x32xf32> to vector<32x32xf32>
    %171 = arith.addf %167, %170 : vector<32x32xf32>
    %172 = arith.addf %155, %171 : vector<32x32xf32>
    %c0_84 = arith.constant 0 : index
    %c0_85 = arith.constant 0 : index
    %c0_86 = arith.constant 0 : index
    %173 = vector.load %arg19[%c0_84, %c0_85, %c0_86] : memref<2x1x32xf32, #tpu.memory_space<vmem>>, vector<1x1x32xf32>
    %174 = vector.shape_cast %173 : vector<1x1x32xf32> to vector<1x32xf32>
    %c0_87 = arith.constant 0 : index
    %c0_88 = arith.constant 0 : index
    %c0_89 = arith.constant 0 : index
    %175 = vector.load %arg20[%c0_87, %c0_88, %c0_89] : memref<2x1x32xf32, #tpu.memory_space<vmem>>, vector<1x1x32xf32>
    %176 = vector.shape_cast %175 : vector<1x1x32xf32> to vector<1x32xf32>
    %cst_90 = arith.constant dense<0.000000e+00> : vector<32xf32>
    %177 = vector.multi_reduction <add>, %172, %cst_90 [1] : vector<32x32xf32> to vector<32xf32>
    %178 = vector.shape_cast %177 : vector<32xf32> to vector<32x1xf32>
    %cst_91 = arith.constant 3.200000e+01 : f32
    %179 = vector.broadcast %cst_91 : f32 to vector<32x1xf32>
    %180 = arith.divf %178, %179 : vector<32x1xf32>
    %181 = vector.broadcast %180 : vector<32x1xf32> to vector<32x32xf32>
    %182 = arith.subf %172, %181 : vector<32x32xf32>
    %183 = arith.mulf %182, %182 : vector<32x32xf32>
    %cst_92 = arith.constant dense<0.000000e+00> : vector<32xf32>
    %184 = vector.multi_reduction <add>, %183, %cst_92 [1] : vector<32x32xf32> to vector<32xf32>
    %185 = vector.shape_cast %184 : vector<32xf32> to vector<32x1xf32>
    %cst_93 = arith.constant 3.200000e+01 : f32
    %186 = vector.broadcast %cst_93 : f32 to vector<32x1xf32>
    %187 = arith.divf %185, %186 : vector<32x1xf32>
    %cst_94 = arith.constant 9.99999974E-6 : f32
    %188 = vector.broadcast %cst_94 : f32 to vector<32x1xf32>
    %189 = arith.addf %187, %188 : vector<32x1xf32>
    %190 = math.rsqrt %189 : vector<32x1xf32>
    %191 = vector.broadcast %190 : vector<32x1xf32> to vector<32x32xf32>
    %192 = arith.mulf %182, %191 : vector<32x32xf32>
    %193 = vector.broadcast %174 : vector<1x32xf32> to vector<32x32xf32>
    %194 = arith.mulf %192, %193 : vector<32x32xf32>
    %195 = vector.broadcast %176 : vector<1x32xf32> to vector<32x32xf32>
    %196 = arith.addf %194, %195 : vector<32x32xf32>
    %c1 = arith.constant 1 : index
    %c0_95 = arith.constant 0 : index
    %c0_96 = arith.constant 0 : index
    %197 = vector.load %arg9[%c1, %c0_95, %c0_96] : memref<2x32x96xf32, #tpu.memory_space<vmem>>, vector<1x32x96xf32>
    %198 = vector.shape_cast %197 : vector<1x32x96xf32> to vector<32x96xf32>
    %cst_97 = arith.constant dense<0.000000e+00> : vector<32x96xf32>
    %199 = tpu.matmul %196, %198, %cst_97 {dimension_numbers = #tpu.dot_dimension_numbers<[1], [0], [0], [1], [0, 0, 1, 1], [], []>} : vector<32x32xf32>, vector<32x96xf32>, vector<32x96xf32> -> vector<32x96xf32>
    %c1_98 = arith.constant 1 : index
    %c0_99 = arith.constant 0 : index
    %c0_100 = arith.constant 0 : index
    %200 = vector.load %arg10[%c1_98, %c0_99, %c0_100] : memref<2x1x96xf32, #tpu.memory_space<vmem>>, vector<1x1x96xf32>
    %201 = vector.shape_cast %200 : vector<1x1x96xf32> to vector<1x96xf32>
    %202 = vector.broadcast %201 : vector<1x96xf32> to vector<32x96xf32>
    %203 = arith.addf %199, %202 : vector<32x96xf32>
    %204 = vector.shape_cast %203 : vector<32x96xf32> to vector<2x16x96xf32>
    %205 = vector.extract_strided_slice %204 {offsets = [0, 0, 0], sizes = [2, 16, 8], strides = [1, 1, 1]} : vector<2x16x96xf32> to vector<2x16x8xf32>
    %cst_101 = arith.constant 0.353553385 : f32
    %206 = vector.broadcast %cst_101 : f32 to vector<2x16x8xf32>
    %207 = arith.mulf %205, %206 : vector<2x16x8xf32>
    %208 = vector.extract_strided_slice %204 {offsets = [0, 0, 32], sizes = [2, 16, 8], strides = [1, 1, 1]} : vector<2x16x96xf32> to vector<2x16x8xf32>
    %209 = vector.extract_strided_slice %204 {offsets = [0, 0, 64], sizes = [2, 16, 8], strides = [1, 1, 1]} : vector<2x16x96xf32> to vector<2x16x8xf32>
    "tpu.trace_start"() <{level = 10 : i32, message = "bqd,bkd->bqk"}> : () -> ()
    %cst_102 = arith.constant dense<0.000000e+00> : vector<2x16x16xf32>
    %210 = tpu.matmul %207, %208, %cst_102 {dimension_numbers = #tpu.dot_dimension_numbers<[2], [2], [1], [1], [0, 0, 0, 1, 1, 1], [0], [0]>} : vector<2x16x8xf32>, vector<2x16x8xf32>, vector<2x16x16xf32> -> vector<2x16x16xf32>
    %cst_103 = arith.constant -1.000000e+30 : f32
    "tpu.trace_stop"() : () -> ()
    %211 = vector.shape_cast %29 : vector<1x16x16xi1> to vector<1x16x16xi1>
    %212 = vector.broadcast %211 : vector<1x16x16xi1> to vector<2x16x16xi1>
    %213 = vector.broadcast %cst_103 : f32 to vector<2x16x16xf32>
    %214 = arith.select %212, %210, %213 : vector<2x16x16xi1>, vector<2x16x16xf32>
    %cst_104 = arith.constant dense<0xFF800000> : vector<2x16xf32>
    %215 = vector.multi_reduction <maximumf>, %214, %cst_104 [2] : vector<2x16x16xf32> to vector<2x16xf32>
    %216 = vector.shape_cast %215 : vector<2x16xf32> to vector<2x16x1xf32>
    %217 = vector.broadcast %216 : vector<2x16x1xf32> to vector<2x16x16xf32>
    %218 = arith.subf %214, %217 : vector<2x16x16xf32>
    %219 = math.exp %218 : vector<2x16x16xf32>
    %cst_105 = arith.constant dense<0.000000e+00> : vector<2x16xf32>
    %220 = vector.multi_reduction <add>, %219, %cst_105 [2] : vector<2x16x16xf32> to vector<2x16xf32>
    %221 = vector.shape_cast %220 : vector<2x16xf32> to vector<2x16x1xf32>
    %222 = tpu.reciprocal %221 {approx = true} : vector<2x16x1xf32> -> vector<2x16x1xf32>
    %223 = vector.broadcast %222 : vector<2x16x1xf32> to vector<2x16x16xf32>
    %224 = arith.mulf %219, %223 : vector<2x16x16xf32>
    "tpu.trace_start"() <{level = 10 : i32, message = "bqk,bkd->bqd"}> : () -> ()
    %cst_106 = arith.constant dense<0.000000e+00> : vector<2x16x8xf32>
    %225 = tpu.matmul %224, %209, %cst_106 {dimension_numbers = #tpu.dot_dimension_numbers<[2], [1], [1], [2], [0, 0, 0, 1, 1, 2], [0], [0]>} : vector<2x16x16xf32>, vector<2x16x8xf32>, vector<2x16x8xf32> -> vector<2x16x8xf32>
    "tpu.trace_stop"() : () -> ()
    %226 = vector.extract_strided_slice %204 {offsets = [0, 0, 8], sizes = [2, 16, 8], strides = [1, 1, 1]} : vector<2x16x96xf32> to vector<2x16x8xf32>
    %cst_107 = arith.constant 0.353553385 : f32
    %227 = vector.broadcast %cst_107 : f32 to vector<2x16x8xf32>
    %228 = arith.mulf %226, %227 : vector<2x16x8xf32>
    %229 = vector.extract_strided_slice %204 {offsets = [0, 0, 40], sizes = [2, 16, 8], strides = [1, 1, 1]} : vector<2x16x96xf32> to vector<2x16x8xf32>
    %230 = vector.extract_strided_slice %204 {offsets = [0, 0, 72], sizes = [2, 16, 8], strides = [1, 1, 1]} : vector<2x16x96xf32> to vector<2x16x8xf32>
    "tpu.trace_start"() <{level = 10 : i32, message = "bqd,bkd->bqk"}> : () -> ()
    %cst_108 = arith.constant dense<0.000000e+00> : vector<2x16x16xf32>
    %231 = tpu.matmul %228, %229, %cst_108 {dimension_numbers = #tpu.dot_dimension_numbers<[2], [2], [1], [1], [0, 0, 0, 1, 1, 1], [0], [0]>} : vector<2x16x8xf32>, vector<2x16x8xf32>, vector<2x16x16xf32> -> vector<2x16x16xf32>
    %cst_109 = arith.constant -1.000000e+30 : f32
    "tpu.trace_stop"() : () -> ()
    %232 = vector.shape_cast %29 : vector<1x16x16xi1> to vector<1x16x16xi1>
    %233 = vector.broadcast %232 : vector<1x16x16xi1> to vector<2x16x16xi1>
    %234 = vector.broadcast %cst_109 : f32 to vector<2x16x16xf32>
    %235 = arith.select %233, %231, %234 : vector<2x16x16xi1>, vector<2x16x16xf32>
    %cst_110 = arith.constant dense<0xFF800000> : vector<2x16xf32>
    %236 = vector.multi_reduction <maximumf>, %235, %cst_110 [2] : vector<2x16x16xf32> to vector<2x16xf32>
    %237 = vector.shape_cast %236 : vector<2x16xf32> to vector<2x16x1xf32>
    %238 = vector.broadcast %237 : vector<2x16x1xf32> to vector<2x16x16xf32>
    %239 = arith.subf %235, %238 : vector<2x16x16xf32>
    %240 = math.exp %239 : vector<2x16x16xf32>
    %cst_111 = arith.constant dense<0.000000e+00> : vector<2x16xf32>
    %241 = vector.multi_reduction <add>, %240, %cst_111 [2] : vector<2x16x16xf32> to vector<2x16xf32>
    %242 = vector.shape_cast %241 : vector<2x16xf32> to vector<2x16x1xf32>
    %243 = tpu.reciprocal %242 {approx = true} : vector<2x16x1xf32> -> vector<2x16x1xf32>
    %244 = vector.broadcast %243 : vector<2x16x1xf32> to vector<2x16x16xf32>
    %245 = arith.mulf %240, %244 : vector<2x16x16xf32>
    "tpu.trace_start"() <{level = 10 : i32, message = "bqk,bkd->bqd"}> : () -> ()
    %cst_112 = arith.constant dense<0.000000e+00> : vector<2x16x8xf32>
    %246 = tpu.matmul %245, %230, %cst_112 {dimension_numbers = #tpu.dot_dimension_numbers<[2], [1], [1], [2], [0, 0, 0, 1, 1, 2], [0], [0]>} : vector<2x16x16xf32>, vector<2x16x8xf32>, vector<2x16x8xf32> -> vector<2x16x8xf32>
    "tpu.trace_stop"() : () -> ()
    %247 = vector.extract_strided_slice %204 {offsets = [0, 0, 16], sizes = [2, 16, 8], strides = [1, 1, 1]} : vector<2x16x96xf32> to vector<2x16x8xf32>
    %cst_113 = arith.constant 0.353553385 : f32
    %248 = vector.broadcast %cst_113 : f32 to vector<2x16x8xf32>
    %249 = arith.mulf %247, %248 : vector<2x16x8xf32>
    %250 = vector.extract_strided_slice %204 {offsets = [0, 0, 48], sizes = [2, 16, 8], strides = [1, 1, 1]} : vector<2x16x96xf32> to vector<2x16x8xf32>
    %251 = vector.extract_strided_slice %204 {offsets = [0, 0, 80], sizes = [2, 16, 8], strides = [1, 1, 1]} : vector<2x16x96xf32> to vector<2x16x8xf32>
    "tpu.trace_start"() <{level = 10 : i32, message = "bqd,bkd->bqk"}> : () -> ()
    %cst_114 = arith.constant dense<0.000000e+00> : vector<2x16x16xf32>
    %252 = tpu.matmul %249, %250, %cst_114 {dimension_numbers = #tpu.dot_dimension_numbers<[2], [2], [1], [1], [0, 0, 0, 1, 1, 1], [0], [0]>} : vector<2x16x8xf32>, vector<2x16x8xf32>, vector<2x16x16xf32> -> vector<2x16x16xf32>
    %cst_115 = arith.constant -1.000000e+30 : f32
    "tpu.trace_stop"() : () -> ()
    %253 = vector.shape_cast %29 : vector<1x16x16xi1> to vector<1x16x16xi1>
    %254 = vector.broadcast %253 : vector<1x16x16xi1> to vector<2x16x16xi1>
    %255 = vector.broadcast %cst_115 : f32 to vector<2x16x16xf32>
    %256 = arith.select %254, %252, %255 : vector<2x16x16xi1>, vector<2x16x16xf32>
    %cst_116 = arith.constant dense<0xFF800000> : vector<2x16xf32>
    %257 = vector.multi_reduction <maximumf>, %256, %cst_116 [2] : vector<2x16x16xf32> to vector<2x16xf32>
    %258 = vector.shape_cast %257 : vector<2x16xf32> to vector<2x16x1xf32>
    %259 = vector.broadcast %258 : vector<2x16x1xf32> to vector<2x16x16xf32>
    %260 = arith.subf %256, %259 : vector<2x16x16xf32>
    %261 = math.exp %260 : vector<2x16x16xf32>
    %cst_117 = arith.constant dense<0.000000e+00> : vector<2x16xf32>
    %262 = vector.multi_reduction <add>, %261, %cst_117 [2] : vector<2x16x16xf32> to vector<2x16xf32>
    %263 = vector.shape_cast %262 : vector<2x16xf32> to vector<2x16x1xf32>
    %264 = tpu.reciprocal %263 {approx = true} : vector<2x16x1xf32> -> vector<2x16x1xf32>
    %265 = vector.broadcast %264 : vector<2x16x1xf32> to vector<2x16x16xf32>
    %266 = arith.mulf %261, %265 : vector<2x16x16xf32>
    "tpu.trace_start"() <{level = 10 : i32, message = "bqk,bkd->bqd"}> : () -> ()
    %cst_118 = arith.constant dense<0.000000e+00> : vector<2x16x8xf32>
    %267 = tpu.matmul %266, %251, %cst_118 {dimension_numbers = #tpu.dot_dimension_numbers<[2], [1], [1], [2], [0, 0, 0, 1, 1, 2], [0], [0]>} : vector<2x16x16xf32>, vector<2x16x8xf32>, vector<2x16x8xf32> -> vector<2x16x8xf32>
    "tpu.trace_stop"() : () -> ()
    %268 = vector.extract_strided_slice %204 {offsets = [0, 0, 24], sizes = [2, 16, 8], strides = [1, 1, 1]} : vector<2x16x96xf32> to vector<2x16x8xf32>
    %cst_119 = arith.constant 0.353553385 : f32
    %269 = vector.broadcast %cst_119 : f32 to vector<2x16x8xf32>
    %270 = arith.mulf %268, %269 : vector<2x16x8xf32>
    %271 = vector.extract_strided_slice %204 {offsets = [0, 0, 56], sizes = [2, 16, 8], strides = [1, 1, 1]} : vector<2x16x96xf32> to vector<2x16x8xf32>
    %272 = vector.extract_strided_slice %204 {offsets = [0, 0, 88], sizes = [2, 16, 8], strides = [1, 1, 1]} : vector<2x16x96xf32> to vector<2x16x8xf32>
    "tpu.trace_start"() <{level = 10 : i32, message = "bqd,bkd->bqk"}> : () -> ()
    %cst_120 = arith.constant dense<0.000000e+00> : vector<2x16x16xf32>
    %273 = tpu.matmul %270, %271, %cst_120 {dimension_numbers = #tpu.dot_dimension_numbers<[2], [2], [1], [1], [0, 0, 0, 1, 1, 1], [0], [0]>} : vector<2x16x8xf32>, vector<2x16x8xf32>, vector<2x16x16xf32> -> vector<2x16x16xf32>
    %cst_121 = arith.constant -1.000000e+30 : f32
    "tpu.trace_stop"() : () -> ()
    %274 = vector.shape_cast %29 : vector<1x16x16xi1> to vector<1x16x16xi1>
    %275 = vector.broadcast %274 : vector<1x16x16xi1> to vector<2x16x16xi1>
    %276 = vector.broadcast %cst_121 : f32 to vector<2x16x16xf32>
    %277 = arith.select %275, %273, %276 : vector<2x16x16xi1>, vector<2x16x16xf32>
    %cst_122 = arith.constant dense<0xFF800000> : vector<2x16xf32>
    %278 = vector.multi_reduction <maximumf>, %277, %cst_122 [2] : vector<2x16x16xf32> to vector<2x16xf32>
    %279 = vector.shape_cast %278 : vector<2x16xf32> to vector<2x16x1xf32>
    %280 = vector.broadcast %279 : vector<2x16x1xf32> to vector<2x16x16xf32>
    %281 = arith.subf %277, %280 : vector<2x16x16xf32>
    %282 = math.exp %281 : vector<2x16x16xf32>
    %cst_123 = arith.constant dense<0.000000e+00> : vector<2x16xf32>
    %283 = vector.multi_reduction <add>, %282, %cst_123 [2] : vector<2x16x16xf32> to vector<2x16xf32>
    %284 = vector.shape_cast %283 : vector<2x16xf32> to vector<2x16x1xf32>
    %285 = tpu.reciprocal %284 {approx = true} : vector<2x16x1xf32> -> vector<2x16x1xf32>
    %286 = vector.broadcast %285 : vector<2x16x1xf32> to vector<2x16x16xf32>
    %287 = arith.mulf %282, %286 : vector<2x16x16xf32>
    "tpu.trace_start"() <{level = 10 : i32, message = "bqk,bkd->bqd"}> : () -> ()
    %cst_124 = arith.constant dense<0.000000e+00> : vector<2x16x8xf32>
    %288 = tpu.matmul %287, %272, %cst_124 {dimension_numbers = #tpu.dot_dimension_numbers<[2], [1], [1], [2], [0, 0, 0, 1, 1, 2], [0], [0]>} : vector<2x16x16xf32>, vector<2x16x8xf32>, vector<2x16x8xf32> -> vector<2x16x8xf32>
    "tpu.trace_stop"() : () -> ()
    %289 = tpu.concatenate %225, %246, %267, %288 in 2 : vector<2x16x8xf32>, vector<2x16x8xf32>, vector<2x16x8xf32>, vector<2x16x8xf32> -> vector<2x16x32xf32>
    %290 = vector.shape_cast %289 : vector<2x16x32xf32> to vector<32x32xf32>
    %c1_125 = arith.constant 1 : index
    %c0_126 = arith.constant 0 : index
    %c0_127 = arith.constant 0 : index
    %291 = vector.load %arg11[%c1_125, %c0_126, %c0_127] : memref<2x32x32xf32, #tpu.memory_space<vmem>>, vector<1x32x32xf32>
    %292 = vector.shape_cast %291 : vector<1x32x32xf32> to vector<32x32xf32>
    %cst_128 = arith.constant dense<0.000000e+00> : vector<32x32xf32>
    %293 = tpu.matmul %290, %292, %cst_128 {dimension_numbers = #tpu.dot_dimension_numbers<[1], [0], [0], [1], [0, 0, 1, 1], [], []>} : vector<32x32xf32>, vector<32x32xf32>, vector<32x32xf32> -> vector<32x32xf32>
    %c1_129 = arith.constant 1 : index
    %c0_130 = arith.constant 0 : index
    %c0_131 = arith.constant 0 : index
    %294 = vector.load %arg12[%c1_129, %c0_130, %c0_131] : memref<2x1x32xf32, #tpu.memory_space<vmem>>, vector<1x1x32xf32>
    %295 = vector.shape_cast %294 : vector<1x1x32xf32> to vector<1x32xf32>
    %296 = vector.broadcast %295 : vector<1x32xf32> to vector<32x32xf32>
    %297 = arith.addf %293, %296 : vector<32x32xf32>
    %298 = arith.addf %196, %297 : vector<32x32xf32>
    %c1_132 = arith.constant 1 : index
    %c0_133 = arith.constant 0 : index
    %c0_134 = arith.constant 0 : index
    %299 = vector.load %arg13[%c1_132, %c0_133, %c0_134] : memref<2x1x32xf32, #tpu.memory_space<vmem>>, vector<1x1x32xf32>
    %300 = vector.shape_cast %299 : vector<1x1x32xf32> to vector<1x32xf32>
    %c1_135 = arith.constant 1 : index
    %c0_136 = arith.constant 0 : index
    %c0_137 = arith.constant 0 : index
    %301 = vector.load %arg14[%c1_135, %c0_136, %c0_137] : memref<2x1x32xf32, #tpu.memory_space<vmem>>, vector<1x1x32xf32>
    %302 = vector.shape_cast %301 : vector<1x1x32xf32> to vector<1x32xf32>
    %cst_138 = arith.constant dense<0.000000e+00> : vector<32xf32>
    %303 = vector.multi_reduction <add>, %298, %cst_138 [1] : vector<32x32xf32> to vector<32xf32>
    %304 = vector.shape_cast %303 : vector<32xf32> to vector<32x1xf32>
    %cst_139 = arith.constant 3.200000e+01 : f32
    %305 = vector.broadcast %cst_139 : f32 to vector<32x1xf32>
    %306 = arith.divf %304, %305 : vector<32x1xf32>
    %307 = vector.broadcast %306 : vector<32x1xf32> to vector<32x32xf32>
    %308 = arith.subf %298, %307 : vector<32x32xf32>
    %309 = arith.mulf %308, %308 : vector<32x32xf32>
    %cst_140 = arith.constant dense<0.000000e+00> : vector<32xf32>
    %310 = vector.multi_reduction <add>, %309, %cst_140 [1] : vector<32x32xf32> to vector<32xf32>
    %311 = vector.shape_cast %310 : vector<32xf32> to vector<32x1xf32>
    %cst_141 = arith.constant 3.200000e+01 : f32
    %312 = vector.broadcast %cst_141 : f32 to vector<32x1xf32>
    %313 = arith.divf %311, %312 : vector<32x1xf32>
    %cst_142 = arith.constant 9.99999974E-6 : f32
    %314 = vector.broadcast %cst_142 : f32 to vector<32x1xf32>
    %315 = arith.addf %313, %314 : vector<32x1xf32>
    %316 = math.rsqrt %315 : vector<32x1xf32>
    %317 = vector.broadcast %316 : vector<32x1xf32> to vector<32x32xf32>
    %318 = arith.mulf %308, %317 : vector<32x32xf32>
    %319 = vector.broadcast %300 : vector<1x32xf32> to vector<32x32xf32>
    %320 = arith.mulf %318, %319 : vector<32x32xf32>
    %321 = vector.broadcast %302 : vector<1x32xf32> to vector<32x32xf32>
    %322 = arith.addf %320, %321 : vector<32x32xf32>
    %c1_143 = arith.constant 1 : index
    %c0_144 = arith.constant 0 : index
    %c0_145 = arith.constant 0 : index
    %323 = vector.load %arg15[%c1_143, %c0_144, %c0_145] : memref<2x32x2048xf32, #tpu.memory_space<vmem>>, vector<1x32x2048xf32>
    %324 = vector.shape_cast %323 : vector<1x32x2048xf32> to vector<32x2048xf32>
    %cst_146 = arith.constant dense<0.000000e+00> : vector<32x2048xf32>
    %325 = tpu.matmul %322, %324, %cst_146 {dimension_numbers = #tpu.dot_dimension_numbers<[1], [0], [0], [1], [0, 0, 1, 1], [], []>} : vector<32x32xf32>, vector<32x2048xf32>, vector<32x2048xf32> -> vector<32x2048xf32>
    %c1_147 = arith.constant 1 : index
    %c0_148 = arith.constant 0 : index
    %c0_149 = arith.constant 0 : index
    %326 = vector.load %arg16[%c1_147, %c0_148, %c0_149] : memref<2x1x2048xf32, #tpu.memory_space<vmem>>, vector<1x1x2048xf32>
    %327 = vector.shape_cast %326 : vector<1x1x2048xf32> to vector<1x2048xf32>
    %328 = vector.broadcast %327 : vector<1x2048xf32> to vector<32x2048xf32>
    %329 = arith.addf %325, %328 : vector<32x2048xf32>
    %cst_150 = arith.constant 0.000000e+00 : f32
    %330 = vector.broadcast %cst_150 : f32 to vector<32x2048xf32>
    %331 = arith.maximumf %329, %330 : vector<32x2048xf32>
    %c1_151 = arith.constant 1 : index
    %c0_152 = arith.constant 0 : index
    %c0_153 = arith.constant 0 : index
    %332 = vector.load %arg17[%c1_151, %c0_152, %c0_153] : memref<2x2048x32xf32, #tpu.memory_space<vmem>>, vector<1x2048x32xf32>
    %333 = vector.shape_cast %332 : vector<1x2048x32xf32> to vector<2048x32xf32>
    %cst_154 = arith.constant dense<0.000000e+00> : vector<32x32xf32>
    %334 = tpu.matmul %331, %333, %cst_154 {dimension_numbers = #tpu.dot_dimension_numbers<[1], [0], [0], [1], [0, 0, 1, 1], [], []>} : vector<32x2048xf32>, vector<2048x32xf32>, vector<32x32xf32> -> vector<32x32xf32>
    %c1_155 = arith.constant 1 : index
    %c0_156 = arith.constant 0 : index
    %c0_157 = arith.constant 0 : index
    %335 = vector.load %arg18[%c1_155, %c0_156, %c0_157] : memref<2x1x32xf32, #tpu.memory_space<vmem>>, vector<1x1x32xf32>
    %336 = vector.shape_cast %335 : vector<1x1x32xf32> to vector<1x32xf32>
    %337 = vector.broadcast %336 : vector<1x32xf32> to vector<32x32xf32>
    %338 = arith.addf %334, %337 : vector<32x32xf32>
    %339 = arith.addf %322, %338 : vector<32x32xf32>
    %c1_158 = arith.constant 1 : index
    %c0_159 = arith.constant 0 : index
    %c0_160 = arith.constant 0 : index
    %340 = vector.load %arg19[%c1_158, %c0_159, %c0_160] : memref<2x1x32xf32, #tpu.memory_space<vmem>>, vector<1x1x32xf32>
    %341 = vector.shape_cast %340 : vector<1x1x32xf32> to vector<1x32xf32>
    %c1_161 = arith.constant 1 : index
    %c0_162 = arith.constant 0 : index
    %c0_163 = arith.constant 0 : index
    %342 = vector.load %arg20[%c1_161, %c0_162, %c0_163] : memref<2x1x32xf32, #tpu.memory_space<vmem>>, vector<1x1x32xf32>
    %343 = vector.shape_cast %342 : vector<1x1x32xf32> to vector<1x32xf32>
    %cst_164 = arith.constant dense<0.000000e+00> : vector<32xf32>
    %344 = vector.multi_reduction <add>, %339, %cst_164 [1] : vector<32x32xf32> to vector<32xf32>
    %345 = vector.shape_cast %344 : vector<32xf32> to vector<32x1xf32>
    %cst_165 = arith.constant 3.200000e+01 : f32
    %346 = vector.broadcast %cst_165 : f32 to vector<32x1xf32>
    %347 = arith.divf %345, %346 : vector<32x1xf32>
    %348 = vector.broadcast %347 : vector<32x1xf32> to vector<32x32xf32>
    %349 = arith.subf %339, %348 : vector<32x32xf32>
    %350 = arith.mulf %349, %349 : vector<32x32xf32>
    %cst_166 = arith.constant dense<0.000000e+00> : vector<32xf32>
    %351 = vector.multi_reduction <add>, %350, %cst_166 [1] : vector<32x32xf32> to vector<32xf32>
    %352 = vector.shape_cast %351 : vector<32xf32> to vector<32x1xf32>
    %cst_167 = arith.constant 3.200000e+01 : f32
    %353 = vector.broadcast %cst_167 : f32 to vector<32x1xf32>
    %354 = arith.divf %352, %353 : vector<32x1xf32>
    %cst_168 = arith.constant 9.99999974E-6 : f32
    %355 = vector.broadcast %cst_168 : f32 to vector<32x1xf32>
    %356 = arith.addf %354, %355 : vector<32x1xf32>
    %357 = math.rsqrt %356 : vector<32x1xf32>
    %358 = vector.broadcast %357 : vector<32x1xf32> to vector<32x32xf32>
    %359 = arith.mulf %349, %358 : vector<32x32xf32>
    %360 = vector.broadcast %341 : vector<1x32xf32> to vector<32x32xf32>
    %361 = arith.mulf %359, %360 : vector<32x32xf32>
    %362 = vector.broadcast %343 : vector<1x32xf32> to vector<32x32xf32>
    %363 = arith.addf %361, %362 : vector<32x32xf32>
    %c0_169 = arith.constant 0 : index
    %c0_170 = arith.constant 0 : index
    %364 = vector.load %arg21[%c0_169, %c0_170] : memref<32x1xf32, #tpu.memory_space<vmem>>, vector<32x1xf32>
    %cst_171 = arith.constant dense<0.000000e+00> : vector<32x1xf32>
    %365 = tpu.matmul %363, %364, %cst_171 {dimension_numbers = #tpu.dot_dimension_numbers<[1], [0], [0], [1], [0, 0, 1, 1], [], []>} : vector<32x32xf32>, vector<32x1xf32>, vector<32x1xf32> -> vector<32x1xf32>
    %c0_172 = arith.constant 0 : index
    %c0_173 = arith.constant 0 : index
    %366 = vector.load %arg22[%c0_172, %c0_173] : memref<1x1xf32, #tpu.memory_space<vmem>>, vector<1x1xf32>
    %367 = vector.broadcast %366 : vector<1x1xf32> to vector<32x1xf32>
    %368 = arith.addf %365, %367 : vector<32x1xf32>
    %c0_174 = arith.constant 0 : index
    %c0_175 = arith.constant 0 : index
    %369 = vector.load %arg23[%c0_174, %c0_175] : memref<32x1xf32, #tpu.memory_space<vmem>>, vector<32x1xf32>
    tpu.vector_store %arg23[%c0_174, %c0_175], %368 {strides = array<i32>} : memref<32x1xf32, #tpu.memory_space<vmem>>, vector<32x1xf32>,
    return
  }
}

</mosaic_0001>

<bundles_post_ra>
// kernel: transformer_forward.1
= control target key start
LH: loop header
LB: loop body
LE: loop exit
PB: predicated region body
PF: predicated region fallthrough
CT: control target
= control target key end

     0   :  { %vm101_vm0 = vcmask 1043456   ;;  %vm88_vm1 = vcmask 31744   ;;  %v10294_v3 = vmov 0   ;;  %v83_v18 = vlaneseq  ;;  %s10295_s30 = smov 96   ;;  %s10296_s25 = smov 64   ;;  %s13925_s3 = inlined_call_operand.vmem [shape: f32[4,32], index: 3, kind: input, shape index: {}]   ;;  %s13926_s0 = inlined_call_operand.vmem [shape: f32[32,4], index: 0, kind: input, shape index: {}]   ;;  %s13927_s1 = inlined_call_operand.vmem [shape: f32[32,1], index: 1, kind: input, shape index: {}]   ;;  %s13928_s2 = inlined_call_operand.vmem [shape: f32[32,1], index: 2, kind: input, shape index: {}]   ;;  %s13929_s6 = inlined_call_operand.vmem [shape: f32[32,32], index: 6, kind: input, shape index: {}]   ;;  %s13930_s4 = inlined_call_operand.vmem [shape: f32[1,32], index: 4, kind: input, shape index: {}]   ;;  %s13931_s5 = inlined_call_operand.vmem [shape: f32[1,32], index: 5, kind: input, shape index: {}]   ;;  %s13932_s9 = inlined_call_operand.vmem [shape: f32[2,32,96], index: 9, kind: input, shape index: {}]   ;;  %s13933_s7 = inlined_call_operand.vmem [shape: f32[1,32], index: 7, kind: input, shape index: {}]   ;;  %s13934_s8 = inlined_call_operand.vmem [shape: f32[16,32], index: 8, kind: input, shape index: {}]   ;;  %s13935_s10 = inlined_call_operand.vmem [shape: f32[2,1,96], index: 10, kind: input, shape index: {}]   ;;  %s13936_s11 = inlined_call_operand.vmem [shape: f32[2,32,32], index: 11, kind: input, shape index: {}]   ;;  %s13937_s12 = inlined_call_operand.vmem [shape: f32[2,1,32], index: 12, kind: input, shape index: {}]   ;;  %s13938_s15 = inlined_call_operand.vmem [shape: f32[2,32,2048], index: 15, kind: input, shape index: {}]   ;;  %s13939_s13 = inlined_call_operand.vmem [shape: f32[2,1,32], index: 13, kind: input, shape index: {}]   ;;  %s13940_s14 = inlined_call_operand.vmem [shape: f32[2,1,32], index: 14, kind: input, shape index: {}]   ;;  %s13941_s17 = inlined_call_operand.vmem [shape: f32[2,2048,32], index: 17, kind: input, shape index: {}]   ;;  %s13942_s16 = inlined_call_operand.vmem [shape: f32[2,1,2048], index: 16, kind: input, shape index: {}]   ;;  %s13943_s18 = inlined_call_operand.vmem [shape: f32[2,1,32], index: 18, kind: input, shape index: {}]   ;;  %s13944_s19 = inlined_call_operand.vmem [shape: f32[2,1,32], index: 19, kind: input, shape index: {}]   ;;  %s13945_s20 = inlined_call_operand.vmem [shape: f32[2,1,32], index: 20, kind: input, shape index: {}]   ;;  %s13946_s21 = inlined_call_operand.vmem [shape: f32[32,1], index: 21, kind: input, shape index: {}]   ;;  %s13947_s22 = inlined_call_operand.<no memory space> [shape: f32[1,1], index: 22, kind: input, shape index: {}]   ;;  %s13948_s23 = inlined_call_operand.vmem [shape: f32[32,1], index: 23, kind: output, shape index: {}]  }
   0x1   :  { %13992 = sst [smem:[#allocation13_spill]] %s13925_s3  ;;  %10132 = vset.pattern.permute.xlu0 %v10294_v3  ;;  %10133 = vset.pattern.permute.xlu1 %v10294_v3  ;;  %vm269_vm2 = vcmask 261120   ;;  %v8378_v58 = vld [vmem:[%s13933_s7] ss:$0 sm:$0xff]  ;;  %v368_v63 = vld [vmem:[%s13934_s8 + $0x8] sm:$0xff]  ;;  %vm494_vm3 = vcmask 64512  }
   0x2   :  { %13993 = sst [smem:[#allocation14_spill]] %s13926_s0  ;;  %v10486_v21 = vshrl.u32 %v83_v18, 7  ;;  %v367_v62 = vld [vmem:[%s13934_s8] sm:$0xff]  ;;  %vm677_vm5 = vcmask 130048   ;;  %s10297_s26 = smov 88   ;;  %vm2164_vm6 = vcmask 195584  }
   0x3   :  { %13994 = sst [smem:[#allocation15_spill]] %s13927_s1  ;;  %s10298_s1 = smov 120   ;;  %vm8364_vm7 = vcmask 7168  }
   0x4   :  { %13995 = sst [smem:[#allocation16_spill]] %s13928_s2  ;;  %v10492_v23 = vsub.s32 0, %v10486_v21  ;;  %s13960_s27 = smov 48  }
   0x5   :  { %13996 = sst [smem:[#allocation17_spill]] %s13929_s6  ;;  %s13956_s28 = smov 104  }
   0x6   :  { %13997 = sst [smem:[#allocation18_spill]] %s13930_s4  ;;  %14006 = vst [vmem:[#allocation3_spill] sm:$0xff] %v10492_v23  ;;  %s13966_s3 = smov 16  }
   0x7   :  { %13998 = sst [smem:[#allocation19_spill]] %s13931_s5  ;;  %s10299_s5 = smov 56  }
   0x8   :  { %13999 = sst [smem:[#allocation20_spill]] %s13932_s9  ;;  %s13958_s9 = smov 72  }
   0x9   :  { %s14000_s24 = sld [smem:[#allocation13_spill]] }
   0xa   :  { %s14001_s0 = sld [smem:[#allocation14_spill]] }
   0xb   :  { %s14002_s29 = sld [smem:[#allocation15_spill]] }
   0xc   :  { %s14004_s4 = sld [smem:[#allocation17_spill]] }
   0xd   :  { %s14005_s2 = sld [smem:[#allocation18_spill]] }
   0xe   :  { %s14007_s6 = sld [smem:[#allocation19_spill]] }
   0xf   :  { %v80_v0 = vld [vmem:[%s14000_s24] sm:$0xf]  ;;  %s14003_s24 = sld [smem:[#allocation16_spill]] }
  0x10   :  { %v76_v1 = vld [vmem:[%s14001_s0] sm:$0xff]  ;;  %v77_v2 = vld [vmem:[%s14001_s0 + $0x8] sm:$0xff]  ;;  %9800 = vmatprep.subr.msk.mxu0 %vm101_vm0, %v80_v0  ;;  %v78_v4 = vld [vmem:[%s14001_s0 + $0x10] sm:$0xff] }
  0x11   :  { %9802 = vmatprep.mubr.msk.f32.mxu0 %vm88_vm1, %v76_v1  ;;  %v190_v5 = vld [vmem:[%s14002_s29] sm:$0xff]  ;;  %9801 = vmatpush3.msk.msra.mxu0 %vm101_vm0, %v80_v0  ;;  %v191_v6 = vld [vmem:[%s14002_s29 + $0x8] sm:$0xff]  ;;  %v79_v8 = vld [vmem:[%s14001_s0 + $0x18] sm:$0xff]  ;;  %s13968_s0 = smov 8  }
  0x12   :  { %196 = vperm.xlu0 %10132, %v190_v5   ;;  %9803 = vmatmul.mubr.msk.f32.vlgmr.msra.gmra.mxu0 %vm88_vm1, %v77_v2  ;;  %v192_v10 = vld [vmem:[%s14002_s29 + $0x10] sm:$0xff]  ;;  %v193_v12 = vld [vmem:[%s14002_s29 + $0x18] sm:$0xff]  ;;  %v259_v16 = vld [vmem:[%s14004_s4 + $0x8] sm:$0xff]  ;;  %s10300_s29 = smov 80  }
  0x13   :  { %201 = vperm.xlu1 %10133, %v191_v6   ;;  %9805 = vmatprep.mubr.msk.f32.mxu0 %vm88_vm1, %v78_v4  ;;  %v261_v14 = vld [vmem:[%s14004_s4 + $0x18] sm:$0xff]  ;;  %v260_v15 = vld [vmem:[%s14004_s4 + $0x10] sm:$0xff]  ;;  %v258_v17 = vld [vmem:[%s14004_s4] sm:$0xff]  ;;  %s14008_s4 = sld [smem:[#allocation20_spill]] }
  0x14   :  { %9808 = vmatprep.subr.mxu1 %v261_v14  ;;  %v81_v22 = vld [vmem:[%s14005_s2] sm:$0x1]  ;;  %s13954_s2 = smov 40  }
  0x15   :  { %v226_v7 = vld [vmem:[%s14003_s24] sm:$0xff]  ;;  %v227_v9 = vld [vmem:[%s14003_s24 + $0x8] sm:$0xff]  ;;  %v228_v11 = vld [vmem:[%s14003_s24 + $0x10] sm:$0xff]  ;;  %9809 = vmatpush3.msra.mxu1 %v261_v14  ;;  %v86_v28 = vrot.slane %v81_v22, %v10492_v23 }
  0x16   :  { %232 = vperm.xlu0 %10132, %v226_v7   ;;  %9806 = vmatmul.mubr.msk.f32.gmra.mxu0 %vm88_vm1, %v79_v8  ;;  %v229_v13 = vld [vmem:[%s14003_s24 + $0x18] sm:$0xff]  ;;  %v218_v24 = vld [vmem:[%s14007_s6] sm:$0x1]  ;;  %s13962_s24 = smov 112   ;;  %s13964_s6 = smov 24  }
  0x17   :  { %237 = vperm.xlu1 %10133, %v227_v9   ;;  %9810 = vmatprep.subr.mxu1 %v260_v15  ;;  %v219_v27 = vsub.f32 %v218_v24, %v81_v22  ;;  %v8383_v9 = vld [vmem:[%s13935_s10] ss:$0 sm:$0xff] }
  0x18   :  { %9811 = vmatpush3.msra.mxu1 %v260_v15 }
  0x19   :  { %9812 = vmatprep.subr.mxu1 %v259_v16  ;;  %v224_v29 = vrot.slane %v219_v27, %v10492_v23  ;;  %v379_v54 = vld [vmem:[%s14008_s4 + $0x18] sm:$0xff]  ;;  %v378_v55 = vld [vmem:[%s14008_s4 + $0x10] sm:$0xff]  ;;  %v377_v56 = vld [vmem:[%s14008_s4 + $0x8] sm:$0xff] }
  0x1a   :  { %206 = vperm.xlu0 %10132, %v192_v10   ;;  %9813 = vmatpush3.msra.mxu1 %v259_v16  ;;  %v376_v57 = vld [vmem:[%s14008_s4] sm:$0xff] }
  0x1b   :  { %242 = vperm.xlu1 %10133, %v228_v11   ;;  %9814 = vmatprep.subr.mxu1 %v258_v17 }
  0x1c   :  { %9815 = vmatpush3.msra.mxu1 %v258_v17  ;;  %9822 = vmatprep.subr.mxu0 %v379_v54 }
  0x1d   :  { %9823 = vmatpush3.msra.mxu0 %v379_v54 }
  0x1e   :  { %211 = vperm.xlu0 %10132, %v193_v12   ;;  %9824 = vmatprep.subr.mxu0 %v378_v55 }
  0x1f   :  { %247 = vperm.xlu1 %10133, %v229_v13   ;;  %9825 = vmatpush3.msra.mxu0 %v378_v55 }
  0x20   :  { %9826 = vmatprep.subr.mxu0 %v377_v56 }
  0x21   :  { %9827 = vmatpush3.msra.mxu0 %v377_v56 }
  0x22   :  { %9828 = vmatprep.subr.mxu0 %v376_v57 }
  0x23   :  { %9829 = vmatpush3.msra.mxu0 %v376_v57 }
  0x8d   :  { %v197_v19 = vpop.permute.xlu0 %196 }
  0x8e   :  { %v202_v20 = vpop.permute.xlu1 %201 }
  0x91   :  { %v233_v25 = vpop.permute.xlu0 %232 }
  0x92   :  { %v238_v26 = vpop.permute.xlu1 %237  ;;  %v250_v39 = vmul.f32 %v233_v25, %v224_v29 }
  0x93   :  { %v251_v36 = vmul.f32 %v238_v26, %v224_v29 }
  0x95   :  { %v207_v31 = vpop.permute.xlu0 %206 }
  0x96   :  { %v243_v32 = vpop.permute.xlu1 %242 }
  0x97   :  { %v252_v49 = vmul.f32 %v243_v32, %v224_v29 }
  0x99   :  { %v212_v43 = vpop.permute.xlu0 %211 }
  0x9a   :  { %v248_v44 = vpop.permute.xlu1 %247 }
  0x9b   :  { %v253_v51 = vmul.f32 %v248_v44, %v224_v29  ;;  %v10588_v29 = vand.u32 127, %v83_v18 }
  0x9d   :  { %14009 = vst [vmem:[#allocation4_spill] sm:$0xff] %v10588_v29  ;;  %vm375_vm4 = vcmp.lt.s32.totalorder %v10588_v29, 9 }
  0xd2   :  { %v9804_v30 = vpop.f32.mrf.mxu0 }
  0xd3   :  { %v177_v33 = vadd.f32 %v9804_v30, %v86_v28 }
  0xd4   :  { %v171_v34 = vpop.f32.mrf.mxu0 }
  0xd5   :  { %v172_v35 = vadd.f32 %v171_v34, %v86_v28  ;;  %v215_v37 = vadd.f32 %v202_v20, %v177_v33 }
  0xd6   :  { %v9807_v38 = vpop.f32.mrf.mxu0 }
  0xd7   :  { %v187_v40 = vadd.f32 %v9807_v38, %v86_v28  ;;  %v214_v41 = vadd.f32 %v197_v19, %v172_v35  ;;  %v255_v47 = vadd.f32 %v251_v36, %v215_v37 }
  0xd8   :  { %v181_v42 = vpop.f32.mrf.mxu0 }
  0xd9   :  { %v182_v45 = vadd.f32 %v181_v42, %v86_v28  ;;  %v254_v46 = vadd.f32 %v250_v39, %v214_v41  ;;  %v217_v48 = vadd.f32 %v212_v43, %v187_v40 }
  0xdb   :  { %v216_v50 = vadd.f32 %v207_v31, %v182_v45  ;;  %9816 = vmatprep.mubr.msk.f32.mxu1 %vm269_vm2, %v254_v46  ;;  %v257_v53 = vadd.f32 %v253_v51, %v217_v48 }
  0xdc   :  { %9817 = vmatmul.mubr.msk.f32.vlgmr.msra.gmra.mxu1 %vm269_vm2, %v255_v47 }
  0xdd   :  { %v256_v52 = vadd.f32 %v252_v49, %v216_v50 }
  0xdf   :  { %9819 = vmatprep.mubr.msk.f32.mxu1 %vm269_vm2, %v256_v52 }
  0xe0   :  { %9820 = vmatmul.mubr.msk.f32.gmra.mxu1 %vm269_vm2, %v257_v53 }
 0x19c   :  { %v9818_v59 = vpop.f32.mrf.mxu1 }
 0x19d   :  { %v354_v60 = vadd.f32 %v9818_v59, %v8378_v58 }
 0x19e   :  { %v348_v61 = vpop.f32.mrf.mxu1 }
 0x19f   :  { %v349_v0 = vadd.f32 %v8378_v58, %v348_v61  ;;  %v10526_v3 = vadd.f32 %v368_v63, %v354_v60 }
 0x1a0   :  { %v9821_v1 = vpop.f32.mrf.mxu1 }
 0x1a1   :  { %v10524_v2 = vadd.f32 %v367_v62, %v349_v0  ;;  %v364_v4 = vadd.f32 %v9821_v1, %v8378_v58 }
 0x1a2   :  { %v358_v5 = vpop.f32.mrf.mxu1 }
 0x1a3   :  { %v359_v6 = vadd.f32 %v8378_v58, %v358_v5  ;;  %9830 = vmatprep.mubr.msk.f32.mxu0 %vm269_vm2, %v10524_v2  ;;  %v10534_v8 = vadd.f32 %v368_v63, %v364_v4 }
 0x1a4   :  { %9831 = vmatmul.mubr.msk.f32.vlgmr.msra.gmra.mxu0 %vm269_vm2, %v10526_v3 }
 0x1a5   :  { %v10532_v7 = vadd.f32 %v367_v62, %v359_v6 }
 0x1a7   :  { %9833 = vmatprep.mubr.msk.f32.mxu0 %vm269_vm2, %v10532_v7 }
 0x1a8   :  { %9834 = vmatmul.mubr.msk.f32.gmra.mxu0 %vm269_vm2, %v10534_v8 }
 0x264   :  { %v9832_v10 = vpop.f32.mrf.mxu0 }
 0x265   :  { %v10543_v11 = vadd.f32 %v9832_v10, %v8383_v9 }
 0x266   :  { %v465_v12 = vpop.f32.mrf.mxu0 }
 0x267   :  { %v10545_v13 = vadd.f32 %v8383_v9, %v465_v12  ;;  %492 = vrot.lane.b32.xlu0 %v10543_v11, %s10295_s30  ;;  %v10577_v27 = vmul.f32 0.35355338, %v10543_v11 }
 0x268   :  { %v9835_v14 = vpop.f32.mrf.mxu0 }
 0x269   :  { %v10549_v15 = vadd.f32 %v9835_v14, %v8383_v9  ;;  %490 = vrot.lane.b32.xlu1 %v10545_v13, %s10295_s30  ;;  %v10554_v16 = vmul.f32 0.35355338, %v10545_v13 }
 0x26a   :  { %v475_v17 = vpop.f32.mrf.mxu0 }
 0x26b   :  { %v10556_v19 = vadd.f32 %v8383_v9, %v475_v17  ;;  %584 = vrot.lane.b32.xlu0 %v10549_v15, %s10295_s30  ;;  %9840 = vmatprep.mubr.msk.f32.mxu1 %vm494_vm3, %v10554_v16  ;;  %v10583_v28 = vmul.f32 0.35355338, %v10549_v15 }
 0x26d   :  { %582 = vrot.lane.b32.xlu1 %v10556_v19, %s10295_s30  ;;  %v10565_v20 = vmul.f32 0.35355338, %v10556_v19 }
 0x26f   :  { %9847 = vmatprep.mubr.msk.f32.mxu0 %vm494_vm3, %v10565_v20 }
 0x2d9   :  { %v493_v22 = vpop.permute.xlu0 %492 }
 0x2da   :  { %9836 = vmatprep.subr.msk.mxu1 %vm494_vm3, %v493_v22 }
 0x2db   :  { %9837 = vmatpush3.xpose.msk.msra.mxu1 %vm494_vm3, %v493_v22  ;;  %v491_v24 = vpop.permute.xlu1 %490 }
 0x2dc   :  { %9838 = vmatprep.subr.msk.mxu1 %vm494_vm3, %v491_v24 }
 0x2dd   :  { %v585_v25 = vpop.permute.xlu0 %584 }
 0x2de   :  { %9843 = vmatprep.subr.msk.mxu0 %vm494_vm3, %v585_v25 }
 0x2df   :  { %9839 = vmatpush3.xpose.msk.msra.mxu1 %vm494_vm3, %v491_v24  ;;  %9844 = vmatpush3.xpose.msk.msra.mxu0 %vm494_vm3, %v585_v25  ;;  %v583_v26 = vpop.permute.xlu1 %582 }
 0x2e0   :  { %9845 = vmatprep.subr.msk.mxu0 %vm494_vm3, %v583_v26 }
 0x2e2   :  { %9841 = vmatmul.mubr.msk.f32.vlgmr.msra.gmra.mxu1 %vm494_vm3, %v10577_v27 }
 0x2e3   :  { %9846 = vmatpush3.xpose.msk.msra.mxu0 %vm494_vm3, %v583_v26 }
 0x2e6   :  { %9848 = vmatmul.mubr.msk.f32.vlgmr.msra.gmra.mxu0 %vm494_vm3, %v10583_v28 }
 0x3a2   :  { %v9842_v30 = vpop.f32.mrf.mxu1 }
 0x3a3   :  { %v674_v31 = vsel %vm375_vm4, %v9842_v30, -1e+30 }
 0x3a4   :  { %v571_v32 = vpop.f32.mrf.mxu1  ;;  %v681_v33 = vsel %vm677_vm5, %v674_v31, -inf }
 0x3a5   :  { %682 = vmax.xlane.f32.xlu1 %v681_v33  ;;  %v673_v34 = vsel %vm375_vm4, %v571_v32, -1e+30 }
 0x3a6   :  { %v9849_v35 = vpop.f32.mrf.mxu0  ;;  %v678_v36 = vsel %vm677_vm5, %v673_v34, -inf }
 0x3a7   :  { %679 = vmax.xlane.f32.xlu0 %v678_v36  ;;  %v676_v39 = vsel %vm375_vm4, %v9849_v35, -1e+30 }
 0x3a8   :  { %v662_v18 = vpop.f32.mrf.mxu0  ;;  %v687_v40 = vsel %vm677_vm5, %v676_v39, -inf }
 0x3a9   :  { %v675_v37 = vsel %vm375_vm4, %v662_v18, -1e+30 }
 0x3aa   :  { %v684_v38 = vsel %vm677_vm5, %v675_v37, -inf }
 0x3ab   :  { %685 = vmax.xlane.f32.xlu0 %v684_v38 }
 0x3af   :  { %688 = vmax.xlane.f32.xlu0 %v687_v40 }
 0x3b6   :  { %722 = vrot.lane.b32.xlu1 %v10545_v13, %s10296_s25 }
 0x3ba   :  { %900 = vrot.lane.b32.xlu1 %v10545_v13, %s10297_s26 }
 0x3be   :  { %898 = vrot.lane.b32.xlu1 %v10577_v27, %s10298_s1 }
 0x3c2   :  { %809 = vrot.lane.b32.xlu1 %v10556_v19, %s10296_s25 }
 0x3c5   :  { %724 = vrot.lane.b32.xlu0 %v10543_v11, %s10296_s25 }
 0x42e   :  { %v683_v41 = vpop.xlane.xlu1 %682 }
 0x42f   :  { %v691_v42 = vsub.f32 %v674_v31, %v683_v41 }
 0x430   :  { %v680_v43 = vpop.xlane.xlu0 %679 }
 0x431   :  { %v696_v44 = vmul.f32 1.442695, %v691_v42  ;;  %v690_v45 = vsub.f32 %v673_v34, %v680_v43 }
 0x432   :  { %v723_v50 = vpop.permute.xlu1 %722 }
 0x433   :  { %10134 = vpow2.f32 %v696_v44  ;;  %v694_v46 = vmul.f32 1.442695, %v690_v45 }
 0x434   :  { %v686_v47 = vpop.xlane.xlu0 %685 }
 0x435   :  { %10136 = vpow2.f32 %v694_v46  ;;  %v692_v56 = vsub.f32 %v675_v37, %v686_v47 }
 0x436   :  { %v901_v63 = vpop.permute.xlu1 %900 }
 0x437   :  { %v698_v58 = vmul.f32 1.442695, %v692_v56 }
 0x438   :  { %v689_v48 = vpop.xlane.xlu0 %688 }
 0x439   :  { %v693_v55 = vsub.f32 %v676_v39, %v689_v48 }
 0x43a   :  { %v899_v0 = vpop.permute.xlu1 %898 }
 0x43b   :  { %v700_v57 = vmul.f32 1.442695, %v693_v55 }
 0x43c   :  { %v725_v49 = vpop.permute.xlu0 %724 }
 0x43d   :  { %9850 = vmatprep.subr.mxu1 %v725_v49  ;;  %10138 = vpow2.f32 %v700_v57 }
 0x43e   :  { %9851 = vmatpush3.msra.mxu1 %v725_v49  ;;  %10140 = vpow2.f32 %v698_v58  ;;  %v810_v1 = vpop.permute.xlu1 %809 }
 0x43f   :  { %9852 = vmatprep.subr.mxu1 %v723_v50 }
 0x440   :  { %v10135_v51 = vpop.eup %10134  ;;  %9853 = vmatpush3.msra.mxu1 %v723_v50 }
 0x441   :  { %v705_v52 = vsel %vm677_vm5, %v10135_v51, 0.0 }
 0x442   :  { %v10137_v53 = vpop.eup %10136  ;;  %706 = vadd.xlane.f32.xlu0 %v705_v52 }
 0x443   :  { %v702_v54 = vsel %vm677_vm5, %v10137_v53, 0.0 }
 0x444   :  { %703 = vadd.xlane.f32.xlu1 %v702_v54 }
 0x44a   :  { %v10139_v59 = vpop.eup %10138 }
 0x44b   :  { %v711_v60 = vsel %vm677_vm5, %v10139_v59, 0.0  ;;  %v10141_v61 = vpop.eup %10140 }
 0x44c   :  { %v708_v62 = vsel %vm677_vm5, %v10141_v61, 0.0 }
 0x455   :  { %991 = vrot.lane.b32.xlu1 %v10556_v19, %s10297_s26 }
 0x458   :  { %902 = vrot.lane.b32.xlu0 %v10543_v11, %s10297_s26 }
 0x45c   :  { %896 = vrot.lane.b32.xlu0 %v10554_v16, %s10298_s1 }
 0x460   :  { %811 = vrot.lane.b32.xlu0 %v10549_v15, %s10296_s25 }
 0x464   :  { %993 = vrot.lane.b32.xlu0 %v10549_v15, %s10297_s26 }
 0x468   :  { %987 = vrot.lane.b32.xlu0 %v10565_v20, %s10298_s1 }
 0x479   :  { %712 = vadd.xlane.f32.xlu1 %v711_v60 }
 0x47d   :  { %709 = vadd.xlane.f32.xlu1 %v708_v62 }
 0x48e   :  { %989 = vrot.lane.b32.xlu1 %v10583_v28, %s10298_s1 }
 0x4cb   :  { %v707_v4 = vpop.xlane.xlu0 %706 }
 0x4cc   :  { %10142 = vrcp.f32 %v707_v4 }
 0x4cd   :  { %v704_v5 = vpop.xlane.xlu1 %703 }
 0x4ce   :  { %10144 = vrcp.f32 %v704_v5 }
 0x4cf   :  { %v903_v6 = vpop.permute.xlu0 %902 }
 0x4d0   :  { %9864 = vmatprep.subr.msk.mxu1 %vm494_vm3, %v903_v6 }
 0x4d1   :  { %v992_v25 = vpop.permute.xlu1 %991 }
 0x4d3   :  { %v897_v9 = vpop.permute.xlu0 %896 }
 0x4d7   :  { %v812_v10 = vpop.permute.xlu0 %811 }
 0x4d8   :  { %9857 = vmatprep.subr.mxu0 %v812_v10 }
 0x4d9   :  { %9858 = vmatpush3.msra.mxu0 %v812_v10  ;;  %v10143_v12 = vpop.eup %10142 }
 0x4da   :  { %9859 = vmatprep.subr.mxu0 %v810_v1  ;;  %v719_v24 = vmul.f32 %v10143_v12, %v10135_v51 }
 0x4db   :  { %v10145_v14 = vpop.eup %10144  ;;  %9860 = vmatpush3.msra.mxu0 %v810_v1  ;;  %v994_v17 = vpop.permute.xlu0 %993 }
 0x4dc   :  { %9871 = vmatprep.subr.msk.mxu0 %vm494_vm3, %v994_v17  ;;  %v718_v22 = vmul.f32 %v10145_v14, %v10137_v53 }
 0x4de   :  { %9854 = vmatprep.mubr.msk.f32.mxu1 %vm677_vm5, %v718_v22 }
 0x4df   :  { %9855 = vmatmul.mubr.msk.f32.vlgmr.msra.gmra.mxu1 %vm677_vm5, %v719_v24  ;;  %v988_v35 = vpop.permute.xlu0 %987 }
 0x4e0   :  { %9865 = vmatpush3.xpose.msk.msra.mxu1 %vm494_vm3, %v903_v6  ;;  %9868 = vmatprep.mubr.msk.f32.mxu1 %vm494_vm3, %v897_v9 }
 0x4e1   :  { %9866 = vmatprep.subr.msk.mxu1 %vm494_vm3, %v901_v63 }
 0x4e4   :  { %9867 = vmatpush3.xpose.msk.msra.mxu1 %vm494_vm3, %v901_v63 }
 0x4e7   :  { %9869 = vmatmul.mubr.msk.f32.vlgmr.msra.gmra.mxu1 %vm494_vm3, %v899_v0 }
 0x502   :  { %v713_v26 = vpop.xlane.xlu1 %712 }
 0x503   :  { %10146 = vrcp.f32 %v713_v26 }
 0x506   :  { %v710_v30 = vpop.xlane.xlu1 %709 }
 0x507   :  { %10148 = vrcp.f32 %v710_v30 }
 0x50a   :  { %v990_v36 = vpop.permute.xlu1 %989 }
 0x510   :  { %v10147_v31 = vpop.eup %10146 }
 0x511   :  { %v721_v34 = vmul.f32 %v10147_v31, %v10139_v59 }
 0x514   :  { %v10149_v32 = vpop.eup %10148 }
 0x515   :  { %v720_v33 = vmul.f32 %v10149_v32, %v10141_v61 }
 0x517   :  { %9861 = vmatprep.mubr.msk.f32.mxu0 %vm677_vm5, %v720_v33 }
 0x518   :  { %9862 = vmatmul.mubr.msk.f32.vlgmr.msra.gmra.mxu0 %vm677_vm5, %v721_v34 }
 0x519   :  { %9872 = vmatpush3.xpose.msk.msra.mxu0 %vm494_vm3, %v994_v17  ;;  %9875 = vmatprep.mubr.msk.f32.mxu0 %vm494_vm3, %v988_v35 }
 0x51a   :  { %9873 = vmatprep.subr.msk.mxu0 %vm494_vm3, %v992_v25 }
 0x51d   :  { %9874 = vmatpush3.xpose.msk.msra.mxu0 %vm494_vm3, %v992_v25 }
 0x520   :  { %9876 = vmatmul.mubr.msk.f32.vlgmr.msra.gmra.mxu0 %vm494_vm3, %v990_v36 }
 0x59f   :  { %v10647_v18 = vpop.f32.mrf.mxu1 }
 0x5a1   :  { %v10649_v37 = vpop.f32.mrf.mxu1 }
 0x5a7   :  { %v9870_v38 = vpop.f32.mrf.mxu1 }
 0x5a8   :  { %v1079_v39 = vsel %vm375_vm4, %v9870_v38, -1e+30 }
 0x5a9   :  { %v978_v40 = vpop.f32.mrf.mxu1  ;;  %v1085_v41 = vsel %vm677_vm5, %v1079_v39, -inf }
 0x5aa   :  { %1086 = vmax.xlane.f32.xlu1 %v1085_v41  ;;  %v1078_v42 = vsel %vm375_vm4, %v978_v40, -1e+30 }
 0x5ab   :  { %v1082_v43 = vsel %vm677_vm5, %v1078_v42, -inf }
 0x5ac   :  { %1083 = vmax.xlane.f32.xlu0 %v1082_v43 }
 0x5bb   :  { %1126 = vrot.lane.b32.xlu1 %v10545_v13, %s10299_s5 }
 0x5bf   :  { %1304 = vrot.lane.b32.xlu1 %v10545_v13, %s10300_s29 }
 0x5c3   :  { %1302 = vrot.lane.b32.xlu1 %v10577_v27, %s13962_s24 }
 0x5c7   :  { %1213 = vrot.lane.b32.xlu1 %v10556_v19, %s10299_s5 }
 0x5d8   :  { %v10665_v44 = vpop.f32.mrf.mxu0 }
 0x5da   :  { %v10667_v45 = vpop.f32.mrf.mxu0 }
 0x5e0   :  { %v9877_v46 = vpop.f32.mrf.mxu0 }
 0x5e1   :  { %v1081_v50 = vsel %vm375_vm4, %v9877_v46, -1e+30 }
 0x5e2   :  { %v1069_v47 = vpop.f32.mrf.mxu0  ;;  %v1091_v51 = vsel %vm677_vm5, %v1081_v50, -inf }
 0x5e3   :  { %v1080_v48 = vsel %vm375_vm4, %v1069_v47, -1e+30 }
 0x5e4   :  { %v1088_v49 = vsel %vm677_vm5, %v1080_v48, -inf }
 0x5e5   :  { %1089 = vmax.xlane.f32.xlu0 %v1088_v49 }
 0x5e9   :  { %1092 = vmax.xlane.f32.xlu0 %v1091_v51 }
 0x5ff   :  { %1128 = vrot.lane.b32.xlu0 %v10543_v11, %s10299_s5 }
 0x633   :  { %v1087_v52 = vpop.xlane.xlu1 %1086 }
 0x634   :  { %v1095_v53 = vsub.f32 %v1079_v39, %v1087_v52 }
 0x635   :  { %v1084_v54 = vpop.xlane.xlu0 %1083 }
 0x636   :  { %v1100_v55 = vmul.f32 1.442695, %v1095_v53  ;;  %v1094_v56 = vsub.f32 %v1078_v42, %v1084_v54 }
 0x637   :  { %v1127_v9 = vpop.permute.xlu1 %1126 }
 0x638   :  { %10150 = vpow2.f32 %v1100_v55  ;;  %v1098_v57 = vmul.f32 1.442695, %v1094_v56 }
 0x63a   :  { %10152 = vpow2.f32 %v1098_v57 }
 0x63b   :  { %v1305_v22 = vpop.permute.xlu1 %1304 }
 0x63f   :  { %v1303_v24 = vpop.permute.xlu1 %1302 }
 0x643   :  { %v1214_v25 = vpop.permute.xlu1 %1213 }
 0x645   :  { %v10151_v58 = vpop.eup %10150 }
 0x646   :  { %v1109_v59 = vsel %vm677_vm5, %v10151_v58, 0.0 }
 0x647   :  { %v10153_v60 = vpop.eup %10152  ;;  %1110 = vadd.xlane.f32.xlu0 %v1109_v59 }
 0x648   :  { %v1106_v61 = vsel %vm677_vm5, %v10153_v60, 0.0 }
 0x649   :  { %1107 = vadd.xlane.f32.xlu1 %v1106_v61 }
 0x65a   :  { %1395 = vrot.lane.b32.xlu1 %v10556_v19, %s10300_s29 }
 0x65d   :  { %1306 = vrot.lane.b32.xlu0 %v10543_v11, %s10300_s29 }
 0x661   :  { %1300 = vrot.lane.b32.xlu0 %v10554_v16, %s13962_s24 }
 0x665   :  { %1215 = vrot.lane.b32.xlu0 %v10549_v15, %s10299_s5 }
 0x669   :  { %1397 = vrot.lane.b32.xlu0 %v10549_v15, %s10300_s29 }
 0x66d   :  { %1391 = vrot.lane.b32.xlu0 %v10565_v20, %s13962_s24 }
 0x66e   :  { %v1090_v62 = vpop.xlane.xlu0 %1089 }
 0x66f   :  { %v1096_v63 = vsub.f32 %v1080_v48, %v1090_v62 }
 0x671   :  { %v1102_v4 = vmul.f32 1.442695, %v1096_v63 }
 0x672   :  { %v1093_v0 = vpop.xlane.xlu0 %1092 }
 0x673   :  { %v1097_v1 = vsub.f32 %v1081_v50, %v1093_v0 }
 0x675   :  { %v1104_v5 = vmul.f32 1.442695, %v1097_v1 }
 0x676   :  { %v1129_v6 = vpop.permute.xlu0 %1128 }
 0x677   :  { %10154 = vpow2.f32 %v1104_v5  ;;  %9878 = vmatprep.subr.mxu1 %v1129_v6 }
 0x678   :  { %9879 = vmatpush3.msra.mxu1 %v1129_v6  ;;  %10156 = vpow2.f32 %v1102_v4 }
 0x679   :  { %9880 = vmatprep.subr.mxu1 %v1127_v9 }
 0x67a   :  { %9881 = vmatpush3.msra.mxu1 %v1127_v9 }
 0x684   :  { %v10155_v10 = vpop.eup %10154 }
 0x685   :  { %v1115_v12 = vsel %vm677_vm5, %v10155_v10, 0.0  ;;  %v10157_v14 = vpop.eup %10156 }
 0x686   :  { %1116 = vadd.xlane.f32.xlu1 %v1115_v12  ;;  %v1112_v17 = vsel %vm677_vm5, %v10157_v14, 0.0 }
 0x68a   :  { %1113 = vadd.xlane.f32.xlu1 %v1112_v17 }
 0x69b   :  { %1393 = vrot.lane.b32.xlu1 %v10583_v28, %s13962_s24 }
 0x6d0   :  { %v1111_v26 = vpop.xlane.xlu0 %1110 }
 0x6d1   :  { %10158 = vrcp.f32 %v1111_v26 }
 0x6d2   :  { %v1108_v30 = vpop.xlane.xlu1 %1107 }
 0x6d3   :  { %10160 = vrcp.f32 %v1108_v30 }
 0x6d4   :  { %v1307_v31 = vpop.permute.xlu0 %1306 }
 0x6d5   :  { %9892 = vmatprep.subr.msk.mxu1 %vm494_vm3, %v1307_v31 }
 0x6d6   :  { %v1396_v40 = vpop.permute.xlu1 %1395 }
 0x6d8   :  { %v1301_v32 = vpop.permute.xlu0 %1300 }
 0x6dc   :  { %v1216_v33 = vpop.permute.xlu0 %1215 }
 0x6dd   :  { %9885 = vmatprep.subr.mxu0 %v1216_v33 }
 0x6de   :  { %9886 = vmatpush3.msra.mxu0 %v1216_v33  ;;  %v10159_v34 = vpop.eup %10158 }
 0x6df   :  { %9887 = vmatprep.subr.mxu0 %v1214_v25  ;;  %v1123_v39 = vmul.f32 %v10159_v34, %v10151_v58 }
 0x6e0   :  { %v10161_v35 = vpop.eup %10160  ;;  %9888 = vmatpush3.msra.mxu0 %v1214_v25  ;;  %v1398_v36 = vpop.permute.xlu0 %1397 }
 0x6e1   :  { %9899 = vmatprep.subr.msk.mxu0 %vm494_vm3, %v1398_v36  ;;  %v1122_v38 = vmul.f32 %v10161_v35, %v10153_v60 }
 0x6e3   :  { %9882 = vmatprep.mubr.msk.f32.mxu1 %vm677_vm5, %v1122_v38 }
 0x6e4   :  { %9883 = vmatmul.mubr.msk.f32.vlgmr.msra.gmra.mxu1 %vm677_vm5, %v1123_v39  ;;  %v1392_v49 = vpop.permute.xlu0 %1391 }
 0x6e5   :  { %9893 = vmatpush3.xpose.msk.msra.mxu1 %vm494_vm3, %v1307_v31  ;;  %9896 = vmatprep.mubr.msk.f32.mxu1 %vm494_vm3, %v1301_v32 }
 0x6e6   :  { %9894 = vmatprep.subr.msk.mxu1 %vm494_vm3, %v1305_v22 }
 0x6e9   :  { %9895 = vmatpush3.xpose.msk.msra.mxu1 %vm494_vm3, %v1305_v22 }
 0x6ec   :  { %9897 = vmatmul.mubr.msk.f32.vlgmr.msra.gmra.mxu1 %vm494_vm3, %v1303_v24 }
 0x70f   :  { %v1117_v41 = vpop.xlane.xlu1 %1116 }
 0x710   :  { %10162 = vrcp.f32 %v1117_v41 }
 0x713   :  { %v1114_v42 = vpop.xlane.xlu1 %1113 }
 0x714   :  { %10164 = vrcp.f32 %v1114_v42 }
 0x717   :  { %v1394_v50 = vpop.permute.xlu1 %1393 }
 0x71d   :  { %v10163_v43 = vpop.eup %10162 }
 0x71e   :  { %v1125_v48 = vmul.f32 %v10163_v43, %v10155_v10 }
 0x721   :  { %v10165_v46 = vpop.eup %10164 }
 0x722   :  { %v1124_v47 = vmul.f32 %v10165_v46, %v10157_v14 }
 0x724   :  { %9889 = vmatprep.mubr.msk.f32.mxu0 %vm677_vm5, %v1124_v47 }
 0x725   :  { %9890 = vmatmul.mubr.msk.f32.vlgmr.msra.gmra.mxu0 %vm677_vm5, %v1125_v48 }
 0x726   :  { %9900 = vmatpush3.xpose.msk.msra.mxu0 %vm494_vm3, %v1398_v36  ;;  %9903 = vmatprep.mubr.msk.f32.mxu0 %vm494_vm3, %v1392_v49 }
 0x727   :  { %9901 = vmatprep.subr.msk.mxu0 %vm494_vm3, %v1396_v40 }
 0x72a   :  { %9902 = vmatpush3.xpose.msk.msra.mxu0 %vm494_vm3, %v1396_v40 }
 0x72d   :  { %9904 = vmatmul.mubr.msk.f32.vlgmr.msra.gmra.mxu0 %vm494_vm3, %v1394_v50 }
 0x7a4   :  { %v10711_v51 = vpop.f32.mrf.mxu1 }
 0x7a6   :  { %v10713_v52 = vpop.f32.mrf.mxu1 }
 0x7ac   :  { %v9898_v53 = vpop.f32.mrf.mxu1 }
 0x7ad   :  { %v1483_v54 = vsel %vm375_vm4, %v9898_v53, -1e+30 }
 0x7ae   :  { %v1382_v55 = vpop.f32.mrf.mxu1  ;;  %v1489_v56 = vsel %vm677_vm5, %v1483_v54, -inf }
 0x7af   :  { %1490 = vmax.xlane.f32.xlu1 %v1489_v56  ;;  %v1482_v57 = vsel %vm375_vm4, %v1382_v55, -1e+30 }
 0x7b0   :  { %v1486_v58 = vsel %vm677_vm5, %v1482_v57, -inf }
 0x7b1   :  { %1487 = vmax.xlane.f32.xlu0 %v1486_v58 }
 0x7c0   :  { %1530 = vrot.lane.b32.xlu1 %v10545_v13, %s13960_s27 }
 0x7c4   :  { %1708 = vrot.lane.b32.xlu1 %v10545_v13, %s13958_s9 }
 0x7c8   :  { %1706 = vrot.lane.b32.xlu1 %v10577_v27, %s13956_s28 }
 0x7cc   :  { %1617 = vrot.lane.b32.xlu1 %v10556_v19, %s13960_s27 }
 0x7e5   :  { %v10729_v59 = vpop.f32.mrf.mxu0 }
 0x7e7   :  { %v10731_v60 = vpop.f32.mrf.mxu0 }
 0x7ed   :  { %v9905_v61 = vpop.f32.mrf.mxu0 }
 0x7ee   :  { %v1485_v1 = vsel %vm375_vm4, %v9905_v61, -1e+30 }
 0x7ef   :  { %v1473_v62 = vpop.f32.mrf.mxu0  ;;  %v1495_v27 = vsel %vm677_vm5, %v1485_v1, -inf }
 0x7f0   :  { %v1484_v63 = vsel %vm375_vm4, %v1473_v62, -1e+30 }
 0x7f1   :  { %v1492_v0 = vsel %vm677_vm5, %v1484_v63, -inf }
 0x7f2   :  { %1493 = vmax.xlane.f32.xlu0 %v1492_v0 }
 0x7f6   :  { %1496 = vmax.xlane.f32.xlu0 %v1495_v27 }
 0x80c   :  { %1532 = vrot.lane.b32.xlu0 %v10543_v11, %s13960_s27 }
 0x838   :  { %v1491_v4 = vpop.xlane.xlu1 %1490 }
 0x839   :  { %v1499_v5 = vsub.f32 %v1483_v54, %v1491_v4 }
 0x83a   :  { %v1488_v6 = vpop.xlane.xlu0 %1487 }
 0x83b   :  { %v1504_v9 = vmul.f32 1.442695, %v1499_v5  ;;  %v1498_v10 = vsub.f32 %v1482_v57, %v1488_v6 }
 0x83c   :  { %v1531_v35 = vpop.permute.xlu1 %1530 }
 0x83d   :  { %10166 = vpow2.f32 %v1504_v9  ;;  %v1502_v12 = vmul.f32 1.442695, %v1498_v10 }
 0x83f   :  { %10168 = vpow2.f32 %v1502_v12 }
 0x840   :  { %v1709_v39 = vpop.permute.xlu1 %1708 }
 0x844   :  { %v1707_v40 = vpop.permute.xlu1 %1706 }
 0x848   :  { %v1618_v41 = vpop.permute.xlu1 %1617 }
 0x84a   :  { %v10167_v14 = vpop.eup %10166 }
 0x84b   :  { %v1513_v17 = vsel %vm677_vm5, %v10167_v14, 0.0 }
 0x84c   :  { %v10169_v22 = vpop.eup %10168  ;;  %1514 = vadd.xlane.f32.xlu0 %v1513_v17 }
 0x84d   :  { %v1510_v24 = vsel %vm677_vm5, %v10169_v22, 0.0 }
 0x84e   :  { %1511 = vadd.xlane.f32.xlu1 %v1510_v24 }
 0x85f   :  { %1799 = vrot.lane.b32.xlu1 %v10556_v19, %s13958_s9 }
 0x862   :  { %1710 = vrot.lane.b32.xlu0 %v10543_v11, %s13958_s9 }
 0x866   :  { %1704 = vrot.lane.b32.xlu0 %v10554_v16, %s13956_s28 }
 0x86a   :  { %1619 = vrot.lane.b32.xlu0 %v10549_v15, %s13960_s27 }
 0x86e   :  { %1801 = vrot.lane.b32.xlu0 %v10549_v15, %s13958_s9  ;;  %s14028_s9 = smov 24  }
 0x872   :  { %1795 = vrot.lane.b32.xlu0 %v10565_v20, %s13956_s28 }
 0x87b   :  { %v1494_v25 = vpop.xlane.xlu0 %1493 }
 0x87c   :  { %v1500_v26 = vsub.f32 %v1484_v63, %v1494_v25 }
 0x87e   :  { %v1506_v32 = vmul.f32 1.442695, %v1500_v26 }
 0x87f   :  { %v1497_v30 = vpop.xlane.xlu0 %1496 }
 0x880   :  { %v1501_v31 = vsub.f32 %v1485_v1, %v1497_v30 }
 0x882   :  { %v1508_v33 = vmul.f32 1.442695, %v1501_v31 }
 0x883   :  { %v1533_v34 = vpop.permute.xlu0 %1532 }
 0x884   :  { %10170 = vpow2.f32 %v1508_v33  ;;  %9906 = vmatprep.subr.mxu1 %v1533_v34 }
 0x885   :  { %9907 = vmatpush3.msra.mxu1 %v1533_v34  ;;  %10172 = vpow2.f32 %v1506_v32 }
 0x886   :  { %9908 = vmatprep.subr.mxu1 %v1531_v35 }
 0x887   :  { %9909 = vmatpush3.msra.mxu1 %v1531_v35 }
 0x891   :  { %v10171_v16 = vpop.eup %10170 }
 0x892   :  { %v1519_v36 = vsel %vm677_vm5, %v10171_v16, 0.0  ;;  %v10173_v38 = vpop.eup %10172 }
 0x893   :  { %1520 = vadd.xlane.f32.xlu1 %v1519_v36  ;;  %v1516_v20 = vsel %vm677_vm5, %v10173_v38, 0.0 }
 0x897   :  { %1517 = vadd.xlane.f32.xlu1 %v1516_v20 }
 0x8a8   :  { %1797 = vrot.lane.b32.xlu1 %v10583_v28, %s13956_s28 }
 0x8d5   :  { %v1515_v42 = vpop.xlane.xlu0 %1514 }
 0x8d6   :  { %10174 = vrcp.f32 %v1515_v42 }
 0x8d7   :  { %v1512_v43 = vpop.xlane.xlu1 %1511 }
 0x8d8   :  { %10176 = vrcp.f32 %v1512_v43 }
 0x8d9   :  { %v1711_v46 = vpop.permute.xlu0 %1710 }
 0x8da   :  { %9920 = vmatprep.subr.msk.mxu1 %vm494_vm3, %v1711_v46 }
 0x8db   :  { %v1800_v55 = vpop.permute.xlu1 %1799 }
 0x8dd   :  { %v1705_v47 = vpop.permute.xlu0 %1704 }
 0x8e1   :  { %v1620_v48 = vpop.permute.xlu0 %1619 }
 0x8e2   :  { %9913 = vmatprep.subr.mxu0 %v1620_v48 }
 0x8e3   :  { %9914 = vmatpush3.msra.mxu0 %v1620_v48  ;;  %v10175_v49 = vpop.eup %10174 }
 0x8e4   :  { %9915 = vmatprep.subr.mxu0 %v1618_v41  ;;  %v1527_v54 = vmul.f32 %v10175_v49, %v10167_v14 }
 0x8e5   :  { %v10177_v50 = vpop.eup %10176  ;;  %9916 = vmatpush3.msra.mxu0 %v1618_v41  ;;  %v1802_v53 = vpop.permute.xlu0 %1801 }
 0x8e6   :  { %9927 = vmatprep.subr.msk.mxu0 %vm494_vm3, %v1802_v53  ;;  %v1526_v28 = vmul.f32 %v10177_v50, %v10169_v22 }
 0x8e8   :  { %9910 = vmatprep.mubr.msk.f32.mxu1 %vm677_vm5, %v1526_v28 }
 0x8e9   :  { %9911 = vmatmul.mubr.msk.f32.vlgmr.msra.gmra.mxu1 %vm677_vm5, %v1527_v54  ;;  %v1796_v0 = vpop.permute.xlu0 %1795 }
 0x8ea   :  { %9921 = vmatpush3.xpose.msk.msra.mxu1 %vm494_vm3, %v1711_v46  ;;  %9924 = vmatprep.mubr.msk.f32.mxu1 %vm494_vm3, %v1705_v47 }
 0x8eb   :  { %9922 = vmatprep.subr.msk.mxu1 %vm494_vm3, %v1709_v39 }
 0x8ee   :  { %9923 = vmatpush3.xpose.msk.msra.mxu1 %vm494_vm3, %v1709_v39 }
 0x8f1   :  { %9925 = vmatmul.mubr.msk.f32.vlgmr.msra.gmra.mxu1 %vm494_vm3, %v1707_v40 }
 0x91c   :  { %v1521_v56 = vpop.xlane.xlu1 %1520 }
 0x91d   :  { %10178 = vrcp.f32 %v1521_v56 }
 0x920   :  { %v1518_v57 = vpop.xlane.xlu1 %1517 }
 0x921   :  { %10180 = vrcp.f32 %v1518_v57 }
 0x924   :  { %v1798_v1 = vpop.permute.xlu1 %1797 }
 0x92a   :  { %v10179_v58 = vpop.eup %10178 }
 0x92b   :  { %v1529_v63 = vmul.f32 %v10179_v58, %v10171_v16 }
 0x92e   :  { %v10181_v61 = vpop.eup %10180 }
 0x92f   :  { %v1528_v62 = vmul.f32 %v10181_v61, %v10173_v38 }
 0x931   :  { %9917 = vmatprep.mubr.msk.f32.mxu0 %vm677_vm5, %v1528_v62 }
 0x932   :  { %9918 = vmatmul.mubr.msk.f32.vlgmr.msra.gmra.mxu0 %vm677_vm5, %v1529_v63 }
 0x933   :  { %9928 = vmatpush3.xpose.msk.msra.mxu0 %vm494_vm3, %v1802_v53  ;;  %9931 = vmatprep.mubr.msk.f32.mxu0 %vm494_vm3, %v1796_v0 }
 0x934   :  { %9929 = vmatprep.subr.msk.mxu0 %vm494_vm3, %v1800_v55 }
 0x937   :  { %9930 = vmatpush3.xpose.msk.msra.mxu0 %vm494_vm3, %v1800_v55 }
 0x93a   :  { %9932 = vmatmul.mubr.msk.f32.vlgmr.msra.gmra.mxu0 %vm494_vm3, %v1798_v1 }
 0x9a9   :  { %v9912_v27 = vpop.f32.mrf.mxu1 }
 0x9ab   :  { %v1608_v4 = vpop.f32.mrf.mxu1 }
 0x9b1   :  { %v9926_v5 = vpop.f32.mrf.mxu1 }
 0x9b2   :  { %v1887_v6 = vsel %vm375_vm4, %v9926_v5, -1e+30  ;;  %v2171_v5 = vld [vmem:[%s13936_s11 + $0x10] sm:$0xff] }
 0x9b3   :  { %v1786_v9 = vpop.f32.mrf.mxu1  ;;  %v1893_v10 = vsel %vm677_vm5, %v1887_v6, -inf }
 0x9b4   :  { %1894 = vmax.xlane.f32.xlu1 %v1893_v10  ;;  %v1886_v12 = vsel %vm375_vm4, %v1786_v9, -1e+30  ;;  %v2169_v9 = vld [vmem:[%s13936_s11] sm:$0xff] }
 0x9b5   :  { %v1890_v14 = vsel %vm677_vm5, %v1886_v12, -inf }
 0x9b6   :  { %1891 = vmax.xlane.f32.xlu0 %v1890_v14 }
 0x9c5   :  { %1936 = vrot.lane.b32.xlu1 %v10543_v11, %s13954_s2 }
 0x9f2   :  { %v10783_v17 = vpop.f32.mrf.mxu0 }
 0x9f4   :  { %v10785_v22 = vpop.f32.mrf.mxu0 }
 0x9fa   :  { %v9933_v24 = vpop.f32.mrf.mxu0 }
 0x9fb   :  { %v1889_v31 = vsel %vm375_vm4, %v9933_v24, -1e+30 }
 0x9fc   :  { %v1877_v25 = vpop.f32.mrf.mxu0  ;;  %v1899_v32 = vsel %vm677_vm5, %v1889_v31, -inf }
 0x9fd   :  { %v1888_v26 = vsel %vm375_vm4, %v1877_v25, -1e+30 }
 0x9fe   :  { %v1896_v30 = vsel %vm677_vm5, %v1888_v26, -inf }
 0x9ff   :  { %1897 = vmax.xlane.f32.xlu0 %v1896_v30 }
 0xa03   :  { %1900 = vmax.xlane.f32.xlu0 %v1899_v32 }
 0xa3d   :  { %v1895_v33 = vpop.xlane.xlu1 %1894 }
 0xa3e   :  { %v1903_v11 = vsub.f32 %v1887_v6, %v1895_v33  ;;  %v2170_v6 = vld [vmem:[%s13936_s11 + $0x8] sm:$0xff] }
 0xa3f   :  { %v1892_v34 = vpop.xlane.xlu0 %1891 }
 0xa40   :  { %v1908_v35 = vmul.f32 1.442695, %v1903_v11  ;;  %v1902_v16 = vsub.f32 %v1886_v12, %v1892_v34 }
 0xa41   :  { %v1937_v36 = vpop.permute.xlu1 %1936 }
 0xa42   :  { %10182 = vpow2.f32 %v1908_v35  ;;  %v1906_v38 = vmul.f32 1.442695, %v1902_v16  ;;  %9934 = vmatprep.subr.mxu1 %v1937_v36 }
 0xa43   :  { %9935 = vmatpush3.msra.mxu1 %v1937_v36 }
 0xa44   :  { %10184 = vpow2.f32 %v1906_v38 }
 0xa4f   :  { %v10183_v20 = vpop.eup %10182 }
 0xa50   :  { %v1917_v39 = vsel %vm677_vm5, %v10183_v20, 0.0 }
 0xa51   :  { %v10185_v40 = vpop.eup %10184  ;;  %1918 = vadd.xlane.f32.xlu0 %v1917_v39 }
 0xa52   :  { %v1914_v41 = vsel %vm677_vm5, %v10185_v40, 0.0 }
 0xa53   :  { %1915 = vadd.xlane.f32.xlu1 %v1914_v41 }
 0xa64   :  { %2023 = vrot.lane.b32.xlu1 %v10549_v15, %s13954_s2 }
 0xa88   :  { %v1898_v42 = vpop.xlane.xlu0 %1897 }
 0xa89   :  { %v1904_v43 = vsub.f32 %v1888_v26, %v1898_v42 }
 0xa8b   :  { %v1910_v46 = vmul.f32 1.442695, %v1904_v43 }
 0xa8c   :  { %v1901_v47 = vpop.xlane.xlu0 %1900 }
 0xa8d   :  { %10186 = vpow2.f32 %v1910_v46  ;;  %v1905_v48 = vsub.f32 %v1889_v31, %v1901_v47 }
 0xa8f   :  { %v1912_v49 = vmul.f32 1.442695, %v1905_v48 }
 0xa91   :  { %10188 = vpow2.f32 %v1912_v49 }
 0xa9a   :  { %v10187_v50 = vpop.eup %10186 }
 0xa9b   :  { %v1920_v53 = vsel %vm677_vm5, %v10187_v50, 0.0 }
 0xa9c   :  { %1921 = vadd.xlane.f32.xlu1 %v1920_v53 }
 0xa9e   :  { %v10189_v28 = vpop.eup %10188 }
 0xa9f   :  { %v1923_v54 = vsel %vm677_vm5, %v10189_v28, 0.0 }
 0xaa0   :  { %1924 = vadd.xlane.f32.xlu0 %v1923_v54 }
 0xaad   :  { %2021 = vrot.lane.b32.xlu1 %v10556_v19, %s13954_s2 }
 0xab1   :  { %2114 = vrot.lane.b32.xlu1 %v10711_v51, %s13968_s0 }
 0xab5   :  { %2130 = vrot.lane.b32.xlu1 %v9912_v27, %s13966_s3 }
 0xab6   :  { %1934 = vrot.lane.b32.xlu0 %v10545_v13, %s13954_s2 }
 0xaba   :  { %2112 = vrot.lane.b32.xlu0 %v10713_v52, %s13968_s0 }
 0xabe   :  { %2128 = vrot.lane.b32.xlu0 %v1608_v4, %s13966_s3  ;;  %v2172_v4 = vld [vmem:[%s13936_s11 + $0x18] sm:$0xff] }
 0xada   :  { %v1919_v51 = vpop.xlane.xlu0 %1918 }
 0xadc   :  { %v1916_v15 = vpop.xlane.xlu1 %1915 }
 0xadd   :  { %10190 = vrcp.f32 %v1916_v15 }
 0xade   :  { %10192 = vrcp.f32 %v1919_v51 }
 0xae0   :  { %v2024_v55 = vpop.permute.xlu1 %2023 }
 0xae1   :  { %9941 = vmatprep.subr.mxu0 %v2024_v55 }
 0xae2   :  { %9942 = vmatpush3.msra.mxu0 %v2024_v55 }
 0xaea   :  { %v10191_v19 = vpop.eup %10190 }
 0xaeb   :  { %v1930_v56 = vmul.f32 %v10191_v19, %v10185_v40  ;;  %v10193_v52 = vpop.eup %10192 }
 0xaec   :  { %v1931_v62 = vmul.f32 %v10193_v52, %v10183_v20 }
 0xaed   :  { %9938 = vmatprep.mubr.msk.f32.mxu1 %vm677_vm5, %v1930_v56 }
 0xb25   :  { %v1922_v57 = vpop.xlane.xlu1 %1921 }
 0xb26   :  { %10194 = vrcp.f32 %v1922_v57 }
 0xb29   :  { %v2022_v58 = vpop.permute.xlu1 %2021  ;;  %v1925_v13 = vpop.xlane.xlu0 %1924 }
 0xb2a   :  { %10196 = vrcp.f32 %v1925_v13  ;;  %9943 = vmatprep.subr.mxu0 %v2022_v58 }
 0xb2b   :  { %9944 = vmatpush3.msra.mxu0 %v2022_v58 }
 0xb2d   :  { %v1935_v61 = vpop.permute.xlu0 %1934  ;;  %v2115_v25 = vpop.permute.xlu1 %2114 }
 0xb2e   :  { %9936 = vmatprep.subr.mxu1 %v1935_v61 }
 0xb2f   :  { %9937 = vmatpush3.msra.mxu1 %v1935_v61 }
 0xb30   :  { %9939 = vmatmul.mubr.msk.f32.vlgmr.msra.gmra.mxu1 %vm677_vm5, %v1931_v62  ;;  %9948 = vmatprep.subr.mxu1 %v2172_v4 }
 0xb31   :  { %9949 = vmatpush3.msra.mxu1 %v2172_v4  ;;  %v2113_v26 = vpop.permute.xlu0 %2112  ;;  %v2131_v30 = vpop.permute.xlu1 %2130 }
 0xb32   :  { %9950 = vmatprep.subr.mxu1 %v2171_v5 }
 0xb33   :  { %v10195_v63 = vpop.eup %10194  ;;  %9951 = vmatpush3.msra.mxu1 %v2171_v5 }
 0xb34   :  { %v1932_v0 = vmul.f32 %v10195_v63, %v10187_v50  ;;  %9952 = vmatprep.subr.mxu1 %v2170_v6 }
 0xb35   :  { %9953 = vmatpush3.msra.mxu1 %v2170_v6  ;;  %v2129_v31 = vpop.permute.xlu0 %2128 }
 0xb36   :  { %9945 = vmatprep.mubr.msk.f32.mxu0 %vm677_vm5, %v1932_v0  ;;  %9954 = vmatprep.subr.mxu1 %v2169_v9 }
 0xb37   :  { %v10197_v1 = vpop.eup %10196  ;;  %9955 = vmatpush3.msra.mxu1 %v2169_v9 }
 0xb38   :  { %v1933_v27 = vmul.f32 %v10197_v1, %v10189_v28 }
 0xb3a   :  { %9946 = vmatmul.mubr.msk.f32.vlgmr.msra.gmra.mxu0 %vm677_vm5, %v1933_v27 }
 0xbf0   :  { %v9940_v10 = vpop.f32.mrf.mxu1 }
 0xbf1   :  { %2146 = vrot.lane.b32.xlu1 %v9940_v10, %s13964_s6 }
 0xbf2   :  { %v2012_v12 = vpop.f32.mrf.mxu1 }
 0xbf3   :  { %2144 = vrot.lane.b32.xlu0 %v2012_v12, %s13964_s6 }
 0xbf5   :  { %2118 = vrot.lane.b32.xlu1 %v10729_v59, %s13968_s0 }
 0xbf7   :  { %2116 = vrot.lane.b32.xlu0 %v10731_v60, %s13968_s0  ;;  %v2156_v60 = vsel %vm494_vm3, %v10649_v37, %v2113_v26  ;;  %v2407_v26 = vld [vmem:[%s13938_s15 + $0x198] sm:$0xff] }
 0xbf8   :  { %v2160_v32 = vsel %vm677_vm5, %v2156_v60, %v2129_v31  ;;  %2629 = vmatprep.subr.mxu1 %v2407_v26  ;;  %v2406_v31 = vld [vmem:[%s13938_s15 + $0x190] sm:$0xff]  ;;  %v2391_v60 = vld [vmem:[%s13938_s15 + $0x118] sm:$0xff] }
 0xbf9   :  { %2134 = vrot.lane.b32.xlu1 %v10783_v17, %s13966_s3  ;;  %v2157_v17 = vsel %vm494_vm3, %v10647_v18, %v2115_v25  ;;  %v2405_v25 = vld [vmem:[%s13938_s15 + $0x188] sm:$0xff] }
 0xbfa   :  { %v9947_v14 = vpop.f32.mrf.mxu0  ;;  %v2161_v33 = vsel %vm677_vm5, %v2157_v17, %v2131_v30  ;;  %2540 = vmatprep.subr.mxu0 %v2405_v25  ;;  %v2404_v30 = vld [vmem:[%s13938_s15 + $0x180] sm:$0xff] }
 0xbfb   :  { %2132 = vrot.lane.b32.xlu0 %v10785_v22, %s13966_s3  ;;  %2541 = vmatpush1.msra.mxu0 %v2404_v30  ;;  %v2388_v17 = vld [vmem:[%s13938_s15 + $0x100] sm:$0xff] }
 0xbfc   :  { %v2099_v24 = vpop.f32.mrf.mxu0 }
 0xbfd   :  { %2150 = vrot.lane.b32.xlu1 %v9947_v14, %s13964_s6 }
 0xbff   :  { %2148 = vrot.lane.b32.xlu0 %v2099_v24, %s13964_s6 }
 0xc63   :  { %v2147_v59 = vpop.permute.xlu1 %2146 }
 0xc64   :  { %v2166_v34 = vsel %vm2164_vm6, %v2161_v33, %v2147_v59  ;;  %v2389_v59 = vld [vmem:[%s13938_s15 + $0x108] sm:$0xff]  ;;  %v2375_v33 = vld [vmem:[%s13938_s15 + $0x98] sm:$0xff] }
 0xc65   :  { %v2145_v22 = vpop.permute.xlu0 %2144  ;;  %2542 = vmatprep.subr.mxu0 %v2389_v59 }
 0xc66   :  { %v2165_v11 = vsel %vm2164_vm6, %v2160_v32, %v2145_v22  ;;  %v2390_v32 = vld [vmem:[%s13938_s15 + $0x110] sm:$0xff]  ;;  %2543 = vmatpush1.msra.mxu0 %v2388_v17  ;;  %v2373_v22 = vld [vmem:[%s13938_s15 + $0x88] sm:$0xff] }
 0xc67   :  { %v2119_v35 = vpop.permute.xlu1 %2118  ;;  %9956 = vmatprep.mubr.msk.f32.mxu1 %vm269_vm2, %v2165_v11  ;;  %2544 = vmatprep.subr.mxu0 %v2373_v22  ;;  %v2372_v11 = vld [vmem:[%s13938_s15 + $0x80] sm:$0xff]  ;;  %v2397_v17 = vld [vmem:[%s13938_s15 + $0x148] sm:$0xff] }
 0xc68   :  { %9957 = vmatmul.mubr.msk.f32.vlgmr.msra.gmra.mxu1 %vm269_vm2, %v2166_v34  ;;  %v2159_v20 = vsel %vm494_vm3, %v10665_v44, %v2119_v35  ;;  %v2374_v34 = vld [vmem:[%s13938_s15 + $0x90] sm:$0xff]  ;;  %2545 = vmatpush1.msra.mxu0 %v2372_v11  ;;  %v2357_v35 = vld [vmem:[%s13938_s15 + $0x8] sm:$0xff]  ;;  %v2396_v22 = vld [vmem:[%s13938_s15 + $0x140] sm:$0xff] }
 0xc69   :  { %v2117_v16 = vpop.permute.xlu0 %2116  ;;  %2630 = vmatpush1.msra.mxu1 %v2406_v31  ;;  %2546 = vmatprep.subr.mxu0 %v2357_v35  ;;  %v2381_v11 = vld [vmem:[%s13938_s15 + $0xc8] sm:$0xff]  ;;  %v2380_v35 = vld [vmem:[%s13938_s15 + $0xc0] sm:$0xff] }
 0xc6a   :  { %v2158_v18 = vsel %vm494_vm3, %v10667_v45, %v2117_v16  ;;  %v8436_v45 = vld [vmem:[%s13937_s12] ss:$0 sm:$0xff]  ;;  %2631 = vmatprep.subr.mxu1 %v2391_v60  ;;  %v2359_v16 = vld [vmem:[%s13938_s15 + $0x18] sm:$0xff]  ;;  %v2414_v60 = vld [vmem:[%s13938_s15 + $0x1d0] sm:$0xff] }
 0xc6b   :  { %v2135_v37 = vpop.permute.xlu1 %2134  ;;  %2632 = vmatpush1.msra.mxu1 %v2390_v32  ;;  %v2399_v32 = vld [vmem:[%s13938_s15 + $0x158] sm:$0xff] }
 0xc6c   :  { %v2163_v41 = vsel %vm677_vm5, %v2159_v20, %v2135_v37  ;;  %2633 = vmatprep.subr.mxu1 %v2375_v33  ;;  %v2356_v37 = vld [vmem:[%s13938_s15] sm:$0xff]  ;;  %v2411_v20 = vld [vmem:[%s13938_s15 + $0x1b8] sm:$0xff]  ;;  %v2398_v33 = vld [vmem:[%s13938_s15 + $0x150] sm:$0xff] }
 0xc6d   :  { %v2133_v36 = vpop.permute.xlu0 %2132  ;;  %2634 = vmatpush1.msra.mxu1 %v2374_v34  ;;  %2547 = vmatpush1.msra.mxu0 %v2356_v37  ;;  %v2383_v34 = vld [vmem:[%s13938_s15 + $0xd8] sm:$0xff]  ;;  %v2365_v37 = vld [vmem:[%s13938_s15 + $0x48] sm:$0xff] }
 0xc6e   :  { %v2162_v39 = vsel %vm677_vm5, %v2158_v18, %v2133_v36  ;;  %2635 = vmatprep.subr.mxu1 %v2359_v16  ;;  %v2358_v36 = vld [vmem:[%s13938_s15 + $0x10] sm:$0xff]  ;;  %v13970_v18 = vmov 0.0  }
 0xc6f   :  { %v2151_v38 = vpop.permute.xlu1 %2150  ;;  %2580 = vmatprep.mubr.f32.mxu0 %v13970_v18  ;;  %2636 = vmatpush1.msra.mxu1 %v2358_v36  ;;  %v2382_v16 = vld [vmem:[%s13938_s15 + $0xd0] sm:$0xff]  ;;  %v2367_v36 = vld [vmem:[%s13938_s15 + $0x58] sm:$0xff] }
 0xc70   :  { %v2168_v43 = vsel %vm2164_vm6, %v2163_v41, %v2151_v38  ;;  %v2409_v38 = vld [vmem:[%s13938_s15 + $0x1a8] sm:$0xff]  ;;  %2807 = vmatprep.subr.mxu1 %v2411_v20  ;;  %v2366_v20 = vld [vmem:[%s13938_s15 + $0x50] sm:$0xff] }
 0xc71   :  { %v2149_v40 = vpop.permute.xlu0 %2148  ;;  %2718 = vmatprep.subr.mxu0 %v2409_v38  ;;  %v2364_v38 = vld [vmem:[%s13938_s15 + $0x40] sm:$0xff] }
 0xc72   :  { %v2167_v42 = vsel %vm2164_vm6, %v2162_v39, %v2149_v40 }
 0xc73   :  { %9959 = vmatprep.mubr.msk.f32.mxu1 %vm269_vm2, %v2167_v42 }
 0xc74   :  { %9960 = vmatmul.mubr.msk.f32.gmra.mxu1 %vm269_vm2, %v2168_v43 }
 0xc75   :  { %2669 = vmatprep.mubr.f32.mxu1 %v13970_v18 }
 0xd28   :  { %v9958_v46 = vpop.f32.mrf.mxu1 }
 0xd29   :  { %v2264_v47 = vadd.f32 %v9958_v46, %v8436_v45 }
 0xd2a   :  { %v2258_v44 = vpop.f32.mrf.mxu1 }
 0xd2b   :  { %v2259_v48 = vadd.f32 %v8436_v45, %v2258_v44  ;;  %v2278_v49 = vadd.f32 %v2264_v47, %v10526_v3 }
 0xd2d   :  { %v2286_v50 = vsel %vm269_vm2, %v2278_v49, 0.0  ;;  %v2277_v53 = vadd.f32 %v2259_v48, %v10524_v2 }
 0xd2e   :  { %2287 = vadd.xlane.f32.xlu1 %v2286_v50 }
 0xd2f   :  { %v2283_v28 = vsel %vm269_vm2, %v2277_v53, 0.0 }
 0xd30   :  { %2284 = vadd.xlane.f32.xlu0 %v2283_v28 }
 0xd34   :  { %v9961_v54 = vpop.f32.mrf.mxu1 }
 0xd35   :  { %v2274_v55 = vadd.f32 %v9961_v54, %v8436_v45 }
 0xd36   :  { %v2268_v15 = vpop.f32.mrf.mxu1 }
 0xd37   :  { %v2269_v19 = vadd.f32 %v8436_v45, %v2268_v15  ;;  %v2280_v51 = vadd.f32 %v2274_v55, %v10534_v8  ;;  %v8441_v55 = vld [vmem:[%s13939_s13] ss:$0 sm:$0xff] }
 0xd39   :  { %v2279_v56 = vadd.f32 %v2269_v19, %v10532_v7  ;;  %v2292_v3 = vsel %vm269_vm2, %v2280_v51, 0.0 }
 0xd3b   :  { %v2289_v57 = vsel %vm269_vm2, %v2279_v56, 0.0 }
 0xd3c   :  { %2290 = vadd.xlane.f32.xlu0 %v2289_v57 }
 0xd40   :  { %2293 = vadd.xlane.f32.xlu0 %v2292_v3  ;;  %v2408_v3 = vld [vmem:[%s13938_s15 + $0x1a0] sm:$0xff] }
 0xdb7   :  { %v2288_v58 = vpop.xlane.xlu1 %2287 }
 0xdb8   :  { %v2297_v2 = vmul.f32 0.03125, %v2288_v58  ;;  %v2410_v58 = vld [vmem:[%s13938_s15 + $0x1b0] sm:$0xff] }
 0xdb9   :  { %v2285_v13 = vpop.xlane.xlu0 %2284 }
 0xdba   :  { %v10868_v52 = vsub.f32 %v2278_v49, %v2297_v2  ;;  %v2296_v61 = vmul.f32 0.03125, %v2285_v13  ;;  %v2393_v2 = vld [vmem:[%s13938_s15 + $0x128] sm:$0xff]  ;;  %v2395_v13 = vld [vmem:[%s13938_s15 + $0x138] sm:$0xff] }
 0xdbc   :  { %v10870_v62 = vsub.f32 %v2277_v53, %v2296_v61  ;;  %v2305_v63 = vmul.f32 %v10868_v52, %v10868_v52  ;;  %v2392_v61 = vld [vmem:[%s13938_s15 + $0x120] sm:$0xff] }
 0xdbe   :  { %v2311_v7 = vsel %vm269_vm2, %v2305_v63, 0.0  ;;  %v2304_v8 = vmul.f32 %v10870_v62, %v10870_v62  ;;  %v2377_v63 = vld [vmem:[%s13938_s15 + $0xa8] sm:$0xff] }
 0xdbf   :  { %2312 = vadd.xlane.f32.xlu0 %v2311_v7  ;;  %v2379_v7 = vld [vmem:[%s13938_s15 + $0xb8] sm:$0xff] }
 0xdc0   :  { %v2308_v0 = vsel %vm269_vm2, %v2304_v8, 0.0 }
 0xdc1   :  { %2309 = vadd.xlane.f32.xlu1 %v2308_v0  ;;  %v2376_v0 = vld [vmem:[%s13938_s15 + $0xa0] sm:$0xff] }
 0xdc5   :  { %v2291_v1 = vpop.xlane.xlu0 %2290 }
 0xdc6   :  { %v2298_v27 = vmul.f32 0.03125, %v2291_v1  ;;  %v2378_v1 = vld [vmem:[%s13938_s15 + $0xb0] sm:$0xff] }
 0xdc8   :  { %v10878_v4 = vsub.f32 %v2279_v56, %v2298_v27  ;;  %v8442_v56 = vld [vmem:[%s13940_s14] ss:$0 sm:$0xff] }
 0xdc9   :  { %v2294_v5 = vpop.xlane.xlu0 %2293 }
 0xdca   :  { %v2299_v6 = vmul.f32 0.03125, %v2294_v5  ;;  %v2306_v9 = vmul.f32 %v10878_v4, %v10878_v4  ;;  %v2361_v5 = vld [vmem:[%s13938_s15 + $0x28] sm:$0xff] }
 0xdcc   :  { %v10882_v10 = vsub.f32 %v2280_v51, %v2299_v6  ;;  %v2314_v12 = vsel %vm269_vm2, %v2306_v9, 0.0  ;;  %v2363_v6 = vld [vmem:[%s13938_s15 + $0x38] sm:$0xff]  ;;  %v2360_v9 = vld [vmem:[%s13938_s15 + $0x20] sm:$0xff] }
 0xdcd   :  { %2315 = vadd.xlane.f32.xlu1 %v2314_v12 }
 0xdce   :  { %v2307_v14 = vmul.f32 %v10882_v10, %v10882_v10 }
 0xdd0   :  { %v2317_v24 = vsel %vm269_vm2, %v2307_v14, 0.0  ;;  %v2413_v14 = vld [vmem:[%s13938_s15 + $0x1c8] sm:$0xff] }
 0xdd1   :  { %2318 = vadd.xlane.f32.xlu0 %v2317_v24  ;;  %v2415_v24 = vld [vmem:[%s13938_s15 + $0x1d8] sm:$0xff] }
 0xe48   :  { %v2313_v39 = vpop.xlane.xlu0 %2312 }
 0xe49   :  { %v2321_v40 = vmul.f32 0.03125, %v2313_v39  ;;  %v2417_v39 = vld [vmem:[%s13938_s15 + $0x1e8] sm:$0xff] }
 0xe4a   :  { %v2310_v41 = vpop.xlane.xlu1 %2309 }
 0xe4b   :  { %v2325_v42 = vadd.f32 1e-05, %v2321_v40  ;;  %v2320_v43 = vmul.f32 0.03125, %v2310_v41  ;;  %v2419_v40 = vld [vmem:[%s13938_s15 + $0x1f8] sm:$0xff]  ;;  %v2416_v41 = vld [vmem:[%s13938_s15 + $0x1e0] sm:$0xff] }
 0xe4d   :  { %10198 = vrsqrt.f32 %v2325_v42  ;;  %v2324_v45 = vadd.f32 1e-05, %v2320_v43  ;;  %v2418_v42 = vld [vmem:[%s13938_s15 + $0x1f0] sm:$0xff]  ;;  %v2401_v43 = vld [vmem:[%s13938_s15 + $0x168] sm:$0xff] }
 0xe4f   :  { %10200 = vrsqrt.f32 %v2324_v45  ;;  %v2403_v45 = vld [vmem:[%s13938_s15 + $0x178] sm:$0xff] }
 0xe56   :  { %v2316_v46 = vpop.xlane.xlu1 %2315 }
 0xe57   :  { %v2322_v47 = vmul.f32 0.03125, %v2316_v46  ;;  %v2400_v46 = vld [vmem:[%s13938_s15 + $0x160] sm:$0xff] }
 0xe59   :  { %v2326_v44 = vadd.f32 1e-05, %v2322_v47  ;;  %v2402_v47 = vld [vmem:[%s13938_s15 + $0x170] sm:$0xff] }
 0xe5a   :  { %v10199_v48 = vpop.eup %10198  ;;  %v2319_v49 = vpop.xlane.xlu0 %2318 }
 0xe5b   :  { %10202 = vrsqrt.f32 %v2326_v44  ;;  %v2323_v50 = vmul.f32 0.03125, %v2319_v49  ;;  %v2333_v28 = vmul.f32 %v10199_v48, %v10868_v52  ;;  %v2385_v44 = vld [vmem:[%s13938_s15 + $0xe8] sm:$0xff]  ;;  %v2387_v48 = vld [vmem:[%s13938_s15 + $0xf8] sm:$0xff]  ;;  %v2384_v49 = vld [vmem:[%s13938_s15 + $0xe0] sm:$0xff] }
 0xe5c   :  { %v10201_v53 = vpop.eup %10200 }
 0xe5d   :  { %v2332_v54 = vmul.f32 %v10201_v53, %v10870_v62  ;;  %v2327_v15 = vadd.f32 1e-05, %v2323_v50  ;;  %v2343_v51 = vmul.f32 %v8441_v55, %v2333_v28  ;;  %v2394_v62 = vld [vmem:[%s13938_s15 + $0x130] sm:$0xff]  ;;  %v2369_v53 = vld [vmem:[%s13938_s15 + $0x68] sm:$0xff]  ;;  %v2371_v28 = vld [vmem:[%s13938_s15 + $0x78] sm:$0xff] }
 0xe5e   :  { %v2386_v50 = vld [vmem:[%s13938_s15 + $0xf0] sm:$0xff] }
 0xe5f   :  { %v2342_v19 = vmul.f32 %v8441_v55, %v2332_v54  ;;  %10204 = vrsqrt.f32 %v2327_v15  ;;  %v10972_v52 = vadd.f32 %v8442_v56, %v2343_v51  ;;  %v2368_v54 = vld [vmem:[%s13938_s15 + $0x60] sm:$0xff]  ;;  %v2370_v15 = vld [vmem:[%s13938_s15 + $0x70] sm:$0xff]  ;;  %v3339_v51 = vld [vmem:[%s13941_s17 + $0x178] sm:$0xff] }
 0xe61   :  { %v10952_v57 = vadd.f32 %v8442_v56, %v2342_v19  ;;  %v3355_v19 = vld [vmem:[%s13941_s17 + $0x1f8] sm:$0xff] }
 0xe63   :  { %8443 = vmatmul.mubr.msk.f32.vlgmr.msra.gmra.mxu0 %vm269_vm2, %v10952_v57  ;;  %8447 = vmatmul.mubr.msk.f32.vlgmr.msra.gmra.mxu1 %vm269_vm2, %v10952_v57 }
 0xe64   :  { %2586 = vmatprep.mubr.f32.mxu0 %v13970_v18  ;;  %2675 = vmatprep.mubr.f32.mxu1 %v13970_v18 }
 0xe65   :  { %2719 = vmatpush1.msra.mxu0 %v2408_v3  ;;  %2808 = vmatpush1.msra.mxu1 %v2410_v58  ;;  %v3322_v3 = vld [vmem:[%s13941_s17 + $0xf0] sm:$0xff] }
 0xe66   :  { %2720 = vmatprep.subr.mxu0 %v2393_v2  ;;  %2809 = vmatprep.subr.mxu1 %v2395_v13  ;;  %v3354_v58 = vld [vmem:[%s13941_s17 + $0x1f0] sm:$0xff] }
 0xe67   :  { %8444 = vmatmul.mubr.msk.f32.gmra.mxu0 %vm269_vm2, %v10972_v52  ;;  %8448 = vmatmul.mubr.msk.f32.gmra.mxu1 %vm269_vm2, %v10972_v52  ;;  %v3306_v2 = vld [vmem:[%s13941_s17 + $0x70] sm:$0xff] }
 0xe68   :  { %v10203_v8 = vpop.eup %10202  ;;  %2592 = vmatprep.mubr.f32.mxu0 %v13970_v18  ;;  %2681 = vmatprep.mubr.f32.mxu1 %v13970_v18  ;;  %v3338_v13 = vld [vmem:[%s13941_s17 + $0x170] sm:$0xff] }
 0xe69   :  { %v2334_v27 = vmul.f32 %v10203_v8, %v10878_v4  ;;  %2721 = vmatpush1.msra.mxu0 %v2392_v61  ;;  %2810 = vmatpush1.msra.mxu1 %v2394_v62  ;;  %v2362_v4 = vld [vmem:[%s13938_s15 + $0x30] sm:$0xff]  ;;  %v3321_v61 = vld [vmem:[%s13941_s17 + $0xe8] sm:$0xff]  ;;  %v3320_v8 = vld [vmem:[%s13941_s17 + $0xe0] sm:$0xff] }
 0xe6a   :  { %2722 = vmatprep.subr.mxu0 %v2377_v63  ;;  %2811 = vmatprep.subr.mxu1 %v2379_v7  ;;  %v3353_v62 = vld [vmem:[%s13941_s17 + $0x1e8] sm:$0xff] }
 0xe6b   :  { %v2344_v12 = vmul.f32 %v8441_v55, %v2334_v27  ;;  %2723 = vmatpush1.msra.mxu0 %v2376_v0  ;;  %2812 = vmatpush1.msra.mxu1 %v2378_v1  ;;  %v3305_v63 = vld [vmem:[%s13941_s17 + $0x68] sm:$0xff]  ;;  %v3352_v0 = vld [vmem:[%s13941_s17 + $0x1e0] sm:$0xff] }
 0xe6c   :  { %v10205_v25 = vpop.eup %10204  ;;  %2724 = vmatprep.subr.mxu0 %v2361_v5  ;;  %2813 = vmatprep.subr.mxu1 %v2363_v6  ;;  %v3337_v7 = vld [vmem:[%s13941_s17 + $0x168] sm:$0xff]  ;;  %v3304_v1 = vld [vmem:[%s13941_s17 + $0x60] sm:$0xff]  ;;  %v3319_v5 = vld [vmem:[%s13941_s17 + $0xd8] sm:$0xff] }
 0xe6d   :  { %v11017_v26 = vadd.f32 %v8442_v56, %v2344_v12  ;;  %v2335_v30 = vmul.f32 %v10205_v25, %v10882_v10  ;;  %2725 = vmatpush1.msra.mxu0 %v2360_v9  ;;  %2814 = vmatpush1.msra.mxu1 %v2362_v4  ;;  %v2412_v10 = vld [vmem:[%s13938_s15 + $0x1c0] sm:$0xff]  ;;  %v3351_v6 = vld [vmem:[%s13941_s17 + $0x1d8] sm:$0xff]  ;;  %v3318_v12 = vld [vmem:[%s13941_s17 + $0xd0] sm:$0xff] }
 0xe6e   :  { %2896 = vmatprep.subr.mxu0 %v2413_v14  ;;  %2985 = vmatprep.subr.mxu1 %v2415_v24  ;;  %v3336_v27 = vld [vmem:[%s13941_s17 + $0x160] sm:$0xff]  ;;  %v3303_v9 = vld [vmem:[%s13941_s17 + $0x58] sm:$0xff]  ;;  %v3350_v14 = vld [vmem:[%s13941_s17 + $0x1d0] sm:$0xff] }
 0xe6f   :  { %v2345_v31 = vmul.f32 %v8441_v55, %v2335_v30  ;;  %8445 = vmatmul.mubr.msk.f32.gmra.mxu0 %vm269_vm2, %v11017_v26  ;;  %8449 = vmatmul.mubr.msk.f32.gmra.mxu1 %vm269_vm2, %v11017_v26  ;;  %v3323_v55 = vld [vmem:[%s13941_s17 + $0xf8] sm:$0xff]  ;;  %v3302_v24 = vld [vmem:[%s13941_s17 + $0x50] sm:$0xff]  ;;  %v3317_v30 = vld [vmem:[%s13941_s17 + $0xc8] sm:$0xff] }
 0xe70   :  { %2598 = vmatprep.mubr.f32.mxu0 %v13970_v18  ;;  %2687 = vmatprep.mubr.f32.mxu1 %v13970_v18  ;;  %v3335_v4 = vld [vmem:[%s13941_s17 + $0x158] sm:$0xff]  ;;  %v3334_v25 = vld [vmem:[%s13941_s17 + $0x150] sm:$0xff] }
 0xe71   :  { %v11026_v59 = vadd.f32 %v8442_v56, %v2345_v31  ;;  %v3307_v56 = vld [vmem:[%s13941_s17 + $0x78] sm:$0xff]  ;;  %v3349_v31 = vld [vmem:[%s13941_s17 + $0x1c8] sm:$0xff] }
 0xe73   :  { %14010 = vst [vmem:[#allocation5_spill] sm:$0xff] %v11026_v59  ;;  %8446 = vmatmul.mubr.msk.f32.gmra.mxu0 %vm269_vm2, %v11026_v59  ;;  %8450 = vmatmul.mubr.msk.f32.gmra.mxu1 %vm269_vm2, %v11026_v59 }
 0xe74   :  { %2758 = vmatprep.mubr.f32.mxu0 %v13970_v18  ;;  %2847 = vmatprep.mubr.f32.mxu1 %v13970_v18 }
 0xe77   :  { %8451 = vmatmul.mubr.msk.f32.vlgmr.msra.gmra.mxu0 %vm269_vm2, %v10952_v57  ;;  %8455 = vmatmul.mubr.msk.f32.vlgmr.msra.gmra.mxu1 %vm269_vm2, %v10952_v57 }
 0xe78   :  { %2764 = vmatprep.mubr.f32.mxu0 %v13970_v18  ;;  %2853 = vmatprep.mubr.f32.mxu1 %v13970_v18 }
 0xe79   :  { %2897 = vmatpush1.msra.mxu0 %v2412_v10  ;;  %2986 = vmatpush1.msra.mxu1 %v2414_v60  ;;  %v3301_v10 = vld [vmem:[%s13941_s17 + $0x48] sm:$0xff] }
 0xe7a   :  { %2898 = vmatprep.subr.mxu0 %v2397_v17  ;;  %2987 = vmatprep.subr.mxu1 %v2399_v32  ;;  %v3333_v60 = vld [vmem:[%s13941_s17 + $0x148] sm:$0xff]  ;;  %v3316_v17 = vld [vmem:[%s13941_s17 + $0xc0] sm:$0xff] }
 0xe7b   :  { %8452 = vmatmul.mubr.msk.f32.gmra.mxu0 %vm269_vm2, %v10972_v52  ;;  %8456 = vmatmul.mubr.msk.f32.gmra.mxu1 %vm269_vm2, %v10972_v52  ;;  %v3348_v32 = vld [vmem:[%s13941_s17 + $0x1c0] sm:$0xff] }
 0xe7c   :  { %2770 = vmatprep.mubr.f32.mxu0 %v13970_v18  ;;  %2859 = vmatprep.mubr.f32.mxu1 %v13970_v18 }
 0xe7d   :  { %2899 = vmatpush1.msra.mxu0 %v2396_v22  ;;  %2988 = vmatpush1.msra.mxu1 %v2398_v33  ;;  %v3300_v22 = vld [vmem:[%s13941_s17 + $0x40] sm:$0xff] }
 0xe7e   :  { %2900 = vmatprep.subr.mxu0 %v2381_v11  ;;  %2989 = vmatprep.subr.mxu1 %v2383_v34  ;;  %v3332_v33 = vld [vmem:[%s13941_s17 + $0x140] sm:$0xff]  ;;  %v3315_v11 = vld [vmem:[%s13941_s17 + $0xb8] sm:$0xff] }
 0xe7f   :  { %8453 = vmatmul.mubr.msk.f32.gmra.mxu0 %vm269_vm2, %v11017_v26  ;;  %8457 = vmatmul.mubr.msk.f32.gmra.mxu1 %vm269_vm2, %v11017_v26  ;;  %v3347_v34 = vld [vmem:[%s13941_s17 + $0x1b8] sm:$0xff] }
 0xe80   :  { %2776 = vmatprep.mubr.f32.mxu0 %v13970_v18  ;;  %2865 = vmatprep.mubr.f32.mxu1 %v13970_v18 }
 0xe81   :  { %2901 = vmatpush1.msra.mxu0 %v2380_v35  ;;  %2990 = vmatpush1.msra.mxu1 %v2382_v16  ;;  %v3299_v35 = vld [vmem:[%s13941_s17 + $0x38] sm:$0xff] }
 0xe82   :  { %2902 = vmatprep.subr.mxu0 %v2365_v37  ;;  %2991 = vmatprep.subr.mxu1 %v2367_v36  ;;  %v3331_v16 = vld [vmem:[%s13941_s17 + $0x138] sm:$0xff]  ;;  %v3314_v37 = vld [vmem:[%s13941_s17 + $0xb0] sm:$0xff] }
 0xe83   :  { %8454 = vmatmul.mubr.msk.f32.gmra.mxu0 %vm269_vm2, %v11026_v59  ;;  %8458 = vmatmul.mubr.msk.f32.gmra.mxu1 %vm269_vm2, %v11026_v59  ;;  %v3346_v36 = vld [vmem:[%s13941_s17 + $0x1b0] sm:$0xff] }
 0xe84   :  { %2903 = vmatpush1.msra.mxu0 %v2364_v38  ;;  %2936 = vmatprep.mubr.f32.mxu0 %v13970_v18  ;;  %v3298_v38 = vld [vmem:[%s13941_s17 + $0x30] sm:$0xff] }
 0xe85   :  { %2992 = vmatpush1.msra.mxu1 %v2366_v20  ;;  %3025 = vmatprep.mubr.f32.mxu1 %v13970_v18  ;;  %v3330_v20 = vld [vmem:[%s13941_s17 + $0x130] sm:$0xff] }
 0xe86   :  { %3074 = vmatprep.subr.mxu0 %v2417_v39  ;;  %3163 = vmatprep.subr.mxu1 %v2419_v40  ;;  %v3313_v39 = vld [vmem:[%s13941_s17 + $0xa8] sm:$0xff] }
 0xe87   :  { %8459 = vmatmul.mubr.msk.f32.vlgmr.msra.gmra.mxu0 %vm269_vm2, %v10952_v57  ;;  %8463 = vmatmul.mubr.msk.f32.vlgmr.msra.gmra.mxu1 %vm269_vm2, %v10952_v57  ;;  %v3345_v40 = vld [vmem:[%s13941_s17 + $0x1a8] sm:$0xff] }
 0xe88   :  { %2942 = vmatprep.mubr.f32.mxu0 %v13970_v18  ;;  %3031 = vmatprep.mubr.f32.mxu1 %v13970_v18 }
 0xe89   :  { %3075 = vmatpush1.msra.mxu0 %v2416_v41  ;;  %3164 = vmatpush1.msra.mxu1 %v2418_v42  ;;  %v3297_v41 = vld [vmem:[%s13941_s17 + $0x28] sm:$0xff] }
 0xe8a   :  { %3076 = vmatprep.subr.mxu0 %v2401_v43  ;;  %3165 = vmatprep.subr.mxu1 %v2403_v45  ;;  %v3329_v42 = vld [vmem:[%s13941_s17 + $0x128] sm:$0xff]  ;;  %v3312_v43 = vld [vmem:[%s13941_s17 + $0xa0] sm:$0xff] }
 0xe8b   :  { %8460 = vmatmul.mubr.msk.f32.gmra.mxu0 %vm269_vm2, %v10972_v52  ;;  %8464 = vmatmul.mubr.msk.f32.gmra.mxu1 %vm269_vm2, %v10972_v52  ;;  %v3344_v45 = vld [vmem:[%s13941_s17 + $0x1a0] sm:$0xff] }
 0xe8c   :  { %2948 = vmatprep.mubr.f32.mxu0 %v13970_v18  ;;  %3037 = vmatprep.mubr.f32.mxu1 %v13970_v18 }
 0xe8d   :  { %3077 = vmatpush1.msra.mxu0 %v2400_v46  ;;  %3166 = vmatpush1.msra.mxu1 %v2402_v47  ;;  %v3296_v46 = vld [vmem:[%s13941_s17 + $0x20] sm:$0xff] }
 0xe8e   :  { %3078 = vmatprep.subr.mxu0 %v2385_v44  ;;  %3167 = vmatprep.subr.mxu1 %v2387_v48  ;;  %v3328_v47 = vld [vmem:[%s13941_s17 + $0x120] sm:$0xff]  ;;  %v3311_v44 = vld [vmem:[%s13941_s17 + $0x98] sm:$0xff] }
 0xe8f   :  { %8461 = vmatmul.mubr.msk.f32.gmra.mxu0 %vm269_vm2, %v11017_v26  ;;  %8465 = vmatmul.mubr.msk.f32.gmra.mxu1 %vm269_vm2, %v11017_v26  ;;  %v3343_v48 = vld [vmem:[%s13941_s17 + $0x198] sm:$0xff] }
 0xe90   :  { %2954 = vmatprep.mubr.f32.mxu0 %v13970_v18  ;;  %3043 = vmatprep.mubr.f32.mxu1 %v13970_v18 }
 0xe91   :  { %3079 = vmatpush1.msra.mxu0 %v2384_v49  ;;  %3168 = vmatpush1.msra.mxu1 %v2386_v50  ;;  %v3295_v49 = vld [vmem:[%s13941_s17 + $0x18] sm:$0xff] }
 0xe92   :  { %3080 = vmatprep.subr.mxu0 %v2369_v53  ;;  %3169 = vmatprep.subr.mxu1 %v2371_v28  ;;  %v3327_v50 = vld [vmem:[%s13941_s17 + $0x118] sm:$0xff]  ;;  %v3310_v53 = vld [vmem:[%s13941_s17 + $0x90] sm:$0xff] }
 0xe93   :  { %8462 = vmatmul.mubr.msk.f32.gmra.mxu0 %vm269_vm2, %v11026_v59  ;;  %8466 = vmatmul.mubr.msk.f32.gmra.mxu1 %vm269_vm2, %v11026_v59  ;;  %v3342_v28 = vld [vmem:[%s13941_s17 + $0x190] sm:$0xff] }
 0xe94   :  { %3081 = vmatpush1.msra.mxu0 %v2368_v54  ;;  %3114 = vmatprep.mubr.f32.mxu0 %v13970_v18  ;;  %v3294_v54 = vld [vmem:[%s13941_s17 + $0x10] sm:$0xff] }
 0xe95   :  { %3170 = vmatpush1.msra.mxu1 %v2370_v15  ;;  %3203 = vmatprep.mubr.f32.mxu1 %v13970_v18  ;;  %v3326_v15 = vld [vmem:[%s13941_s17 + $0x110] sm:$0xff] }
 0xe96   :  { %9008 = vmatprep.subr.mxu0 %v3323_v55  ;;  %9052 = vmatprep.subr.mxu1 %v3355_v19  ;;  %v3309_v55 = vld [vmem:[%s13941_s17 + $0x88] sm:$0xff] }
 0xe97   :  { %8467 = vmatmul.mubr.msk.f32.vlgmr.msra.gmra.mxu0 %vm269_vm2, %v10952_v57  ;;  %8471 = vmatmul.mubr.msk.f32.vlgmr.msra.gmra.mxu1 %vm269_vm2, %v10952_v57  ;;  %v3341_v19 = vld [vmem:[%s13941_s17 + $0x188] sm:$0xff] }
 0xe98   :  { %3120 = vmatprep.mubr.f32.mxu0 %v13970_v18  ;;  %3209 = vmatprep.mubr.f32.mxu1 %v13970_v18 }
 0xe99   :  { %9009 = vmatpush3.msra.mxu0 %v3307_v56  ;;  %9053 = vmatpush3.msra.mxu1 %v3339_v51  ;;  %v3293_v56 = vld [vmem:[%s13941_s17 + $0x8] sm:$0xff] }
 0xe9a   :  { %9010 = vmatprep.subr.mxu0 %v3322_v3  ;;  %9054 = vmatprep.subr.mxu1 %v3354_v58  ;;  %v3325_v51 = vld [vmem:[%s13941_s17 + $0x108] sm:$0xff]  ;;  %v3308_v3 = vld [vmem:[%s13941_s17 + $0x80] sm:$0xff] }
 0xe9b   :  { %8468 = vmatmul.mubr.msk.f32.gmra.mxu0 %vm269_vm2, %v10972_v52  ;;  %8472 = vmatmul.mubr.msk.f32.gmra.mxu1 %vm269_vm2, %v10972_v52  ;;  %v3340_v58 = vld [vmem:[%s13941_s17 + $0x180] sm:$0xff] }
 0xe9c   :  { %3126 = vmatprep.mubr.f32.mxu0 %v13970_v18  ;;  %3215 = vmatprep.mubr.f32.mxu1 %v13970_v18 }
 0xe9d   :  { %9011 = vmatpush3.msra.mxu0 %v3306_v2  ;;  %9055 = vmatpush3.msra.mxu1 %v3338_v13  ;;  %v3292_v2 = vld [vmem:[%s13941_s17] sm:$0xff] }
 0xe9e   :  { %9012 = vmatprep.subr.mxu0 %v3321_v61  ;;  %9056 = vmatprep.subr.mxu1 %v3353_v62  ;;  %v3324_v13 = vld [vmem:[%s13941_s17 + $0x100] sm:$0xff]  ;;  %v3387_v61 = vld [vmem:[%s13941_s17 + $0x2f8] sm:$0xff] }
 0xe9f   :  { %8469 = vmatmul.mubr.msk.f32.gmra.mxu0 %vm269_vm2, %v11017_v26  ;;  %8473 = vmatmul.mubr.msk.f32.gmra.mxu1 %vm269_vm2, %v11017_v26  ;;  %v3419_v62 = vld [vmem:[%s13941_s17 + $0x3f8] sm:$0xff] }
 0xea0   :  { %3132 = vmatprep.mubr.f32.mxu0 %v13970_v18  ;;  %3221 = vmatprep.mubr.f32.mxu1 %v13970_v18 }
 0xea1   :  { %9013 = vmatpush3.msra.mxu0 %v3305_v63  ;;  %9057 = vmatpush3.msra.mxu1 %v3337_v7  ;;  %v11393_v63 = vsub.s32 2, %v10486_v21  ;;  %v11398_v7 = vld [vmem:[%s13942_s16] sm:$0xff] }
 0xea2   :  { %9014 = vmatprep.subr.mxu0 %v3320_v8  ;;  %9058 = vmatprep.subr.mxu1 %v3352_v0  ;;  %v11401_v8 = vsub.s32 1, %v10486_v21  ;;  %v11404_v0 = vsub.s32 3, %v10486_v21 }
 0xea3   :  { %8470 = vmatmul.mubr.msk.f32.gmra.mxu0 %vm269_vm2, %v11026_v59  ;;  %8474 = vmatmul.mubr.msk.f32.gmra.mxu1 %vm269_vm2, %v11026_v59  ;;  %14011 = vst [vmem:[#allocation6_spill] sm:$0xff] %v11393_v63 }
 0xea4   :  { %9015 = vmatpush3.msra.mxu0 %v3304_v1  ;;  %9059 = vmatpush3.msra.mxu1 %v3336_v27  ;;  %14012 = vst [vmem:[#allocation7_spill] sm:$0xff] %v11401_v8  ;;  %14013 = vst [vmem:[#allocation8_spill] sm:$0xff] %v11404_v0  ;;  %v11408_v1 = vrot.slane %v11398_v7, %v10492_v23  ;;  %v11412_v27 = vrot.slane %v11398_v7, %v11393_v63 }
 0xea5   :  { %9016 = vmatprep.subr.mxu0 %v3319_v5  ;;  %9060 = vmatprep.subr.mxu1 %v3351_v6  ;;  %v11416_v5 = vrot.slane %v11398_v7, %v11401_v8  ;;  %v11420_v6 = vrot.slane %v11398_v7, %v11404_v0 }
 0xea6   :  { %9017 = vmatpush3.msra.mxu0 %v3303_v9  ;;  %9061 = vmatpush3.msra.mxu1 %v3335_v4 }
 0xea7   :  { %9018 = vmatprep.subr.mxu0 %v3318_v12  ;;  %9062 = vmatprep.subr.mxu1 %v3350_v14 }
 0xea8   :  { %9019 = vmatpush3.msra.mxu0 %v3302_v24  ;;  %9063 = vmatpush3.msra.mxu1 %v3334_v25 }
 0xea9   :  { %9020 = vmatprep.subr.mxu0 %v3317_v30  ;;  %9064 = vmatprep.subr.mxu1 %v3349_v31 }
 0xeaa   :  { %9021 = vmatpush3.msra.mxu0 %v3301_v10  ;;  %9065 = vmatpush3.msra.mxu1 %v3333_v60 }
 0xeab   :  { %9022 = vmatprep.subr.mxu0 %v3316_v17  ;;  %9066 = vmatprep.subr.mxu1 %v3348_v32 }
 0xeac   :  { %9023 = vmatpush3.msra.mxu0 %v3300_v22  ;;  %9067 = vmatpush3.msra.mxu1 %v3332_v33 }
 0xead   :  { %9024 = vmatprep.subr.mxu0 %v3315_v11  ;;  %9068 = vmatprep.subr.mxu1 %v3347_v34 }
 0xeae   :  { %9025 = vmatpush3.msra.mxu0 %v3299_v35  ;;  %9069 = vmatpush3.msra.mxu1 %v3331_v16  ;;  %v3371_v35 = vld [vmem:[%s13941_s17 + $0x278] sm:$0xff] }
 0xeaf   :  { %9026 = vmatprep.subr.mxu0 %v3314_v37  ;;  %9070 = vmatprep.subr.mxu1 %v3346_v36  ;;  %v3403_v16 = vld [vmem:[%s13941_s17 + $0x378] sm:$0xff] }
 0xeb0   :  { %9027 = vmatpush3.msra.mxu0 %v3298_v38  ;;  %9071 = vmatpush3.msra.mxu1 %v3330_v20  ;;  %v3386_v38 = vld [vmem:[%s13941_s17 + $0x2f0] sm:$0xff] }
 0xeb1   :  { %9028 = vmatprep.subr.mxu0 %v3313_v39  ;;  %9072 = vmatprep.subr.mxu1 %v3345_v40  ;;  %v3418_v20 = vld [vmem:[%s13941_s17 + $0x3f0] sm:$0xff] }
 0xeb2   :  { %9029 = vmatpush3.msra.mxu0 %v3297_v41  ;;  %9073 = vmatpush3.msra.mxu1 %v3329_v42  ;;  %v3370_v41 = vld [vmem:[%s13941_s17 + $0x270] sm:$0xff] }
 0xeb3   :  { %9030 = vmatprep.subr.mxu0 %v3312_v43  ;;  %9074 = vmatprep.subr.mxu1 %v3344_v45  ;;  %v3402_v42 = vld [vmem:[%s13941_s17 + $0x370] sm:$0xff] }
 0xeb4   :  { %9031 = vmatpush3.msra.mxu0 %v3296_v46  ;;  %9075 = vmatpush3.msra.mxu1 %v3328_v47  ;;  %v3385_v46 = vld [vmem:[%s13941_s17 + $0x2e8] sm:$0xff] }
 0xeb5   :  { %9032 = vmatprep.subr.mxu0 %v3311_v44  ;;  %9076 = vmatprep.subr.mxu1 %v3343_v48  ;;  %v3417_v47 = vld [vmem:[%s13941_s17 + $0x3e8] sm:$0xff] }
 0xeb6   :  { %9033 = vmatpush3.msra.mxu0 %v3295_v49  ;;  %9077 = vmatpush3.msra.mxu1 %v3327_v50 }
 0xeb7   :  { %9034 = vmatprep.subr.mxu0 %v3310_v53  ;;  %9078 = vmatprep.subr.mxu1 %v3342_v28  ;;  %v3369_v53 = vld [vmem:[%s13941_s17 + $0x268] sm:$0xff] }
 0xeb8   :  { %9035 = vmatpush3.msra.mxu0 %v3294_v54  ;;  %9079 = vmatpush3.msra.mxu1 %v3326_v15  ;;  %v3401_v28 = vld [vmem:[%s13941_s17 + $0x368] sm:$0xff]  ;;  %v3384_v54 = vld [vmem:[%s13941_s17 + $0x2e0] sm:$0xff] }
 0xeb9   :  { %9036 = vmatprep.subr.mxu0 %v3309_v55  ;;  %9080 = vmatprep.subr.mxu1 %v3341_v19  ;;  %v3416_v15 = vld [vmem:[%s13941_s17 + $0x3e0] sm:$0xff] }
 0xeba   :  { %9037 = vmatpush3.msra.mxu0 %v3293_v56  ;;  %9081 = vmatpush3.msra.mxu1 %v3325_v51  ;;  %v3368_v56 = vld [vmem:[%s13941_s17 + $0x260] sm:$0xff] }
 0xebb   :  { %9038 = vmatprep.subr.mxu0 %v3308_v3  ;;  %9082 = vmatprep.subr.mxu1 %v3340_v58  ;;  %v3400_v51 = vld [vmem:[%s13941_s17 + $0x360] sm:$0xff] }
 0xebc   :  { %9039 = vmatpush3.msra.mxu0 %v3292_v2  ;;  %9083 = vmatpush3.msra.mxu1 %v3324_v13  ;;  %v3383_v2 = vld [vmem:[%s13941_s17 + $0x2d8] sm:$0xff] }
 0xebd   :  { %9096 = vmatprep.subr.mxu0 %v3387_v61  ;;  %9140 = vmatprep.subr.mxu1 %v3419_v62  ;;  %v3415_v13 = vld [vmem:[%s13941_s17 + $0x3d8] sm:$0xff] }
 0xf23   :  { %v2582_v9 = vpop.f32.mrf.mxu0  ;;  %v2671_v4 = vpop.f32.mrf.mxu1 }
 0xf24   :  { %v2583_v12 = vadd.f32 %v2582_v9, %v11408_v1  ;;  %v2672_v14 = vadd.f32 %v2671_v4, %v11412_v27  ;;  %v3367_v9 = vld [vmem:[%s13941_s17 + $0x258] sm:$0xff] }
 0xf25   :  { %v2584_v24 = vpop.f32.mrf.mxu0  ;;  %v2673_v25 = vpop.f32.mrf.mxu1  ;;  %v3399_v4 = vld [vmem:[%s13941_s17 + $0x358] sm:$0xff] }
 0xf26   :  { %v2585_v30 = vadd.f32 %v2584_v24, %v11416_v5  ;;  %v2674_v31 = vadd.f32 %v2673_v25, %v11420_v6  ;;  %v3228_v22 = vmax.f32 %v2583_v12, 0.0  ;;  %v3230_v33 = vmax.f32 %v2672_v14, 0.0  ;;  %v3382_v12 = vld [vmem:[%s13941_s17 + $0x2d0] sm:$0xff] }
 0xf27   :  { %v2588_v10 = vpop.f32.mrf.mxu0  ;;  %v2677_v60 = vpop.f32.mrf.mxu1  ;;  %v3414_v14 = vld [vmem:[%s13941_s17 + $0x3d0] sm:$0xff]  ;;  %v11493_v24 = vsub.s32 5, %v10486_v21 }
 0xf28   :  { %v3229_v17 = vmax.f32 %v2585_v30, 0.0  ;;  %v3231_v32 = vmax.f32 %v2674_v31, 0.0  ;;  %v2589_v39 = vadd.f32 %v2588_v10, %v11408_v1  ;;  %v2678_v40 = vadd.f32 %v2677_v60, %v11412_v27 }
 0xf29   :  { %v2590_v11 = vpop.f32.mrf.mxu0  ;;  %v2679_v34 = vpop.f32.mrf.mxu1  ;;  %14014 = vst [vmem:[#allocation9_spill] sm:$0xff] %v11493_v24 }
 0xf2a   :  { %v2591_v37 = vadd.f32 %v2590_v11, %v11416_v5  ;;  %v2680_v36 = vadd.f32 %v2679_v34, %v11420_v6  ;;  %3619 = vmatprep.mubr.f32.mxu0 %v3229_v17  ;;  %3704 = vmatprep.mubr.f32.mxu1 %v3231_v32  ;;  %v3244_v44 = vmax.f32 %v2589_v39, 0.0  ;;  %v3246_v48 = vmax.f32 %v2678_v40, 0.0  ;;  %v3366_v32 = vld [vmem:[%s13941_s17 + $0x250] sm:$0xff]  ;;  %v3380_v40 = vld [vmem:[%s13941_s17 + $0x2c0] sm:$0xff] }
 0xf2b   :  { %3620 = vmatmul.mubr.f32.vlgmr.msra.gmra.mxu0 %v3228_v22  ;;  %3705 = vmatmul.mubr.f32.vlgmr.msra.gmra.mxu1 %v3230_v33  ;;  %v3398_v22 = vld [vmem:[%s13941_s17 + $0x350] sm:$0xff]  ;;  %v11504_v33 = vsub.s32 7, %v10486_v21  ;;  %v11526_v39 = vrot.slane %v11398_v7, %v11493_v24 }
 0xf2c   :  { %v3245_v43 = vmax.f32 %v2591_v37, 0.0  ;;  %v3247_v45 = vmax.f32 %v2680_v36, 0.0  ;;  %9097 = vmatpush3.msra.mxu0 %v3371_v35  ;;  %9141 = vmatpush3.msra.mxu1 %v3403_v16  ;;  %v3381_v35 = vld [vmem:[%s13941_s17 + $0x2c8] sm:$0xff] }
 0xf2d   :  { %9098 = vmatprep.subr.mxu0 %v3386_v38  ;;  %9142 = vmatprep.subr.mxu1 %v3418_v20  ;;  %14015 = vst [vmem:[#allocation10_spill] sm:$0xff] %v11504_v33  ;;  %v3413_v16 = vld [vmem:[%s13941_s17 + $0x3c8] sm:$0xff] }
 0xf2e   :  { %9099 = vmatpush3.msra.mxu0 %v3370_v41  ;;  %9143 = vmatpush3.msra.mxu1 %v3402_v42  ;;  %v3412_v41 = vld [vmem:[%s13941_s17 + $0x3c0] sm:$0xff] }
 0xf2f   :  { %3624 = vmatprep.mubr.f32.mxu0 %v3245_v43  ;;  %3709 = vmatprep.mubr.f32.mxu1 %v3247_v45  ;;  %v2594_v49 = vpop.f32.mrf.mxu0  ;;  %v2683_v50 = vpop.f32.mrf.mxu1  ;;  %v11536_v43 = vrot.slane %v11398_v7, %v11504_v33 }
 0xf30   :  { %9100 = vmatprep.subr.mxu0 %v3385_v46  ;;  %9144 = vmatprep.subr.mxu1 %v3417_v47  ;;  %v2595_v25 = vadd.f32 %v2594_v49, %v11408_v1  ;;  %v2684_v30 = vadd.f32 %v2683_v50, %v11412_v27  ;;  %v3364_v49 = vld [vmem:[%s13941_s17 + $0x240] sm:$0xff] }
 0xf31   :  { %3625 = vmatmul.mubr.f32.gmra.mxu0 %v3244_v44  ;;  %3710 = vmatmul.mubr.f32.gmra.mxu1 %v3246_v48  ;;  %v2596_v55 = vpop.f32.mrf.mxu0  ;;  %v2685_v19 = vpop.f32.mrf.mxu1  ;;  %v3396_v50 = vld [vmem:[%s13941_s17 + $0x340] sm:$0xff] }
 0xf32   :  { %9101 = vmatpush3.msra.mxu0 %v3369_v53  ;;  %9145 = vmatpush3.msra.mxu1 %v3401_v28  ;;  %v2597_v3 = vadd.f32 %v2596_v55, %v11416_v5  ;;  %v2686_v58 = vadd.f32 %v2685_v19, %v11420_v6  ;;  %v3260_v38 = vmax.f32 %v2595_v25, 0.0  ;;  %v3262_v20 = vmax.f32 %v2684_v30, 0.0  ;;  %v3411_v53 = vld [vmem:[%s13941_s17 + $0x3b8] sm:$0xff]  ;;  %v3361_v25 = vld [vmem:[%s13941_s17 + $0x228] sm:$0xff] }
 0xf33   :  { %9102 = vmatprep.subr.mxu0 %v3384_v54  ;;  %9146 = vmatprep.subr.mxu1 %v3416_v15  ;;  %v2600_v61 = vpop.f32.mrf.mxu0  ;;  %v2689_v62 = vpop.f32.mrf.mxu1  ;;  %v3363_v55 = vld [vmem:[%s13941_s17 + $0x238] sm:$0xff]  ;;  %v3393_v30 = vld [vmem:[%s13941_s17 + $0x328] sm:$0xff] }
 0xf34   :  { %9103 = vmatpush3.msra.mxu0 %v3368_v56  ;;  %9147 = vmatpush3.msra.mxu1 %v3400_v51  ;;  %v3261_v31 = vmax.f32 %v2597_v3, 0.0  ;;  %v3263_v10 = vmax.f32 %v2686_v58, 0.0  ;;  %v2601_v45 = vadd.f32 %v2600_v61, %v11408_v1  ;;  %v2690_v46 = vadd.f32 %v2689_v62, %v11412_v27  ;;  %v3379_v27 = vld [vmem:[%s13941_s17 + $0x2b8] sm:$0xff]  ;;  %v3378_v56 = vld [vmem:[%s13941_s17 + $0x2b0] sm:$0xff] }
 0xf35   :  { %9104 = vmatprep.subr.mxu0 %v3383_v2  ;;  %9148 = vmatprep.subr.mxu1 %v3415_v13  ;;  %v2602_v60 = vpop.f32.mrf.mxu0  ;;  %v2691_v17 = vpop.f32.mrf.mxu1  ;;  %v3395_v19 = vld [vmem:[%s13941_s17 + $0x338] sm:$0xff]  ;;  %v3410_v51 = vld [vmem:[%s13941_s17 + $0x3b0] sm:$0xff] }
 0xf36   :  { %9105 = vmatpush3.msra.mxu0 %v3367_v9  ;;  %9149 = vmatpush3.msra.mxu1 %v3399_v4  ;;  %v2603_v11 = vadd.f32 %v2602_v60, %v11416_v5  ;;  %v2692_v34 = vadd.f32 %v2691_v17, %v11420_v6  ;;  %v3365_v5 = vld [vmem:[%s13941_s17 + $0x248] sm:$0xff]  ;;  %v3276_v54 = vmax.f32 %v2601_v45, 0.0  ;;  %v3278_v15 = vmax.f32 %v2690_v46, 0.0  ;;  %v3362_v2 = vld [vmem:[%s13941_s17 + $0x230] sm:$0xff]  ;;  %v3360_v17 = vld [vmem:[%s13941_s17 + $0x220] sm:$0xff] }
 0xf37   :  { %9106 = vmatprep.subr.mxu0 %v3382_v12  ;;  %9150 = vmatprep.subr.mxu1 %v3414_v14  ;;  %v11514_v37 = vpop.f32.mrf.mxu0  ;;  %v11516_v36 = vpop.f32.mrf.mxu1  ;;  %v3397_v6 = vld [vmem:[%s13941_s17 + $0x348] sm:$0xff]  ;;  %v3394_v13 = vld [vmem:[%s13941_s17 + $0x330] sm:$0xff]  ;;  %v11583_v12 = vsub.s32 4, %v10486_v21  ;;  %v11586_v14 = vsub.s32 6, %v10486_v21  ;;  %v3408_v21 = vld [vmem:[%s13941_s17 + $0x3a0] sm:$0xff] }
 0xf38   :  { %9107 = vmatpush3.msra.mxu0 %v3366_v32  ;;  %9151 = vmatpush3.msra.mxu1 %v3398_v22  ;;  %v3277_v47 = vmax.f32 %v2603_v11, 0.0  ;;  %v3279_v44 = vmax.f32 %v2692_v34, 0.0  ;;  %v3377_v9 = vld [vmem:[%s13941_s17 + $0x2a8] sm:$0xff]  ;;  %v3392_v32 = vld [vmem:[%s13941_s17 + $0x320] sm:$0xff]  ;;  %v3375_v22 = vld [vmem:[%s13941_s17 + $0x298] sm:$0xff] }
 0xf39   :  { %3629 = vmatprep.mubr.f32.mxu0 %v3261_v31  ;;  %3714 = vmatprep.mubr.f32.mxu1 %v3263_v10  ;;  %v2762_v42 = vpop.f32.mrf.mxu0  ;;  %v2851_v48 = vpop.f32.mrf.mxu1  ;;  %v3409_v4 = vld [vmem:[%s13941_s17 + $0x3a8] sm:$0xff]  ;;  %14016 = vst [vmem:[#allocation11_spill] sm:$0xff] %v11583_v12  ;;  %14017 = vst [vmem:[#allocation12_spill] sm:$0xff] %v11586_v14  ;;  %v3376_v10 = vld [vmem:[%s13941_s17 + $0x2a0] sm:$0xff]  ;;  %v11614_v34 = vrot.slane %v11398_v7, %v11583_v12 }
 0xf3a   :  { %9108 = vmatprep.subr.mxu0 %v3381_v35  ;;  %9152 = vmatprep.subr.mxu1 %v3413_v16  ;;  %v2763_v1 = vadd.f32 %v2762_v42, %v11526_v39  ;;  %v2852_v28 = vadd.f32 %v2851_v48, %v11536_v43  ;;  %v3407_v11 = vld [vmem:[%s13941_s17 + $0x398] sm:$0xff]  ;;  %v11618_v35 = vrot.slane %v11398_v7, %v11586_v14  ;;  %v3406_v7 = vld [vmem:[%s13941_s17 + $0x390] sm:$0xff]  ;;  %v3373_v42 = vld [vmem:[%s13941_s17 + $0x288] sm:$0xff] }
 0xf3b   :  { %3630 = vmatmul.mubr.f32.gmra.mxu0 %v3260_v38  ;;  %3715 = vmatmul.mubr.f32.gmra.mxu1 %v3262_v20  ;;  %v11566_v58 = vpop.f32.mrf.mxu0  ;;  %v11574_v62 = vpop.f32.mrf.mxu1  ;;  %v3359_v16 = vld [vmem:[%s13941_s17 + $0x218] sm:$0xff]  ;;  %v3405_v45 = vld [vmem:[%s13941_s17 + $0x388] sm:$0xff]  ;;  %v2761_v46 = vadd.f32 %v11514_v37, %v11614_v34  ;;  %v3372_v37 = vld [vmem:[%s13941_s17 + $0x280] sm:$0xff] }
 0xf3c   :  { %9109 = vmatpush3.msra.mxu0 %v3365_v5  ;;  %9153 = vmatpush3.msra.mxu1 %v3397_v6  ;;  %v3233_v3 = vmax.f32 %v2763_v1, 0.0  ;;  %v3235_v61 = vmax.f32 %v2852_v28, 0.0  ;;  %v3391_v38 = vld [vmem:[%s13941_s17 + $0x318] sm:$0xff]  ;;  %v3374_v5 = vld [vmem:[%s13941_s17 + $0x290] sm:$0xff]  ;;  %v3389_v48 = vld [vmem:[%s13941_s17 + $0x308] sm:$0xff] }
 0xf3d   :  { %9110 = vmatprep.subr.mxu0 %v3380_v40  ;;  %9154 = vmatprep.subr.mxu1 %v3412_v41  ;;  %v2768_v31 = vpop.f32.mrf.mxu0  ;;  %v2857_v60 = vpop.f32.mrf.mxu1  ;;  %v3358_v40 = vld [vmem:[%s13941_s17 + $0x210] sm:$0xff]  ;;  %v3388_v28 = vld [vmem:[%s13941_s17 + $0x300] sm:$0xff] }
 0xf3e   :  { %9111 = vmatpush3.msra.mxu0 %v3364_v49  ;;  %9155 = vmatpush3.msra.mxu1 %v3396_v50  ;;  %v3390_v41 = vld [vmem:[%s13941_s17 + $0x310] sm:$0xff]  ;;  %v2769_v50 = vadd.f32 %v2768_v31, %v11526_v39  ;;  %v2858_v1 = vadd.f32 %v2857_v60, %v11536_v43 }
 0xf3f   :  { %3634 = vmatprep.mubr.f32.mxu0 %v3277_v47  ;;  %3719 = vmatprep.mubr.f32.mxu1 %v3279_v44  ;;  %v11626_v20 = vpop.f32.mrf.mxu0  ;;  %v11634_v6 = vpop.f32.mrf.mxu1  ;;  %v2850_v47 = vadd.f32 %v11516_v36, %v11618_v35  ;;  %v3357_v44 = vld [vmem:[%s13941_s17 + $0x208] sm:$0xff]  ;;  %v3404_v36 = vld [vmem:[%s13941_s17 + $0x380] sm:$0xff]  ;;  %v3434_v31 = vld [vmem:[%s13941_s17 + $0x470] sm:$0xff] }
 0xf40   :  { %9112 = vmatprep.subr.mxu0 %v3379_v27  ;;  %9156 = vmatprep.subr.mxu1 %v3411_v53  ;;  %v3356_v53 = vld [vmem:[%s13941_s17 + $0x200] sm:$0xff] }
 0xf41   :  { %3635 = vmatmul.mubr.f32.gmra.mxu0 %v3276_v54  ;;  %3720 = vmatmul.mubr.f32.gmra.mxu1 %v3278_v15  ;;  %v2774_v49 = vpop.f32.mrf.mxu0  ;;  %v2863_v27 = vpop.f32.mrf.mxu1  ;;  %v3232_v54 = vmax.f32 %v2761_v46, 0.0  ;;  %v3234_v15 = vmax.f32 %v2850_v47, 0.0 }
 0xf42   :  { %9113 = vmatpush3.msra.mxu0 %v3363_v55  ;;  %9157 = vmatpush3.msra.mxu1 %v3395_v19  ;;  %v3451_v55 = vld [vmem:[%s13941_s17 + $0x4f8] sm:$0xff] }
 0xf43   :  { %9114 = vmatprep.subr.mxu0 %v3378_v56  ;;  %9158 = vmatprep.subr.mxu1 %v3410_v51  ;;  %v3483_v19 = vld [vmem:[%s13941_s17 + $0x5f8] sm:$0xff]  ;;  %v11678_v56 = vpop.f32.mrf.mxu0  ;;  %v2767_v51 = vadd.f32 %v11566_v58, %v11614_v34  ;;  %v3450_v58 = vld [vmem:[%s13941_s17 + $0x4f0] sm:$0xff] }
 0xf44   :  { %9115 = vmatpush3.msra.mxu0 %v3362_v2  ;;  %9159 = vmatpush3.msra.mxu1 %v3394_v13  ;;  %v3249_v2 = vmax.f32 %v2769_v50, 0.0  ;;  %v3251_v13 = vmax.f32 %v2858_v1, 0.0  ;;  %v3479_v50 = vld [vmem:[%s13941_s17 + $0x5d8] sm:$0xff] }
 0xf45   :  { %9116 = vmatprep.subr.mxu0 %v3377_v9  ;;  %3789 = vmatprep.mubr.f32.mxu0 %v3233_v3  ;;  %v2856_v3 = vadd.f32 %v11574_v62, %v11618_v35  ;;  %v3435_v9 = vld [vmem:[%s13941_s17 + $0x478] sm:$0xff]  ;;  %v3482_v62 = vld [vmem:[%s13941_s17 + $0x5f0] sm:$0xff]  ;;  %v3248_v60 = vmax.f32 %v2767_v51, 0.0 }
 0xf46   :  { %9160 = vmatprep.subr.mxu1 %v3409_v4  ;;  %3874 = vmatprep.mubr.f32.mxu1 %v3235_v61  ;;  %v2867_v61 = vpop.f32.mrf.mxu1  ;;  %v3467_v4 = vld [vmem:[%s13941_s17 + $0x578] sm:$0xff] }
 0xf47   :  { %9117 = vmatpush3.msra.mxu0 %v3361_v25  ;;  %9161 = vmatpush3.msra.mxu1 %v3393_v30  ;;  %v2775_v25 = vadd.f32 %v2774_v49, %v11526_v39  ;;  %v2864_v30 = vadd.f32 %v2863_v27, %v11536_v43  ;;  %v11741_v49 = vld [vmem:[%s13942_s16 + $0x8] sm:$0xff]  ;;  %v3463_v51 = vld [vmem:[%s13941_s17 + $0x558] sm:$0xff] }
 0xf48   :  { %9118 = vmatprep.subr.mxu0 %v3376_v10  ;;  %9162 = vmatprep.subr.mxu1 %v3408_v21  ;;  %v3466_v10 = vld [vmem:[%s13941_s17 + $0x570] sm:$0xff]  ;;  %v2780_v21 = vpop.f32.mrf.mxu0  ;;  %v11755_v27 = vrot.slane %v11741_v49, %v11404_v0 }
 0xf49   :  { %9119 = vmatpush3.msra.mxu0 %v3360_v17  ;;  %9163 = vmatpush3.msra.mxu1 %v3392_v32  ;;  %v3250_v17 = vmax.f32 %v2856_v3, 0.0  ;;  %v2869_v32 = vpop.f32.mrf.mxu1  ;;  %v3430_v3 = vld [vmem:[%s13941_s17 + $0x450] sm:$0xff] }
 0xf4a   :  { %9120 = vmatprep.subr.mxu0 %v3375_v22  ;;  %9164 = vmatprep.subr.mxu1 %v3407_v11  ;;  %v3449_v22 = vld [vmem:[%s13941_s17 + $0x4e8] sm:$0xff]  ;;  %v2870_v46 = vadd.f32 %v2869_v32, %v11536_v43  ;;  %v3443_v32 = vld [vmem:[%s13941_s17 + $0x4b8] sm:$0xff] }
 0xf4b   :  { %9121 = vmatpush3.msra.mxu0 %v3359_v16  ;;  %9165 = vmatpush3.msra.mxu1 %v3391_v38  ;;  %v3481_v11 = vld [vmem:[%s13941_s17 + $0x5e8] sm:$0xff]  ;;  %v2773_v16 = vadd.f32 %v11626_v20, %v11614_v34  ;;  %v2862_v38 = vadd.f32 %v11634_v6, %v11618_v35  ;;  %v3448_v20 = vld [vmem:[%s13941_s17 + $0x4e0] sm:$0xff]  ;;  %v11730_v47 = vpop.f32.mrf.mxu1 }
 0xf4c   :  { %9122 = vmatprep.subr.mxu0 %v3374_v5  ;;  %9166 = vmatprep.subr.mxu1 %v3406_v7  ;;  %v3265_v5 = vmax.f32 %v2775_v25, 0.0  ;;  %v3267_v7 = vmax.f32 %v2864_v30, 0.0  ;;  %v3480_v6 = vld [vmem:[%s13941_s17 + $0x5e0] sm:$0xff]  ;;  %v3461_v30 = vld [vmem:[%s13941_s17 + $0x548] sm:$0xff] }
 0xf4d   :  { %9123 = vmatpush3.msra.mxu0 %v3358_v40  ;;  %9167 = vmatpush3.msra.mxu1 %v3390_v41  ;;  %v3433_v40 = vld [vmem:[%s13941_s17 + $0x468] sm:$0xff]  ;;  %v3266_v43 = vmax.f32 %v2862_v38, 0.0 }
 0xf4e   :  { %9124 = vmatprep.subr.mxu0 %v3373_v42  ;;  %9168 = vmatprep.subr.mxu1 %v3405_v45  ;;  %v3465_v41 = vld [vmem:[%s13941_s17 + $0x568] sm:$0xff]  ;;  %v11720_v42 = vpop.f32.mrf.mxu0  ;;  %v2781_v45 = vadd.f32 %v2780_v21, %v11526_v39  ;;  %v3264_v39 = vmax.f32 %v2773_v16, 0.0  ;;  %v3476_v21 = vld [vmem:[%s13941_s17 + $0x5c0] sm:$0xff]  ;;  %v3459_v16 = vld [vmem:[%s13941_s17 + $0x538] sm:$0xff] }
 0xf4f   :  { %9125 = vmatpush3.msra.mxu0 %v3357_v44  ;;  %9169 = vmatpush3.msra.mxu1 %v3389_v48  ;;  %v3432_v44 = vld [vmem:[%s13941_s17 + $0x460] sm:$0xff] }
 0xf50   :  { %9126 = vmatprep.subr.mxu0 %v3372_v37  ;;  %9170 = vmatprep.subr.mxu1 %v3404_v36  ;;  %v3464_v48 = vld [vmem:[%s13941_s17 + $0x560] sm:$0xff]  ;;  %v11745_v37 = vrot.slane %v11741_v49, %v11401_v8  ;;  %v3447_v36 = vld [vmem:[%s13941_s17 + $0x4d8] sm:$0xff]  ;;  %v2940_v1 = vpop.f32.mrf.mxu0 }
 0xf51   :  { %9127 = vmatpush3.msra.mxu0 %v3356_v53  ;;  %9171 = vmatpush3.msra.mxu1 %v3388_v28  ;;  %v2779_v53 = vadd.f32 %v11678_v56, %v11614_v34  ;;  %v2868_v28 = vadd.f32 %v2867_v61, %v11618_v35  ;;  %v3446_v34 = vld [vmem:[%s13941_s17 + $0x4d0] sm:$0xff] }
 0xf52   :  { %3790 = vmatmul.mubr.f32.vlgmr.msra.gmra.mxu0 %v3232_v54  ;;  %3875 = vmatmul.mubr.f32.vlgmr.msra.gmra.mxu1 %v3234_v15  ;;  %v3281_v54 = vmax.f32 %v2781_v45, 0.0  ;;  %v3283_v15 = vmax.f32 %v2870_v46, 0.0  ;;  %v3478_v35 = vld [vmem:[%s13941_s17 + $0x5d0] sm:$0xff]  ;;  %v2941_v56 = vadd.f32 %v2940_v1, %v11745_v37  ;;  %v11816_v38 = vpop.f32.mrf.mxu0  ;;  %v3473_v45 = vld [vmem:[%s13941_s17 + $0x5a8] sm:$0xff]  ;;  %v3456_v1 = vld [vmem:[%s13941_s17 + $0x520] sm:$0xff] }
 0xf53   :  { %9184 = vmatprep.subr.mxu0 %v3451_v55  ;;  %9228 = vmatprep.subr.mxu1 %v3483_v19  ;;  %v3029_v55 = vpop.f32.mrf.mxu1  ;;  %v3431_v19 = vld [vmem:[%s13941_s17 + $0x458] sm:$0xff]  ;;  %v3280_v61 = vmax.f32 %v2779_v53, 0.0  ;;  %v3425_v46 = vld [vmem:[%s13941_s17 + $0x428] sm:$0xff] }
 0xf54   :  { %3794 = vmatprep.mubr.f32.mxu0 %v3249_v2  ;;  %3879 = vmatprep.mubr.f32.mxu1 %v3251_v13  ;;  %v3462_v2 = vld [vmem:[%s13941_s17 + $0x550] sm:$0xff]  ;;  %v3030_v13 = vadd.f32 %v3029_v55, %v11755_v27  ;;  %v3237_v25 = vmax.f32 %v2941_v56, 0.0  ;;  %v3439_v53 = vld [vmem:[%s13941_s17 + $0x498] sm:$0xff] }
 0xf55   :  { %9185 = vmatpush3.msra.mxu0 %v3435_v9  ;;  %9229 = vmatpush3.msra.mxu1 %v3467_v4  ;;  %v3282_v9 = vmax.f32 %v2868_v28, 0.0  ;;  %v3445_v4 = vld [vmem:[%s13941_s17 + $0x4c8] sm:$0xff]  ;;  %v3471_v28 = vld [vmem:[%s13941_s17 + $0x598] sm:$0xff] }
 0xf56   :  { %9186 = vmatprep.subr.mxu0 %v3450_v58  ;;  %9230 = vmatprep.subr.mxu1 %v3482_v62  ;;  %v3477_v58 = vld [vmem:[%s13941_s17 + $0x5c8] sm:$0xff]  ;;  %v3423_v55 = vld [vmem:[%s13941_s17 + $0x418] sm:$0xff] }
 0xf57   :  { %9187 = vmatpush3.msra.mxu0 %v3434_v31  ;;  %9231 = vmatpush3.msra.mxu1 %v3466_v10  ;;  %v3429_v62 = vld [vmem:[%s13941_s17 + $0x448] sm:$0xff]  ;;  %v3239_v31 = vmax.f32 %v3030_v13, 0.0  ;;  %v3444_v10 = vld [vmem:[%s13941_s17 + $0x4c0] sm:$0xff] }
 0xf58   :  { %3795 = vmatmul.mubr.f32.gmra.mxu0 %v3248_v60  ;;  %3880 = vmatmul.mubr.f32.gmra.mxu1 %v3250_v17  ;;  %v3428_v60 = vld [vmem:[%s13941_s17 + $0x440] sm:$0xff]  ;;  %v3437_v13 = vld [vmem:[%s13941_s17 + $0x488] sm:$0xff] }
 0xf59   :  { %9188 = vmatprep.subr.mxu0 %v3449_v22  ;;  %9232 = vmatprep.subr.mxu1 %v3481_v11  ;;  %v3460_v17 = vld [vmem:[%s13941_s17 + $0x540] sm:$0xff]  ;;  %v3475_v22 = vld [vmem:[%s13941_s17 + $0x5b8] sm:$0xff] }
 0xf5a   :  { %3799 = vmatprep.mubr.f32.mxu0 %v3265_v5  ;;  %3884 = vmatprep.mubr.f32.mxu1 %v3267_v7  ;;  %v3427_v11 = vld [vmem:[%s13941_s17 + $0x438] sm:$0xff]  ;;  %v3442_v5 = vld [vmem:[%s13941_s17 + $0x4b0] sm:$0xff] }
 0xf5b   :  { %9189 = vmatpush3.msra.mxu0 %v3433_v40  ;;  %9233 = vmatpush3.msra.mxu1 %v3465_v41  ;;  %v3474_v7 = vld [vmem:[%s13941_s17 + $0x5b0] sm:$0xff]  ;;  %v11824_v40 = vpop.f32.mrf.mxu1 }
 0xf5c   :  { %9190 = vmatprep.subr.mxu0 %v3448_v20  ;;  %9234 = vmatprep.subr.mxu1 %v3480_v6  ;;  %v3426_v41 = vld [vmem:[%s13941_s17 + $0x430] sm:$0xff]  ;;  %v3441_v6 = vld [vmem:[%s13941_s17 + $0x4a8] sm:$0xff] }
 0xf5d   :  { %9191 = vmatpush3.msra.mxu0 %v3432_v44  ;;  %9235 = vmatpush3.msra.mxu1 %v3464_v48  ;;  %v3458_v20 = vld [vmem:[%s13941_s17 + $0x530] sm:$0xff]  ;;  %v3457_v44 = vld [vmem:[%s13941_s17 + $0x528] sm:$0xff]  ;;  %v2946_v48 = vpop.f32.mrf.mxu0 }
 0xf5e   :  { %3800 = vmatmul.mubr.f32.gmra.mxu0 %v3264_v39  ;;  %3885 = vmatmul.mubr.f32.gmra.mxu1 %v3266_v43  ;;  %v3440_v39 = vld [vmem:[%s13941_s17 + $0x4a0] sm:$0xff] }
 0xf5f   :  { %9192 = vmatprep.subr.mxu0 %v3447_v36  ;;  %9236 = vmatprep.subr.mxu1 %v3479_v50  ;;  %v3472_v43 = vld [vmem:[%s13941_s17 + $0x5a0] sm:$0xff]  ;;  %v3035_v36 = vpop.f32.mrf.mxu1 }
 0xf60   :  { %3804 = vmatprep.mubr.f32.mxu0 %v3281_v54  ;;  %3889 = vmatprep.mubr.f32.mxu1 %v3283_v15  ;;  %v3424_v50 = vld [vmem:[%s13941_s17 + $0x420] sm:$0xff]  ;;  %v11864_v54 = vrot.slane %v11741_v49, %v10492_v23  ;;  %v11868_v15 = vrot.slane %v11741_v49, %v11393_v63 }
 0xf61   :  { %9193 = vmatpush3.msra.mxu0 %v3431_v19  ;;  %9237 = vmatpush3.msra.mxu1 %v3463_v51  ;;  %v3455_v19 = vld [vmem:[%s13941_s17 + $0x518] sm:$0xff]  ;;  %v11876_v51 = vpop.f32.mrf.mxu0  ;;  %v11884_v56 = vpop.f32.mrf.mxu1 }
 0xf62   :  { %9194 = vmatprep.subr.mxu0 %v3446_v34  ;;  %9238 = vmatprep.subr.mxu1 %v3478_v35  ;;  %v3438_v34 = vld [vmem:[%s13941_s17 + $0x490] sm:$0xff] }
 0xf63   :  { %9195 = vmatpush3.msra.mxu0 %v3430_v3  ;;  %9239 = vmatpush3.msra.mxu1 %v3462_v2  ;;  %v3470_v35 = vld [vmem:[%s13941_s17 + $0x590] sm:$0xff] }
 0xf64   :  { %3805 = vmatmul.mubr.f32.gmra.mxu0 %v3280_v61  ;;  %3890 = vmatmul.mubr.f32.gmra.mxu1 %v3282_v9  ;;  %v3422_v3 = vld [vmem:[%s13941_s17 + $0x410] sm:$0xff]  ;;  %v3469_v61 = vld [vmem:[%s13941_s17 + $0x588] sm:$0xff]  ;;  %v2939_v9 = vadd.f32 %v11720_v42, %v11864_v54  ;;  %v3436_v42 = vld [vmem:[%s13941_s17 + $0x480] sm:$0xff] }
 0xf65   :  { %9196 = vmatprep.subr.mxu0 %v3445_v4  ;;  %9240 = vmatprep.subr.mxu1 %v3477_v58  ;;  %v3454_v2 = vld [vmem:[%s13941_s17 + $0x510] sm:$0xff]  ;;  %v3028_v4 = vadd.f32 %v11730_v47, %v11868_v15  ;;  %v3421_v58 = vld [vmem:[%s13941_s17 + $0x408] sm:$0xff]  ;;  %v3468_v47 = vld [vmem:[%s13941_s17 + $0x580] sm:$0xff] }
 0xf66   :  { %9197 = vmatpush3.msra.mxu0 %v3429_v62  ;;  %3959 = vmatprep.mubr.f32.mxu0 %v3237_v25  ;;  %v3453_v62 = vld [vmem:[%s13941_s17 + $0x508] sm:$0xff]  ;;  %v2952_v25 = vpop.f32.mrf.mxu0 }
 0xf67   :  { %9241 = vmatpush3.msra.mxu1 %v3461_v30  ;;  %4044 = vmatprep.mubr.f32.mxu1 %v3239_v31  ;;  %v2947_v30 = vadd.f32 %v2946_v48, %v11745_v37  ;;  %v3036_v31 = vadd.f32 %v3035_v36, %v11755_v27 }
 0xf68   :  { %9198 = vmatprep.subr.mxu0 %v3444_v10  ;;  %9242 = vmatprep.subr.mxu1 %v3476_v21  ;;  %v3041_v10 = vpop.f32.mrf.mxu1  ;;  %v3420_v21 = vld [vmem:[%s13941_s17 + $0x400] sm:$0xff] }
 0xf69   :  { %9199 = vmatpush3.msra.mxu0 %v3428_v60  ;;  %9243 = vmatpush3.msra.mxu1 %v3460_v17  ;;  %v3452_v60 = vld [vmem:[%s13941_s17 + $0x500] sm:$0xff]  ;;  %v3236_v17 = vmax.f32 %v2939_v9, 0.0  ;;  %v3042_v48 = vadd.f32 %v3041_v10, %v11755_v27  ;;  %v12000_v10 = vrot.slane %v11741_v49, %v11504_v33 }
 0xf6a   :  { %9200 = vmatprep.subr.mxu0 %v3443_v32  ;;  %9244 = vmatprep.subr.mxu1 %v3475_v22  ;;  %v3238_v32 = vmax.f32 %v3028_v4, 0.0  ;;  %v3515_v22 = vld [vmem:[%s13941_s17 + $0x6f8] sm:$0xff] }
 0xf6b   :  { %9201 = vmatpush3.msra.mxu0 %v3427_v11  ;;  %9245 = vmatpush3.msra.mxu1 %v3459_v16  ;;  %v3547_v11 = vld [vmem:[%s13941_s17 + $0x7f8] sm:$0xff]  ;;  %v11928_v16 = vpop.f32.mrf.mxu0 }
 0xf6c   :  { %9202 = vmatprep.subr.mxu0 %v3442_v5  ;;  %9246 = vmatprep.subr.mxu1 %v3474_v7  ;;  %v2945_v5 = vadd.f32 %v11816_v38, %v11864_v54  ;;  %v3034_v7 = vadd.f32 %v11824_v40, %v11868_v15  ;;  %v3514_v38 = vld [vmem:[%s13941_s17 + $0x6f0] sm:$0xff] }
 0xf6d   :  { %9203 = vmatpush3.msra.mxu0 %v3426_v41  ;;  %9247 = vmatpush3.msra.mxu1 %v3458_v20  ;;  %v3253_v41 = vmax.f32 %v2947_v30, 0.0  ;;  %v3255_v20 = vmax.f32 %v3036_v31, 0.0  ;;  %v3546_v40 = vld [vmem:[%s13941_s17 + $0x7f0] sm:$0xff]  ;;  %v2958_v36 = vpop.f32.mrf.mxu0  ;;  %v3543_v30 = vld [vmem:[%s13941_s17 + $0x7d8] sm:$0xff] }
 0xf6e   :  { %9204 = vmatprep.subr.mxu0 %v3441_v6  ;;  %9248 = vmatprep.subr.mxu1 %v3473_v45  ;;  %v3045_v6 = vpop.f32.mrf.mxu1  ;;  %v3499_v45 = vld [vmem:[%s13941_s17 + $0x678] sm:$0xff]  ;;  %v2959_v9 = vadd.f32 %v2958_v36, %v11745_v37  ;;  %v3540_v36 = vld [vmem:[%s13941_s17 + $0x7c0] sm:$0xff] }
 0xf6f   :  { %9205 = vmatpush3.msra.mxu0 %v3425_v46  ;;  %9249 = vmatpush3.msra.mxu1 %v3457_v44  ;;  %v3531_v46 = vld [vmem:[%s13941_s17 + $0x778] sm:$0xff]  ;;  %v2953_v44 = vadd.f32 %v2952_v25, %v11745_v37  ;;  %v3528_v25 = vld [vmem:[%s13941_s17 + $0x760] sm:$0xff]  ;;  %v11990_v37 = vrot.slane %v11741_v49, %v11493_v24 }
 0xf70   :  { %9206 = vmatprep.subr.mxu0 %v3440_v39  ;;  %9250 = vmatprep.subr.mxu1 %v3472_v43  ;;  %v3498_v39 = vld [vmem:[%s13941_s17 + $0x670] sm:$0xff] }
 0xf71   :  { %9207 = vmatpush3.msra.mxu0 %v3424_v50  ;;  %9251 = vmatpush3.msra.mxu1 %v3456_v1  ;;  %v3530_v43 = vld [vmem:[%s13941_s17 + $0x770] sm:$0xff]  ;;  %v3252_v50 = vmax.f32 %v2945_v5, 0.0  ;;  %v3254_v1 = vmax.f32 %v3034_v7, 0.0  ;;  %v3527_v5 = vld [vmem:[%s13941_s17 + $0x758] sm:$0xff] }
 0xf72   :  { %9208 = vmatprep.subr.mxu0 %v3439_v53  ;;  %9252 = vmatprep.subr.mxu1 %v3471_v28  ;;  %v3047_v53 = vpop.f32.mrf.mxu1  ;;  %v3513_v28 = vld [vmem:[%s13941_s17 + $0x6e8] sm:$0xff]  ;;  %v3494_v7 = vld [vmem:[%s13941_s17 + $0x650] sm:$0xff] }
 0xf73   :  { %9209 = vmatpush3.msra.mxu0 %v3423_v55  ;;  %9253 = vmatpush3.msra.mxu1 %v3455_v19  ;;  %v3545_v55 = vld [vmem:[%s13941_s17 + $0x7e8] sm:$0xff]  ;;  %v2951_v19 = vadd.f32 %v11876_v51, %v11864_v54  ;;  %v3512_v51 = vld [vmem:[%s13941_s17 + $0x6e0] sm:$0xff]  ;;  %v3048_v4 = vadd.f32 %v3047_v53, %v11755_v27  ;;  %v3511_v27 = vld [vmem:[%s13941_s17 + $0x6d8] sm:$0xff] }
 0xf74   :  { %9210 = vmatprep.subr.mxu0 %v3438_v34  ;;  %9254 = vmatprep.subr.mxu1 %v3470_v35  ;;  %v3040_v34 = vadd.f32 %v11884_v56, %v11868_v15  ;;  %v3269_v35 = vmax.f32 %v2953_v44, 0.0  ;;  %v3544_v56 = vld [vmem:[%s13941_s17 + $0x7e0] sm:$0xff] }
 0xf75   :  { %9211 = vmatpush3.msra.mxu0 %v3422_v3  ;;  %9255 = vmatpush3.msra.mxu1 %v3454_v2  ;;  %v3271_v3 = vmax.f32 %v3042_v48, 0.0  ;;  %v3497_v2 = vld [vmem:[%s13941_s17 + $0x668] sm:$0xff]  ;;  %v3492_v53 = vld [vmem:[%s13941_s17 + $0x640] sm:$0xff] }
 0xf76   :  { %9212 = vmatprep.subr.mxu0 %v3437_v13  ;;  %9256 = vmatprep.subr.mxu1 %v3469_v61  ;;  %v3529_v13 = vld [vmem:[%s13941_s17 + $0x768] sm:$0xff]  ;;  %v11970_v61 = vpop.f32.mrf.mxu0 }
 0xf77   :  { %9213 = vmatpush3.msra.mxu0 %v3421_v58  ;;  %9257 = vmatpush3.msra.mxu1 %v3453_v62  ;;  %v11980_v58 = vpop.f32.mrf.mxu1  ;;  %v3496_v62 = vld [vmem:[%s13941_s17 + $0x660] sm:$0xff]  ;;  %v3525_v48 = vld [vmem:[%s13941_s17 + $0x748] sm:$0xff] }
 0xf78   :  { %9214 = vmatprep.subr.mxu0 %v3436_v42  ;;  %9258 = vmatprep.subr.mxu1 %v3468_v47  ;;  %v3268_v42 = vmax.f32 %v2951_v19, 0.0  ;;  %v3270_v47 = vmax.f32 %v3040_v34, 0.0  ;;  %v3118_v31 = vpop.f32.mrf.mxu0  ;;  %v3539_v19 = vld [vmem:[%s13941_s17 + $0x7b8] sm:$0xff] }
 0xf79   :  { %9215 = vmatpush3.msra.mxu0 %v3420_v21  ;;  %9259 = vmatpush3.msra.mxu1 %v3452_v60  ;;  %v2957_v21 = vadd.f32 %v11928_v16, %v11864_v54  ;;  %v3046_v60 = vadd.f32 %v3045_v6, %v11868_v15  ;;  %v3510_v54 = vld [vmem:[%s13941_s17 + $0x6d0] sm:$0xff]  ;;  %v3119_v16 = vadd.f32 %v3118_v31, %v11990_v37  ;;  %v3491_v34 = vld [vmem:[%s13941_s17 + $0x638] sm:$0xff] }
 0xf7a   :  { %3960 = vmatmul.mubr.f32.vlgmr.msra.gmra.mxu0 %v3236_v17  ;;  %4045 = vmatmul.mubr.f32.vlgmr.msra.gmra.mxu1 %v3238_v32  ;;  %v3285_v17 = vmax.f32 %v2959_v9, 0.0  ;;  %v3287_v32 = vmax.f32 %v3048_v4, 0.0  ;;  %v3542_v15 = vld [vmem:[%s13941_s17 + $0x7d0] sm:$0xff]  ;;  %v3505_v4 = vld [vmem:[%s13941_s17 + $0x6a8] sm:$0xff] }
 0xf7b   :  { %9272 = vmatprep.subr.mxu0 %v3515_v22  ;;  %9316 = vmatprep.subr.mxu1 %v3547_v11  ;;  %v3207_v22 = vpop.f32.mrf.mxu1  ;;  %v3495_v11 = vld [vmem:[%s13941_s17 + $0x658] sm:$0xff]  ;;  %v3284_v6 = vmax.f32 %v2957_v21, 0.0  ;;  %v3241_v44 = vmax.f32 %v3119_v16, 0.0  ;;  %v3522_v9 = vld [vmem:[%s13941_s17 + $0x730] sm:$0xff]  ;;  %v3488_v21 = vld [vmem:[%s13941_s17 + $0x620] sm:$0xff] }
 0xf7c   :  { %3964 = vmatprep.mubr.f32.mxu0 %v3253_v41  ;;  %4049 = vmatprep.mubr.f32.mxu1 %v3255_v20  ;;  %v3526_v41 = vld [vmem:[%s13941_s17 + $0x750] sm:$0xff]  ;;  %v3208_v20 = vadd.f32 %v3207_v22, %v12000_v10  ;;  %v12113_v22 = vrot.slane %v11741_v49, %v11583_v12 }
 0xf7d   :  { %9273 = vmatpush3.msra.mxu0 %v3499_v45  ;;  %9317 = vmatpush3.msra.mxu1 %v3531_v46  ;;  %v3286_v45 = vmax.f32 %v3046_v60, 0.0  ;;  %v3509_v46 = vld [vmem:[%s13941_s17 + $0x6c8] sm:$0xff]  ;;  %v3520_v60 = vld [vmem:[%s13941_s17 + $0x720] sm:$0xff] }
 0xf7e   :  { %9274 = vmatprep.subr.mxu0 %v3514_v38  ;;  %9318 = vmatprep.subr.mxu1 %v3546_v40  ;;  %v3541_v38 = vld [vmem:[%s13941_s17 + $0x7c8] sm:$0xff] }
 0xf7f   :  { %9275 = vmatpush3.msra.mxu0 %v3498_v39  ;;  %9319 = vmatpush3.msra.mxu1 %v3530_v43  ;;  %v3493_v40 = vld [vmem:[%s13941_s17 + $0x648] sm:$0xff]  ;;  %v3243_v39 = vmax.f32 %v3208_v20, 0.0  ;;  %v3508_v43 = vld [vmem:[%s13941_s17 + $0x6c0] sm:$0xff]  ;;  %v3518_v20 = vld [vmem:[%s13941_s17 + $0x710] sm:$0xff] }
 0xf80   :  { %3965 = vmatmul.mubr.f32.gmra.mxu0 %v3252_v50  ;;  %4050 = vmatmul.mubr.f32.gmra.mxu1 %v3254_v1  ;;  %v12043_v50 = vpop.f32.mrf.mxu0  ;;  %v12045_v1 = vpop.f32.mrf.mxu1 }
 0xf81   :  { %9276 = vmatprep.subr.mxu0 %v3513_v28  ;;  %9320 = vmatprep.subr.mxu1 %v3545_v55  ;;  %v3524_v28 = vld [vmem:[%s13941_s17 + $0x740] sm:$0xff]  ;;  %v3507_v55 = vld [vmem:[%s13941_s17 + $0x6b8] sm:$0xff] }
 0xf82   :  { %3969 = vmatprep.mubr.f32.mxu0 %v3269_v35  ;;  %4054 = vmatprep.mubr.f32.mxu1 %v3271_v3  ;;  %v3523_v35 = vld [vmem:[%s13941_s17 + $0x738] sm:$0xff]  ;;  %v3506_v3 = vld [vmem:[%s13941_s17 + $0x6b0] sm:$0xff] }
 0xf83   :  { %9277 = vmatpush3.msra.mxu0 %v3497_v2  ;;  %9321 = vmatpush3.msra.mxu1 %v3529_v13  ;;  %v3538_v2 = vld [vmem:[%s13941_s17 + $0x7b0] sm:$0xff]  ;;  %v3124_v13 = vpop.f32.mrf.mxu0 }
 0xf84   :  { %9278 = vmatprep.subr.mxu0 %v3512_v51  ;;  %9322 = vmatprep.subr.mxu1 %v3544_v56  ;;  %v3213_v51 = vpop.f32.mrf.mxu1  ;;  %v3490_v56 = vld [vmem:[%s13941_s17 + $0x630] sm:$0xff] }
 0xf85   :  { %9279 = vmatpush3.msra.mxu0 %v3496_v62  ;;  %9323 = vmatpush3.msra.mxu1 %v3528_v25  ;;  %v3537_v62 = vld [vmem:[%s13941_s17 + $0x7a8] sm:$0xff] }
 0xf86   :  { %3970 = vmatmul.mubr.f32.gmra.mxu0 %v3268_v42  ;;  %4055 = vmatmul.mubr.f32.gmra.mxu1 %v3270_v47  ;;  %v3489_v25 = vld [vmem:[%s13941_s17 + $0x628] sm:$0xff]  ;;  %v3504_v47 = vld [vmem:[%s13941_s17 + $0x6a0] sm:$0xff]  ;;  %v12097_v31 = vpop.f32.mrf.mxu1 }
 0xf87   :  { %9280 = vmatprep.subr.mxu0 %v3511_v27  ;;  %9324 = vmatprep.subr.mxu1 %v3543_v30  ;;  %v3521_v42 = vld [vmem:[%s13941_s17 + $0x728] sm:$0xff]  ;;  %v3536_v27 = vld [vmem:[%s13941_s17 + $0x7a0] sm:$0xff]  ;;  %v12095_v30 = vpop.f32.mrf.mxu0 }
 0xf88   :  { %3974 = vmatprep.mubr.f32.mxu0 %v3285_v17  ;;  %4059 = vmatprep.mubr.f32.mxu1 %v3287_v32  ;;  %v3503_v17 = vld [vmem:[%s13941_s17 + $0x698] sm:$0xff] }
 0xf89   :  { %9281 = vmatpush3.msra.mxu0 %v3495_v11  ;;  %9325 = vmatpush3.msra.mxu1 %v3527_v5  ;;  %v3535_v32 = vld [vmem:[%s13941_s17 + $0x798] sm:$0xff]  ;;  %v12117_v11 = vrot.slane %v11741_v49, %v11586_v14  ;;  %v3534_v49 = vld [vmem:[%s13941_s17 + $0x790] sm:$0xff]  ;;  %v3130_v16 = vpop.f32.mrf.mxu0 }
 0xf8a   :  { %9282 = vmatprep.subr.mxu0 %v3510_v54  ;;  %9326 = vmatprep.subr.mxu1 %v3542_v15  ;;  %v3487_v5 = vld [vmem:[%s13941_s17 + $0x618] sm:$0xff]  ;;  %v3502_v15 = vld [vmem:[%s13941_s17 + $0x690] sm:$0xff] }
 0xf8b   :  { %9283 = vmatpush3.msra.mxu0 %v3494_v7  ;;  %9327 = vmatpush3.msra.mxu1 %v3526_v41  ;;  %v3519_v54 = vld [vmem:[%s13941_s17 + $0x718] sm:$0xff]  ;;  %v3219_v7 = vpop.f32.mrf.mxu1  ;;  %v3486_v41 = vld [vmem:[%s13941_s17 + $0x610] sm:$0xff] }
 0xf8c   :  { %3975 = vmatmul.mubr.f32.gmra.mxu0 %v3284_v6  ;;  %4060 = vmatmul.mubr.f32.gmra.mxu1 %v3286_v45  ;;  %v3501_v6 = vld [vmem:[%s13941_s17 + $0x688] sm:$0xff] }
 0xf8d   :  { %9284 = vmatprep.subr.mxu0 %v3509_v46  ;;  %9328 = vmatprep.subr.mxu1 %v3541_v38  ;;  %v3533_v45 = vld [vmem:[%s13941_s17 + $0x788] sm:$0xff]  ;;  %v3117_v46 = vadd.f32 %v11970_v61, %v12113_v22  ;;  %v3206_v38 = vadd.f32 %v11980_v58, %v12117_v11  ;;  %v3500_v61 = vld [vmem:[%s13941_s17 + $0x680] sm:$0xff] }
 0xf8e   :  { %9285 = vmatpush3.msra.mxu0 %v3493_v40  ;;  %4129 = vmatprep.mubr.f32.mxu0 %v3241_v44  ;;  %v3485_v40 = vld [vmem:[%s13941_s17 + $0x608] sm:$0xff]  ;;  %v3532_v58 = vld [vmem:[%s13941_s17 + $0x780] sm:$0xff] }
 0xf8f   :  { %9329 = vmatpush3.msra.mxu1 %v3525_v48  ;;  %4214 = vmatprep.mubr.f32.mxu1 %v3243_v39  ;;  %v3517_v44 = vld [vmem:[%s13941_s17 + $0x708] sm:$0xff]  ;;  %v3125_v48 = vadd.f32 %v3124_v13, %v11990_v37  ;;  %v3214_v39 = vadd.f32 %v3213_v51, %v12000_v10  ;;  %v3131_v13 = vadd.f32 %v3130_v16, %v11990_v37 }
 0xf90   :  { %9286 = vmatprep.subr.mxu0 %v3508_v43  ;;  %9330 = vmatprep.subr.mxu1 %v3540_v36  ;;  %v3134_v43 = vpop.f32.mrf.mxu0  ;;  %v3223_v36 = vpop.f32.mrf.mxu1  ;;  %v3220_v51 = vadd.f32 %v3219_v7, %v12000_v10 }
 0xf91   :  { %9287 = vmatpush3.msra.mxu0 %v3492_v53  ;;  %9331 = vmatpush3.msra.mxu1 %v3524_v28  ;;  %v3484_v53 = vld [vmem:[%s13941_s17 + $0x600] sm:$0xff] }
 0xf92   :  { %9288 = vmatprep.subr.mxu0 %v3507_v55  ;;  %9332 = vmatprep.subr.mxu1 %v3539_v19  ;;  %v3516_v28 = vld [vmem:[%s13941_s17 + $0x700] sm:$0xff]  ;;  %v3240_v55 = vmax.f32 %v3117_v46, 0.0  ;;  %v3242_v19 = vmax.f32 %v3206_v38, 0.0 }
 0xf93   :  { %9289 = vmatpush3.msra.mxu0 %v3491_v34  ;;  %9333 = vmatpush3.msra.mxu1 %v3523_v35  ;;  %v3123_v34 = vadd.f32 %v12043_v50, %v12113_v22  ;;  %v3212_v35 = vadd.f32 %v12045_v1, %v12117_v11  ;;  %v3129_v1 = vadd.f32 %v12095_v30, %v12113_v22 }
 0xf94   :  { %9290 = vmatprep.subr.mxu0 %v3506_v3  ;;  %9334 = vmatprep.subr.mxu1 %v3538_v2  ;;  %v3257_v3 = vmax.f32 %v3125_v48, 0.0  ;;  %v3259_v2 = vmax.f32 %v3214_v39, 0.0 }
 0xf95   :  { %9291 = vmatpush3.msra.mxu0 %v3490_v56  ;;  %9335 = vmatpush3.msra.mxu1 %v3522_v9  ;;  %v3136_v56 = vpop.f32.mrf.mxu0  ;;  %v3225_v9 = vpop.f32.mrf.mxu1  ;;  %v3256_v50 = vmax.f32 %v3123_v34, 0.0 }
 0xf96   :  { %9292 = vmatprep.subr.mxu0 %v3505_v4  ;;  %9336 = vmatprep.subr.mxu1 %v3537_v62  ;;  %v3258_v4 = vmax.f32 %v3212_v35, 0.0  ;;  %v3218_v62 = vadd.f32 %v12097_v31, %v12117_v11 }
 0xf97   :  { %9293 = vmatpush3.msra.mxu0 %v3489_v25  ;;  %9337 = vmatpush3.msra.mxu1 %v3521_v42  ;;  %v3273_v25 = vmax.f32 %v3131_v13, 0.0  ;;  %v3275_v42 = vmax.f32 %v3220_v51, 0.0 }
 0xf98   :  { %9294 = vmatprep.subr.mxu0 %v3504_v47  ;;  %9338 = vmatprep.subr.mxu1 %v3536_v27  ;;  %v3137_v47 = vadd.f32 %v3136_v56, %v11990_v37  ;;  %v3226_v27 = vadd.f32 %v3225_v9, %v12000_v10 }
 0xf99   :  { %9295 = vmatpush3.msra.mxu0 %v3488_v21  ;;  %9339 = vmatpush3.msra.mxu1 %v3520_v60  ;;  %v3272_v21 = vmax.f32 %v3129_v1, 0.0  ;;  %v3274_v60 = vmax.f32 %v3218_v62, 0.0 }
 0xf9a   :  { %9296 = vmatprep.subr.mxu0 %v3503_v17  ;;  %9340 = vmatprep.subr.mxu1 %v3535_v32  ;;  %v3135_v17 = vadd.f32 %v3134_v43, %v12113_v22  ;;  %v3224_v32 = vadd.f32 %v3223_v36, %v12117_v11  ;;  %v3289_v30 = vmax.f32 %v3137_v47, 0.0 }
 0xf9b   :  { %9297 = vmatpush3.msra.mxu0 %v3487_v5  ;;  %9341 = vmatpush3.msra.mxu1 %v3519_v54  ;;  %v3291_v5 = vmax.f32 %v3226_v27, 0.0  ;;  %v8475_v27 = vld [vmem:[%s13943_s18] ss:$0 sm:$0xff] }
 0xf9c   :  { %9298 = vmatprep.subr.mxu0 %v3502_v15  ;;  %9342 = vmatprep.subr.mxu1 %v3534_v49  ;;  %v3288_v31 = vmax.f32 %v3135_v17, 0.0  ;;  %v3290_v37 = vmax.f32 %v3224_v32, 0.0 }
 0xf9d   :  { %9299 = vmatpush3.msra.mxu0 %v3486_v41  ;;  %9343 = vmatpush3.msra.mxu1 %v3518_v20 }
 0xf9e   :  { %9300 = vmatprep.subr.mxu0 %v3501_v6  ;;  %9344 = vmatprep.subr.mxu1 %v3533_v45 }
 0xf9f   :  { %9301 = vmatpush3.msra.mxu0 %v3485_v40  ;;  %9345 = vmatpush3.msra.mxu1 %v3517_v44 }
 0xfa0   :  { %9302 = vmatprep.subr.mxu0 %v3500_v61  ;;  %9346 = vmatprep.subr.mxu1 %v3532_v58 }
 0xfa1   :  { %9303 = vmatpush3.msra.mxu0 %v3484_v53  ;;  %9347 = vmatpush3.msra.mxu1 %v3516_v28 }
 0xfa2   :  { %4130 = vmatmul.mubr.f32.vlgmr.msra.gmra.mxu0 %v3240_v55  ;;  %4215 = vmatmul.mubr.f32.vlgmr.msra.gmra.mxu1 %v3242_v19 }
 0xfa3   :  { %4134 = vmatprep.mubr.f32.mxu0 %v3257_v3  ;;  %4219 = vmatprep.mubr.f32.mxu1 %v3259_v2 }
 0xfa6   :  { %4135 = vmatmul.mubr.f32.gmra.mxu0 %v3256_v50  ;;  %4220 = vmatmul.mubr.f32.gmra.mxu1 %v3258_v4 }
 0xfa7   :  { %4139 = vmatprep.mubr.f32.mxu0 %v3273_v25  ;;  %4224 = vmatprep.mubr.f32.mxu1 %v3275_v42 }
 0xfaa   :  { %4140 = vmatmul.mubr.f32.gmra.mxu0 %v3272_v21  ;;  %4225 = vmatmul.mubr.f32.gmra.mxu1 %v3274_v60 }
 0xfab   :  { %4144 = vmatprep.mubr.f32.mxu0 %v3289_v30  ;;  %4229 = vmatprep.mubr.f32.mxu1 %v3291_v5 }
 0xfae   :  { %4145 = vmatmul.mubr.f32.gmra.mxu0 %v3288_v31  ;;  %4230 = vmatmul.mubr.f32.gmra.mxu1 %v3290_v37 }
 0xfeb   :  { %v9040_v10 = vpop.f32.mrf.mxu0  ;;  %v9084_v54 = vpop.f32.mrf.mxu1 }
 0xfed   :  { %v9041_v15 = vpop.f32.mrf.mxu0  ;;  %v9085_v49 = vpop.f32.mrf.mxu1 }
 0xfee   :  { %v9042_v47 = vadd.f32 %v9041_v15, %v9040_v10  ;;  %v9086_v30 = vadd.f32 %v9085_v49, %v9084_v54 }
 0xff0   :  { %v3622_v17 = vadd.f32 %v9042_v47, %v8475_v27 }
 0xff1   :  { %v9043_v16 = vpop.f32.mrf.mxu0  ;;  %v9087_v7 = vpop.f32.mrf.mxu1 }
 0xff2   :  { %v3707_v14 = vadd.f32 %v9086_v30, %v3622_v17 }
 0xff3   :  { %v9044_v41 = vpop.f32.mrf.mxu0  ;;  %v9088_v22 = vpop.f32.mrf.mxu1 }
 0xff4   :  { %v9045_v32 = vadd.f32 %v9044_v41, %v9043_v16  ;;  %v9089_v33 = vadd.f32 %v9088_v22, %v9087_v7 }
 0xff6   :  { %v3627_v12 = vadd.f32 %v9045_v32, %v8475_v27 }
 0xff8   :  { %v3712_v63 = vadd.f32 %v9089_v33, %v3627_v12 }
 0xffb   :  { %v9046_v20 = vpop.f32.mrf.mxu0  ;;  %v9090_v11 = vpop.f32.mrf.mxu1 }
 0xffd   :  { %v9047_v6 = vpop.f32.mrf.mxu0  ;;  %v9091_v45 = vpop.f32.mrf.mxu1 }
 0xffe   :  { %v9048_v31 = vadd.f32 %v9047_v6, %v9046_v20  ;;  %v9092_v47 = vadd.f32 %v9091_v45, %v9090_v11 }
0x1000   :  { %v3632_v8 = vadd.f32 %v9048_v31, %v8475_v27 }
0x1001   :  { %v9049_v46 = vpop.f32.mrf.mxu0  ;;  %v12181_v38 = vpop.f32.mrf.mxu1 }
0x1002   :  { %v3717_v41 = vadd.f32 %v9092_v47, %v3632_v8 }
0x1003   :  { %v9050_v40 = vpop.f32.mrf.mxu0  ;;  %v12183_v44 = vpop.f32.mrf.mxu1 }
0x1004   :  { %v9051_v23 = vadd.f32 %v9050_v40, %v9049_v46  ;;  %v9095_v33 = vadd.f32 %v12183_v44, %v12181_v38 }
0x1012   :  { %v9128_v48 = vpop.f32.mrf.mxu0  ;;  %v9172_v39 = vpop.f32.mrf.mxu1 }
0x1014   :  { %v9129_v61 = vpop.f32.mrf.mxu0  ;;  %v9173_v58 = vpop.f32.mrf.mxu1 }
0x1015   :  { %v9130_v5 = vadd.f32 %v9129_v61, %v9128_v48  ;;  %v9174_v29 = vadd.f32 %v9173_v58, %v9172_v39  ;;  %v3637_v48 = vadd.f32 %v9051_v23, %v8475_v27 }
0x1017   :  { %v3792_v24 = vadd.f32 %v9130_v5, %v3707_v14  ;;  %v3722_v8 = vadd.f32 %v9095_v33, %v3637_v48 }
0x1018   :  { %v9131_v43 = vpop.f32.mrf.mxu0  ;;  %v9175_v36 = vpop.f32.mrf.mxu1 }
0x1019   :  { %v3877_v54 = vadd.f32 %v9174_v29, %v3792_v24 }
0x101a   :  { %v9132_v53 = vpop.f32.mrf.mxu0  ;;  %v9176_v28 = vpop.f32.mrf.mxu1 }
0x101b   :  { %v9133_v0 = vadd.f32 %v9132_v53, %v9131_v43  ;;  %v9177_v61 = vadd.f32 %v9176_v28, %v9175_v36 }
0x101d   :  { %v3797_v49 = vadd.f32 %v9133_v0, %v3712_v63 }
0x101e   :  { %v9134_v55 = vpop.f32.mrf.mxu0  ;;  %v9178_v19 = vpop.f32.mrf.mxu1 }
0x101f   :  { %v3882_v12 = vadd.f32 %v9177_v61, %v3797_v49 }
0x1020   :  { %v9135_v34 = vpop.f32.mrf.mxu0  ;;  %v9179_v35 = vpop.f32.mrf.mxu1 }
0x1021   :  { %v9136_v16 = vadd.f32 %v9135_v34, %v9134_v55  ;;  %v9180_v11 = vadd.f32 %v9179_v35, %v9178_v19 }
0x1023   :  { %v3802_v22 = vadd.f32 %v9136_v16, %v3717_v41 }
0x1024   :  { %v9137_v3 = vpop.f32.mrf.mxu0  ;;  %v12185_v2 = vpop.f32.mrf.mxu1 }
0x1025   :  { %v3887_v39 = vadd.f32 %v9180_v11, %v3802_v22 }
0x1026   :  { %v9138_v13 = vpop.f32.mrf.mxu0  ;;  %v12187_v51 = vpop.f32.mrf.mxu1 }
0x1027   :  { %v9139_v46 = vadd.f32 %v9138_v13, %v9137_v3  ;;  %v9183_v38 = vadd.f32 %v12187_v51, %v12185_v2 }
0x1029   :  { %v3807_v36 = vadd.f32 %v9139_v46, %v3722_v8 }
0x103a   :  { %v9216_v56 = vpop.f32.mrf.mxu0  ;;  %v9260_v9 = vpop.f32.mrf.mxu1 }
0x103c   :  { %v9217_v50 = vpop.f32.mrf.mxu0  ;;  %v9261_v4 = vpop.f32.mrf.mxu1 }
0x103d   :  { %v9218_v59 = vadd.f32 %v9217_v50, %v9216_v56  ;;  %v9262_v40 = vadd.f32 %v9261_v4, %v9260_v9 }
0x103f   :  { %v3962_v7 = vadd.f32 %v9218_v59, %v3877_v54 }
0x1040   :  { %v9219_v1 = vpop.f32.mrf.mxu0  ;;  %v9263_v62 = vpop.f32.mrf.mxu1 }
0x1041   :  { %v4047_v0 = vadd.f32 %v9262_v40, %v3962_v7 }
0x1042   :  { %v9220_v25 = vpop.f32.mrf.mxu0  ;;  %v9264_v42 = vpop.f32.mrf.mxu1 }
0x1043   :  { %v9221_v14 = vadd.f32 %v9220_v25, %v9219_v1  ;;  %v9265_v28 = vadd.f32 %v9264_v42, %v9263_v62  ;;  %v3892_v25 = vadd.f32 %v9183_v38, %v3807_v36  ;;  %v8479_v38 = vld [vmem:[%s14008_s4 + $0x28] sm:$0xff] }
0x1045   :  { %v3967_v24 = vadd.f32 %v9221_v14, %v3882_v12 }
0x1046   :  { %v9222_v21 = vpop.f32.mrf.mxu0  ;;  %v9266_v60 = vpop.f32.mrf.mxu1 }
0x1047   :  { %v4052_v35 = vadd.f32 %v9265_v28, %v3967_v24 }
0x1048   :  { %v9223_v37 = vpop.f32.mrf.mxu0  ;;  %v9267_v18 = vpop.f32.mrf.mxu1 }
0x1049   :  { %v9224_v45 = vadd.f32 %v9223_v37, %v9222_v21  ;;  %v9268_v50 = vadd.f32 %v9267_v18, %v9266_v60 }
0x104b   :  { %v3972_v44 = vadd.f32 %v9224_v45, %v3887_v39 }
0x104c   :  { %v9225_v10 = vpop.f32.mrf.mxu0  ;;  %v12192_v15 = vpop.f32.mrf.mxu1 }
0x104d   :  { %v4057_v42 = vadd.f32 %v9268_v50, %v3972_v44  ;;  %v8478_v44 = vld [vmem:[%s14008_s4 + $0x20] sm:$0xff] }
0x104e   :  { %v9226_v20 = vpop.f32.mrf.mxu0  ;;  %v9270_v6 = vpop.f32.mrf.mxu1 }
0x104f   :  { %v9227_v13 = vadd.f32 %v9226_v20, %v9225_v10  ;;  %v9271_v18 = vadd.f32 %v9270_v6, %v12192_v15  ;;  %v14018_v15 = vld [vmem:[#allocation5_spill] sm:$0xff] }
0x1051   :  { %v3977_v30 = vadd.f32 %v9227_v13, %v3892_v25 }
0x1062   :  { %v9304_v43 = vpop.f32.mrf.mxu0  ;;  %v9348_v53 = vpop.f32.mrf.mxu1 }
0x1064   :  { %v9305_v29 = vpop.f32.mrf.mxu0  ;;  %v9349_v63 = vpop.f32.mrf.mxu1 }
0x1065   :  { %v9306_v23 = vadd.f32 %v9305_v29, %v9304_v43  ;;  %v9350_v34 = vadd.f32 %v9349_v63, %v9348_v53 }
0x1066   :  { %v9307_v59 = vpop.f32.mrf.mxu0  ;;  %v9351_v58 = vpop.f32.mrf.mxu1 }
0x1067   :  { %v4132_v55 = vadd.f32 %v9306_v23, %v4047_v0 }
0x1068   :  { %v9308_v3 = vpop.f32.mrf.mxu0  ;;  %v9352_v19 = vpop.f32.mrf.mxu1 }
0x1069   :  { %v4217_v56 = vadd.f32 %v9350_v34, %v4132_v55  ;;  %v9309_v9 = vadd.f32 %v9308_v3, %v9307_v59  ;;  %v9353_v21 = vadd.f32 %v9352_v19, %v9351_v58  ;;  %v8481_v55 = vld [vmem:[%s14008_s4 + $0x38] sm:$0xff]  ;;  %v8480_v34 = vld [vmem:[%s14008_s4 + $0x30] sm:$0xff] }
0x106a   :  { %v9310_v4 = vpop.f32.mrf.mxu0  ;;  %v9354_v1 = vpop.f32.mrf.mxu1  ;;  %9962 = vmatprep.subr.mxu0 %v8481_v55 }
0x106b   :  { %v4137_v27 = vadd.f32 %v9309_v9, %v4052_v35  ;;  %v4235_v62 = vadd.f32 %v4217_v56, %v10952_v57  ;;  %v4062_v57 = vadd.f32 %v9271_v18, %v3977_v30  ;;  %9963 = vmatpush3.msra.mxu0 %v8481_v55 }
0x106c   :  { %v9311_v17 = vpop.f32.mrf.mxu0  ;;  %v9355_v32 = vpop.f32.mrf.mxu1  ;;  %9964 = vmatprep.subr.mxu0 %v8480_v34 }
0x106d   :  { %v4222_v2 = vadd.f32 %v9353_v21, %v4137_v27  ;;  %v9312_v51 = vadd.f32 %v9311_v17, %v9310_v4  ;;  %v4241_v5 = vsel %vm269_vm2, %v4235_v62, 0.0  ;;  %v9356_v10 = vadd.f32 %v9355_v32, %v9354_v1  ;;  %9965 = vmatpush3.msra.mxu0 %v8480_v34  ;;  %v8477_v32 = vld [vmem:[%s13945_s20] ss:$0 sm:$0xff] }
0x106e   :  { %v9313_v31 = vpop.f32.mrf.mxu0  ;;  %v9357_v37 = vpop.f32.mrf.mxu1  ;;  %4242 = vadd.xlane.f32.xlu1 %v4241_v5  ;;  %9966 = vmatprep.subr.mxu0 %v8479_v38 }
0x106f   :  { %v4142_v60 = vadd.f32 %v9312_v51, %v4057_v42  ;;  %v4236_v47 = vadd.f32 %v4222_v2, %v10972_v52  ;;  %9967 = vmatpush3.msra.mxu0 %v8479_v38  ;;  %v8476_v42 = vld [vmem:[%s13944_s19] ss:$0 sm:$0xff] }
0x1070   :  { %v9314_v16 = vpop.f32.mrf.mxu0  ;;  %v9358_v54 = vpop.f32.mrf.mxu1  ;;  %9968 = vmatprep.subr.mxu0 %v8478_v44 }
0x1071   :  { %v4227_v49 = vadd.f32 %v9356_v10, %v4142_v60  ;;  %v9315_v41 = vadd.f32 %v9314_v16, %v9313_v31  ;;  %v4244_v20 = vsel %vm269_vm2, %v4236_v47, 0.0  ;;  %v9359_v61 = vadd.f32 %v9358_v54, %v9357_v37  ;;  %9969 = vmatpush3.msra.mxu0 %v8478_v44 }
0x1072   :  { %4245 = vadd.xlane.f32.xlu0 %v4244_v20 }
0x1073   :  { %v4147_v48 = vadd.f32 %v9315_v41, %v4062_v57  ;;  %v4237_v7 = vadd.f32 %v4227_v49, %v11017_v26  ;;  %v8483_v41 = vld [vmem:[%s13935_s10 + $0x1] ss:$0 sm:$0xff]  ;;  %s14020_s10 = smov 112  }
0x1075   :  { %v4232_v14 = vadd.f32 %v9359_v61, %v4147_v48  ;;  %v4247_v22 = vsel %vm269_vm2, %v4237_v7, 0.0 }
0x1076   :  { %4248 = vadd.xlane.f32.xlu1 %v4247_v22 }
0x1077   :  { %v4238_v6 = vadd.f32 %v4232_v14, %v14018_v15 }
0x1079   :  { %v4250_v52 = vsel %vm269_vm2, %v4238_v6, 0.0 }
0x107a   :  { %4251 = vadd.xlane.f32.xlu0 %v4250_v52 }
0x10f7   :  { %v4243_v43 = vpop.xlane.xlu1 %4242 }
0x10f8   :  { %v4253_v53 = vmul.f32 0.03125, %v4243_v43 }
0x10fa   :  { %v4257_v33 = vsub.f32 %v4235_v62, %v4253_v53 }
0x10fb   :  { %v4246_v12 = vpop.xlane.xlu0 %4245 }
0x10fc   :  { %v4254_v46 = vmul.f32 0.03125, %v4246_v12  ;;  %v4261_v40 = vmul.f32 %v4257_v33, %v4257_v33 }
0x10fe   :  { %v4258_v11 = vsub.f32 %v4236_v47, %v4254_v46  ;;  %v4265_v45 = vsel %vm269_vm2, %v4261_v40, 0.0 }
0x10ff   :  { %4266 = vadd.xlane.f32.xlu1 %v4265_v45  ;;  %v4249_v26 = vpop.xlane.xlu1 %4248 }
0x1100   :  { %v4255_v29 = vmul.f32 0.03125, %v4249_v26  ;;  %v4262_v63 = vmul.f32 %v4258_v11, %v4258_v11 }
0x1102   :  { %v4259_v8 = vsub.f32 %v4237_v7, %v4255_v29  ;;  %v4268_v0 = vsel %vm269_vm2, %v4262_v63, 0.0 }
0x1103   :  { %4269 = vadd.xlane.f32.xlu0 %v4268_v0  ;;  %v4252_v24 = vpop.xlane.xlu0 %4251 }
0x1104   :  { %v4256_v23 = vmul.f32 0.03125, %v4252_v24  ;;  %v4263_v39 = vmul.f32 %v4259_v8, %v4259_v8 }
0x1106   :  { %v4260_v59 = vsub.f32 %v4238_v6, %v4256_v23  ;;  %v4271_v58 = vsel %vm269_vm2, %v4263_v39, 0.0 }
0x1107   :  { %4272 = vadd.xlane.f32.xlu1 %v4271_v58 }
0x1108   :  { %v4264_v36 = vmul.f32 %v4260_v59, %v4260_v59 }
0x110a   :  { %v4274_v28 = vsel %vm269_vm2, %v4264_v36, 0.0 }
0x110b   :  { %4275 = vadd.xlane.f32.xlu0 %v4274_v28 }
0x1188   :  { %v4267_v3 = vpop.xlane.xlu1 %4266 }
0x1189   :  { %v4277_v19 = vmul.f32 0.03125, %v4267_v3 }
0x118b   :  { %v4281_v35 = vadd.f32 1e-05, %v4277_v19 }
0x118c   :  { %v4270_v13 = vpop.xlane.xlu0 %4269 }
0x118d   :  { %10206 = vrsqrt.f32 %v4281_v35  ;;  %v4278_v56 = vmul.f32 0.03125, %v4270_v13 }
0x118f   :  { %v4282_v9 = vadd.f32 1e-05, %v4278_v56 }
0x1190   :  { %v4273_v50 = vpop.xlane.xlu1 %4272 }
0x1191   :  { %10208 = vrsqrt.f32 %v4282_v9  ;;  %v4279_v4 = vmul.f32 0.03125, %v4273_v50 }
0x1193   :  { %v4283_v1 = vadd.f32 1e-05, %v4279_v4 }
0x1194   :  { %v4276_v25 = vpop.xlane.xlu0 %4275 }
0x1195   :  { %10210 = vrsqrt.f32 %v4283_v1  ;;  %v4280_v27 = vmul.f32 0.03125, %v4276_v25 }
0x1197   :  { %v4284_v21 = vadd.f32 1e-05, %v4280_v27 }
0x1199   :  { %10212 = vrsqrt.f32 %v4284_v21 }
0x119a   :  { %v10207_v62 = vpop.eup %10206 }
0x119b   :  { %v4289_v17 = vmul.f32 %v10207_v62, %v4257_v33 }
0x119d   :  { %v4299_v30 = vmul.f32 %v8476_v42, %v4289_v17 }
0x119e   :  { %v10209_v2 = vpop.eup %10208 }
0x119f   :  { %v4290_v51 = vmul.f32 %v10209_v2, %v4258_v11  ;;  %v12229_v5 = vadd.f32 %v8477_v32, %v4299_v30 }
0x11a1   :  { %v4300_v31 = vmul.f32 %v8476_v42, %v4290_v51  ;;  %9970 = vmatprep.mubr.msk.f32.mxu0 %vm269_vm2, %v12229_v5 }
0x11a2   :  { %v10211_v37 = vpop.eup %10210 }
0x11a3   :  { %v12233_v18 = vadd.f32 %v8477_v32, %v4300_v31  ;;  %v4291_v60 = vmul.f32 %v10211_v37, %v4259_v8 }
0x11a5   :  { %9971 = vmatmul.mubr.msk.f32.vlgmr.msra.gmra.mxu0 %vm269_vm2, %v12233_v18  ;;  %v4301_v10 = vmul.f32 %v8476_v42, %v4291_v60 }
0x11a6   :  { %v10213_v47 = vpop.eup %10212 }
0x11a7   :  { %v12237_v16 = vadd.f32 %v8477_v32, %v4301_v10  ;;  %v4292_v54 = vmul.f32 %v10213_v47, %v4260_v59 }
0x11a9   :  { %9973 = vmatprep.mubr.msk.f32.mxu0 %vm269_vm2, %v12237_v16  ;;  %v4302_v57 = vmul.f32 %v8476_v42, %v4292_v54 }
0x11ab   :  { %v12241_v49 = vadd.f32 %v8477_v32, %v4302_v57 }
0x11ad   :  { %9974 = vmatmul.mubr.msk.f32.gmra.mxu0 %vm269_vm2, %v12241_v49 }
0x1265   :  { %v9972_v20 = vpop.f32.mrf.mxu0 }
0x1266   :  { %v12248_v48 = vadd.f32 %v9972_v20, %v8483_v41 }
0x1267   :  { %v4404_v61 = vpop.f32.mrf.mxu0 }
0x1268   :  { %v12250_v7 = vadd.f32 %v8483_v41, %v4404_v61  ;;  %4431 = vrot.lane.b32.xlu1 %v12248_v48, %s10295_s30  ;;  %v12279_v12 = vmul.f32 0.35355338, %v12248_v48 }
0x126a   :  { %4429 = vrot.lane.b32.xlu0 %v12250_v7, %s10295_s30  ;;  %v12257_v14 = vmul.f32 0.35355338, %v12250_v7 }
0x126c   :  { %9980 = vmatprep.mubr.msk.f32.mxu1 %vm494_vm3, %v12257_v14 }
0x126d   :  { %v9975_v22 = vpop.f32.mrf.mxu0 }
0x126e   :  { %v12261_v15 = vadd.f32 %v9975_v22, %v8483_v41 }
0x126f   :  { %v4414_v6 = vpop.f32.mrf.mxu0 }
0x1270   :  { %v12263_v52 = vadd.f32 %v8483_v41, %v4414_v6  ;;  %4522 = vrot.lane.b32.xlu1 %v12261_v15, %s10295_s30  ;;  %v12288_v11 = vmul.f32 0.35355338, %v12261_v15 }
0x1272   :  { %v12268_v43 = vmul.f32 0.35355338, %v12263_v52 }
0x1274   :  { %4520 = vrot.lane.b32.xlu1 %v12263_v52, %s10295_s30  ;;  %9987 = vmatprep.mubr.msk.f32.mxu0 %vm494_vm3, %v12268_v43  ;;  %s14021_s30 = smov 48  }
0x12da   :  { %v4432_v53 = vpop.permute.xlu1 %4431 }
0x12db   :  { %9976 = vmatprep.subr.msk.mxu1 %vm494_vm3, %v4432_v53 }
0x12dc   :  { %9977 = vmatpush3.xpose.msk.msra.mxu1 %vm494_vm3, %v4432_v53  ;;  %v4430_v33 = vpop.permute.xlu0 %4429 }
0x12dd   :  { %9978 = vmatprep.subr.msk.mxu1 %vm494_vm3, %v4430_v33 }
0x12e0   :  { %9979 = vmatpush3.xpose.msk.msra.mxu1 %vm494_vm3, %v4430_v33 }
0x12e2   :  { %v4523_v46 = vpop.permute.xlu1 %4522 }
0x12e3   :  { %9981 = vmatmul.mubr.msk.f32.vlgmr.msra.gmra.mxu1 %vm494_vm3, %v12279_v12  ;;  %9983 = vmatprep.subr.msk.mxu0 %vm494_vm3, %v4523_v46 }
0x12e4   :  { %9984 = vmatpush3.xpose.msk.msra.mxu0 %vm494_vm3, %v4523_v46 }
0x12e6   :  { %v4521_v40 = vpop.permute.xlu1 %4520 }
0x12e7   :  { %9985 = vmatprep.subr.msk.mxu0 %vm494_vm3, %v4521_v40 }
0x12e8   :  { %9986 = vmatpush3.xpose.msk.msra.mxu0 %vm494_vm3, %v4521_v40 }
0x12eb   :  { %9988 = vmatmul.mubr.msk.f32.vlgmr.msra.gmra.mxu0 %vm494_vm3, %v12288_v11 }
0x13a3   :  { %v9982_v45 = vpop.f32.mrf.mxu1 }
0x13a4   :  { %v4610_v29 = vsel %vm375_vm4, %v9982_v45, -1e+30 }
0x13a5   :  { %v4616_v63 = vsel %vm677_vm5, %v4610_v29, -inf  ;;  %v4509_v8 = vpop.f32.mrf.mxu1 }
0x13a6   :  { %v4609_v0 = vsel %vm375_vm4, %v4509_v8, -1e+30  ;;  %4617 = vmax.xlane.f32.xlu1 %v4616_v63 }
0x13a7   :  { %v4613_v24 = vsel %vm677_vm5, %v4609_v0, -inf }
0x13a8   :  { %4614 = vmax.xlane.f32.xlu0 %v4613_v24 }
0x13ab   :  { %v9989_v23 = vpop.f32.mrf.mxu0 }
0x13ac   :  { %v4612_v36 = vsel %vm375_vm4, %v9989_v23, -1e+30 }
0x13ad   :  { %v4600_v39 = vpop.f32.mrf.mxu0  ;;  %v4622_v28 = vsel %vm677_vm5, %v4612_v36, -inf }
0x13ae   :  { %v4611_v59 = vsel %vm375_vm4, %v4600_v39, -1e+30 }
0x13af   :  { %v4619_v58 = vsel %vm677_vm5, %v4611_v59, -inf }
0x13b0   :  { %4620 = vmax.xlane.f32.xlu0 %v4619_v58 }
0x13b4   :  { %4623 = vmax.xlane.f32.xlu0 %v4622_v28 }
0x13b7   :  { %4657 = vrot.lane.b32.xlu1 %v12250_v7, %s10296_s25 }
0x13bb   :  { %4835 = vrot.lane.b32.xlu1 %v12250_v7, %s10297_s26 }
0x13bf   :  { %4833 = vrot.lane.b32.xlu1 %v12279_v12, %s10298_s1 }
0x13c3   :  { %4744 = vrot.lane.b32.xlu1 %v12263_v52, %s10296_s25 }
0x13ca   :  { %4659 = vrot.lane.b32.xlu0 %v12248_v48, %s10296_s25 }
0x142f   :  { %v4618_v55 = vpop.xlane.xlu1 %4617 }
0x1430   :  { %v4626_v34 = vsub.f32 %v4610_v29, %v4618_v55 }
0x1431   :  { %v4615_v38 = vpop.xlane.xlu0 %4614 }
0x1432   :  { %v4631_v44 = vmul.f32 1.442695, %v4626_v34  ;;  %v4625_v3 = vsub.f32 %v4609_v0, %v4615_v38 }
0x1433   :  { %v4658_v1 = vpop.permute.xlu1 %4657 }
0x1434   :  { %10214 = vpow2.f32 %v4631_v44  ;;  %v4629_v19 = vmul.f32 1.442695, %v4625_v3 }
0x1436   :  { %10216 = vpow2.f32 %v4629_v19 }
0x1437   :  { %v4836_v51 = vpop.permute.xlu1 %4835 }
0x1439   :  { %v4621_v35 = vpop.xlane.xlu0 %4620 }
0x143a   :  { %v4627_v21 = vsub.f32 %v4611_v59, %v4621_v35 }
0x143b   :  { %v4834_v31 = vpop.permute.xlu1 %4833 }
0x143c   :  { %v4633_v42 = vmul.f32 1.442695, %v4627_v21 }
0x143d   :  { %v4624_v13 = vpop.xlane.xlu0 %4623 }
0x143e   :  { %v4628_v27 = vsub.f32 %v4612_v36, %v4624_v13 }
0x143f   :  { %v4745_v37 = vpop.permute.xlu1 %4744 }
0x1440   :  { %v4635_v62 = vmul.f32 1.442695, %v4628_v27 }
0x1441   :  { %v10215_v56 = vpop.eup %10214  ;;  %v4660_v9 = vpop.permute.xlu0 %4659 }
0x1442   :  { %9990 = vmatprep.subr.mxu1 %v4660_v9  ;;  %v4640_v50 = vsel %vm677_vm5, %v10215_v56, 0.0  ;;  %10218 = vpow2.f32 %v4635_v62 }
0x1443   :  { %v10217_v4 = vpop.eup %10216  ;;  %4641 = vadd.xlane.f32.xlu0 %v4640_v50  ;;  %9991 = vmatpush3.msra.mxu1 %v4660_v9  ;;  %10220 = vpow2.f32 %v4633_v42 }
0x1444   :  { %9992 = vmatprep.subr.mxu1 %v4658_v1  ;;  %v4637_v25 = vsel %vm677_vm5, %v10217_v4, 0.0 }
0x1445   :  { %4638 = vadd.xlane.f32.xlu1 %v4637_v25  ;;  %9993 = vmatpush3.msra.mxu1 %v4658_v1 }
0x144f   :  { %v10219_v17 = vpop.eup %10218 }
0x1450   :  { %v4646_v32 = vsel %vm677_vm5, %v10219_v17, 0.0  ;;  %v10221_v30 = vpop.eup %10220 }
0x1451   :  { %v4643_v2 = vsel %vm677_vm5, %v10221_v30, 0.0 }
0x1456   :  { %4926 = vrot.lane.b32.xlu1 %v12263_v52, %s10297_s26 }
0x1459   :  { %4837 = vrot.lane.b32.xlu0 %v12248_v48, %s10297_s26 }
0x145d   :  { %4831 = vrot.lane.b32.xlu0 %v12257_v14, %s10298_s1 }
0x1461   :  { %4746 = vrot.lane.b32.xlu0 %v12261_v15, %s10296_s25  ;;  %s14022_s25 = smov 72  }
0x1465   :  { %4928 = vrot.lane.b32.xlu0 %v12261_v15, %s10297_s26  ;;  %s14023_s26 = smov 104  }
0x1469   :  { %4922 = vrot.lane.b32.xlu0 %v12268_v43, %s10298_s1 }
0x147a   :  { %4647 = vadd.xlane.f32.xlu1 %v4646_v32 }
0x147e   :  { %4644 = vadd.xlane.f32.xlu1 %v4643_v2 }
0x148f   :  { %4924 = vrot.lane.b32.xlu1 %v12288_v11, %s10298_s1  ;;  %s14024_s1 = smov 40  }
0x14cc   :  { %v4642_v60 = vpop.xlane.xlu0 %4641 }
0x14cd   :  { %10222 = vrcp.f32 %v4642_v60 }
0x14ce   :  { %v4639_v10 = vpop.xlane.xlu1 %4638 }
0x14cf   :  { %10224 = vrcp.f32 %v4639_v10 }
0x14d0   :  { %v4838_v47 = vpop.permute.xlu0 %4837 }
0x14d1   :  { %10004 = vmatprep.subr.msk.mxu1 %vm494_vm3, %v4838_v47 }
0x14d2   :  { %v4927_v53 = vpop.permute.xlu1 %4926 }
0x14d4   :  { %v4832_v54 = vpop.permute.xlu0 %4831 }
0x14d8   :  { %v4747_v57 = vpop.permute.xlu0 %4746 }
0x14d9   :  { %9997 = vmatprep.subr.mxu0 %v4747_v57 }
0x14da   :  { %9998 = vmatpush3.msra.mxu0 %v4747_v57  ;;  %v10223_v41 = vpop.eup %10222 }
0x14db   :  { %9999 = vmatprep.subr.mxu0 %v4745_v37  ;;  %v4654_v6 = vmul.f32 %v10223_v41, %v10215_v56 }
0x14dc   :  { %v10225_v20 = vpop.eup %10224  ;;  %10000 = vmatpush3.msra.mxu0 %v4745_v37  ;;  %v4929_v61 = vpop.permute.xlu0 %4928 }
0x14dd   :  { %10011 = vmatprep.subr.msk.mxu0 %vm494_vm3, %v4929_v61  ;;  %v4653_v22 = vmul.f32 %v10225_v20, %v10217_v4 }
0x14df   :  { %9994 = vmatprep.mubr.msk.f32.mxu1 %vm677_vm5, %v4653_v22 }
0x14e0   :  { %9995 = vmatmul.mubr.msk.f32.vlgmr.msra.gmra.mxu1 %vm677_vm5, %v4654_v6  ;;  %v4923_v8 = vpop.permute.xlu0 %4922 }
0x14e1   :  { %10005 = vmatpush3.xpose.msk.msra.mxu1 %vm494_vm3, %v4838_v47  ;;  %10008 = vmatprep.mubr.msk.f32.mxu1 %vm494_vm3, %v4832_v54 }
0x14e2   :  { %10006 = vmatprep.subr.msk.mxu1 %vm494_vm3, %v4836_v51 }
0x14e5   :  { %10007 = vmatpush3.xpose.msk.msra.mxu1 %vm494_vm3, %v4836_v51 }
0x14e8   :  { %10009 = vmatmul.mubr.msk.f32.vlgmr.msra.gmra.mxu1 %vm494_vm3, %v4834_v31 }
0x1503   :  { %v4648_v33 = vpop.xlane.xlu1 %4647 }
0x1504   :  { %10226 = vrcp.f32 %v4648_v33 }
0x1507   :  { %v4645_v46 = vpop.xlane.xlu1 %4644 }
0x1508   :  { %10228 = vrcp.f32 %v4645_v46 }
0x150b   :  { %v4925_v0 = vpop.permute.xlu1 %4924 }
0x1511   :  { %v10227_v40 = vpop.eup %10226 }
0x1512   :  { %v4656_v63 = vmul.f32 %v10227_v40, %v10219_v17 }
0x1515   :  { %v10229_v45 = vpop.eup %10228 }
0x1516   :  { %v4655_v29 = vmul.f32 %v10229_v45, %v10221_v30 }
0x1518   :  { %10001 = vmatprep.mubr.msk.f32.mxu0 %vm677_vm5, %v4655_v29 }
0x1519   :  { %10002 = vmatmul.mubr.msk.f32.vlgmr.msra.gmra.mxu0 %vm677_vm5, %v4656_v63 }
0x151a   :  { %10012 = vmatpush3.xpose.msk.msra.mxu0 %vm494_vm3, %v4929_v61  ;;  %10015 = vmatprep.mubr.msk.f32.mxu0 %vm494_vm3, %v4923_v8 }
0x151b   :  { %10013 = vmatprep.subr.msk.mxu0 %vm494_vm3, %v4927_v53 }
0x151e   :  { %10014 = vmatpush3.xpose.msk.msra.mxu0 %vm494_vm3, %v4927_v53 }
0x1521   :  { %10016 = vmatmul.mubr.msk.f32.vlgmr.msra.gmra.mxu0 %vm494_vm3, %v4925_v0 }
0x15a0   :  { %v12348_v24 = vpop.f32.mrf.mxu1 }
0x15a2   :  { %v12350_v23 = vpop.f32.mrf.mxu1 }
0x15a8   :  { %v10010_v39 = vpop.f32.mrf.mxu1 }
0x15a9   :  { %v5014_v59 = vsel %vm375_vm4, %v10010_v39, -1e+30 }
0x15aa   :  { %v5020_v58 = vsel %vm677_vm5, %v5014_v59, -inf  ;;  %v4913_v36 = vpop.f32.mrf.mxu1 }
0x15ab   :  { %v5013_v28 = vsel %vm375_vm4, %v4913_v36, -1e+30  ;;  %5021 = vmax.xlane.f32.xlu1 %v5020_v58 }
0x15ac   :  { %v5017_v55 = vsel %vm677_vm5, %v5013_v28, -inf }
0x15ad   :  { %5018 = vmax.xlane.f32.xlu0 %v5017_v55 }
0x15bc   :  { %5061 = vrot.lane.b32.xlu1 %v12250_v7, %s10299_s5 }
0x15c0   :  { %5239 = vrot.lane.b32.xlu1 %v12250_v7, %s10300_s29 }
0x15c4   :  { %5237 = vrot.lane.b32.xlu1 %v12279_v12, %s14020_s10 }
0x15c8   :  { %5148 = vrot.lane.b32.xlu1 %v12263_v52, %s10299_s5 }
0x15d9   :  { %v12366_v34 = vpop.f32.mrf.mxu0 }
0x15db   :  { %v12368_v38 = vpop.f32.mrf.mxu0 }
0x15e1   :  { %v10017_v44 = vpop.f32.mrf.mxu0 }
0x15e2   :  { %v5016_v13 = vsel %vm375_vm4, %v10017_v44, -1e+30 }
0x15e3   :  { %v5004_v3 = vpop.f32.mrf.mxu0  ;;  %v5026_v56 = vsel %vm677_vm5, %v5016_v13, -inf }
0x15e4   :  { %v5015_v19 = vsel %vm375_vm4, %v5004_v3, -1e+30 }
0x15e5   :  { %v5023_v35 = vsel %vm677_vm5, %v5015_v19, -inf }
0x15e6   :  { %5024 = vmax.xlane.f32.xlu0 %v5023_v35 }
0x15ea   :  { %5027 = vmax.xlane.f32.xlu0 %v5026_v56 }
0x1600   :  { %5063 = vrot.lane.b32.xlu0 %v12248_v48, %s10299_s5 }
0x1634   :  { %v5022_v9 = vpop.xlane.xlu1 %5021 }
0x1635   :  { %v5030_v50 = vsub.f32 %v5014_v59, %v5022_v9 }
0x1636   :  { %v5019_v4 = vpop.xlane.xlu0 %5018 }
0x1637   :  { %v5035_v1 = vmul.f32 1.442695, %v5030_v50  ;;  %v5029_v25 = vsub.f32 %v5013_v28, %v5019_v4 }
0x1638   :  { %v5062_v10 = vpop.permute.xlu1 %5061 }
0x1639   :  { %10230 = vpow2.f32 %v5035_v1  ;;  %v5033_v27 = vmul.f32 1.442695, %v5029_v25 }
0x163b   :  { %10232 = vpow2.f32 %v5033_v27 }
0x163c   :  { %v5240_v20 = vpop.permute.xlu1 %5239 }
0x1640   :  { %v5238_v61 = vpop.permute.xlu1 %5237 }
0x1644   :  { %v5149_v22 = vpop.permute.xlu1 %5148 }
0x1646   :  { %v10231_v21 = vpop.eup %10230 }
0x1647   :  { %v5044_v62 = vsel %vm677_vm5, %v10231_v21, 0.0 }
0x1648   :  { %v10233_v42 = vpop.eup %10232  ;;  %5045 = vadd.xlane.f32.xlu0 %v5044_v62 }
0x1649   :  { %v5041_v17 = vsel %vm677_vm5, %v10233_v42, 0.0 }
0x164a   :  { %5042 = vadd.xlane.f32.xlu1 %v5041_v17 }
0x165b   :  { %5330 = vrot.lane.b32.xlu1 %v12263_v52, %s10300_s29 }
0x165e   :  { %5241 = vrot.lane.b32.xlu0 %v12248_v48, %s10300_s29 }
0x1662   :  { %5235 = vrot.lane.b32.xlu0 %v12257_v14, %s14020_s10 }
0x1666   :  { %5150 = vrot.lane.b32.xlu0 %v12261_v15, %s10299_s5  ;;  %s14025_s5 = smov 8  }
0x166a   :  { %5332 = vrot.lane.b32.xlu0 %v12261_v15, %s10300_s29  ;;  %s14026_s29 = smov 16  }
0x166e   :  { %5326 = vrot.lane.b32.xlu0 %v12268_v43, %s14020_s10 }
0x166f   :  { %v5025_v32 = vpop.xlane.xlu0 %5024 }
0x1670   :  { %v5031_v30 = vsub.f32 %v5015_v19, %v5025_v32 }
0x1672   :  { %v5037_v31 = vmul.f32 1.442695, %v5031_v30 }
0x1673   :  { %v5028_v2 = vpop.xlane.xlu0 %5027 }
0x1674   :  { %v5032_v51 = vsub.f32 %v5016_v13, %v5028_v2 }
0x1676   :  { %v5039_v37 = vmul.f32 1.442695, %v5032_v51 }
0x1677   :  { %v5064_v60 = vpop.permute.xlu0 %5063 }
0x1678   :  { %10234 = vpow2.f32 %v5039_v37  ;;  %10018 = vmatprep.subr.mxu1 %v5064_v60 }
0x1679   :  { %10019 = vmatpush3.msra.mxu1 %v5064_v60  ;;  %10236 = vpow2.f32 %v5037_v31 }
0x167a   :  { %10020 = vmatprep.subr.mxu1 %v5062_v10 }
0x167b   :  { %10021 = vmatpush3.msra.mxu1 %v5062_v10 }
0x1685   :  { %v10235_v47 = vpop.eup %10234 }
0x1686   :  { %v5050_v54 = vsel %vm677_vm5, %v10235_v47, 0.0  ;;  %v10237_v57 = vpop.eup %10236 }
0x1687   :  { %5051 = vadd.xlane.f32.xlu1 %v5050_v54  ;;  %v5047_v41 = vsel %vm677_vm5, %v10237_v57, 0.0 }
0x168b   :  { %5048 = vadd.xlane.f32.xlu1 %v5047_v41 }
0x169c   :  { %5328 = vrot.lane.b32.xlu1 %v12288_v11, %s14020_s10 }
0x16d1   :  { %v5046_v6 = vpop.xlane.xlu0 %5045 }
0x16d2   :  { %10238 = vrcp.f32 %v5046_v6 }
0x16d3   :  { %v5043_v53 = vpop.xlane.xlu1 %5042 }
0x16d4   :  { %10240 = vrcp.f32 %v5043_v53 }
0x16d5   :  { %v5242_v33 = vpop.permute.xlu0 %5241 }
0x16d6   :  { %10032 = vmatprep.subr.msk.mxu1 %vm494_vm3, %v5242_v33 }
0x16d7   :  { %v5331_v39 = vpop.permute.xlu1 %5330 }
0x16d9   :  { %v5236_v46 = vpop.permute.xlu0 %5235 }
0x16dd   :  { %v5151_v40 = vpop.permute.xlu0 %5150 }
0x16de   :  { %10025 = vmatprep.subr.mxu0 %v5151_v40 }
0x16df   :  { %10026 = vmatpush3.msra.mxu0 %v5151_v40  ;;  %v10239_v45 = vpop.eup %10238 }
0x16e0   :  { %10027 = vmatprep.subr.mxu0 %v5149_v22  ;;  %v5058_v0 = vmul.f32 %v10239_v45, %v10231_v21 }
0x16e1   :  { %v10241_v29 = vpop.eup %10240  ;;  %10028 = vmatpush3.msra.mxu0 %v5149_v22  ;;  %v5333_v63 = vpop.permute.xlu0 %5332 }
0x16e2   :  { %10039 = vmatprep.subr.msk.mxu0 %vm494_vm3, %v5333_v63  ;;  %v5057_v8 = vmul.f32 %v10241_v29, %v10233_v42 }
0x16e4   :  { %10022 = vmatprep.mubr.msk.f32.mxu1 %vm677_vm5, %v5057_v8 }
0x16e5   :  { %10023 = vmatmul.mubr.msk.f32.vlgmr.msra.gmra.mxu1 %vm677_vm5, %v5058_v0  ;;  %v5327_v3 = vpop.permute.xlu0 %5326 }
0x16e6   :  { %10033 = vmatpush3.xpose.msk.msra.mxu1 %vm494_vm3, %v5242_v33  ;;  %10036 = vmatprep.mubr.msk.f32.mxu1 %vm494_vm3, %v5236_v46 }
0x16e7   :  { %10034 = vmatprep.subr.msk.mxu1 %vm494_vm3, %v5240_v20 }
0x16ea   :  { %10035 = vmatpush3.xpose.msk.msra.mxu1 %vm494_vm3, %v5240_v20 }
0x16ed   :  { %10037 = vmatmul.mubr.msk.f32.vlgmr.msra.gmra.mxu1 %vm494_vm3, %v5238_v61 }
0x1710   :  { %v5052_v59 = vpop.xlane.xlu1 %5051 }
0x1711   :  { %10242 = vrcp.f32 %v5052_v59 }
0x1714   :  { %v5049_v58 = vpop.xlane.xlu1 %5048 }
0x1715   :  { %10244 = vrcp.f32 %v5049_v58 }
0x1718   :  { %v5329_v19 = vpop.permute.xlu1 %5328 }
0x171e   :  { %v10243_v36 = vpop.eup %10242 }
0x171f   :  { %v5060_v44 = vmul.f32 %v10243_v36, %v10235_v47 }
0x1722   :  { %v10245_v28 = vpop.eup %10244 }
0x1723   :  { %v5059_v55 = vmul.f32 %v10245_v28, %v10237_v57 }
0x1725   :  { %10029 = vmatprep.mubr.msk.f32.mxu0 %vm677_vm5, %v5059_v55 }
0x1726   :  { %10030 = vmatmul.mubr.msk.f32.vlgmr.msra.gmra.mxu0 %vm677_vm5, %v5060_v44 }
0x1727   :  { %10040 = vmatpush3.xpose.msk.msra.mxu0 %vm494_vm3, %v5333_v63  ;;  %10043 = vmatprep.mubr.msk.f32.mxu0 %vm494_vm3, %v5327_v3 }
0x1728   :  { %10041 = vmatprep.subr.msk.mxu0 %vm494_vm3, %v5331_v39 }
0x172b   :  { %10042 = vmatpush3.xpose.msk.msra.mxu0 %vm494_vm3, %v5331_v39 }
0x172e   :  { %10044 = vmatmul.mubr.msk.f32.vlgmr.msra.gmra.mxu0 %vm494_vm3, %v5329_v19 }
0x17a5   :  { %v12412_v35 = vpop.f32.mrf.mxu1 }
0x17a7   :  { %v12414_v13 = vpop.f32.mrf.mxu1 }
0x17ad   :  { %v10038_v56 = vpop.f32.mrf.mxu1 }
0x17ae   :  { %v5418_v9 = vsel %vm375_vm4, %v10038_v56, -1e+30 }
0x17af   :  { %v5424_v50 = vsel %vm677_vm5, %v5418_v9, -inf  ;;  %v5317_v4 = vpop.f32.mrf.mxu1 }
0x17b0   :  { %v5417_v1 = vsel %vm375_vm4, %v5317_v4, -1e+30  ;;  %5425 = vmax.xlane.f32.xlu1 %v5424_v50 }
0x17b1   :  { %v5421_v25 = vsel %vm677_vm5, %v5417_v1, -inf }
0x17b2   :  { %5422 = vmax.xlane.f32.xlu0 %v5421_v25 }
0x17c1   :  { %5465 = vrot.lane.b32.xlu1 %v12250_v7, %s14021_s30 }
0x17c5   :  { %5643 = vrot.lane.b32.xlu1 %v12250_v7, %s14022_s25 }
0x17c9   :  { %5641 = vrot.lane.b32.xlu1 %v12279_v12, %s14023_s26 }
0x17cd   :  { %5552 = vrot.lane.b32.xlu1 %v12263_v52, %s14021_s30 }
0x17e6   :  { %v12430_v27 = vpop.f32.mrf.mxu0 }
0x17e8   :  { %v12432_v21 = vpop.f32.mrf.mxu0 }
0x17ee   :  { %v10045_v62 = vpop.f32.mrf.mxu0 }
0x17ef   :  { %v5420_v30 = vsel %vm375_vm4, %v10045_v62, -1e+30 }
0x17f0   :  { %v5408_v42 = vpop.f32.mrf.mxu0  ;;  %v5430_v12 = vsel %vm677_vm5, %v5420_v30, -inf }
0x17f1   :  { %v5419_v17 = vsel %vm375_vm4, %v5408_v42, -1e+30 }
0x17f2   :  { %v5427_v32 = vsel %vm677_vm5, %v5419_v17, -inf }
0x17f3   :  { %5428 = vmax.xlane.f32.xlu0 %v5427_v32 }
0x17f7   :  { %5431 = vmax.xlane.f32.xlu0 %v5430_v12 }
0x180d   :  { %5467 = vrot.lane.b32.xlu0 %v12248_v48, %s14021_s30 }
0x1839   :  { %v5426_v2 = vpop.xlane.xlu1 %5425 }
0x183a   :  { %v5434_v51 = vsub.f32 %v5418_v9, %v5426_v2 }
0x183b   :  { %v5423_v31 = vpop.xlane.xlu0 %5422 }
0x183c   :  { %v5439_v37 = vmul.f32 1.442695, %v5434_v51  ;;  %v5433_v60 = vsub.f32 %v5417_v1, %v5423_v31 }
0x183d   :  { %v5466_v40 = vpop.permute.xlu1 %5465 }
0x183e   :  { %10246 = vpow2.f32 %v5439_v37  ;;  %v5437_v10 = vmul.f32 1.442695, %v5433_v60 }
0x1840   :  { %10248 = vpow2.f32 %v5437_v10 }
0x1841   :  { %v5644_v63 = vpop.permute.xlu1 %5643 }
0x1845   :  { %v5642_v8 = vpop.permute.xlu1 %5641 }
0x1849   :  { %v5553_v0 = vpop.permute.xlu1 %5552 }
0x184b   :  { %v10247_v47 = vpop.eup %10246 }
0x184c   :  { %v5448_v54 = vsel %vm677_vm5, %v10247_v47, 0.0 }
0x184d   :  { %v10249_v57 = vpop.eup %10248  ;;  %5449 = vadd.xlane.f32.xlu0 %v5448_v54 }
0x184e   :  { %v5445_v41 = vsel %vm677_vm5, %v10249_v57, 0.0 }
0x184f   :  { %5446 = vadd.xlane.f32.xlu1 %v5445_v41 }
0x1860   :  { %5734 = vrot.lane.b32.xlu1 %v12263_v52, %s14022_s25 }
0x1863   :  { %5645 = vrot.lane.b32.xlu0 %v12248_v48, %s14022_s25 }
0x1867   :  { %5639 = vrot.lane.b32.xlu0 %v12257_v14, %s14023_s26 }
0x186b   :  { %5554 = vrot.lane.b32.xlu0 %v12261_v15, %s14021_s30 }
0x186f   :  { %5736 = vrot.lane.b32.xlu0 %v12261_v15, %s14022_s25 }
0x1873   :  { %5730 = vrot.lane.b32.xlu0 %v12268_v43, %s14023_s26 }
0x187c   :  { %v5429_v20 = vpop.xlane.xlu0 %5428 }
0x187d   :  { %v5435_v61 = vsub.f32 %v5419_v17, %v5429_v20 }
0x187f   :  { %v5441_v53 = vmul.f32 1.442695, %v5435_v61 }
0x1880   :  { %v5432_v22 = vpop.xlane.xlu0 %5431 }
0x1881   :  { %v5436_v6 = vsub.f32 %v5420_v30, %v5432_v22 }
0x1883   :  { %v5443_v33 = vmul.f32 1.442695, %v5436_v6 }
0x1884   :  { %v5468_v46 = vpop.permute.xlu0 %5467 }
0x1885   :  { %10250 = vpow2.f32 %v5443_v33  ;;  %10046 = vmatprep.subr.mxu1 %v5468_v46 }
0x1886   :  { %10047 = vmatpush3.msra.mxu1 %v5468_v46  ;;  %10252 = vpow2.f32 %v5441_v53 }
0x1887   :  { %10048 = vmatprep.subr.mxu1 %v5466_v40 }
0x1888   :  { %10049 = vmatpush3.msra.mxu1 %v5466_v40 }
0x1892   :  { %v10251_v14 = vpop.eup %10250 }
0x1893   :  { %v5454_v45 = vsel %vm677_vm5, %v10251_v14, 0.0  ;;  %v10253_v29 = vpop.eup %10252 }
0x1894   :  { %5455 = vadd.xlane.f32.xlu1 %v5454_v45  ;;  %v5451_v43 = vsel %vm677_vm5, %v10253_v29, 0.0 }
0x1898   :  { %5452 = vadd.xlane.f32.xlu1 %v5451_v43 }
0x18a9   :  { %5732 = vrot.lane.b32.xlu1 %v12288_v11, %s14023_s26 }
0x18d6   :  { %v5450_v39 = vpop.xlane.xlu0 %5449 }
0x18d7   :  { %10254 = vrcp.f32 %v5450_v39 }
0x18d8   :  { %v5447_v59 = vpop.xlane.xlu1 %5446 }
0x18d9   :  { %10256 = vrcp.f32 %v5447_v59 }
0x18da   :  { %v5646_v58 = vpop.permute.xlu0 %5645 }
0x18db   :  { %10060 = vmatprep.subr.msk.mxu1 %vm494_vm3, %v5646_v58 }
0x18dc   :  { %v5735_v56 = vpop.permute.xlu1 %5734 }
0x18de   :  { %v5640_v36 = vpop.permute.xlu0 %5639 }
0x18e2   :  { %v5555_v28 = vpop.permute.xlu0 %5554 }
0x18e3   :  { %10053 = vmatprep.subr.mxu0 %v5555_v28 }
0x18e4   :  { %10054 = vmatpush3.msra.mxu0 %v5555_v28  ;;  %v10255_v55 = vpop.eup %10254 }
0x18e5   :  { %10055 = vmatprep.subr.mxu0 %v5553_v0  ;;  %v5462_v19 = vmul.f32 %v10255_v55, %v10247_v47 }
0x18e6   :  { %v10257_v44 = vpop.eup %10256  ;;  %10056 = vmatpush3.msra.mxu0 %v5553_v0  ;;  %v5737_v3 = vpop.permute.xlu0 %5736 }
0x18e7   :  { %10067 = vmatprep.subr.msk.mxu0 %vm494_vm3, %v5737_v3  ;;  %v5461_v11 = vmul.f32 %v10257_v44, %v10249_v57 }
0x18e9   :  { %10050 = vmatprep.mubr.msk.f32.mxu1 %vm677_vm5, %v5461_v11 }
0x18ea   :  { %10051 = vmatmul.mubr.msk.f32.vlgmr.msra.gmra.mxu1 %vm677_vm5, %v5462_v19  ;;  %v5731_v42 = vpop.permute.xlu0 %5730 }
0x18eb   :  { %10061 = vmatpush3.xpose.msk.msra.mxu1 %vm494_vm3, %v5646_v58  ;;  %10064 = vmatprep.mubr.msk.f32.mxu1 %vm494_vm3, %v5640_v36 }
0x18ec   :  { %10062 = vmatprep.subr.msk.mxu1 %vm494_vm3, %v5644_v63 }
0x18ef   :  { %10063 = vmatpush3.xpose.msk.msra.mxu1 %vm494_vm3, %v5644_v63 }
0x18f2   :  { %10065 = vmatmul.mubr.msk.f32.vlgmr.msra.gmra.mxu1 %vm494_vm3, %v5642_v8 }
0x191d   :  { %v5456_v9 = vpop.xlane.xlu1 %5455 }
0x191e   :  { %10258 = vrcp.f32 %v5456_v9 }
0x1921   :  { %v5453_v50 = vpop.xlane.xlu1 %5452 }
0x1922   :  { %10260 = vrcp.f32 %v5453_v50 }
0x1925   :  { %v5733_v17 = vpop.permute.xlu1 %5732 }
0x192b   :  { %v10259_v4 = vpop.eup %10258 }
0x192c   :  { %v5464_v62 = vmul.f32 %v10259_v4, %v10251_v14 }
0x192f   :  { %v10261_v1 = vpop.eup %10260 }
0x1930   :  { %v5463_v25 = vmul.f32 %v10261_v1, %v10253_v29 }
0x1932   :  { %10057 = vmatprep.mubr.msk.f32.mxu0 %vm677_vm5, %v5463_v25 }
0x1933   :  { %10058 = vmatmul.mubr.msk.f32.vlgmr.msra.gmra.mxu0 %vm677_vm5, %v5464_v62 }
0x1934   :  { %10068 = vmatpush3.xpose.msk.msra.mxu0 %vm494_vm3, %v5737_v3  ;;  %10071 = vmatprep.mubr.msk.f32.mxu0 %vm494_vm3, %v5731_v42  ;;  %v14027_v42 = vmov 0.0  }
0x1935   :  { %10069 = vmatprep.subr.msk.mxu0 %vm494_vm3, %v5735_v56 }
0x1938   :  { %10070 = vmatpush3.xpose.msk.msra.mxu0 %vm494_vm3, %v5735_v56 }
0x193b   :  { %10072 = vmatmul.mubr.msk.f32.vlgmr.msra.gmra.mxu0 %vm494_vm3, %v5733_v17  ;;  %v8539_v17 = vld [vmem:[%s13936_s11 + $0x38] sm:$0xff] }
0x19aa   :  { %v10052_v32 = vpop.f32.mrf.mxu1 }
0x19ac   :  { %v5543_v30 = vpop.f32.mrf.mxu1 }
0x19b2   :  { %v10066_v12 = vpop.f32.mrf.mxu1 }
0x19b3   :  { %v5822_v2 = vsel %vm375_vm4, %v10066_v12, -1e+30  ;;  %v8536_v12 = vld [vmem:[%s13936_s11 + $0x20] sm:$0xff] }
0x19b4   :  { %v5828_v51 = vsel %vm677_vm5, %v5822_v2, -inf  ;;  %v5721_v31 = vpop.f32.mrf.mxu1 }
0x19b5   :  { %v5821_v37 = vsel %vm375_vm4, %v5721_v31, -1e+30  ;;  %5829 = vmax.xlane.f32.xlu1 %v5828_v51 }
0x19b6   :  { %v5825_v60 = vsel %vm677_vm5, %v5821_v37, -inf }
0x19b7   :  { %5826 = vmax.xlane.f32.xlu0 %v5825_v60 }
0x19c6   :  { %5871 = vrot.lane.b32.xlu1 %v12248_v48, %s14024_s1 }
0x19f3   :  { %v12484_v10 = vpop.f32.mrf.mxu0 }
0x19f5   :  { %v12486_v47 = vpop.f32.mrf.mxu0 }
0x19fb   :  { %v10073_v54 = vpop.f32.mrf.mxu0 }
0x19fc   :  { %v5824_v61 = vsel %vm375_vm4, %v10073_v54, -1e+30 }
0x19fd   :  { %v5812_v57 = vpop.f32.mrf.mxu0  ;;  %v5834_v22 = vsel %vm677_vm5, %v5824_v61, -inf }
0x19fe   :  { %v5823_v41 = vsel %vm375_vm4, %v5812_v57, -1e+30 }
0x19ff   :  { %v5831_v20 = vsel %vm677_vm5, %v5823_v41, -inf }
0x1a00   :  { %5832 = vmax.xlane.f32.xlu0 %v5831_v20 }
0x1a04   :  { %5835 = vmax.xlane.f32.xlu0 %v5834_v22 }
0x1a3e   :  { %v5830_v6 = vpop.xlane.xlu1 %5829 }
0x1a3f   :  { %v5838_v48 = vsub.f32 %v5822_v2, %v5830_v6 }
0x1a40   :  { %v5827_v53 = vpop.xlane.xlu0 %5826 }
0x1a41   :  { %v5843_v33 = vmul.f32 1.442695, %v5838_v48  ;;  %v5837_v46 = vsub.f32 %v5821_v37, %v5827_v53 }
0x1a42   :  { %v5872_v40 = vpop.permute.xlu1 %5871 }
0x1a43   :  { %10262 = vpow2.f32 %v5843_v33  ;;  %v5841_v14 = vmul.f32 1.442695, %v5837_v46  ;;  %10074 = vmatprep.subr.mxu1 %v5872_v40 }
0x1a44   :  { %10075 = vmatpush3.msra.mxu1 %v5872_v40 }
0x1a45   :  { %10264 = vpow2.f32 %v5841_v14 }
0x1a50   :  { %v10263_v45 = vpop.eup %10262 }
0x1a51   :  { %v5852_v29 = vsel %vm677_vm5, %v10263_v45, 0.0 }
0x1a52   :  { %v10265_v26 = vpop.eup %10264  ;;  %5853 = vadd.xlane.f32.xlu0 %v5852_v29 }
0x1a53   :  { %v5849_v43 = vsel %vm677_vm5, %v10265_v26, 0.0 }
0x1a54   :  { %5850 = vadd.xlane.f32.xlu1 %v5849_v43 }
0x1a65   :  { %5958 = vrot.lane.b32.xlu1 %v12261_v15, %s14024_s1 }
0x1a89   :  { %v5833_v63 = vpop.xlane.xlu0 %5832 }
0x1a8a   :  { %v5839_v8 = vsub.f32 %v5823_v41, %v5833_v63 }
0x1a8c   :  { %v5845_v0 = vmul.f32 1.442695, %v5839_v8 }
0x1a8d   :  { %v5836_v39 = vpop.xlane.xlu0 %5835 }
0x1a8e   :  { %10266 = vpow2.f32 %v5845_v0  ;;  %v5840_v59 = vsub.f32 %v5824_v61, %v5836_v39 }
0x1a90   :  { %v5847_v58 = vmul.f32 1.442695, %v5840_v59 }
0x1a92   :  { %10268 = vpow2.f32 %v5847_v58 }
0x1a9b   :  { %v10267_v36 = vpop.eup %10266 }
0x1a9c   :  { %v5855_v28 = vsel %vm677_vm5, %v10267_v36, 0.0 }
0x1a9d   :  { %5856 = vadd.xlane.f32.xlu1 %v5855_v28 }
0x1a9f   :  { %v10269_v55 = vpop.eup %10268 }
0x1aa0   :  { %v5858_v44 = vsel %vm677_vm5, %v10269_v55, 0.0 }
0x1aa1   :  { %5859 = vadd.xlane.f32.xlu0 %v5858_v44 }
0x1aae   :  { %5956 = vrot.lane.b32.xlu1 %v12263_v52, %s14024_s1 }
0x1ab2   :  { %6049 = vrot.lane.b32.xlu1 %v12412_v35, %s14025_s5 }
0x1ab6   :  { %6065 = vrot.lane.b32.xlu1 %v10052_v32, %s14026_s29  ;;  %v8538_v32 = vld [vmem:[%s13936_s11 + $0x30] sm:$0xff] }
0x1ab7   :  { %5869 = vrot.lane.b32.xlu0 %v12250_v7, %s14024_s1 }
0x1abb   :  { %6047 = vrot.lane.b32.xlu0 %v12414_v13, %s14025_s5 }
0x1abf   :  { %6063 = vrot.lane.b32.xlu0 %v5543_v30, %s14026_s29  ;;  %v8537_v30 = vld [vmem:[%s13936_s11 + $0x28] sm:$0xff] }
0x1adb   :  { %v5854_v35 = vpop.xlane.xlu0 %5853 }
0x1add   :  { %v5851_v15 = vpop.xlane.xlu1 %5850 }
0x1ade   :  { %10270 = vrcp.f32 %v5851_v15 }
0x1adf   :  { %10272 = vrcp.f32 %v5854_v35 }
0x1ae1   :  { %v5959_v3 = vpop.permute.xlu1 %5958 }
0x1ae2   :  { %10081 = vmatprep.subr.mxu0 %v5959_v3 }
0x1ae3   :  { %10082 = vmatpush3.msra.mxu0 %v5959_v3 }
0x1aeb   :  { %v10271_v11 = vpop.eup %10270 }
0x1aec   :  { %v5865_v52 = vmul.f32 %v10271_v11, %v10265_v26  ;;  %v10273_v13 = vpop.eup %10272 }
0x1aed   :  { %v5866_v50 = vmul.f32 %v10273_v13, %v10263_v45 }
0x1aee   :  { %10078 = vmatprep.mubr.msk.f32.mxu1 %vm677_vm5, %v5865_v52 }
0x1b26   :  { %v5857_v19 = vpop.xlane.xlu1 %5856 }
0x1b27   :  { %10274 = vrcp.f32 %v5857_v19 }
0x1b2a   :  { %v5957_v56 = vpop.permute.xlu1 %5956  ;;  %v5860_v7 = vpop.xlane.xlu0 %5859 }
0x1b2b   :  { %10276 = vrcp.f32 %v5860_v7  ;;  %10083 = vmatprep.subr.mxu0 %v5957_v56 }
0x1b2c   :  { %10084 = vmatpush3.msra.mxu0 %v5957_v56 }
0x1b2e   :  { %v5870_v9 = vpop.permute.xlu0 %5869  ;;  %v6050_v60 = vpop.permute.xlu1 %6049 }
0x1b2f   :  { %10076 = vmatprep.subr.mxu1 %v5870_v9 }
0x1b30   :  { %10077 = vmatpush3.msra.mxu1 %v5870_v9 }
0x1b31   :  { %10079 = vmatmul.mubr.msk.f32.vlgmr.msra.gmra.mxu1 %vm677_vm5, %v5866_v50  ;;  %10088 = vmatprep.subr.mxu1 %v8539_v17 }
0x1b32   :  { %10089 = vmatpush3.msra.mxu1 %v8539_v17  ;;  %v6048_v54 = vpop.permute.xlu0 %6047  ;;  %v6066_v57 = vpop.permute.xlu1 %6065 }
0x1b33   :  { %10090 = vmatprep.subr.mxu1 %v8538_v32 }
0x1b34   :  { %v10275_v4 = vpop.eup %10274  ;;  %10091 = vmatpush3.msra.mxu1 %v8538_v32 }
0x1b35   :  { %v5867_v1 = vmul.f32 %v10275_v4, %v10267_v36  ;;  %10092 = vmatprep.subr.mxu1 %v8537_v30 }
0x1b36   :  { %10093 = vmatpush3.msra.mxu1 %v8537_v30  ;;  %v6064_v41 = vpop.permute.xlu0 %6063 }
0x1b37   :  { %10085 = vmatprep.mubr.msk.f32.mxu0 %vm677_vm5, %v5867_v1  ;;  %10094 = vmatprep.subr.mxu1 %v8536_v12 }
0x1b38   :  { %v10277_v25 = vpop.eup %10276  ;;  %10095 = vmatpush3.msra.mxu1 %v8536_v12 }
0x1b39   :  { %v5868_v62 = vmul.f32 %v10277_v25, %v10269_v55 }
0x1b3b   :  { %10086 = vmatmul.mubr.msk.f32.vlgmr.msra.gmra.mxu0 %vm677_vm5, %v5868_v62 }
0x1b3c   :  { %6519 = vmatprep.mubr.f32.mxu0 %v14027_v42 }
0x1bf1   :  { %v10080_v2 = vpop.f32.mrf.mxu1 }
0x1bf2   :  { %6081 = vrot.lane.b32.xlu1 %v10080_v2, %s14028_s9 }
0x1bf3   :  { %v5947_v51 = vpop.f32.mrf.mxu1 }
0x1bf4   :  { %6079 = vrot.lane.b32.xlu0 %v5947_v51, %s14028_s9 }
0x1bf6   :  { %6053 = vrot.lane.b32.xlu1 %v12430_v27, %s14025_s5 }
0x1bf8   :  { %6051 = vrot.lane.b32.xlu0 %v12432_v21, %s14025_s5  ;;  %v6091_v21 = vsel %vm494_vm3, %v12350_v23, %v6048_v54  ;;  %v8600_v54 = vld [vmem:[%s13938_s15 + $0x390] sm:$0xff] }
0x1bf9   :  { %v6095_v20 = vsel %vm677_vm5, %v6091_v21, %v6064_v41  ;;  %v8585_v41 = vld [vmem:[%s13938_s15 + $0x318] sm:$0xff]  ;;  %v8584_v21 = vld [vmem:[%s13938_s15 + $0x310] sm:$0xff] }
0x1bfa   :  { %6069 = vrot.lane.b32.xlu1 %v12484_v10, %s14026_s29  ;;  %v6092_v10 = vsel %vm494_vm3, %v12348_v24, %v6050_v60  ;;  %v8598_v60 = vld [vmem:[%s13938_s15 + $0x380] sm:$0xff] }
0x1bfb   :  { %v10087_v31 = vpop.f32.mrf.mxu0 }
0x1bfc   :  { %6067 = vrot.lane.b32.xlu0 %v12486_v47, %s14026_s29  ;;  %v6096_v47 = vsel %vm677_vm5, %v6092_v10, %v6066_v57  ;;  %v8583_v57 = vld [vmem:[%s13938_s15 + $0x308] sm:$0xff] }
0x1bfd   :  { %v6034_v37 = vpop.f32.mrf.mxu0  ;;  %v8567_v10 = vld [vmem:[%s13938_s15 + $0x288] sm:$0xff] }
0x1bfe   :  { %6085 = vrot.lane.b32.xlu1 %v10087_v31, %s14028_s9  ;;  %v8599_v31 = vld [vmem:[%s13938_s15 + $0x388] sm:$0xff] }
0x1bff   :  { %6479 = vmatprep.subr.mxu0 %v8599_v31 }
0x1c00   :  { %6083 = vrot.lane.b32.xlu0 %v6034_v37, %s14028_s9  ;;  %v8601_v37 = vld [vmem:[%s13938_s15 + $0x398] sm:$0xff]  ;;  %6480 = vmatpush1.msra.mxu0 %v8598_v60  ;;  %v8608_v60 = vld [vmem:[%s13938_s15 + $0x3d0] sm:$0xff] }
0x1c01   :  { %6568 = vmatprep.subr.mxu1 %v8601_v37  ;;  %6481 = vmatprep.subr.mxu0 %v8583_v57  ;;  %v8593_v57 = vld [vmem:[%s13938_s15 + $0x358] sm:$0xff] }
0x1c64   :  { %v6082_v27 = vpop.permute.xlu1 %6081 }
0x1c65   :  { %v6100_v6 = vsel %vm2164_vm6, %v6096_v47, %v6082_v27  ;;  %v8582_v27 = vld [vmem:[%s13938_s15 + $0x300] sm:$0xff]  ;;  %v8568_v47 = vld [vmem:[%s13938_s15 + $0x290] sm:$0xff] }
0x1c66   :  { %v6080_v61 = vpop.permute.xlu0 %6079  ;;  %6482 = vmatpush1.msra.mxu0 %v8582_v27  ;;  %v8592_v27 = vld [vmem:[%s13938_s15 + $0x350] sm:$0xff] }
0x1c67   :  { %v6099_v22 = vsel %vm2164_vm6, %v6095_v20, %v6080_v61  ;;  %v8569_v20 = vld [vmem:[%s13938_s15 + $0x298] sm:$0xff]  ;;  %6483 = vmatprep.subr.mxu0 %v8567_v10  ;;  %v8566_v61 = vld [vmem:[%s13938_s15 + $0x280] sm:$0xff] }
0x1c68   :  { %v6054_v48 = vpop.permute.xlu1 %6053  ;;  %10096 = vmatprep.mubr.msk.f32.mxu1 %vm269_vm2, %v6099_v22  ;;  %6484 = vmatpush1.msra.mxu0 %v8566_v61  ;;  %v8551_v22 = vld [vmem:[%s13938_s15 + $0x208] sm:$0xff]  ;;  %v8577_v10 = vld [vmem:[%s13938_s15 + $0x2d8] sm:$0xff]  ;;  %v8576_v61 = vld [vmem:[%s13938_s15 + $0x2d0] sm:$0xff] }
0x1c69   :  { %10097 = vmatmul.mubr.msk.f32.vlgmr.msra.gmra.mxu1 %vm269_vm2, %v6100_v6  ;;  %v6094_v40 = vsel %vm494_vm3, %v12366_v34, %v6054_v48  ;;  %v8553_v6 = vld [vmem:[%s13938_s15 + $0x218] sm:$0xff]  ;;  %6485 = vmatprep.subr.mxu0 %v8551_v22  ;;  %v8550_v48 = vld [vmem:[%s13938_s15 + $0x200] sm:$0xff] }
0x1c6a   :  { %v6052_v53 = vpop.permute.xlu0 %6051  ;;  %6569 = vmatpush1.msra.mxu1 %v8600_v54  ;;  %6486 = vmatpush1.msra.mxu0 %v8550_v48  ;;  %v8591_v54 = vld [vmem:[%s13938_s15 + $0x348] sm:$0xff]  ;;  %v8561_v22 = vld [vmem:[%s13938_s15 + $0x258] sm:$0xff]  ;;  %v8560_v48 = vld [vmem:[%s13938_s15 + $0x250] sm:$0xff] }
0x1c6b   :  { %v6093_v24 = vsel %vm494_vm3, %v12368_v38, %v6052_v53  ;;  %v8541_v38 = vld [vmem:[%s13937_s12 + $0x1] ss:$0 sm:$0xff]  ;;  %6570 = vmatprep.subr.mxu1 %v8585_v41  ;;  %v8552_v53 = vld [vmem:[%s13938_s15 + $0x210] sm:$0xff] }
0x1c6c   :  { %v6070_v33 = vpop.permute.xlu1 %6069  ;;  %6571 = vmatpush1.msra.mxu1 %v8584_v21  ;;  %v8590_v41 = vld [vmem:[%s13938_s15 + $0x340] sm:$0xff]  ;;  %v8575_v21 = vld [vmem:[%s13938_s15 + $0x2c8] sm:$0xff] }
0x1c6d   :  { %v6098_v29 = vsel %vm677_vm5, %v6094_v40, %v6070_v33  ;;  %6572 = vmatprep.subr.mxu1 %v8569_v20  ;;  %v8603_v33 = vld [vmem:[%s13938_s15 + $0x3a8] sm:$0xff]  ;;  %v8574_v20 = vld [vmem:[%s13938_s15 + $0x2c0] sm:$0xff] }
0x1c6e   :  { %v6068_v23 = vpop.permute.xlu0 %6067  ;;  %6573 = vmatpush1.msra.mxu1 %v8568_v47  ;;  %6657 = vmatprep.subr.mxu0 %v8603_v33  ;;  %v8559_v47 = vld [vmem:[%s13938_s15 + $0x248] sm:$0xff]  ;;  %v8613_v33 = vld [vmem:[%s13938_s15 + $0x3f8] sm:$0xff] }
0x1c6f   :  { %v6097_v14 = vsel %vm677_vm5, %v6093_v24, %v6068_v23  ;;  %6574 = vmatprep.subr.mxu1 %v8553_v6  ;;  %v8605_v23 = vld [vmem:[%s13938_s15 + $0x3b8] sm:$0xff]  ;;  %v8558_v6 = vld [vmem:[%s13938_s15 + $0x240] sm:$0xff] }
0x1c70   :  { %v6086_v46 = vpop.permute.xlu1 %6085  ;;  %6575 = vmatpush1.msra.mxu1 %v8552_v53  ;;  %v8611_v53 = vld [vmem:[%s13938_s15 + $0x3e8] sm:$0xff] }
0x1c71   :  { %v6102_v43 = vsel %vm2164_vm6, %v6098_v29, %v6086_v46  ;;  %6746 = vmatprep.subr.mxu1 %v8605_v23  ;;  %v8610_v23 = vld [vmem:[%s13938_s15 + $0x3e0] sm:$0xff] }
0x1c72   :  { %v6084_v45 = vpop.permute.xlu0 %6083 }
0x1c73   :  { %v6101_v26 = vsel %vm2164_vm6, %v6097_v14, %v6084_v45 }
0x1c74   :  { %10099 = vmatprep.mubr.msk.f32.mxu1 %vm269_vm2, %v6101_v26 }
0x1c75   :  { %10100 = vmatmul.mubr.msk.f32.gmra.mxu1 %vm269_vm2, %v6102_v43 }
0x1c76   :  { %6608 = vmatprep.mubr.f32.mxu1 %v14027_v42 }
0x1d29   :  { %v10098_v34 = vpop.f32.mrf.mxu1 }
0x1d2a   :  { %v6200_v63 = vadd.f32 %v10098_v34, %v8541_v38 }
0x1d2b   :  { %v6194_v8 = vpop.f32.mrf.mxu1 }
0x1d2c   :  { %v6214_v0 = vadd.f32 %v6200_v63, %v12233_v18  ;;  %v6195_v39 = vadd.f32 %v8541_v38, %v6194_v8 }
0x1d2e   :  { %v6213_v59 = vadd.f32 %v6195_v39, %v12229_v5  ;;  %v6224_v58 = vsel %vm269_vm2, %v6214_v0, 0.0 }
0x1d2f   :  { %6225 = vadd.xlane.f32.xlu1 %v6224_v58 }
0x1d30   :  { %v6221_v36 = vsel %vm269_vm2, %v6213_v59, 0.0 }
0x1d31   :  { %6222 = vadd.xlane.f32.xlu0 %v6221_v36  ;;  %v8548_v36 = vld [vmem:[%s13939_s13 + $0x1] ss:$0 sm:$0xff] }
0x1d35   :  { %v10101_v28 = vpop.f32.mrf.mxu1 }
0x1d36   :  { %v6210_v44 = vadd.f32 %v10101_v28, %v8541_v38 }
0x1d37   :  { %v6204_v55 = vpop.f32.mrf.mxu1 }
0x1d38   :  { %v6205_v15 = vadd.f32 %v8541_v38, %v6204_v55  ;;  %v6216_v11 = vadd.f32 %v6210_v44, %v12241_v49  ;;  %v8549_v55 = vld [vmem:[%s13940_s14 + $0x1] ss:$0 sm:$0xff] }
0x1d3a   :  { %v6215_v3 = vadd.f32 %v6205_v15, %v12237_v16  ;;  %v6230_v18 = vsel %vm269_vm2, %v6216_v11, 0.0 }
0x1d3c   :  { %v6227_v52 = vsel %vm269_vm2, %v6215_v3, 0.0 }
0x1d3d   :  { %6228 = vadd.xlane.f32.xlu0 %v6227_v52  ;;  %v8587_v52 = vld [vmem:[%s13938_s15 + $0x328] sm:$0xff] }
0x1d41   :  { %6231 = vadd.xlane.f32.xlu0 %v6230_v18  ;;  %v8589_v18 = vld [vmem:[%s13938_s15 + $0x338] sm:$0xff] }
0x1db8   :  { %v6226_v5 = vpop.xlane.xlu1 %6225 }
0x1db9   :  { %v6234_v35 = vmul.f32 0.03125, %v6226_v5 }
0x1dba   :  { %v6223_v19 = vpop.xlane.xlu0 %6222 }
0x1dbb   :  { %v12571_v56 = vsub.f32 %v6214_v0, %v6234_v35  ;;  %v6233_v7 = vmul.f32 0.03125, %v6223_v19  ;;  %v8586_v35 = vld [vmem:[%s13938_s15 + $0x320] sm:$0xff]  ;;  %v8588_v19 = vld [vmem:[%s13938_s15 + $0x330] sm:$0xff] }
0x1dbd   :  { %v12573_v13 = vsub.f32 %v6213_v59, %v6233_v7  ;;  %v6242_v9 = vmul.f32 %v12571_v56, %v12571_v56  ;;  %v8573_v7 = vld [vmem:[%s13938_s15 + $0x2b8] sm:$0xff] }
0x1dbf   :  { %v6248_v16 = vsel %vm269_vm2, %v6242_v9, 0.0  ;;  %v6241_v49 = vmul.f32 %v12573_v13, %v12573_v13  ;;  %v8570_v9 = vld [vmem:[%s13938_s15 + $0x2a0] sm:$0xff] }
0x1dc0   :  { %6249 = vadd.xlane.f32.xlu0 %v6248_v16  ;;  %v8572_v16 = vld [vmem:[%s13938_s15 + $0x2b0] sm:$0xff] }
0x1dc1   :  { %v6245_v50 = vsel %vm269_vm2, %v6241_v49, 0.0 }
0x1dc2   :  { %6246 = vadd.xlane.f32.xlu1 %v6245_v50  ;;  %v8555_v50 = vld [vmem:[%s13938_s15 + $0x228] sm:$0xff] }
0x1dc6   :  { %v6229_v4 = vpop.xlane.xlu0 %6228 }
0x1dc7   :  { %v6235_v1 = vmul.f32 0.03125, %v6229_v4  ;;  %v8557_v4 = vld [vmem:[%s13938_s15 + $0x238] sm:$0xff] }
0x1dc9   :  { %v12581_v25 = vsub.f32 %v6215_v3, %v6235_v1  ;;  %v8602_v3 = vld [vmem:[%s13938_s15 + $0x3a0] sm:$0xff] }
0x1dca   :  { %v6232_v62 = vpop.xlane.xlu0 %6231  ;;  %v8554_v1 = vld [vmem:[%s13938_s15 + $0x220] sm:$0xff] }
0x1dcb   :  { %v6236_v17 = vmul.f32 0.03125, %v6232_v62  ;;  %v6243_v32 = vmul.f32 %v12581_v25, %v12581_v25 }
0x1dcd   :  { %v12585_v30 = vsub.f32 %v6216_v11, %v6236_v17  ;;  %v6251_v12 = vsel %vm269_vm2, %v6243_v32, 0.0  ;;  %v8604_v11 = vld [vmem:[%s13938_s15 + $0x3b0] sm:$0xff]  ;;  %v8607_v17 = vld [vmem:[%s13938_s15 + $0x3c8] sm:$0xff]  ;;  %v8609_v32 = vld [vmem:[%s13938_s15 + $0x3d8] sm:$0xff] }
0x1dce   :  { %6252 = vadd.xlane.f32.xlu1 %v6251_v12 }
0x1dcf   :  { %v6244_v2 = vmul.f32 %v12585_v30, %v12585_v30 }
0x1dd1   :  { %v6254_v51 = vsel %vm269_vm2, %v6244_v2, 0.0 }
0x1dd2   :  { %6255 = vadd.xlane.f32.xlu0 %v6254_v51 }
0x1e49   :  { %v6250_v24 = vpop.xlane.xlu0 %6249 }
0x1e4a   :  { %v6258_v46 = vmul.f32 0.03125, %v6250_v24  ;;  %v8612_v24 = vld [vmem:[%s13938_s15 + $0x3f0] sm:$0xff] }
0x1e4b   :  { %v6247_v40 = vpop.xlane.xlu1 %6246 }
0x1e4c   :  { %v6262_v14 = vadd.f32 1e-05, %v6258_v46  ;;  %v6257_v45 = vmul.f32 0.03125, %v6247_v40  ;;  %v8595_v46 = vld [vmem:[%s13938_s15 + $0x368] sm:$0xff]  ;;  %v8597_v40 = vld [vmem:[%s13938_s15 + $0x378] sm:$0xff] }
0x1e4e   :  { %10278 = vrsqrt.f32 %v6262_v14  ;;  %v6261_v29 = vadd.f32 1e-05, %v6257_v45  ;;  %v8594_v14 = vld [vmem:[%s13938_s15 + $0x360] sm:$0xff]  ;;  %v8596_v45 = vld [vmem:[%s13938_s15 + $0x370] sm:$0xff] }
0x1e50   :  { %10280 = vrsqrt.f32 %v6261_v29  ;;  %v8579_v29 = vld [vmem:[%s13938_s15 + $0x2e8] sm:$0xff] }
0x1e57   :  { %v6253_v26 = vpop.xlane.xlu1 %6252 }
0x1e58   :  { %v6259_v43 = vmul.f32 0.03125, %v6253_v26  ;;  %v8581_v26 = vld [vmem:[%s13938_s15 + $0x2f8] sm:$0xff] }
0x1e5a   :  { %v6263_v38 = vadd.f32 1e-05, %v6259_v43  ;;  %v8578_v43 = vld [vmem:[%s13938_s15 + $0x2e0] sm:$0xff] }
0x1e5b   :  { %v10279_v34 = vpop.eup %10278  ;;  %v6256_v63 = vpop.xlane.xlu0 %6255 }
0x1e5c   :  { %10282 = vrsqrt.f32 %v6263_v38  ;;  %v6260_v8 = vmul.f32 0.03125, %v6256_v63  ;;  %v6270_v39 = vmul.f32 %v10279_v34, %v12571_v56  ;;  %v8571_v56 = vld [vmem:[%s13938_s15 + $0x2a8] sm:$0xff]  ;;  %v8580_v38 = vld [vmem:[%s13938_s15 + $0x2f0] sm:$0xff]  ;;  %v8565_v63 = vld [vmem:[%s13938_s15 + $0x278] sm:$0xff] }
0x1e5d   :  { %v10281_v0 = vpop.eup %10280  ;;  %v8563_v34 = vld [vmem:[%s13938_s15 + $0x268] sm:$0xff] }
0x1e5e   :  { %v6269_v59 = vmul.f32 %v10281_v0, %v12573_v13  ;;  %v6264_v58 = vadd.f32 1e-05, %v6260_v8  ;;  %v6280_v44 = vmul.f32 %v8548_v36, %v6270_v39  ;;  %v8562_v8 = vld [vmem:[%s13938_s15 + $0x260] sm:$0xff]  ;;  %v8564_v0 = vld [vmem:[%s13938_s15 + $0x270] sm:$0xff]  ;;  %v8679_v39 = vld [vmem:[%s13941_s17 + $0x8f8] sm:$0xff] }
0x1e60   :  { %v6279_v28 = vmul.f32 %v8548_v36, %v6269_v59  ;;  %10284 = vrsqrt.f32 %v6264_v58  ;;  %v12673_v5 = vadd.f32 %v8549_v55, %v6280_v44  ;;  %v8711_v59 = vld [vmem:[%s13941_s17 + $0x9f8] sm:$0xff]  ;;  %v8662_v44 = vld [vmem:[%s13941_s17 + $0x870] sm:$0xff] }
0x1e61   :  { %v8663_v58 = vld [vmem:[%s13941_s17 + $0x878] sm:$0xff] }
0x1e62   :  { %v12653_v15 = vadd.f32 %v8549_v55, %v6279_v28  ;;  %v8678_v28 = vld [vmem:[%s13941_s17 + $0x8f0] sm:$0xff] }
0x1e64   :  { %8616 = vmatmul.mubr.msk.f32.vlgmr.msra.gmra.mxu0 %vm269_vm2, %v12653_v15  ;;  %8620 = vmatmul.mubr.msk.f32.vlgmr.msra.gmra.mxu1 %vm269_vm2, %v12653_v15 }
0x1e65   :  { %6525 = vmatprep.mubr.f32.mxu0 %v14027_v42  ;;  %6614 = vmatprep.mubr.f32.mxu1 %v14027_v42 }
0x1e66   :  { %6658 = vmatpush1.msra.mxu0 %v8602_v3  ;;  %6747 = vmatpush1.msra.mxu1 %v8604_v11  ;;  %v8694_v3 = vld [vmem:[%s13941_s17 + $0x970] sm:$0xff]  ;;  %v8677_v11 = vld [vmem:[%s13941_s17 + $0x8e8] sm:$0xff] }
0x1e67   :  { %6659 = vmatprep.subr.mxu0 %v8587_v52  ;;  %6748 = vmatprep.subr.mxu1 %v8589_v18  ;;  %v8709_v52 = vld [vmem:[%s13941_s17 + $0x9e8] sm:$0xff] }
0x1e68   :  { %8617 = vmatmul.mubr.msk.f32.gmra.mxu0 %vm269_vm2, %v12673_v5  ;;  %8621 = vmatmul.mubr.msk.f32.gmra.mxu1 %vm269_vm2, %v12673_v5  ;;  %v8661_v18 = vld [vmem:[%s13941_s17 + $0x868] sm:$0xff] }
0x1e69   :  { %v10283_v13 = vpop.eup %10282  ;;  %6531 = vmatprep.mubr.f32.mxu0 %v14027_v42  ;;  %6620 = vmatprep.mubr.f32.mxu1 %v14027_v42 }
0x1e6a   :  { %v6271_v49 = vmul.f32 %v10283_v13, %v12581_v25  ;;  %6660 = vmatpush1.msra.mxu0 %v8586_v35  ;;  %6749 = vmatpush1.msra.mxu1 %v8588_v19  ;;  %v8556_v25 = vld [vmem:[%s13938_s15 + $0x230] sm:$0xff]  ;;  %v8693_v35 = vld [vmem:[%s13941_s17 + $0x968] sm:$0xff]  ;;  %v8676_v19 = vld [vmem:[%s13941_s17 + $0x8e0] sm:$0xff] }
0x1e6b   :  { %6661 = vmatprep.subr.mxu0 %v8571_v56  ;;  %6750 = vmatprep.subr.mxu1 %v8573_v7  ;;  %v8708_v56 = vld [vmem:[%s13941_s17 + $0x9e0] sm:$0xff] }
0x1e6c   :  { %v6281_v62 = vmul.f32 %v8548_v36, %v6271_v49  ;;  %6662 = vmatpush1.msra.mxu0 %v8570_v9  ;;  %6751 = vmatpush1.msra.mxu1 %v8572_v16  ;;  %v8660_v7 = vld [vmem:[%s13941_s17 + $0x860] sm:$0xff]  ;;  %v8675_v9 = vld [vmem:[%s13941_s17 + $0x8d8] sm:$0xff] }
0x1e6d   :  { %v10285_v12 = vpop.eup %10284  ;;  %6663 = vmatprep.subr.mxu0 %v8555_v50  ;;  %6752 = vmatprep.subr.mxu1 %v8557_v4  ;;  %v8692_v13 = vld [vmem:[%s13941_s17 + $0x960] sm:$0xff]  ;;  %v8659_v16 = vld [vmem:[%s13941_s17 + $0x858] sm:$0xff]  ;;  %v8674_v50 = vld [vmem:[%s13941_s17 + $0x8d0] sm:$0xff] }
0x1e6e   :  { %v12718_v2 = vadd.f32 %v8549_v55, %v6281_v62  ;;  %v6272_v51 = vmul.f32 %v10285_v12, %v12585_v30  ;;  %6664 = vmatpush1.msra.mxu0 %v8554_v1  ;;  %6753 = vmatpush1.msra.mxu1 %v8556_v25  ;;  %v8606_v30 = vld [vmem:[%s13938_s15 + $0x3c0] sm:$0xff]  ;;  %v8691_v49 = vld [vmem:[%s13941_s17 + $0x958] sm:$0xff]  ;;  %v8706_v4 = vld [vmem:[%s13941_s17 + $0x9d0] sm:$0xff] }
0x1e6f   :  { %6835 = vmatprep.subr.mxu0 %v8607_v17  ;;  %6924 = vmatprep.subr.mxu1 %v8609_v32  ;;  %v8658_v1 = vld [vmem:[%s13941_s17 + $0x850] sm:$0xff]  ;;  %v8673_v62 = vld [vmem:[%s13941_s17 + $0x8c8] sm:$0xff] }
0x1e70   :  { %v6282_v31 = vmul.f32 %v8548_v36, %v6272_v51  ;;  %8618 = vmatmul.mubr.msk.f32.gmra.mxu0 %vm269_vm2, %v12718_v2  ;;  %8622 = vmatmul.mubr.msk.f32.gmra.mxu1 %vm269_vm2, %v12718_v2  ;;  %v8695_v36 = vld [vmem:[%s13941_s17 + $0x978] sm:$0xff]  ;;  %v8690_v25 = vld [vmem:[%s13941_s17 + $0x950] sm:$0xff]  ;;  %v8705_v17 = vld [vmem:[%s13941_s17 + $0x9c8] sm:$0xff] }
0x1e71   :  { %6537 = vmatprep.mubr.f32.mxu0 %v14027_v42  ;;  %6626 = vmatprep.mubr.f32.mxu1 %v14027_v42  ;;  %v8657_v32 = vld [vmem:[%s13941_s17 + $0x848] sm:$0xff]  ;;  %v8672_v51 = vld [vmem:[%s13941_s17 + $0x8c0] sm:$0xff] }
0x1e72   :  { %v12727_v37 = vadd.f32 %v8549_v55, %v6282_v31  ;;  %v8710_v55 = vld [vmem:[%s13941_s17 + $0x9f0] sm:$0xff]  ;;  %v8689_v12 = vld [vmem:[%s13941_s17 + $0x948] sm:$0xff]  ;;  %v8704_v31 = vld [vmem:[%s13941_s17 + $0x9c0] sm:$0xff] }
0x1e74   :  { %14029 = vst [vmem:[#allocation5_spill] sm:$0xff] %v12727_v37  ;;  %8619 = vmatmul.mubr.msk.f32.gmra.mxu0 %vm269_vm2, %v12727_v37  ;;  %8623 = vmatmul.mubr.msk.f32.gmra.mxu1 %vm269_vm2, %v12727_v37 }
0x1e75   :  { %6697 = vmatprep.mubr.f32.mxu0 %v14027_v42  ;;  %6786 = vmatprep.mubr.f32.mxu1 %v14027_v42 }
0x1e78   :  { %8624 = vmatmul.mubr.msk.f32.vlgmr.msra.gmra.mxu0 %vm269_vm2, %v12653_v15  ;;  %8628 = vmatmul.mubr.msk.f32.vlgmr.msra.gmra.mxu1 %vm269_vm2, %v12653_v15 }
0x1e79   :  { %6703 = vmatprep.mubr.f32.mxu0 %v14027_v42  ;;  %6792 = vmatprep.mubr.f32.mxu1 %v14027_v42 }
0x1e7a   :  { %6836 = vmatpush1.msra.mxu0 %v8606_v30  ;;  %6925 = vmatpush1.msra.mxu1 %v8608_v60  ;;  %v8656_v30 = vld [vmem:[%s13941_s17 + $0x840] sm:$0xff] }
0x1e7b   :  { %6837 = vmatprep.subr.mxu0 %v8591_v54  ;;  %6926 = vmatprep.subr.mxu1 %v8593_v57  ;;  %v8688_v60 = vld [vmem:[%s13941_s17 + $0x940] sm:$0xff]  ;;  %v8671_v54 = vld [vmem:[%s13941_s17 + $0x8b8] sm:$0xff] }
0x1e7c   :  { %8625 = vmatmul.mubr.msk.f32.gmra.mxu0 %vm269_vm2, %v12673_v5  ;;  %8629 = vmatmul.mubr.msk.f32.gmra.mxu1 %vm269_vm2, %v12673_v5  ;;  %v8703_v57 = vld [vmem:[%s13941_s17 + $0x9b8] sm:$0xff] }
0x1e7d   :  { %6709 = vmatprep.mubr.f32.mxu0 %v14027_v42  ;;  %6798 = vmatprep.mubr.f32.mxu1 %v14027_v42 }
0x1e7e   :  { %6838 = vmatpush1.msra.mxu0 %v8590_v41  ;;  %6927 = vmatpush1.msra.mxu1 %v8592_v27  ;;  %v8655_v41 = vld [vmem:[%s13941_s17 + $0x838] sm:$0xff] }
0x1e7f   :  { %6839 = vmatprep.subr.mxu0 %v8575_v21  ;;  %6928 = vmatprep.subr.mxu1 %v8577_v10  ;;  %v8687_v27 = vld [vmem:[%s13941_s17 + $0x938] sm:$0xff]  ;;  %v8670_v21 = vld [vmem:[%s13941_s17 + $0x8b0] sm:$0xff] }
0x1e80   :  { %8626 = vmatmul.mubr.msk.f32.gmra.mxu0 %vm269_vm2, %v12718_v2  ;;  %8630 = vmatmul.mubr.msk.f32.gmra.mxu1 %vm269_vm2, %v12718_v2  ;;  %v8702_v10 = vld [vmem:[%s13941_s17 + $0x9b0] sm:$0xff] }
0x1e81   :  { %6715 = vmatprep.mubr.f32.mxu0 %v14027_v42  ;;  %6804 = vmatprep.mubr.f32.mxu1 %v14027_v42 }
0x1e82   :  { %6840 = vmatpush1.msra.mxu0 %v8574_v20  ;;  %6929 = vmatpush1.msra.mxu1 %v8576_v61  ;;  %v8654_v20 = vld [vmem:[%s13941_s17 + $0x830] sm:$0xff] }
0x1e83   :  { %6841 = vmatprep.subr.mxu0 %v8559_v47  ;;  %6930 = vmatprep.subr.mxu1 %v8561_v22  ;;  %v8686_v61 = vld [vmem:[%s13941_s17 + $0x930] sm:$0xff]  ;;  %v8669_v47 = vld [vmem:[%s13941_s17 + $0x8a8] sm:$0xff] }
0x1e84   :  { %8627 = vmatmul.mubr.msk.f32.gmra.mxu0 %vm269_vm2, %v12727_v37  ;;  %8631 = vmatmul.mubr.msk.f32.gmra.mxu1 %vm269_vm2, %v12727_v37  ;;  %v8701_v22 = vld [vmem:[%s13941_s17 + $0x9a8] sm:$0xff] }
0x1e85   :  { %6842 = vmatpush1.msra.mxu0 %v8558_v6  ;;  %6875 = vmatprep.mubr.f32.mxu0 %v14027_v42  ;;  %v8653_v6 = vld [vmem:[%s13941_s17 + $0x828] sm:$0xff] }
0x1e86   :  { %6931 = vmatpush1.msra.mxu1 %v8560_v48  ;;  %6964 = vmatprep.mubr.f32.mxu1 %v14027_v42  ;;  %v8685_v48 = vld [vmem:[%s13941_s17 + $0x928] sm:$0xff] }
0x1e87   :  { %7013 = vmatprep.subr.mxu0 %v8611_v53  ;;  %7102 = vmatprep.subr.mxu1 %v8613_v33  ;;  %v8668_v53 = vld [vmem:[%s13941_s17 + $0x8a0] sm:$0xff] }
0x1e88   :  { %8632 = vmatmul.mubr.msk.f32.vlgmr.msra.gmra.mxu0 %vm269_vm2, %v12653_v15  ;;  %8636 = vmatmul.mubr.msk.f32.vlgmr.msra.gmra.mxu1 %vm269_vm2, %v12653_v15  ;;  %v8700_v33 = vld [vmem:[%s13941_s17 + $0x9a0] sm:$0xff] }
0x1e89   :  { %6881 = vmatprep.mubr.f32.mxu0 %v14027_v42  ;;  %6970 = vmatprep.mubr.f32.mxu1 %v14027_v42 }
0x1e8a   :  { %7014 = vmatpush1.msra.mxu0 %v8610_v23  ;;  %7103 = vmatpush1.msra.mxu1 %v8612_v24  ;;  %v8652_v23 = vld [vmem:[%s13941_s17 + $0x820] sm:$0xff] }
0x1e8b   :  { %7015 = vmatprep.subr.mxu0 %v8595_v46  ;;  %7104 = vmatprep.subr.mxu1 %v8597_v40  ;;  %v8684_v24 = vld [vmem:[%s13941_s17 + $0x920] sm:$0xff]  ;;  %v8667_v46 = vld [vmem:[%s13941_s17 + $0x898] sm:$0xff] }
0x1e8c   :  { %8633 = vmatmul.mubr.msk.f32.gmra.mxu0 %vm269_vm2, %v12673_v5  ;;  %8637 = vmatmul.mubr.msk.f32.gmra.mxu1 %vm269_vm2, %v12673_v5  ;;  %v8699_v40 = vld [vmem:[%s13941_s17 + $0x998] sm:$0xff] }
0x1e8d   :  { %6887 = vmatprep.mubr.f32.mxu0 %v14027_v42  ;;  %6976 = vmatprep.mubr.f32.mxu1 %v14027_v42 }
0x1e8e   :  { %7016 = vmatpush1.msra.mxu0 %v8594_v14  ;;  %7105 = vmatpush1.msra.mxu1 %v8596_v45  ;;  %v8651_v14 = vld [vmem:[%s13941_s17 + $0x818] sm:$0xff] }
0x1e8f   :  { %7017 = vmatprep.subr.mxu0 %v8579_v29  ;;  %7106 = vmatprep.subr.mxu1 %v8581_v26  ;;  %v8683_v45 = vld [vmem:[%s13941_s17 + $0x918] sm:$0xff]  ;;  %v8666_v29 = vld [vmem:[%s13941_s17 + $0x890] sm:$0xff] }
0x1e90   :  { %8634 = vmatmul.mubr.msk.f32.gmra.mxu0 %vm269_vm2, %v12718_v2  ;;  %8638 = vmatmul.mubr.msk.f32.gmra.mxu1 %vm269_vm2, %v12718_v2  ;;  %v8698_v26 = vld [vmem:[%s13941_s17 + $0x990] sm:$0xff] }
0x1e91   :  { %6893 = vmatprep.mubr.f32.mxu0 %v14027_v42  ;;  %6982 = vmatprep.mubr.f32.mxu1 %v14027_v42 }
0x1e92   :  { %7018 = vmatpush1.msra.mxu0 %v8578_v43  ;;  %7107 = vmatpush1.msra.mxu1 %v8580_v38  ;;  %v8650_v43 = vld [vmem:[%s13941_s17 + $0x810] sm:$0xff] }
0x1e93   :  { %7019 = vmatprep.subr.mxu0 %v8563_v34  ;;  %7108 = vmatprep.subr.mxu1 %v8565_v63  ;;  %v8682_v38 = vld [vmem:[%s13941_s17 + $0x910] sm:$0xff]  ;;  %v8665_v34 = vld [vmem:[%s13941_s17 + $0x888] sm:$0xff] }
0x1e94   :  { %8635 = vmatmul.mubr.msk.f32.gmra.mxu0 %vm269_vm2, %v12727_v37  ;;  %8639 = vmatmul.mubr.msk.f32.gmra.mxu1 %vm269_vm2, %v12727_v37  ;;  %v8697_v63 = vld [vmem:[%s13941_s17 + $0x988] sm:$0xff] }
0x1e95   :  { %7020 = vmatpush1.msra.mxu0 %v8562_v8  ;;  %7053 = vmatprep.mubr.f32.mxu0 %v14027_v42  ;;  %v8649_v8 = vld [vmem:[%s13941_s17 + $0x808] sm:$0xff] }
0x1e96   :  { %7109 = vmatpush1.msra.mxu1 %v8564_v0  ;;  %7142 = vmatprep.mubr.f32.mxu1 %v14027_v42  ;;  %v8681_v0 = vld [vmem:[%s13941_s17 + $0x908] sm:$0xff] }
0x1e97   :  { %9440 = vmatprep.subr.mxu0 %v8679_v39  ;;  %9484 = vmatprep.subr.mxu1 %v8711_v59  ;;  %v8664_v39 = vld [vmem:[%s13941_s17 + $0x880] sm:$0xff] }
0x1e98   :  { %8640 = vmatmul.mubr.msk.f32.vlgmr.msra.gmra.mxu0 %vm269_vm2, %v12653_v15  ;;  %8644 = vmatmul.mubr.msk.f32.vlgmr.msra.gmra.mxu1 %vm269_vm2, %v12653_v15  ;;  %v8696_v59 = vld [vmem:[%s13941_s17 + $0x980] sm:$0xff] }
0x1e99   :  { %7059 = vmatprep.mubr.f32.mxu0 %v14027_v42  ;;  %7148 = vmatprep.mubr.f32.mxu1 %v14027_v42 }
0x1e9a   :  { %9441 = vmatpush3.msra.mxu0 %v8663_v58  ;;  %9485 = vmatpush3.msra.mxu1 %v8695_v36  ;;  %v8648_v58 = vld [vmem:[%s13941_s17 + $0x800] sm:$0xff] }
0x1e9b   :  { %9442 = vmatprep.subr.mxu0 %v8678_v28  ;;  %9486 = vmatprep.subr.mxu1 %v8710_v55  ;;  %v8680_v36 = vld [vmem:[%s13941_s17 + $0x900] sm:$0xff]  ;;  %v8743_v28 = vld [vmem:[%s13941_s17 + $0xaf8] sm:$0xff] }
0x1e9c   :  { %8641 = vmatmul.mubr.msk.f32.gmra.mxu0 %vm269_vm2, %v12673_v5  ;;  %8645 = vmatmul.mubr.msk.f32.gmra.mxu1 %vm269_vm2, %v12673_v5  ;;  %v8775_v55 = vld [vmem:[%s13941_s17 + $0xbf8] sm:$0xff] }
0x1e9d   :  { %7065 = vmatprep.mubr.f32.mxu0 %v14027_v42  ;;  %7154 = vmatprep.mubr.f32.mxu1 %v14027_v42 }
0x1e9e   :  { %9443 = vmatpush3.msra.mxu0 %v8662_v44  ;;  %9487 = vmatpush3.msra.mxu1 %v8694_v3  ;;  %v13096_v44 = vld [vmem:[%s13942_s16 + $0x10] sm:$0xff]  ;;  %v14030_v3 = vld [vmem:[#allocation3_spill] sm:$0xff] }
0x1e9f   :  { %9444 = vmatprep.subr.mxu0 %v8677_v11  ;;  %9488 = vmatprep.subr.mxu1 %v8709_v52  ;;  %v13100_v11 = vrot.slane %v13096_v44, %v14030_v3  ;;  %v14031_v52 = vld [vmem:[#allocation6_spill] sm:$0xff] }
0x1ea0   :  { %8642 = vmatmul.mubr.msk.f32.gmra.mxu0 %vm269_vm2, %v12718_v2  ;;  %8646 = vmatmul.mubr.msk.f32.gmra.mxu1 %vm269_vm2, %v12718_v2 }
0x1ea1   :  { %7071 = vmatprep.mubr.f32.mxu0 %v14027_v42  ;;  %7160 = vmatprep.mubr.f32.mxu1 %v14027_v42  ;;  %v8707_v42 = vld [vmem:[%s13941_s17 + $0x9d8] sm:$0xff] }
0x1ea2   :  { %9445 = vmatpush3.msra.mxu0 %v8661_v18  ;;  %9489 = vmatpush3.msra.mxu1 %v8693_v35  ;;  %v13104_v18 = vrot.slane %v13096_v44, %v14031_v52  ;;  %v14032_v35 = vld [vmem:[#allocation7_spill] sm:$0xff] }
0x1ea3   :  { %9446 = vmatprep.subr.mxu0 %v8676_v19  ;;  %9490 = vmatprep.subr.mxu1 %v8708_v56  ;;  %v13108_v19 = vrot.slane %v13096_v44, %v14032_v35  ;;  %v14033_v56 = vld [vmem:[#allocation8_spill] sm:$0xff] }
0x1ea4   :  { %8643 = vmatmul.mubr.msk.f32.gmra.mxu0 %vm269_vm2, %v12727_v37  ;;  %8647 = vmatmul.mubr.msk.f32.gmra.mxu1 %vm269_vm2, %v12727_v37 }
0x1ea5   :  { %9447 = vmatpush3.msra.mxu0 %v8660_v7  ;;  %9491 = vmatpush3.msra.mxu1 %v8692_v13  ;;  %v13112_v7 = vrot.slane %v13096_v44, %v14033_v56 }
0x1ea6   :  { %9448 = vmatprep.subr.mxu0 %v8675_v9  ;;  %9492 = vmatprep.subr.mxu1 %v8707_v42 }
0x1ea7   :  { %9449 = vmatpush3.msra.mxu0 %v8659_v16  ;;  %9493 = vmatpush3.msra.mxu1 %v8691_v49 }
0x1ea8   :  { %9450 = vmatprep.subr.mxu0 %v8674_v50  ;;  %9494 = vmatprep.subr.mxu1 %v8706_v4 }
0x1ea9   :  { %9451 = vmatpush3.msra.mxu0 %v8658_v1  ;;  %9495 = vmatpush3.msra.mxu1 %v8690_v25 }
0x1eaa   :  { %9452 = vmatprep.subr.mxu0 %v8673_v62  ;;  %9496 = vmatprep.subr.mxu1 %v8705_v17 }
0x1eab   :  { %9453 = vmatpush3.msra.mxu0 %v8657_v32  ;;  %9497 = vmatpush3.msra.mxu1 %v8689_v12 }
0x1eac   :  { %9454 = vmatprep.subr.mxu0 %v8672_v51  ;;  %9498 = vmatprep.subr.mxu1 %v8704_v31 }
0x1ead   :  { %9455 = vmatpush3.msra.mxu0 %v8656_v30  ;;  %9499 = vmatpush3.msra.mxu1 %v8688_v60  ;;  %v8727_v60 = vld [vmem:[%s13941_s17 + $0xa78] sm:$0xff] }
0x1eae   :  { %9456 = vmatprep.subr.mxu0 %v8671_v54  ;;  %9500 = vmatprep.subr.mxu1 %v8703_v57  ;;  %v8759_v54 = vld [vmem:[%s13941_s17 + $0xb78] sm:$0xff] }
0x1eaf   :  { %9457 = vmatpush3.msra.mxu0 %v8655_v41  ;;  %9501 = vmatpush3.msra.mxu1 %v8687_v27  ;;  %v8742_v27 = vld [vmem:[%s13941_s17 + $0xaf0] sm:$0xff] }
0x1eb0   :  { %9458 = vmatprep.subr.mxu0 %v8670_v21  ;;  %9502 = vmatprep.subr.mxu1 %v8702_v10  ;;  %v8774_v21 = vld [vmem:[%s13941_s17 + $0xbf0] sm:$0xff] }
0x1eb1   :  { %9459 = vmatpush3.msra.mxu0 %v8654_v20  ;;  %9503 = vmatpush3.msra.mxu1 %v8686_v61  ;;  %v8726_v61 = vld [vmem:[%s13941_s17 + $0xa70] sm:$0xff] }
0x1eb2   :  { %9460 = vmatprep.subr.mxu0 %v8669_v47  ;;  %9504 = vmatprep.subr.mxu1 %v8701_v22  ;;  %v8758_v47 = vld [vmem:[%s13941_s17 + $0xb70] sm:$0xff] }
0x1eb3   :  { %9461 = vmatpush3.msra.mxu0 %v8653_v6  ;;  %9505 = vmatpush3.msra.mxu1 %v8685_v48  ;;  %v8741_v48 = vld [vmem:[%s13941_s17 + $0xae8] sm:$0xff] }
0x1eb4   :  { %9462 = vmatprep.subr.mxu0 %v8668_v53  ;;  %9506 = vmatprep.subr.mxu1 %v8700_v33  ;;  %v8773_v53 = vld [vmem:[%s13941_s17 + $0xbe8] sm:$0xff] }
0x1eb5   :  { %9463 = vmatpush3.msra.mxu0 %v8652_v23  ;;  %9507 = vmatpush3.msra.mxu1 %v8684_v24 }
0x1eb6   :  { %9464 = vmatprep.subr.mxu0 %v8667_v46  ;;  %9508 = vmatprep.subr.mxu1 %v8699_v40  ;;  %v8725_v40 = vld [vmem:[%s13941_s17 + $0xa68] sm:$0xff] }
0x1eb7   :  { %9465 = vmatpush3.msra.mxu0 %v8651_v14  ;;  %9509 = vmatpush3.msra.mxu1 %v8683_v45  ;;  %v8757_v14 = vld [vmem:[%s13941_s17 + $0xb68] sm:$0xff]  ;;  %v8740_v45 = vld [vmem:[%s13941_s17 + $0xae0] sm:$0xff] }
0x1eb8   :  { %9466 = vmatprep.subr.mxu0 %v8666_v29  ;;  %9510 = vmatprep.subr.mxu1 %v8698_v26  ;;  %v8772_v29 = vld [vmem:[%s13941_s17 + $0xbe0] sm:$0xff] }
0x1eb9   :  { %9467 = vmatpush3.msra.mxu0 %v8650_v43  ;;  %9511 = vmatpush3.msra.mxu1 %v8682_v38  ;;  %v8724_v38 = vld [vmem:[%s13941_s17 + $0xa60] sm:$0xff] }
0x1eba   :  { %9468 = vmatprep.subr.mxu0 %v8665_v34  ;;  %9512 = vmatprep.subr.mxu1 %v8697_v63  ;;  %v8756_v34 = vld [vmem:[%s13941_s17 + $0xb60] sm:$0xff] }
0x1ebb   :  { %9469 = vmatpush3.msra.mxu0 %v8649_v8  ;;  %9513 = vmatpush3.msra.mxu1 %v8681_v0  ;;  %v8739_v0 = vld [vmem:[%s13941_s17 + $0xad8] sm:$0xff] }
0x1ebc   :  { %9470 = vmatprep.subr.mxu0 %v8664_v39  ;;  %9514 = vmatprep.subr.mxu1 %v8696_v59  ;;  %v8771_v39 = vld [vmem:[%s13941_s17 + $0xbd8] sm:$0xff] }
0x1ebd   :  { %9471 = vmatpush3.msra.mxu0 %v8648_v58  ;;  %9515 = vmatpush3.msra.mxu1 %v8680_v36  ;;  %v8723_v36 = vld [vmem:[%s13941_s17 + $0xa58] sm:$0xff] }
0x1ebe   :  { %9528 = vmatprep.subr.mxu0 %v8743_v28  ;;  %9572 = vmatprep.subr.mxu1 %v8775_v55  ;;  %v8755_v28 = vld [vmem:[%s13941_s17 + $0xb58] sm:$0xff]  ;;  %v8738_v55 = vld [vmem:[%s13941_s17 + $0xad0] sm:$0xff] }
0x1f24   :  { %v6521_v13 = vpop.f32.mrf.mxu0  ;;  %v6610_v9 = vpop.f32.mrf.mxu1 }
0x1f25   :  { %v6522_v42 = vadd.f32 %v6521_v13, %v13100_v11  ;;  %v6611_v16 = vadd.f32 %v6610_v9, %v13104_v18  ;;  %v8770_v13 = vld [vmem:[%s13941_s17 + $0xbd0] sm:$0xff] }
0x1f26   :  { %v6523_v49 = vpop.f32.mrf.mxu0  ;;  %v6612_v50 = vpop.f32.mrf.mxu1 }
0x1f27   :  { %v6524_v4 = vadd.f32 %v6523_v49, %v13108_v19  ;;  %v6613_v1 = vadd.f32 %v6612_v50, %v13112_v7  ;;  %v7167_v12 = vmax.f32 %v6522_v42, 0.0  ;;  %v7169_v51 = vmax.f32 %v6611_v16, 0.0 }
0x1f28   :  { %v6527_v25 = vpop.f32.mrf.mxu0  ;;  %v6616_v62 = vpop.f32.mrf.mxu1 }
0x1f29   :  { %v7168_v17 = vmax.f32 %v6524_v4, 0.0  ;;  %v7170_v32 = vmax.f32 %v6613_v1, 0.0  ;;  %v6528_v10 = vadd.f32 %v6527_v25, %v13100_v11  ;;  %v6617_v20 = vadd.f32 %v6616_v62, %v13104_v18  ;;  %v8722_v1 = vld [vmem:[%s13941_s17 + $0xa50] sm:$0xff] }
0x1f2a   :  { %v6529_v31 = vpop.f32.mrf.mxu0  ;;  %v6618_v30 = vpop.f32.mrf.mxu1  ;;  %v8754_v25 = vld [vmem:[%s13941_s17 + $0xb50] sm:$0xff] }
0x1f2b   :  { %v6530_v57 = vadd.f32 %v6529_v31, %v13108_v19  ;;  %v6619_v41 = vadd.f32 %v6618_v30, %v13112_v7  ;;  %7560 = vmatprep.mubr.f32.mxu0 %v7168_v17  ;;  %7645 = vmatprep.mubr.f32.mxu1 %v7170_v32  ;;  %v7183_v33 = vmax.f32 %v6528_v10, 0.0  ;;  %v7185_v23 = vmax.f32 %v6617_v20, 0.0  ;;  %v8737_v32 = vld [vmem:[%s13941_s17 + $0xac8] sm:$0xff]  ;;  %v14035_v10 = vld [vmem:[#allocation10_spill] sm:$0xff] }
0x1f2c   :  { %7561 = vmatmul.mubr.f32.vlgmr.msra.gmra.mxu0 %v7167_v12  ;;  %7646 = vmatmul.mubr.f32.vlgmr.msra.gmra.mxu1 %v7169_v51  ;;  %v8769_v12 = vld [vmem:[%s13941_s17 + $0xbc8] sm:$0xff]  ;;  %v13222_v20 = vrot.slane %v13096_v44, %v14035_v10 }
0x1f2d   :  { %v7184_v22 = vmax.f32 %v6530_v57, 0.0  ;;  %v7186_v6 = vmax.f32 %v6619_v41, 0.0  ;;  %9529 = vmatpush3.msra.mxu0 %v8727_v60  ;;  %9573 = vmatpush3.msra.mxu1 %v8759_v54  ;;  %v14034_v54 = vld [vmem:[#allocation9_spill] sm:$0xff]  ;;  %v8736_v41 = vld [vmem:[%s13941_s17 + $0xac0] sm:$0xff] }
0x1f2e   :  { %9530 = vmatprep.subr.mxu0 %v8742_v27  ;;  %9574 = vmatprep.subr.mxu1 %v8774_v21  ;;  %v13212_v57 = vrot.slane %v13096_v44, %v14034_v54  ;;  %v8768_v27 = vld [vmem:[%s13941_s17 + $0xbc0] sm:$0xff] }
0x1f2f   :  { %9531 = vmatpush3.msra.mxu0 %v8726_v61  ;;  %9575 = vmatpush3.msra.mxu1 %v8758_v47 }
0x1f30   :  { %7565 = vmatprep.mubr.f32.mxu0 %v7184_v22  ;;  %7650 = vmatprep.mubr.f32.mxu1 %v7186_v6  ;;  %v6533_v24 = vpop.f32.mrf.mxu0  ;;  %v6622_v46 = vpop.f32.mrf.mxu1 }
0x1f31   :  { %9532 = vmatprep.subr.mxu0 %v8741_v48  ;;  %9576 = vmatprep.subr.mxu1 %v8773_v53  ;;  %v6534_v9 = vadd.f32 %v6533_v24, %v13100_v11  ;;  %v6623_v42 = vadd.f32 %v6622_v46, %v13104_v18  ;;  %v8720_v53 = vld [vmem:[%s13941_s17 + $0xa40] sm:$0xff] }
0x1f32   :  { %7566 = vmatmul.mubr.f32.gmra.mxu0 %v7183_v33  ;;  %7651 = vmatmul.mubr.f32.gmra.mxu1 %v7185_v23  ;;  %v6535_v26 = vpop.f32.mrf.mxu0  ;;  %v6624_v43 = vpop.f32.mrf.mxu1  ;;  %v8752_v33 = vld [vmem:[%s13941_s17 + $0xb40] sm:$0xff]  ;;  %v8767_v23 = vld [vmem:[%s13941_s17 + $0xbb8] sm:$0xff] }
0x1f33   :  { %9533 = vmatpush3.msra.mxu0 %v8725_v40  ;;  %9577 = vmatpush3.msra.mxu1 %v8757_v14  ;;  %v6536_v63 = vadd.f32 %v6535_v26, %v13108_v19  ;;  %v6625_v8 = vadd.f32 %v6624_v43, %v13112_v7  ;;  %v7199_v30 = vmax.f32 %v6534_v9, 0.0  ;;  %v7201_v60 = vmax.f32 %v6623_v42, 0.0  ;;  %v8719_v14 = vld [vmem:[%s13941_s17 + $0xa38] sm:$0xff]  ;;  %v8766_v26 = vld [vmem:[%s13941_s17 + $0xbb0] sm:$0xff]  ;;  %v8716_v42 = vld [vmem:[%s13941_s17 + $0xa20] sm:$0xff] }
0x1f34   :  { %9534 = vmatprep.subr.mxu0 %v8740_v45  ;;  %9578 = vmatprep.subr.mxu1 %v8772_v29  ;;  %v6539_v59 = vpop.f32.mrf.mxu0  ;;  %v6628_v58 = vpop.f32.mrf.mxu1  ;;  %v8751_v45 = vld [vmem:[%s13941_s17 + $0xb38] sm:$0xff]  ;;  %v8734_v29 = vld [vmem:[%s13941_s17 + $0xab0] sm:$0xff] }
0x1f35   :  { %9535 = vmatpush3.msra.mxu0 %v8724_v38  ;;  %9579 = vmatpush3.msra.mxu1 %v8756_v34  ;;  %v7200_v16 = vmax.f32 %v6536_v63, 0.0  ;;  %v7202_v49 = vmax.f32 %v6625_v8, 0.0  ;;  %v6540_v61 = vadd.f32 %v6539_v59, %v13100_v11  ;;  %v6629_v47 = vadd.f32 %v6628_v58, %v13104_v18  ;;  %v8735_v18 = vld [vmem:[%s13941_s17 + $0xab8] sm:$0xff]  ;;  %v8718_v34 = vld [vmem:[%s13941_s17 + $0xa30] sm:$0xff]  ;;  %v8765_v59 = vld [vmem:[%s13941_s17 + $0xba8] sm:$0xff] }
0x1f36   :  { %9536 = vmatprep.subr.mxu0 %v8739_v0  ;;  %9580 = vmatprep.subr.mxu1 %v8771_v39  ;;  %v6541_v50 = vpop.f32.mrf.mxu0  ;;  %v6630_v4 = vpop.f32.mrf.mxu1  ;;  %v8750_v63 = vld [vmem:[%s13941_s17 + $0xb30] sm:$0xff]  ;;  %v8733_v39 = vld [vmem:[%s13941_s17 + $0xaa8] sm:$0xff] }
0x1f37   :  { %9537 = vmatpush3.msra.mxu0 %v8723_v36  ;;  %9581 = vmatpush3.msra.mxu1 %v8755_v28  ;;  %v6542_v62 = vadd.f32 %v6541_v50, %v13108_v19  ;;  %v6631_v17 = vadd.f32 %v6630_v4, %v13112_v7  ;;  %v8721_v19 = vld [vmem:[%s13941_s17 + $0xa48] sm:$0xff]  ;;  %v7215_v46 = vmax.f32 %v6540_v61, 0.0  ;;  %v7217_v40 = vmax.f32 %v6629_v47, 0.0  ;;  %v8763_v50 = vld [vmem:[%s13941_s17 + $0xb98] sm:$0xff] }
0x1f38   :  { %9538 = vmatprep.subr.mxu0 %v8738_v55  ;;  %9582 = vmatprep.subr.mxu1 %v8770_v13  ;;  %v13200_v51 = vpop.f32.mrf.mxu0  ;;  %v13202_v31 = vpop.f32.mrf.mxu1  ;;  %v8753_v7 = vld [vmem:[%s13941_s17 + $0xb48] sm:$0xff]  ;;  %v8732_v55 = vld [vmem:[%s13941_s17 + $0xaa0] sm:$0xff] }
0x1f39   :  { %9539 = vmatpush3.msra.mxu0 %v8722_v1  ;;  %9583 = vmatpush3.msra.mxu1 %v8754_v25  ;;  %v7216_v22 = vmax.f32 %v6542_v62, 0.0  ;;  %v7218_v6 = vmax.f32 %v6631_v17, 0.0  ;;  %v8717_v58 = vld [vmem:[%s13941_s17 + $0xa28] sm:$0xff]  ;;  %v8764_v13 = vld [vmem:[%s13941_s17 + $0xba0] sm:$0xff]  ;;  %v8715_v17 = vld [vmem:[%s13941_s17 + $0xa18] sm:$0xff] }
0x1f3a   :  { %7570 = vmatprep.mubr.f32.mxu0 %v7200_v16  ;;  %7655 = vmatprep.mubr.f32.mxu1 %v7202_v49  ;;  %v6701_v21 = vpop.f32.mrf.mxu0  ;;  %v6790_v48 = vpop.f32.mrf.mxu1  ;;  %v8749_v36 = vld [vmem:[%s13941_s17 + $0xb28] sm:$0xff]  ;;  %v8748_v16 = vld [vmem:[%s13941_s17 + $0xb20] sm:$0xff]  ;;  %v8731_v49 = vld [vmem:[%s13941_s17 + $0xa98] sm:$0xff] }
0x1f3b   :  { %9540 = vmatprep.subr.mxu0 %v8737_v32  ;;  %9584 = vmatprep.subr.mxu1 %v8769_v12  ;;  %v6702_v11 = vadd.f32 %v6701_v21, %v13212_v57  ;;  %v6791_v24 = vadd.f32 %v6790_v48, %v13222_v20  ;;  %v14036_v4 = vld [vmem:[#allocation11_spill] sm:$0xff]  ;;  %v14037_v25 = vld [vmem:[#allocation12_spill] sm:$0xff]  ;;  %v8747_v32 = vld [vmem:[%s13941_s17 + $0xb18] sm:$0xff] }
0x1f3c   :  { %7571 = vmatmul.mubr.f32.gmra.mxu0 %v7199_v30  ;;  %7656 = vmatmul.mubr.f32.gmra.mxu1 %v7201_v60  ;;  %v13252_v38 = vpop.f32.mrf.mxu0  ;;  %v13260_v0 = vpop.f32.mrf.mxu1  ;;  %v13294_v1 = vrot.slane %v13096_v44, %v14036_v4  ;;  %v13298_v62 = vrot.slane %v13096_v44, %v14037_v25  ;;  %v8730_v30 = vld [vmem:[%s13941_s17 + $0xa90] sm:$0xff]  ;;  %v8713_v47 = vld [vmem:[%s13941_s17 + $0xa08] sm:$0xff] }
0x1f3d   :  { %9541 = vmatpush3.msra.mxu0 %v8721_v19  ;;  %9585 = vmatpush3.msra.mxu1 %v8753_v7  ;;  %v7172_v43 = vmax.f32 %v6702_v11, 0.0  ;;  %v7174_v8 = vmax.f32 %v6791_v24, 0.0  ;;  %v8762_v44 = vld [vmem:[%s13941_s17 + $0xb90] sm:$0xff]  ;;  %v8712_v11 = vld [vmem:[%s13941_s17 + $0xa00] sm:$0xff] }
0x1f3e   :  { %9542 = vmatprep.subr.mxu0 %v8736_v41  ;;  %9586 = vmatprep.subr.mxu1 %v8768_v27  ;;  %v6707_v28 = vpop.f32.mrf.mxu0  ;;  %v6796_v9 = vpop.f32.mrf.mxu1  ;;  %v8714_v19 = vld [vmem:[%s13941_s17 + $0xa10] sm:$0xff]  ;;  %v8729_v41 = vld [vmem:[%s13941_s17 + $0xa88] sm:$0xff]  ;;  %v6700_v21 = vadd.f32 %v13200_v51, %v13294_v1  ;;  %v6789_v61 = vadd.f32 %v13202_v31, %v13298_v62  ;;  %v8728_v51 = vld [vmem:[%s13941_s17 + $0xa80] sm:$0xff] }
0x1f3f   :  { %9543 = vmatpush3.msra.mxu0 %v8720_v53  ;;  %9587 = vmatpush3.msra.mxu1 %v8752_v33  ;;  %v8746_v7 = vld [vmem:[%s13941_s17 + $0xb10] sm:$0xff]  ;;  %v8761_v27 = vld [vmem:[%s13941_s17 + $0xb88] sm:$0xff]  ;;  %v8760_v31 = vld [vmem:[%s13941_s17 + $0xb80] sm:$0xff]  ;;  %v6708_v48 = vadd.f32 %v6707_v28, %v13212_v57  ;;  %v6797_v53 = vadd.f32 %v6796_v9, %v13222_v20 }
0x1f40   :  { %7575 = vmatprep.mubr.f32.mxu0 %v7216_v22  ;;  %7660 = vmatprep.mubr.f32.mxu1 %v7218_v6  ;;  %v13306_v12 = vpop.f32.mrf.mxu0  ;;  %v13314_v60 = vpop.f32.mrf.mxu1  ;;  %v8745_v22 = vld [vmem:[%s13941_s17 + $0xb08] sm:$0xff]  ;;  %v7173_v24 = vmax.f32 %v6789_v61, 0.0  ;;  %v8820_v61 = vld [vmem:[%s13941_s17 + $0xd60] sm:$0xff] }
0x1f41   :  { %9544 = vmatprep.subr.mxu0 %v8735_v18  ;;  %9588 = vmatprep.subr.mxu1 %v8767_v23  ;;  %v8744_v18 = vld [vmem:[%s13941_s17 + $0xb00] sm:$0xff]  ;;  %v7171_v23 = vmax.f32 %v6700_v21, 0.0 }
0x1f42   :  { %7576 = vmatmul.mubr.f32.gmra.mxu0 %v7215_v46  ;;  %7661 = vmatmul.mubr.f32.gmra.mxu1 %v7217_v40  ;;  %v6713_v6 = vpop.f32.mrf.mxu0  ;;  %v6802_v33 = vpop.f32.mrf.mxu1  ;;  %v8807_v46 = vld [vmem:[%s13941_s17 + $0xcf8] sm:$0xff]  ;;  %v8788_v21 = vld [vmem:[%s13941_s17 + $0xc60] sm:$0xff] }
0x1f43   :  { %9545 = vmatpush3.msra.mxu0 %v8719_v14  ;;  %9589 = vmatpush3.msra.mxu1 %v8751_v45  ;;  %v8839_v40 = vld [vmem:[%s13941_s17 + $0xdf8] sm:$0xff]  ;;  %v6706_v45 = vadd.f32 %v13252_v38, %v13294_v1  ;;  %v8806_v38 = vld [vmem:[%s13941_s17 + $0xcf0] sm:$0xff] }
0x1f44   :  { %9546 = vmatprep.subr.mxu0 %v8734_v29  ;;  %9590 = vmatprep.subr.mxu1 %v8766_v26  ;;  %v13358_v14 = vpop.f32.mrf.mxu0  ;;  %v6795_v29 = vadd.f32 %v13260_v0, %v13298_v62  ;;  %v7188_v26 = vmax.f32 %v6708_v48, 0.0  ;;  %v8838_v0 = vld [vmem:[%s13941_s17 + $0xdf0] sm:$0xff] }
0x1f45   :  { %9547 = vmatpush3.msra.mxu0 %v8718_v34  ;;  %9591 = vmatpush3.msra.mxu1 %v8750_v63  ;;  %v6806_v34 = vpop.f32.mrf.mxu1  ;;  %v8791_v63 = vld [vmem:[%s13941_s17 + $0xc78] sm:$0xff] }
0x1f46   :  { %9548 = vmatprep.subr.mxu0 %v8733_v39  ;;  %7730 = vmatprep.mubr.f32.mxu0 %v7172_v43  ;;  %v7190_v43 = vmax.f32 %v6797_v53, 0.0  ;;  %v6714_v39 = vadd.f32 %v6713_v6, %v13212_v57  ;;  %v6719_v28 = vpop.f32.mrf.mxu0  ;;  %v8803_v6 = vld [vmem:[%s13941_s17 + $0xcd8] sm:$0xff]  ;;  %v6807_v53 = vadd.f32 %v6806_v34, %v13298_v62  ;;  %v8785_v34 = vld [vmem:[%s13941_s17 + $0xc48] sm:$0xff] }
0x1f47   :  { %9592 = vmatprep.subr.mxu1 %v8765_v59  ;;  %7815 = vmatprep.mubr.f32.mxu1 %v7174_v8  ;;  %v8823_v8 = vld [vmem:[%s13941_s17 + $0xd78] sm:$0xff]  ;;  %v6803_v59 = vadd.f32 %v6802_v33, %v13222_v20  ;;  %v6808_v9 = vpop.f32.mrf.mxu1 }
0x1f48   :  { %9549 = vmatpush3.msra.mxu0 %v8717_v58  ;;  %9593 = vmatpush3.msra.mxu1 %v8749_v36  ;;  %v8790_v58 = vld [vmem:[%s13941_s17 + $0xc70] sm:$0xff] }
0x1f49   :  { %9550 = vmatprep.subr.mxu0 %v8732_v55  ;;  %9594 = vmatprep.subr.mxu1 %v8764_v13  ;;  %v8822_v36 = vld [vmem:[%s13941_s17 + $0xd70] sm:$0xff]  ;;  %v7187_v55 = vmax.f32 %v6706_v45, 0.0  ;;  %v7189_v13 = vmax.f32 %v6795_v29, 0.0  ;;  %v7221_v29 = vmax.f32 %v6807_v53, 0.0  ;;  %v8811_v53 = vld [vmem:[%s13941_s17 + $0xd18] sm:$0xff] }
0x1f4a   :  { %9551 = vmatpush3.msra.mxu0 %v8716_v42  ;;  %9595 = vmatpush3.msra.mxu1 %v8748_v16  ;;  %v8805_v42 = vld [vmem:[%s13941_s17 + $0xce8] sm:$0xff] }
0x1f4b   :  { %9552 = vmatprep.subr.mxu0 %v8731_v49  ;;  %9596 = vmatprep.subr.mxu1 %v8763_v50  ;;  %v8837_v16 = vld [vmem:[%s13941_s17 + $0xde8] sm:$0xff]  ;;  %v6712_v49 = vadd.f32 %v13306_v12, %v13294_v1  ;;  %v6801_v50 = vadd.f32 %v13314_v60, %v13298_v62  ;;  %v8804_v12 = vld [vmem:[%s13941_s17 + $0xce0] sm:$0xff]  ;;  %v8834_v62 = vld [vmem:[%s13941_s17 + $0xdd0] sm:$0xff] }
0x1f4c   :  { %9553 = vmatpush3.msra.mxu0 %v8715_v17  ;;  %9597 = vmatpush3.msra.mxu1 %v8747_v32  ;;  %v7204_v17 = vmax.f32 %v6714_v39, 0.0  ;;  %v7206_v32 = vmax.f32 %v6803_v59, 0.0  ;;  %v8836_v60 = vld [vmem:[%s13941_s17 + $0xde0] sm:$0xff] }
0x1f4d   :  { %9554 = vmatprep.subr.mxu0 %v8730_v30  ;;  %9598 = vmatprep.subr.mxu1 %v8762_v44  ;;  %v8789_v30 = vld [vmem:[%s13941_s17 + $0xc68] sm:$0xff]  ;;  %v8832_v39 = vld [vmem:[%s13941_s17 + $0xdc0] sm:$0xff] }
0x1f4e   :  { %9555 = vmatpush3.msra.mxu0 %v8714_v19  ;;  %9599 = vmatpush3.msra.mxu1 %v8746_v7  ;;  %v8821_v44 = vld [vmem:[%s13941_s17 + $0xd68] sm:$0xff]  ;;  %v13400_v19 = vpop.f32.mrf.mxu0  ;;  %v6720_v7 = vadd.f32 %v6719_v28, %v13212_v57  ;;  %v7203_v57 = vmax.f32 %v6712_v49, 0.0  ;;  %v8784_v59 = vld [vmem:[%s13941_s17 + $0xc40] sm:$0xff]  ;;  %v8831_v28 = vld [vmem:[%s13941_s17 + $0xdb8] sm:$0xff] }
0x1f4f   :  { %9556 = vmatprep.subr.mxu0 %v8729_v41  ;;  %9600 = vmatprep.subr.mxu1 %v8761_v27  ;;  %v6809_v41 = vadd.f32 %v6808_v9, %v13222_v20  ;;  %v13410_v27 = vpop.f32.mrf.mxu1  ;;  %v7205_v20 = vmax.f32 %v6801_v50, 0.0  ;;  %v8782_v50 = vld [vmem:[%s13941_s17 + $0xc30] sm:$0xff] }
0x1f50   :  { %9557 = vmatpush3.msra.mxu0 %v8713_v47  ;;  %9601 = vmatpush3.msra.mxu1 %v8745_v22  ;;  %v13421_v47 = vld [vmem:[%s13942_s16 + $0x18] sm:$0xff]  ;;  %v7220_v33 = vmax.f32 %v6720_v7, 0.0  ;;  %v8796_v7 = vld [vmem:[%s13941_s17 + $0xca0] sm:$0xff] }
0x1f51   :  { %9558 = vmatprep.subr.mxu0 %v8728_v51  ;;  %9602 = vmatprep.subr.mxu1 %v8760_v31  ;;  %v13425_v22 = vrot.slane %v13421_v47, %v14032_v35  ;;  %v8835_v51 = vld [vmem:[%s13941_s17 + $0xdd8] sm:$0xff]  ;;  %v6879_v31 = vpop.f32.mrf.mxu0  ;;  %v13435_v48 = vrot.slane %v13421_v47, %v14033_v56  ;;  %v6718_v35 = vadd.f32 %v13358_v14, %v13294_v1  ;;  %v8802_v1 = vld [vmem:[%s13941_s17 + $0xcd0] sm:$0xff] }
0x1f52   :  { %9559 = vmatpush3.msra.mxu0 %v8712_v11  ;;  %9603 = vmatpush3.msra.mxu1 %v8744_v18  ;;  %v7222_v11 = vmax.f32 %v6809_v41, 0.0  ;;  %v6968_v18 = vpop.f32.mrf.mxu1  ;;  %v8819_v56 = vld [vmem:[%s13941_s17 + $0xd58] sm:$0xff]  ;;  %v8828_v41 = vld [vmem:[%s13941_s17 + $0xda0] sm:$0xff] }
0x1f53   :  { %7731 = vmatmul.mubr.f32.vlgmr.msra.gmra.mxu0 %v7171_v23  ;;  %7816 = vmatmul.mubr.f32.vlgmr.msra.gmra.mxu1 %v7173_v24  ;;  %v8787_v23 = vld [vmem:[%s13941_s17 + $0xc58] sm:$0xff]  ;;  %v6880_v24 = vadd.f32 %v6879_v31, %v13425_v22  ;;  %v6969_v14 = vadd.f32 %v6968_v18, %v13435_v48  ;;  %v7219_v45 = vmax.f32 %v6718_v35, 0.0  ;;  %v13496_v9 = vpop.f32.mrf.mxu0  ;;  %v13548_v31 = vrot.slane %v13421_v47, %v14031_v52  ;;  %v8826_v52 = vld [vmem:[%s13941_s17 + $0xd90] sm:$0xff] }
0x1f54   :  { %9616 = vmatprep.subr.mxu0 %v8807_v46  ;;  %9660 = vmatprep.subr.mxu1 %v8839_v40  ;;  %v8786_v46 = vld [vmem:[%s13941_s17 + $0xc50] sm:$0xff]  ;;  %v13504_v49 = vpop.f32.mrf.mxu1  ;;  %v8779_v35 = vld [vmem:[%s13941_s17 + $0xc18] sm:$0xff] }
0x1f55   :  { %7735 = vmatprep.mubr.f32.mxu0 %v7188_v26  ;;  %7820 = vmatprep.mubr.f32.mxu1 %v7190_v43  ;;  %v8818_v40 = vld [vmem:[%s13941_s17 + $0xd50] sm:$0xff]  ;;  %v8801_v26 = vld [vmem:[%s13941_s17 + $0xcc8] sm:$0xff] }
0x1f56   :  { %9617 = vmatpush3.msra.mxu0 %v8791_v63  ;;  %9661 = vmatpush3.msra.mxu1 %v8823_v8  ;;  %v8833_v43 = vld [vmem:[%s13941_s17 + $0xdc8] sm:$0xff]  ;;  %v7176_v63 = vmax.f32 %v6880_v24, 0.0  ;;  %v8778_v18 = vld [vmem:[%s13941_s17 + $0xc10] sm:$0xff]  ;;  %v6967_v24 = vadd.f32 %v13410_v27, %v13548_v31  ;;  %v8824_v27 = vld [vmem:[%s13941_s17 + $0xd80] sm:$0xff] }
0x1f57   :  { %9618 = vmatprep.subr.mxu0 %v8806_v38  ;;  %9662 = vmatprep.subr.mxu1 %v8838_v0  ;;  %v8817_v8 = vld [vmem:[%s13941_s17 + $0xd48] sm:$0xff]  ;;  %v7178_v38 = vmax.f32 %v6969_v14, 0.0  ;;  %v8800_v0 = vld [vmem:[%s13941_s17 + $0xcc0] sm:$0xff] }
0x1f58   :  { %9619 = vmatpush3.msra.mxu0 %v8790_v58  ;;  %9663 = vmatpush3.msra.mxu1 %v8822_v36  ;;  %v8816_v58 = vld [vmem:[%s13941_s17 + $0xd40] sm:$0xff]  ;;  %v8799_v36 = vld [vmem:[%s13941_s17 + $0xcb8] sm:$0xff] }
0x1f59   :  { %7736 = vmatmul.mubr.f32.gmra.mxu0 %v7187_v55  ;;  %7821 = vmatmul.mubr.f32.gmra.mxu1 %v7189_v13  ;;  %v8783_v55 = vld [vmem:[%s13941_s17 + $0xc38] sm:$0xff] }
0x1f5a   :  { %9620 = vmatprep.subr.mxu0 %v8805_v42  ;;  %9664 = vmatprep.subr.mxu1 %v8837_v16  ;;  %v8815_v13 = vld [vmem:[%s13941_s17 + $0xd38] sm:$0xff]  ;;  %v8798_v42 = vld [vmem:[%s13941_s17 + $0xcb0] sm:$0xff] }
0x1f5b   :  { %7740 = vmatprep.mubr.f32.mxu0 %v7204_v17  ;;  %7825 = vmatprep.mubr.f32.mxu1 %v7206_v32  ;;  %v8830_v16 = vld [vmem:[%s13941_s17 + $0xdb0] sm:$0xff]  ;;  %v8797_v32 = vld [vmem:[%s13941_s17 + $0xca8] sm:$0xff] }
0x1f5c   :  { %9621 = vmatpush3.msra.mxu0 %v8789_v30  ;;  %9665 = vmatpush3.msra.mxu1 %v8821_v44  ;;  %v8814_v17 = vld [vmem:[%s13941_s17 + $0xd30] sm:$0xff]  ;;  %v8829_v30 = vld [vmem:[%s13941_s17 + $0xda8] sm:$0xff] }
0x1f5d   :  { %9622 = vmatprep.subr.mxu0 %v8804_v12  ;;  %9666 = vmatprep.subr.mxu1 %v8836_v60  ;;  %v8781_v44 = vld [vmem:[%s13941_s17 + $0xc28] sm:$0xff]  ;;  %v6885_v60 = vpop.f32.mrf.mxu0 }
0x1f5e   :  { %9623 = vmatpush3.msra.mxu0 %v8788_v21  ;;  %9667 = vmatpush3.msra.mxu1 %v8820_v61  ;;  %v8813_v12 = vld [vmem:[%s13941_s17 + $0xd28] sm:$0xff]  ;;  %v6974_v21 = vpop.f32.mrf.mxu1  ;;  %v8780_v61 = vld [vmem:[%s13941_s17 + $0xc20] sm:$0xff] }
0x1f5f   :  { %7741 = vmatmul.mubr.f32.gmra.mxu0 %v7203_v57  ;;  %7826 = vmatmul.mubr.f32.gmra.mxu1 %v7205_v20  ;;  %v8812_v57 = vld [vmem:[%s13941_s17 + $0xd20] sm:$0xff]  ;;  %v8795_v20 = vld [vmem:[%s13941_s17 + $0xc98] sm:$0xff] }
0x1f60   :  { %9624 = vmatprep.subr.mxu0 %v8803_v6  ;;  %9668 = vmatprep.subr.mxu1 %v8835_v51  ;;  %v8827_v6 = vld [vmem:[%s13941_s17 + $0xd98] sm:$0xff]  ;;  %v13544_v51 = vrot.slane %v13421_v47, %v14030_v3  ;;  %v8794_v3 = vld [vmem:[%s13941_s17 + $0xc90] sm:$0xff] }
0x1f61   :  { %7745 = vmatprep.mubr.f32.mxu0 %v7220_v33  ;;  %7830 = vmatprep.mubr.f32.mxu1 %v7222_v11  ;;  %v13556_v33 = vpop.f32.mrf.mxu0  ;;  %v13564_v11 = vpop.f32.mrf.mxu1 }
0x1f62   :  { %9625 = vmatpush3.msra.mxu0 %v8787_v23  ;;  %9669 = vmatpush3.msra.mxu1 %v8819_v56  ;;  %v8810_v23 = vld [vmem:[%s13941_s17 + $0xd10] sm:$0xff]  ;;  %v8793_v56 = vld [vmem:[%s13941_s17 + $0xc88] sm:$0xff] }
0x1f63   :  { %9626 = vmatprep.subr.mxu0 %v8802_v1  ;;  %9670 = vmatprep.subr.mxu1 %v8834_v62  ;;  %v8825_v1 = vld [vmem:[%s13941_s17 + $0xd88] sm:$0xff]  ;;  %v6878_v62 = vadd.f32 %v13400_v19, %v13544_v51  ;;  %v6891_v14 = vpop.f32.mrf.mxu0  ;;  %v8792_v19 = vld [vmem:[%s13941_s17 + $0xc80] sm:$0xff] }
0x1f64   :  { %9627 = vmatpush3.msra.mxu0 %v8786_v46  ;;  %9671 = vmatpush3.msra.mxu1 %v8818_v40  ;;  %v8777_v46 = vld [vmem:[%s13941_s17 + $0xc08] sm:$0xff] }
0x1f65   :  { %7746 = vmatmul.mubr.f32.gmra.mxu0 %v7219_v45  ;;  %7831 = vmatmul.mubr.f32.gmra.mxu1 %v7221_v29  ;;  %v8809_v40 = vld [vmem:[%s13941_s17 + $0xd08] sm:$0xff]  ;;  %v6886_v45 = vadd.f32 %v6885_v60, %v13425_v22  ;;  %v6975_v29 = vadd.f32 %v6974_v21, %v13435_v48  ;;  %v6890_v21 = vadd.f32 %v13556_v33, %v13544_v51  ;;  %v8868_v33 = vld [vmem:[%s13941_s17 + $0xee0] sm:$0xff] }
0x1f66   :  { %9628 = vmatprep.subr.mxu0 %v8801_v26  ;;  %9672 = vmatprep.subr.mxu1 %v8833_v43  ;;  %v6980_v26 = vpop.f32.mrf.mxu1  ;;  %v8776_v43 = vld [vmem:[%s13941_s17 + $0xc00] sm:$0xff] }
0x1f67   :  { %9629 = vmatpush3.msra.mxu0 %v8785_v34  ;;  %7900 = vmatprep.mubr.f32.mxu0 %v7176_v63  ;;  %v8808_v34 = vld [vmem:[%s13941_s17 + $0xd00] sm:$0xff]  ;;  %v7175_v63 = vmax.f32 %v6878_v62, 0.0 }
0x1f68   :  { %9673 = vmatpush3.msra.mxu1 %v8817_v8  ;;  %7985 = vmatprep.mubr.f32.mxu1 %v7178_v38  ;;  %v7177_v8 = vmax.f32 %v6967_v24, 0.0  ;;  %v8871_v38 = vld [vmem:[%s13941_s17 + $0xef8] sm:$0xff] }
0x1f69   :  { %9630 = vmatprep.subr.mxu0 %v8800_v0  ;;  %9674 = vmatprep.subr.mxu1 %v8832_v39  ;;  %v8903_v0 = vld [vmem:[%s13941_s17 + $0xff8] sm:$0xff]  ;;  %v13608_v39 = vpop.f32.mrf.mxu0 }
0x1f6a   :  { %9631 = vmatpush3.msra.mxu0 %v8784_v59  ;;  %9675 = vmatpush3.msra.mxu1 %v8816_v58  ;;  %v6884_v59 = vadd.f32 %v13496_v9, %v13544_v51  ;;  %v6973_v58 = vadd.f32 %v13504_v49, %v13548_v31  ;;  %v8870_v9 = vld [vmem:[%s13941_s17 + $0xef0] sm:$0xff]  ;;  %v6892_v49 = vadd.f32 %v6891_v14, %v13425_v22  ;;  %v8899_v24 = vld [vmem:[%s13941_s17 + $0xfd8] sm:$0xff] }
0x1f6b   :  { %9632 = vmatprep.subr.mxu0 %v8799_v36  ;;  %9676 = vmatprep.subr.mxu1 %v8831_v28  ;;  %v7192_v36 = vmax.f32 %v6886_v45, 0.0  ;;  %v7194_v28 = vmax.f32 %v6975_v29, 0.0  ;;  %v8851_v29 = vld [vmem:[%s13941_s17 + $0xe58] sm:$0xff] }
0x1f6c   :  { %9633 = vmatpush3.msra.mxu0 %v8783_v55  ;;  %9677 = vmatpush3.msra.mxu1 %v8815_v13  ;;  %v6984_v55 = vpop.f32.mrf.mxu1  ;;  %v8855_v13 = vld [vmem:[%s13941_s17 + $0xe78] sm:$0xff] }
0x1f6d   :  { %9634 = vmatprep.subr.mxu0 %v8798_v42  ;;  %9678 = vmatprep.subr.mxu1 %v8830_v16  ;;  %v8887_v42 = vld [vmem:[%s13941_s17 + $0xf78] sm:$0xff]  ;;  %v8902_v16 = vld [vmem:[%s13941_s17 + $0xff0] sm:$0xff]  ;;  %v6985_v14 = vadd.f32 %v6984_v55, %v13548_v31  ;;  %v8864_v55 = vld [vmem:[%s13941_s17 + $0xec0] sm:$0xff] }
0x1f6e   :  { %9635 = vmatpush3.msra.mxu0 %v8782_v50  ;;  %9679 = vmatpush3.msra.mxu1 %v8814_v17  ;;  %v6981_v50 = vadd.f32 %v6980_v26, %v13435_v48  ;;  %v8854_v17 = vld [vmem:[%s13941_s17 + $0xe70] sm:$0xff]  ;;  %v6986_v60 = vpop.f32.mrf.mxu1 }
0x1f6f   :  { %9636 = vmatprep.subr.mxu0 %v8797_v32  ;;  %9680 = vmatprep.subr.mxu1 %v8829_v30  ;;  %v8886_v32 = vld [vmem:[%s13941_s17 + $0xf70] sm:$0xff]  ;;  %v6897_v30 = vpop.f32.mrf.mxu0 }
0x1f70   :  { %9637 = vmatpush3.msra.mxu0 %v8781_v44  ;;  %9681 = vmatpush3.msra.mxu1 %v8813_v12  ;;  %v7191_v44 = vmax.f32 %v6884_v59, 0.0  ;;  %v7193_v12 = vmax.f32 %v6973_v58, 0.0  ;;  %v8849_v59 = vld [vmem:[%s13941_s17 + $0xe48] sm:$0xff] }
0x1f71   :  { %9638 = vmatprep.subr.mxu0 %v8796_v7  ;;  %9682 = vmatprep.subr.mxu1 %v8828_v41  ;;  %v8869_v7 = vld [vmem:[%s13941_s17 + $0xee8] sm:$0xff] }
0x1f72   :  { %9639 = vmatpush3.msra.mxu0 %v8780_v61  ;;  %9683 = vmatpush3.msra.mxu1 %v8812_v57  ;;  %v8901_v41 = vld [vmem:[%s13941_s17 + $0xfe8] sm:$0xff]  ;;  %v6979_v61 = vadd.f32 %v13564_v11, %v13548_v31  ;;  %v7208_v57 = vmax.f32 %v6892_v49, 0.0  ;;  %v6987_v11 = vadd.f32 %v6986_v60, %v13435_v48  ;;  %v8867_v48 = vld [vmem:[%s13941_s17 + $0xed8] sm:$0xff]  ;;  %v8898_v31 = vld [vmem:[%s13941_s17 + $0xfd0] sm:$0xff] }
0x1f73   :  { %9640 = vmatprep.subr.mxu0 %v8795_v20  ;;  %9684 = vmatprep.subr.mxu1 %v8827_v6  ;;  %v7210_v20 = vmax.f32 %v6981_v50, 0.0  ;;  %v8853_v6 = vld [vmem:[%s13941_s17 + $0xe68] sm:$0xff]  ;;  %v8880_v49 = vld [vmem:[%s13941_s17 + $0xf40] sm:$0xff]  ;;  %v8863_v50 = vld [vmem:[%s13941_s17 + $0xeb8] sm:$0xff] }
0x1f74   :  { %9641 = vmatpush3.msra.mxu0 %v8779_v35  ;;  %9685 = vmatpush3.msra.mxu1 %v8811_v53  ;;  %v8885_v35 = vld [vmem:[%s13941_s17 + $0xf68] sm:$0xff]  ;;  %v13650_v53 = vpop.f32.mrf.mxu0  ;;  %v7209_v62 = vmax.f32 %v6979_v61, 0.0 }
0x1f75   :  { %9642 = vmatprep.subr.mxu0 %v8794_v3  ;;  %9686 = vmatprep.subr.mxu1 %v8826_v52  ;;  %v8900_v3 = vld [vmem:[%s13941_s17 + $0xfe0] sm:$0xff]  ;;  %v6898_v52 = vadd.f32 %v6897_v30, %v13425_v22  ;;  %v13670_v22 = vrot.slane %v13421_v47, %v14034_v54  ;;  %v6896_v54 = vadd.f32 %v13608_v39, %v13544_v51  ;;  %v8866_v51 = vld [vmem:[%s13941_s17 + $0xed0] sm:$0xff]  ;;  %v8897_v39 = vld [vmem:[%s13941_s17 + $0xfc8] sm:$0xff] }
0x1f76   :  { %9643 = vmatpush3.msra.mxu0 %v8778_v18  ;;  %9687 = vmatpush3.msra.mxu1 %v8810_v23  ;;  %v13660_v18 = vpop.f32.mrf.mxu1  ;;  %v8852_v23 = vld [vmem:[%s13941_s17 + $0xe60] sm:$0xff]  ;;  %v8879_v30 = vld [vmem:[%s13941_s17 + $0xf38] sm:$0xff]  ;;  %v8861_v61 = vld [vmem:[%s13941_s17 + $0xea8] sm:$0xff] }
0x1f77   :  { %9644 = vmatprep.subr.mxu0 %v8793_v56  ;;  %9688 = vmatprep.subr.mxu1 %v8825_v1  ;;  %v8884_v56 = vld [vmem:[%s13941_s17 + $0xf60] sm:$0xff]  ;;  %v7207_v1 = vmax.f32 %v6890_v21, 0.0  ;;  %v8878_v21 = vld [vmem:[%s13941_s17 + $0xf30] sm:$0xff] }
0x1f78   :  { %9645 = vmatpush3.msra.mxu0 %v8777_v46  ;;  %9689 = vmatpush3.msra.mxu1 %v8809_v40  ;;  %v7057_v46 = vpop.f32.mrf.mxu0  ;;  %v13680_v40 = vrot.slane %v13421_v47, %v14035_v10  ;;  %v7146_v45 = vpop.f32.mrf.mxu1  ;;  %v8883_v10 = vld [vmem:[%s13941_s17 + $0xf58] sm:$0xff] }
0x1f79   :  { %9646 = vmatprep.subr.mxu0 %v8792_v19  ;;  %9690 = vmatprep.subr.mxu1 %v8824_v27  ;;  %v7224_v19 = vmax.f32 %v6898_v52, 0.0  ;;  %v7226_v27 = vmax.f32 %v6987_v11, 0.0  ;;  %v7058_v26 = vadd.f32 %v7057_v46, %v13670_v22  ;;  %v8844_v11 = vld [vmem:[%s13941_s17 + $0xe20] sm:$0xff]  ;;  %v8875_v46 = vld [vmem:[%s13941_s17 + $0xf18] sm:$0xff] }
0x1f7a   :  { %9647 = vmatpush3.msra.mxu0 %v8776_v43  ;;  %9691 = vmatpush3.msra.mxu1 %v8808_v34  ;;  %v8850_v43 = vld [vmem:[%s13941_s17 + $0xe50] sm:$0xff] }
0x1f7b   :  { %7901 = vmatmul.mubr.f32.vlgmr.msra.gmra.mxu0 %v7175_v63  ;;  %7986 = vmatmul.mubr.f32.vlgmr.msra.gmra.mxu1 %v7177_v8  ;;  %v8882_v34 = vld [vmem:[%s13941_s17 + $0xf50] sm:$0xff]  ;;  %v7147_v63 = vadd.f32 %v7146_v45, %v13680_v40  ;;  %v7223_v8 = vmax.f32 %v6896_v54, 0.0  ;;  %v7180_v58 = vmax.f32 %v7058_v26, 0.0  ;;  %v8889_v45 = vld [vmem:[%s13941_s17 + $0xf88] sm:$0xff] }
0x1f7c   :  { %9704 = vmatprep.subr.mxu0 %v8871_v38  ;;  %9748 = vmatprep.subr.mxu1 %v8903_v0  ;;  %v7225_v38 = vmax.f32 %v6985_v14, 0.0  ;;  %v8865_v0 = vld [vmem:[%s13941_s17 + $0xec8] sm:$0xff]  ;;  %v8842_v14 = vld [vmem:[%s13941_s17 + $0xe10] sm:$0xff] }
0x1f7d   :  { %7905 = vmatprep.mubr.f32.mxu0 %v7192_v36  ;;  %7990 = vmatprep.mubr.f32.mxu1 %v7194_v28  ;;  %v8881_v36 = vld [vmem:[%s13941_s17 + $0xf48] sm:$0xff]  ;;  %v7182_v28 = vmax.f32 %v7147_v63, 0.0 }
0x1f7e   :  { %9705 = vmatpush3.msra.mxu0 %v8855_v13  ;;  %9749 = vmatpush3.msra.mxu1 %v8887_v42  ;;  %v8896_v13 = vld [vmem:[%s13941_s17 + $0xfc0] sm:$0xff]  ;;  %v13723_v42 = vpop.f32.mrf.mxu0 }
0x1f7f   :  { %9706 = vmatprep.subr.mxu0 %v8870_v9  ;;  %9750 = vmatprep.subr.mxu1 %v8902_v16  ;;  %v13725_v9 = vpop.f32.mrf.mxu1  ;;  %v8848_v16 = vld [vmem:[%s13941_s17 + $0xe40] sm:$0xff] }
0x1f80   :  { %9707 = vmatpush3.msra.mxu0 %v8854_v17  ;;  %9751 = vmatpush3.msra.mxu1 %v8886_v32  ;;  %v8895_v17 = vld [vmem:[%s13941_s17 + $0xfb8] sm:$0xff]  ;;  %v7063_v60 = vpop.f32.mrf.mxu0 }
0x1f81   :  { %7906 = vmatmul.mubr.f32.gmra.mxu0 %v7191_v44  ;;  %7991 = vmatmul.mubr.f32.gmra.mxu1 %v7193_v12  ;;  %v8847_v32 = vld [vmem:[%s13941_s17 + $0xe38] sm:$0xff]  ;;  %v8862_v44 = vld [vmem:[%s13941_s17 + $0xeb0] sm:$0xff]  ;;  %v7064_v26 = vadd.f32 %v7063_v60, %v13670_v22 }
0x1f82   :  { %9708 = vmatprep.subr.mxu0 %v8869_v7  ;;  %9752 = vmatprep.subr.mxu1 %v8901_v41  ;;  %v8894_v12 = vld [vmem:[%s13941_s17 + $0xfb0] sm:$0xff]  ;;  %v7152_v7 = vpop.f32.mrf.mxu1 }
0x1f83   :  { %7910 = vmatprep.mubr.f32.mxu0 %v7208_v57  ;;  %7995 = vmatprep.mubr.f32.mxu1 %v7210_v20  ;;  %v8846_v41 = vld [vmem:[%s13941_s17 + $0xe30] sm:$0xff]  ;;  %v8893_v57 = vld [vmem:[%s13941_s17 + $0xfa8] sm:$0xff] }
0x1f84   :  { %9709 = vmatpush3.msra.mxu0 %v8853_v6  ;;  %9753 = vmatpush3.msra.mxu1 %v8885_v35  ;;  %v8845_v20 = vld [vmem:[%s13941_s17 + $0xe28] sm:$0xff]  ;;  %v8860_v35 = vld [vmem:[%s13941_s17 + $0xea0] sm:$0xff]  ;;  %v13777_v52 = vpop.f32.mrf.mxu1 }
0x1f85   :  { %9710 = vmatprep.subr.mxu0 %v8868_v33  ;;  %9754 = vmatprep.subr.mxu1 %v8900_v3  ;;  %v8877_v6 = vld [vmem:[%s13941_s17 + $0xf28] sm:$0xff]  ;;  %v8892_v33 = vld [vmem:[%s13941_s17 + $0xfa0] sm:$0xff]  ;;  %v13775_v3 = vpop.f32.mrf.mxu0 }
0x1f86   :  { %9711 = vmatpush3.msra.mxu0 %v8852_v23  ;;  %9755 = vmatpush3.msra.mxu1 %v8884_v56  ;;  %v8876_v23 = vld [vmem:[%s13941_s17 + $0xf20] sm:$0xff]  ;;  %v8859_v56 = vld [vmem:[%s13941_s17 + $0xe98] sm:$0xff]  ;;  %v7158_v54 = vpop.f32.mrf.mxu1 }
0x1f87   :  { %7911 = vmatmul.mubr.f32.gmra.mxu0 %v7207_v1  ;;  %7996 = vmatmul.mubr.f32.gmra.mxu1 %v7209_v62  ;;  %v8891_v1 = vld [vmem:[%s13941_s17 + $0xf98] sm:$0xff]  ;;  %v13793_v62 = vrot.slane %v13421_v47, %v14036_v4  ;;  %v8858_v4 = vld [vmem:[%s13941_s17 + $0xe90] sm:$0xff] }
0x1f88   :  { %9712 = vmatprep.subr.mxu0 %v8867_v48  ;;  %9756 = vmatprep.subr.mxu1 %v8899_v24  ;;  %v13797_v48 = vrot.slane %v13421_v47, %v14037_v25  ;;  %v8843_v24 = vld [vmem:[%s13941_s17 + $0xe18] sm:$0xff]  ;;  %v8890_v25 = vld [vmem:[%s13941_s17 + $0xf90] sm:$0xff]  ;;  %v7069_v47 = vpop.f32.mrf.mxu0  ;;  %v7162_v63 = vpop.f32.mrf.mxu1 }
0x1f89   :  { %7915 = vmatprep.mubr.f32.mxu0 %v7224_v19  ;;  %8000 = vmatprep.mubr.f32.mxu1 %v7226_v27  ;;  %v8874_v19 = vld [vmem:[%s13941_s17 + $0xf10] sm:$0xff]  ;;  %v8857_v27 = vld [vmem:[%s13941_s17 + $0xe88] sm:$0xff] }
0x1f8a   :  { %9713 = vmatpush3.msra.mxu0 %v8851_v29  ;;  %9757 = vmatpush3.msra.mxu1 %v8883_v10  ;;  %v7056_v29 = vadd.f32 %v13650_v53, %v13793_v62  ;;  %v7145_v10 = vadd.f32 %v13660_v18, %v13797_v48  ;;  %v8856_v53 = vld [vmem:[%s13941_s17 + $0xe80] sm:$0xff] }
0x1f8b   :  { %9714 = vmatprep.subr.mxu0 %v8866_v51  ;;  %9758 = vmatprep.subr.mxu1 %v8898_v31  ;;  %v8841_v51 = vld [vmem:[%s13941_s17 + $0xe08] sm:$0xff]  ;;  %v8888_v18 = vld [vmem:[%s13941_s17 + $0xf80] sm:$0xff] }
0x1f8c   :  { %9715 = vmatpush3.msra.mxu0 %v8850_v43  ;;  %9759 = vmatpush3.msra.mxu1 %v8882_v34  ;;  %v8873_v31 = vld [vmem:[%s13941_s17 + $0xf08] sm:$0xff]  ;;  %v7153_v43 = vadd.f32 %v7152_v7, %v13680_v40  ;;  %v7073_v34 = vpop.f32.mrf.mxu0 }
0x1f8d   :  { %7916 = vmatmul.mubr.f32.gmra.mxu0 %v7223_v8  ;;  %8001 = vmatmul.mubr.f32.gmra.mxu1 %v7225_v38  ;;  %v8840_v8 = vld [vmem:[%s13941_s17 + $0xe00] sm:$0xff] }
0x1f8e   :  { %9716 = vmatprep.subr.mxu0 %v8865_v0  ;;  %9760 = vmatprep.subr.mxu1 %v8897_v39  ;;  %v8872_v38 = vld [vmem:[%s13941_s17 + $0xf00] sm:$0xff]  ;;  %v7179_v0 = vmax.f32 %v7056_v29, 0.0  ;;  %v7181_v39 = vmax.f32 %v7145_v10, 0.0 }
0x1f8f   :  { %9717 = vmatpush3.msra.mxu0 %v8849_v59  ;;  %8070 = vmatprep.mubr.f32.mxu0 %v7180_v58  ;;  %v7062_v59 = vadd.f32 %v13723_v42, %v13793_v62  ;;  %v7151_v58 = vadd.f32 %v13725_v9, %v13797_v48  ;;  %v7068_v9 = vadd.f32 %v13775_v3, %v13793_v62 }
0x1f90   :  { %9761 = vmatpush3.msra.mxu1 %v8881_v36  ;;  %8155 = vmatprep.mubr.f32.mxu1 %v7182_v28  ;;  %v7196_v36 = vmax.f32 %v7064_v26, 0.0  ;;  %v7198_v28 = vmax.f32 %v7153_v43, 0.0 }
0x1f91   :  { %9718 = vmatprep.subr.mxu0 %v8864_v55  ;;  %9762 = vmatprep.subr.mxu1 %v8896_v13  ;;  %v7070_v55 = vadd.f32 %v7069_v47, %v13670_v22  ;;  %v7159_v13 = vadd.f32 %v7158_v54, %v13680_v40  ;;  %v7195_v42 = vmax.f32 %v7062_v59, 0.0  ;;  %v7211_v60 = vmax.f32 %v7068_v9, 0.0 }
0x1f92   :  { %9719 = vmatpush3.msra.mxu0 %v8848_v16  ;;  %9763 = vmatpush3.msra.mxu1 %v8880_v49  ;;  %v7075_v16 = vpop.f32.mrf.mxu0  ;;  %v7164_v49 = vpop.f32.mrf.mxu1 }
0x1f93   :  { %9720 = vmatprep.subr.mxu0 %v8863_v50  ;;  %9764 = vmatprep.subr.mxu1 %v8895_v17  ;;  %v7197_v50 = vmax.f32 %v7151_v58, 0.0  ;;  %v7157_v17 = vadd.f32 %v13777_v52, %v13797_v48 }
0x1f94   :  { %9721 = vmatpush3.msra.mxu0 %v8847_v32  ;;  %9765 = vmatpush3.msra.mxu1 %v8879_v30  ;;  %v7212_v32 = vmax.f32 %v7070_v55, 0.0  ;;  %v7214_v30 = vmax.f32 %v7159_v13, 0.0  ;;  %v8905_v13 = vld [vmem:[%s13943_s18 + $0x1] ss:$0 sm:$0xff] }
0x1f95   :  { %9722 = vmatprep.subr.mxu0 %v8862_v44  ;;  %9766 = vmatprep.subr.mxu1 %v8894_v12  ;;  %v7076_v44 = vadd.f32 %v7075_v16, %v13670_v22  ;;  %v7165_v12 = vadd.f32 %v7164_v49, %v13680_v40  ;;  %v7213_v7 = vmax.f32 %v7157_v17, 0.0 }
0x1f96   :  { %9723 = vmatpush3.msra.mxu0 %v8846_v41  ;;  %9767 = vmatpush3.msra.mxu1 %v8878_v21  ;;  %v7074_v41 = vadd.f32 %v7073_v34, %v13793_v62  ;;  %v7163_v21 = vadd.f32 %v7162_v63, %v13797_v48 }
0x1f97   :  { %9724 = vmatprep.subr.mxu0 %v8861_v61  ;;  %9768 = vmatprep.subr.mxu1 %v8893_v57  ;;  %v7228_v61 = vmax.f32 %v7076_v44, 0.0  ;;  %v7230_v57 = vmax.f32 %v7165_v12, 0.0 }
0x1f98   :  { %9725 = vmatpush3.msra.mxu0 %v8845_v20  ;;  %9769 = vmatpush3.msra.mxu1 %v8877_v6  ;;  %v7227_v20 = vmax.f32 %v7074_v41, 0.0  ;;  %v7229_v22 = vmax.f32 %v7163_v21, 0.0 }
0x1f99   :  { %9726 = vmatprep.subr.mxu0 %v8860_v35  ;;  %9770 = vmatprep.subr.mxu1 %v8892_v33 }
0x1f9a   :  { %9727 = vmatpush3.msra.mxu0 %v8844_v11  ;;  %9771 = vmatpush3.msra.mxu1 %v8876_v23 }
0x1f9b   :  { %9728 = vmatprep.subr.mxu0 %v8859_v56  ;;  %9772 = vmatprep.subr.mxu1 %v8891_v1 }
0x1f9c   :  { %9729 = vmatpush3.msra.mxu0 %v8843_v24  ;;  %9773 = vmatpush3.msra.mxu1 %v8875_v46 }
0x1f9d   :  { %9730 = vmatprep.subr.mxu0 %v8858_v4  ;;  %9774 = vmatprep.subr.mxu1 %v8890_v25 }
0x1f9e   :  { %9731 = vmatpush3.msra.mxu0 %v8842_v14  ;;  %9775 = vmatpush3.msra.mxu1 %v8874_v19 }
0x1f9f   :  { %9732 = vmatprep.subr.mxu0 %v8857_v27  ;;  %9776 = vmatprep.subr.mxu1 %v8889_v45 }
0x1fa0   :  { %9733 = vmatpush3.msra.mxu0 %v8841_v51  ;;  %9777 = vmatpush3.msra.mxu1 %v8873_v31 }
0x1fa1   :  { %9734 = vmatprep.subr.mxu0 %v8856_v53  ;;  %9778 = vmatprep.subr.mxu1 %v8888_v18 }
0x1fa2   :  { %9735 = vmatpush3.msra.mxu0 %v8840_v8  ;;  %9779 = vmatpush3.msra.mxu1 %v8872_v38 }
0x1fa3   :  { %8071 = vmatmul.mubr.f32.vlgmr.msra.gmra.mxu0 %v7179_v0  ;;  %8156 = vmatmul.mubr.f32.vlgmr.msra.gmra.mxu1 %v7181_v39 }
0x1fa4   :  { %8075 = vmatprep.mubr.f32.mxu0 %v7196_v36  ;;  %8160 = vmatprep.mubr.f32.mxu1 %v7198_v28 }
0x1fa7   :  { %8076 = vmatmul.mubr.f32.gmra.mxu0 %v7195_v42  ;;  %8161 = vmatmul.mubr.f32.gmra.mxu1 %v7197_v50 }
0x1fa8   :  { %8080 = vmatprep.mubr.f32.mxu0 %v7212_v32  ;;  %8165 = vmatprep.mubr.f32.mxu1 %v7214_v30 }
0x1fab   :  { %8081 = vmatmul.mubr.f32.gmra.mxu0 %v7211_v60  ;;  %8166 = vmatmul.mubr.f32.gmra.mxu1 %v7213_v7 }
0x1fac   :  { %8085 = vmatprep.mubr.f32.mxu0 %v7228_v61  ;;  %8170 = vmatprep.mubr.f32.mxu1 %v7230_v57 }
0x1faf   :  { %8086 = vmatmul.mubr.f32.gmra.mxu0 %v7227_v20  ;;  %8171 = vmatmul.mubr.f32.gmra.mxu1 %v7229_v22 }
0x1fec   :  { %v9472_v40 = vpop.f32.mrf.mxu0  ;;  %v9516_v6 = vpop.f32.mrf.mxu1 }
0x1fee   :  { %v9473_v35 = vpop.f32.mrf.mxu0  ;;  %v9517_v33 = vpop.f32.mrf.mxu1 }
0x1fef   :  { %v9474_v55 = vadd.f32 %v9473_v35, %v9472_v40  ;;  %v9518_v9 = vadd.f32 %v9517_v33, %v9516_v6 }
0x1ff1   :  { %v7563_v42 = vadd.f32 %v9474_v55, %v8905_v13 }
0x1ff2   :  { %v9475_v3 = vpop.f32.mrf.mxu0  ;;  %v9519_v52 = vpop.f32.mrf.mxu1 }
0x1ff3   :  { %v7648_v12 = vadd.f32 %v9518_v9, %v7563_v42 }
0x1ff4   :  { %v9476_v11 = vpop.f32.mrf.mxu0  ;;  %v9520_v23 = vpop.f32.mrf.mxu1 }
0x1ff5   :  { %v9477_v50 = vadd.f32 %v9476_v11, %v9475_v3  ;;  %v9521_v7 = vadd.f32 %v9520_v23, %v9519_v52 }
0x1ff7   :  { %v7568_v60 = vadd.f32 %v9477_v50, %v8905_v13 }
0x1ff9   :  { %v7653_v22 = vadd.f32 %v9521_v7, %v7568_v60 }
0x1ffc   :  { %v9478_v56 = vpop.f32.mrf.mxu0  ;;  %v9522_v1 = vpop.f32.mrf.mxu1 }
0x1ffe   :  { %v9479_v62 = vpop.f32.mrf.mxu0  ;;  %v9523_v48 = vpop.f32.mrf.mxu1 }
0x1fff   :  { %v9480_v32 = vadd.f32 %v9479_v62, %v9478_v56  ;;  %v9524_v55 = vadd.f32 %v9523_v48, %v9522_v1 }
0x2001   :  { %v7573_v61 = vadd.f32 %v9480_v32, %v8905_v13 }
0x2002   :  { %v9481_v24 = vpop.f32.mrf.mxu0  ;;  %v13861_v46 = vpop.f32.mrf.mxu1 }
0x2003   :  { %v7658_v11 = vadd.f32 %v9524_v55, %v7573_v61 }
0x2004   :  { %v9482_v4 = vpop.f32.mrf.mxu0  ;;  %v9526_v25 = vpop.f32.mrf.mxu1 }
0x2005   :  { %v9483_v40 = vadd.f32 %v9482_v4, %v9481_v24  ;;  %v9527_v50 = vadd.f32 %v9526_v25, %v13861_v46 }
0x2013   :  { %v9560_v47 = vpop.f32.mrf.mxu0  ;;  %v9604_v54 = vpop.f32.mrf.mxu1 }
0x2015   :  { %v9561_v14 = vpop.f32.mrf.mxu0  ;;  %v9605_v19 = vpop.f32.mrf.mxu1 }
0x2016   :  { %v9562_v17 = vadd.f32 %v9561_v14, %v9560_v47  ;;  %v9606_v35 = vadd.f32 %v9605_v19, %v9604_v54  ;;  %v7578_v47 = vadd.f32 %v9483_v40, %v8905_v13 }
0x2018   :  { %v7733_v41 = vadd.f32 %v9562_v17, %v7648_v12 }
0x2019   :  { %v9563_v27 = vpop.f32.mrf.mxu0  ;;  %v9607_v45 = vpop.f32.mrf.mxu1 }
0x201a   :  { %v7818_v6 = vadd.f32 %v9606_v35, %v7733_v41 }
0x201b   :  { %v9564_v29 = vpop.f32.mrf.mxu0  ;;  %v9608_v10 = vpop.f32.mrf.mxu1 }
0x201c   :  { %v9565_v21 = vadd.f32 %v9564_v29, %v9563_v27  ;;  %v9609_v14 = vadd.f32 %v9608_v10, %v9607_v45 }
0x201e   :  { %v7738_v33 = vadd.f32 %v9565_v21, %v7653_v22 }
0x201f   :  { %v9566_v51 = vpop.f32.mrf.mxu0  ;;  %v9610_v31 = vpop.f32.mrf.mxu1 }
0x2020   :  { %v7823_v9 = vadd.f32 %v9609_v14, %v7738_v33 }
0x2021   :  { %v9567_v26 = vpop.f32.mrf.mxu0  ;;  %v9611_v43 = vpop.f32.mrf.mxu1 }
0x2022   :  { %v9568_v3 = vadd.f32 %v9567_v26, %v9566_v51  ;;  %v9612_v54 = vadd.f32 %v9611_v43, %v9610_v31  ;;  %v7663_v51 = vadd.f32 %v9527_v50, %v7578_v47 }
0x2024   :  { %v7743_v27 = vadd.f32 %v9568_v3, %v7658_v11 }
0x2025   :  { %v9569_v53 = vpop.f32.mrf.mxu0  ;;  %v13863_v18 = vpop.f32.mrf.mxu1 }
0x2026   :  { %v7828_v13 = vadd.f32 %v9612_v54, %v7743_v27 }
0x2027   :  { %v9570_v34 = vpop.f32.mrf.mxu0  ;;  %v13865_v63 = vpop.f32.mrf.mxu1 }
0x2028   :  { %v9571_v24 = vadd.f32 %v9570_v34, %v9569_v53  ;;  %v9615_v46 = vadd.f32 %v13865_v63, %v13863_v18 }
0x202a   :  { %v7748_v10 = vadd.f32 %v9571_v24, %v7663_v51 }
0x202c   :  { %v7833_v12 = vadd.f32 %v9615_v46, %v7748_v10  ;;  %v8257_v46 = vld [vmem:[%s13946_s21 + $0x8] sm:$0xff] }
0x203b   :  { %v9648_v8 = vpop.f32.mrf.mxu0  ;;  %v9692_v38 = vpop.f32.mrf.mxu1 }
0x203d   :  { %v9649_v0 = vpop.f32.mrf.mxu0  ;;  %v9693_v39 = vpop.f32.mrf.mxu1 }
0x203e   :  { %v9650_v37 = vadd.f32 %v9649_v0, %v9648_v8  ;;  %v9694_v4 = vadd.f32 %v9693_v39, %v9692_v38 }
0x2040   :  { %v7903_v52 = vadd.f32 %v9650_v37, %v7818_v6 }
0x2041   :  { %v9651_v59 = vpop.f32.mrf.mxu0  ;;  %v9695_v58 = vpop.f32.mrf.mxu1 }
0x2042   :  { %v7988_v26 = vadd.f32 %v9694_v4, %v7903_v52 }
0x2043   :  { %v9652_v36 = vpop.f32.mrf.mxu0  ;;  %v9696_v28 = vpop.f32.mrf.mxu1 }
0x2044   :  { %v9653_v23 = vadd.f32 %v9652_v36, %v9651_v59  ;;  %v9697_v59 = vadd.f32 %v9696_v28, %v9695_v58 }
0x2046   :  { %v7908_v8 = vadd.f32 %v9653_v23, %v7823_v9 }
0x2047   :  { %v9654_v16 = vpop.f32.mrf.mxu0  ;;  %v9698_v49 = vpop.f32.mrf.mxu1 }
0x2048   :  { %v7993_v43 = vadd.f32 %v9697_v59, %v7908_v8 }
0x2049   :  { %v9655_v30 = vpop.f32.mrf.mxu0  ;;  %v9699_v44 = vpop.f32.mrf.mxu1 }
0x204a   :  { %v9656_v1 = vadd.f32 %v9655_v30, %v9654_v16  ;;  %v9700_v16 = vadd.f32 %v9699_v44, %v9698_v49 }
0x204c   :  { %v7913_v25 = vadd.f32 %v9656_v1, %v7828_v13 }
0x204d   :  { %v9657_v57 = vpop.f32.mrf.mxu0  ;;  %v13870_v20 = vpop.f32.mrf.mxu1 }
0x204e   :  { %v7998_v28 = vadd.f32 %v9700_v16, %v7913_v25  ;;  %v8256_v25 = vld [vmem:[%s13946_s21] sm:$0xff] }
0x204f   :  { %v9658_v56 = vpop.f32.mrf.mxu0  ;;  %v9702_v62 = vpop.f32.mrf.mxu1 }
0x2050   :  { %v9659_v34 = vadd.f32 %v9658_v56, %v9657_v57  ;;  %v9703_v49 = vadd.f32 %v9702_v62, %v13870_v20  ;;  %v14038_v20 = vld [vmem:[#allocation5_spill] sm:$0xff] }
0x2052   :  { %v7918_v61 = vadd.f32 %v9659_v34, %v7833_v12 }
0x2063   :  { %v9736_v29 = vpop.f32.mrf.mxu0  ;;  %v9780_v42 = vpop.f32.mrf.mxu1 }
0x2065   :  { %v9737_v48 = vpop.f32.mrf.mxu0  ;;  %v9781_v19 = vpop.f32.mrf.mxu1 }
0x2066   :  { %v9738_v0 = vadd.f32 %v9737_v48, %v9736_v29  ;;  %v9782_v17 = vadd.f32 %v9781_v19, %v9780_v42 }
0x2067   :  { %v9739_v45 = vpop.f32.mrf.mxu0  ;;  %v9783_v37 = vpop.f32.mrf.mxu1 }
0x2068   :  { %v8073_v36 = vadd.f32 %v9738_v0, %v7988_v26 }
0x2069   :  { %v9740_v53 = vpop.f32.mrf.mxu0  ;;  %v9784_v31 = vpop.f32.mrf.mxu1 }
0x206a   :  { %v8158_v38 = vadd.f32 %v9782_v17, %v8073_v36  ;;  %v9741_v39 = vadd.f32 %v9740_v53, %v9739_v45  ;;  %v9785_v7 = vadd.f32 %v9784_v31, %v9783_v37  ;;  %v8259_v36 = vld [vmem:[%s13946_s21 + $0x18] sm:$0xff]  ;;  %v8258_v17 = vld [vmem:[%s13946_s21 + $0x10] sm:$0xff]  ;;  %v28_v53 = vstv %s13947_s22 }
0x206b   :  { %v9742_v32 = vpop.f32.mrf.mxu0  ;;  %v9786_v30 = vpop.f32.mrf.mxu1  ;;  %10102 = vmatprep.subr.mxu0 %v8259_v36  ;;  %29 = vst [vmem:[#allocation2] sm:$0x1] %v28_v53 }
0x206c   :  { %v8078_v60 = vadd.f32 %v9741_v39, %v7993_v43  ;;  %v8176_v58 = vadd.f32 %v8158_v38, %v12653_v15  ;;  %v8003_v15 = vadd.f32 %v9703_v49, %v7918_v61  ;;  %10103 = vmatpush3.msra.mxu0 %v8259_v36  ;;  %v8909_v61 = vld [vmem:[%s13945_s20 + $0x1] ss:$0 sm:$0xff] }
0x206d   :  { %v9743_v41 = vpop.f32.mrf.mxu0  ;;  %v9787_v21 = vpop.f32.mrf.mxu1  ;;  %10104 = vmatprep.subr.mxu0 %v8258_v17 }
0x206e   :  { %v8163_v18 = vadd.f32 %v9785_v7, %v8078_v60  ;;  %v9744_v63 = vadd.f32 %v9743_v41, %v9742_v32  ;;  %v8184_v22 = vsel %vm269_vm2, %v8176_v58, 0.0  ;;  %v9788_v35 = vadd.f32 %v9787_v21, %v9786_v30  ;;  %10105 = vmatpush3.msra.mxu0 %v8258_v17  ;;  %v8908_v41 = vld [vmem:[%s13944_s19 + $0x1] ss:$0 sm:$0xff] }
0x206f   :  { %v9745_v40 = vpop.f32.mrf.mxu0  ;;  %v9789_v57 = vpop.f32.mrf.mxu1  ;;  %8185 = vadd.xlane.f32.xlu1 %v8184_v22  ;;  %10106 = vmatprep.subr.mxu0 %v8257_v46 }
0x2070   :  { %v8083_v44 = vadd.f32 %v9744_v63, %v7998_v28  ;;  %v8177_v55 = vadd.f32 %v8163_v18, %v12673_v5  ;;  %10107 = vmatpush3.msra.mxu0 %v8257_v46 }
0x2071   :  { %v9746_v3 = vpop.f32.mrf.mxu0  ;;  %v9790_v6 = vpop.f32.mrf.mxu1  ;;  %10108 = vmatprep.subr.mxu0 %v8256_v25 }
0x2072   :  { %v8168_v33 = vadd.f32 %v9788_v35, %v8083_v44  ;;  %v9747_v11 = vadd.f32 %v9746_v3, %v9745_v40  ;;  %v8187_v56 = vsel %vm269_vm2, %v8177_v55, 0.0  ;;  %v9791_v14 = vadd.f32 %v9790_v6, %v9789_v57  ;;  %10109 = vmatpush3.msra.mxu0 %v8256_v25 }
0x2073   :  { %8188 = vadd.xlane.f32.xlu0 %v8187_v56  ;;  %v8910_v56 = vld [vmem:[#allocation2] ss:$0 sm:$0xff] }
0x2074   :  { %v8088_v47 = vadd.f32 %v9747_v11, %v8003_v15  ;;  %v8178_v52 = vadd.f32 %v8168_v33, %v12718_v2 }
0x2076   :  { %v8173_v23 = vadd.f32 %v9791_v14, %v8088_v47  ;;  %v8190_v27 = vsel %vm269_vm2, %v8178_v52, 0.0 }
0x2077   :  { %8191 = vadd.xlane.f32.xlu1 %v8190_v27 }
0x2078   :  { %v8179_v62 = vadd.f32 %v8173_v23, %v14038_v20 }
0x207a   :  { %v8193_v5 = vsel %vm269_vm2, %v8179_v62, 0.0 }
0x207b   :  { %8194 = vadd.xlane.f32.xlu0 %v8193_v5 }
0x20f8   :  { %v8186_v29 = vpop.xlane.xlu1 %8185 }
0x20f9   :  { %v8196_v42 = vmul.f32 0.03125, %v8186_v29 }
0x20fb   :  { %v8200_v50 = vsub.f32 %v8176_v58, %v8196_v42 }
0x20fc   :  { %v8189_v9 = vpop.xlane.xlu0 %8188 }
0x20fd   :  { %v8197_v24 = vmul.f32 0.03125, %v8189_v9  ;;  %v8204_v4 = vmul.f32 %v8200_v50, %v8200_v50 }
0x20ff   :  { %v8201_v54 = vsub.f32 %v8177_v55, %v8197_v24  ;;  %v8208_v1 = vsel %vm269_vm2, %v8204_v4, 0.0 }
0x2100   :  { %8209 = vadd.xlane.f32.xlu1 %v8208_v1  ;;  %v8192_v2 = vpop.xlane.xlu1 %8191 }
0x2101   :  { %v8198_v48 = vmul.f32 0.03125, %v8192_v2  ;;  %v8205_v19 = vmul.f32 %v8201_v54, %v8201_v54 }
0x2103   :  { %v8202_v51 = vsub.f32 %v8178_v52, %v8198_v48  ;;  %v8211_v26 = vsel %vm269_vm2, %v8205_v19, 0.0 }
0x2104   :  { %8212 = vadd.xlane.f32.xlu0 %v8211_v26  ;;  %v8195_v8 = vpop.xlane.xlu0 %8194 }
0x2105   :  { %v8199_v0 = vmul.f32 0.03125, %v8195_v8  ;;  %v8206_v13 = vmul.f32 %v8202_v51, %v8202_v51 }
0x2107   :  { %v8203_v45 = vsub.f32 %v8179_v62, %v8199_v0  ;;  %v8214_v37 = vsel %vm269_vm2, %v8206_v13, 0.0 }
0x2108   :  { %8215 = vadd.xlane.f32.xlu1 %v8214_v37 }
0x2109   :  { %v8207_v10 = vmul.f32 %v8203_v45, %v8203_v45 }
0x210b   :  { %v8217_v59 = vsel %vm269_vm2, %v8207_v10, 0.0 }
0x210c   :  { %8218 = vadd.xlane.f32.xlu0 %v8217_v59 }
0x2189   :  { %v8210_v31 = vpop.xlane.xlu1 %8209 }
0x218a   :  { %v8220_v43 = vmul.f32 0.03125, %v8210_v31 }
0x218c   :  { %v8224_v34 = vadd.f32 1e-05, %v8220_v43 }
0x218d   :  { %v8213_v38 = vpop.xlane.xlu0 %8212 }
0x218e   :  { %10286 = vrsqrt.f32 %v8224_v34  ;;  %v8221_v39 = vmul.f32 0.03125, %v8213_v38 }
0x2190   :  { %v8225_v16 = vadd.f32 1e-05, %v8221_v39 }
0x2191   :  { %v8216_v32 = vpop.xlane.xlu1 %8215 }
0x2192   :  { %10288 = vrsqrt.f32 %v8225_v16  ;;  %v8222_v30 = vmul.f32 0.03125, %v8216_v32 }
0x2194   :  { %v8226_v12 = vadd.f32 1e-05, %v8222_v30 }
0x2195   :  { %v8219_v60 = vpop.xlane.xlu0 %8218 }
0x2196   :  { %10290 = vrsqrt.f32 %v8226_v12  ;;  %v8223_v7 = vmul.f32 0.03125, %v8219_v60 }
0x2198   :  { %v8227_v58 = vadd.f32 1e-05, %v8223_v7 }
0x219a   :  { %10292 = vrsqrt.f32 %v8227_v58 }
0x219b   :  { %v10287_v28 = vpop.eup %10286 }
0x219c   :  { %v8232_v21 = vmul.f32 %v10287_v28, %v8200_v50 }
0x219e   :  { %v8242_v18 = vmul.f32 %v8908_v41, %v8232_v21 }
0x219f   :  { %v10289_v63 = vpop.eup %10288 }
0x21a0   :  { %v8233_v22 = vmul.f32 %v10289_v63, %v8201_v54  ;;  %v8252_v40 = vadd.f32 %v8909_v61, %v8242_v18 }
0x21a2   :  { %v8243_v57 = vmul.f32 %v8908_v41, %v8233_v22  ;;  %10110 = vmatprep.mubr.msk.f32.mxu0 %vm269_vm2, %v8252_v40 }
0x21a3   :  { %v10291_v49 = vpop.eup %10290 }
0x21a4   :  { %v8253_v44 = vadd.f32 %v8909_v61, %v8243_v57  ;;  %v8234_v35 = vmul.f32 %v10291_v49, %v8202_v51 }
0x21a6   :  { %10111 = vmatmul.mubr.msk.f32.vlgmr.msra.gmra.mxu0 %vm269_vm2, %v8253_v44  ;;  %v8244_v55 = vmul.f32 %v8908_v41, %v8234_v35 }
0x21a7   :  { %v10293_v3 = vpop.eup %10292 }
0x21a8   :  { %v8235_v6 = vmul.f32 %v10293_v3, %v8203_v45  ;;  %v8254_v15 = vadd.f32 %v8909_v61, %v8244_v55 }
0x21aa   :  { %10113 = vmatprep.mubr.msk.f32.mxu0 %vm269_vm2, %v8254_v15  ;;  %v8245_v33 = vmul.f32 %v8908_v41, %v8235_v6 }
0x21ac   :  { %v8255_v11 = vadd.f32 %v8909_v61, %v8245_v33 }
0x21ae   :  { %10114 = vmatmul.mubr.msk.f32.gmra.mxu0 %vm269_vm2, %v8255_v11 }
0x2266   :  { %v10112_v47 = vpop.f32.mrf.mxu0 }
0x2267   :  { %v8351_v14 = vadd.f32 %v10112_v47, %v8910_v56 }
0x2268   :  { %v8345_v52 = vpop.f32.mrf.mxu0 }
0x2269   :  { %8366 = vst.msk [vmem:[%s13948_s23 + $0x8] sm:$0xff] %vm8364_vm7, %v8351_v14  ;;  %v8346_v23 = vadd.f32 %v8910_v56, %v8345_v52 }
0x226b   :  { %8365 = vst.msk [vmem:[%s13948_s23] sm:$0xff] %vm8364_vm7, %v8346_v23 }
0x226e   :  { %v10115_v27 = vpop.f32.mrf.mxu0 }
0x226f   :  { %v8361_v20 = vadd.f32 %v10115_v27, %v8910_v56 }
0x2270   :  { %v8355_v62 = vpop.f32.mrf.mxu0 }
0x2271   :  { %8368 = vst.msk [vmem:[%s13948_s23 + $0x18] sm:$0xff] %vm8364_vm7, %v8361_v20  ;;  %v8356_v5 = vadd.f32 %v8910_v56, %v8355_v62 }
0x2273   :  { %8367 = vst.msk [vmem:[%s13948_s23 + $0x10] sm:$0xff] %vm8364_vm7, %v8356_v5 }

</bundles_post_ra>
